<compile_context>
chip_gen: v5e
topology: v5e:2x2
jax: 0.10.0
libtpu: 0.0.40
codegen_flags: <defaults>
</compile_context>

<pallas_src>
import jax
import jax.numpy as jnp
from jax.experimental import pallas as pl
from jax.experimental.pallas import tpu as pltpu

# Architecture constants (from the PyTorch module).
K1, P1, C1 = 51, 25, 64
K2, P2, C2 = 25, 12, 128
K3, P3, C3 = 11, 5, 256
H_FC = 128
BN_EPS = 1e-5
K1PAD = 64            # conv1 taps padded 51 -> 64 for the MXU contraction dim


def _round8(n):
    return ((n + 7) // 8) * 8


# --------------------------- parameter preparation ---------------------------
def _fold_bn(gamma, beta, mean, var, bias):
    scale = gamma / jnp.sqrt(var + BN_EPS)
    shift = beta + (bias - mean) * scale
    return scale, shift


def prepare_params(p):
    """PyTorch-layout params -> kernel-layout (BN/bias folded, bf16 weights)."""
    (tw1, tb1, g1, be1, rm1, rv1,
     tw2, tb2, g2, be2, rm2, rv2,
     tw3, tb3, g3, be3, rm3, rv3,
     tfc1, tfb1, tfc2, tfb2) = p

    s1, t1 = _fold_bn(g1, be1, rm1, rv1, tb1)
    s2, t2 = _fold_bn(g2, be2, rm2, rv2, tb2)
    s3, t3 = _fold_bn(g3, be3, rm3, rv3, tb3)

    # conv1: (C1, 1, K1) -> (K1, C1), fold BN scale, pad taps 51 -> 64.
    w1 = jnp.transpose(tw1[:, 0, :], (1, 0)) * s1[None, :]
    w1 = jnp.pad(w1, ((0, K1PAD - K1), (0, 0))).astype(jnp.bfloat16)

    # conv2/conv3: (Cout, Cin, K) -> stacked (K*Cin, Cout), fold BN scale.
    w2 = jnp.transpose(tw2, (2, 1, 0)) * s2[None, None, :]
    w2 = w2.reshape(K2 * C1, C2).astype(jnp.bfloat16)
    w3 = jnp.transpose(tw3, (2, 1, 0)) * s3[None, None, :]
    w3 = w3.reshape(K3 * C2, C3).astype(jnp.bfloat16)

    fw1 = jnp.transpose(tfc1, (1, 0)).astype(jnp.bfloat16)       # (C3, H_FC)
    fb1 = tfb1.reshape(1, H_FC).astype(jnp.float32)
    fw2 = tfc2.reshape(1, H_FC).astype(jnp.float32)
    fb2 = tfb2.reshape(1, 1).astype(jnp.float32)

    return (w1, t1.reshape(1, C1).astype(jnp.float32),
            w2, t2.reshape(1, C2).astype(jnp.float32),
            w3, t3.reshape(1, C3).astype(jnp.float32),
            fw1, fb1, fw2, fb2)


def conv1_im2col(x):
    """x: (B, 1, L) f32 -> (B*L, K1PAD) bf16 patches, pool-major rows."""
    B, _, L = x.shape
    L1 = L // 4
    xp = jnp.pad(x[:, 0, :], ((0, 0), (P1, P1)))                 # (B, L + 2*P1)
    cols = jnp.stack([xp[:, k:k + L] for k in range(K1)], axis=-1)   # (B, L, K1)
    cols = jnp.pad(cols, ((0, 0), (0, 0), (0, K1PAD - K1)))
    # pool-major permutation: row (j*L1 + i) <- conv1 output position (4*i + j)
    idx = (4 * jnp.arange(L1)[None, :] + jnp.arange(4)[:, None]).reshape(L)
    cols = cols[:, idx, :]
    return cols.reshape(B * L, K1PAD).astype(jnp.bfloat16)


# --------------------------------- kernel ------------------------------------
def make_kernel(L, bblk):
    L1, L2 = L // 4, L // 16
    LP2R = _round8(L1 + 2 * P2)      # conv2 padded-signal rows per sample
    LP3R = _round8(L2 + 2 * P3)      # conv3 padded-signal rows per sample
    f32 = jnp.float32
    bf16 = jnp.bfloat16

    def kernel(x_ref, w1_ref, t1_ref, w2_ref, t2_ref, w3_ref, t3_ref,
               fw1_ref, fb1_ref, fw2_ref, fb2_ref, out_ref,
               pad2_ref, col2_ref, c2_ref, pad3_ref, col3_ref):
        # ---------------- conv1 + BN + ReLU + MaxPool1d(4) ----------------
        # x rows are pool-major, so conv1 is one MXU matmul per sample and the
        # max-pool is a max of four aligned row blocks.
        w1 = w1_ref[...]
        t1 = t1_ref[...]
        for b in range(bblk):
            hb = jnp.dot(x_ref[b * L:(b + 1) * L, :], w1,
                         preferred_element_type=f32)             # (L, C1)
            hb = jnp.maximum(hb + t1, 0.0)
            p1 = jnp.maximum(jnp.maximum(hb[0:L1], hb[L1:2 * L1]),
                             jnp.maximum(hb[2 * L1:3 * L1], hb[3 * L1:4 * L1]))
            o = b * LP2R
            pad2_ref[o:o + P2, :] = jnp.zeros((P2, C1), f32)
            pad2_ref[o + P2:o + P2 + L1, :] = p1
            pad2_ref[o + P2 + L1:o + LP2R, :] = (
                jnp.zeros((LP2R - P2 - L1, C1), f32))

        # ---------------- conv2 + BN + ReLU (im2col, K = 1600) -------------
        for b in range(bblk):
            o = b * LP2R
            for k in range(K2):
                col2_ref[b * L1:(b + 1) * L1, k * C1:(k + 1) * C1] = (
                    pad2_ref[o + k:o + k + L1, :].astype(bf16))
        h2 = jnp.dot(col2_ref[...], w2_ref[...], preferred_element_type=f32)
        c2_ref[...] = jnp.maximum(h2 + t2_ref[...], 0.0)         # (bblk*L1, C2)

        # ---------------- MaxPool1d(4) via stride-4 reads ------------------
        p2 = c2_ref[pl.ds(0, bblk * L2, 4), :]
        for j in range(1, 4):
            p2 = jnp.maximum(p2, c2_ref[pl.ds(j, bblk * L2, 4), :])
        for b in range(bblk):
            o = b * LP3R
            pad3_ref[o:o + P3, :] = jnp.zeros((P3, C2), f32)
            pad3_ref[o + P3:o + P3 + L2, :] = p2[b * L2:(b + 1) * L2, :]
            pad3_ref[o + P3 + L2:o + LP3R, :] = (
                jnp.zeros((LP3R - P3 - L2, C2), f32))

        # ---------------- conv3 + BN + ReLU (im2col, K = 1408) -------------
        for b in range(bblk):
            o = b * LP3R
            for k in range(K3):
                col3_ref[b * L2:(b + 1) * L2, k * C2:(k + 1) * C2] = (
                    pad3_ref[o + k:o + k + L2, :].astype(bf16))
        h3 = jnp.dot(col3_ref[...], w3_ref[...], preferred_element_type=f32)
        h3 = jnp.maximum(h3 + t3_ref[...], 0.0)                  # (bblk*L2, C3)

        # ------------- AdaptiveAvgPool1d(1) + classifier head --------------
        pooled = jnp.concatenate(
            [jnp.mean(h3[b * L2:(b + 1) * L2, :], axis=0, keepdims=True)
             for b in range(bblk)], axis=0)                      # (bblk, C3)
        z1 = jnp.dot(pooled.astype(bf16), fw1_ref[...],
                     preferred_element_type=f32)
        z1 = jnp.maximum(z1 + fb1_ref[...], 0.0)                 # (bblk, H_FC)
        # Dropout(0.5): inference identity.
        z2 = jnp.sum(z1 * fw2_ref[...], axis=-1, keepdims=True) + fb2_ref[...]
        out_ref[0] = z2

    return kernel


# -------------------------------- wrapper ------------------------------------
def spectrum_classifier(x, kparams, *, bblk=2):
    """x: (B, 1, L) float32 (PyTorch NCW).  Returns (B, 1) logits."""
    B, cin, L = x.shape
    assert cin == 1 and L % 16 == 0 and B % bblk == 0
    G = B // bblk
    L1, L2 = L // 4, L // 16
    LP2R = _round8(L1 + 2 * P2)
    LP3R = _round8(L2 + 2 * P3)

    x1 = conv1_im2col(x)                                         # (B*L, K1PAD)

    def full_spec(a):
        nd = a.ndim
        return pl.BlockSpec(a.shape, lambda g, _n=nd: (0,) * _n)

    in_specs = [pl.BlockSpec((bblk * L, K1PAD), lambda g: (g, 0))]
    in_specs += [full_spec(a) for a in kparams]
    out_spec = pl.BlockSpec((1, bblk, 1), lambda g: (g, 0, 0))

    scratch = [
        pltpu.VMEM((bblk * LP2R, C1), jnp.float32),      # conv2 zero-padded input
        pltpu.VMEM((bblk * L1, K2 * C1), jnp.bfloat16),  # conv2 im2col
        pltpu.VMEM((bblk * L1, C2), jnp.float32),        # conv2 output (pool2 src)
        pltpu.VMEM((bblk * LP3R, C2), jnp.float32),      # conv3 zero-padded input
        pltpu.VMEM((bblk * L2, K3 * C2), jnp.bfloat16),  # conv3 im2col
    ]

    out = pl.pallas_call(
        make_kernel(L, bblk),
        out_shape=jax.ShapeDtypeStruct((G, bblk, 1), jnp.float32),
        grid_spec=pltpu.PrefetchScalarGridSpec(
            num_scalar_prefetch=0,
            grid=(G,),
            in_specs=in_specs,
            out_specs=out_spec,
            scratch_shapes=scratch),
        compiler_params=pltpu.CompilerParams(
            dimension_semantics=("parallel",),
            vmem_limit_bytes=32 * 1024 * 1024),
    )(x1, *kparams)
    return out.reshape(B, 1)


# --------------------- pure-JAX reference (correctness) ----------------------
def ref_forward(x, p):
    (tw1, tb1, g1, be1, rm1, rv1,
     tw2, tb2, g2, be2, rm2, rv2,
     tw3, tb3, g3, be3, rm3, rv3,
     tfc1, tfb1, tfc2, tfb2) = p

    def conv_bn_relu(h, w, b, gamma, beta, mean, var, pad):
        y = jax.lax.conv_general_dilated(
            h, w, window_strides=(1,), padding=[(pad, pad)],
            dimension_numbers=("NCH", "OIH", "NCH"))
        y = y + b[None, :, None]
        y = (y - mean[None, :, None]) / jnp.sqrt(var[None, :, None] + BN_EPS)
        y = y * gamma[None, :, None] + beta[None, :, None]
        return jnp.maximum(y, 0.0)

    def maxpool4(h):
        B, C, L = h.shape
        return jnp.max(h.reshape(B, C, L // 4, 4), axis=-1)

    h = maxpool4(conv_bn_relu(x, tw1, tb1, g1, be1, rm1, rv1, P1))
    h = maxpool4(conv_bn_relu(h, tw2, tb2, g2, be2, rm2, rv2, P2))
    h = conv_bn_relu(h, tw3, tb3, g3, be3, rm3, rv3, P3)
    h = jnp.mean(h, axis=-1)                            # AdaptiveAvgPool1d(1) + flatten
    h = jnp.maximum(h @ tfc1.T + tfb1[None, :], 0.0)    # Linear(256,128) + ReLU
    return h @ tfc2.T + tfb2[None, :]                   # Dropout(eval) + Linear(128,1)


if __name__ == "__main__":
    B, L = 4, 256
    key = jax.random.PRNGKey(0)
    ks = jax.random.split(key, 23)

    def nrm(k, shape, std):
        return std * jax.random.normal(k, shape, jnp.float32)

    # Conv/FC weights (fan-in scaling keeps activations O(1)); non-trivial BN
    # running stats and biases exercise the folded scale/shift paths.
    tw1 = nrm(ks[0], (C1, 1, K1), (2.0 / K1) ** 0.5)
    tb1 = nrm(ks[1], (C1,), 0.05)
    g1 = 1.0 + nrm(ks[2], (C1,), 0.2)
    be1 = nrm(ks[3], (C1,), 0.1)
    rm1 = nrm(ks[4], (C1,), 0.1)
    rv1 = jax.random.uniform(ks[5], (C1,), jnp.float32, 0.5, 1.5)

    tw2 = nrm(ks[6], (C2, C1, K2), (2.0 / (C1 * K2)) ** 0.5)
    tb2 = nrm(ks[7], (C2,), 0.05)
    g2 = 1.0 + nrm(ks[8], (C2,), 0.2)
    be2 = nrm(ks[9], (C2,), 0.1)
    rm2 = nrm(ks[10], (C2,), 0.1)
    rv2 = jax.random.uniform(ks[11], (C2,), jnp.float32, 0.5, 1.5)

    tw3 = nrm(ks[12], (C3, C2, K3), (2.0 / (C2 * K3)) ** 0.5)
    tb3 = nrm(ks[13], (C3,), 0.05)
    g3 = 1.0 + nrm(ks[14], (C3,), 0.2)
    be3 = nrm(ks[15], (C3,), 0.1)
    rm3 = nrm(ks[16], (C3,), 0.1)
    rv3 = jax.random.uniform(ks[17], (C3,), jnp.float32, 0.5, 1.5)

    tfc1 = nrm(ks[18], (H_FC, C3), (2.0 / (C3 + H_FC)) ** 0.5)
    tfb1 = nrm(ks[19], (H_FC,), 0.05)
    tfc2 = nrm(ks[20], (1, H_FC), (2.0 / (H_FC + 1)) ** 0.5)
    tfb2 = nrm(ks[21], (1,), 0.05)

    x = jax.random.normal(ks[22], (B, 1, L), jnp.float32)

    tparams = (tw1, tb1, g1, be1, rm1, rv1,
               tw2, tb2, g2, be2, rm2, rv2,
               tw3, tb3, g3, be3, rm3, rv3,
               tfc1, tfb1, tfc2, tfb2)

    kparams = prepare_params(tparams)
    out = jax.block_until_ready(spectrum_classifier(x, kparams, bblk=2))
    ref = ref_forward(x, tparams)

    assert out.shape == (B, 1)
    # bf16 matmul operands (with f32 accumulation) bound the achievable precision.
    assert jnp.allclose(out, ref, atol=5e-2, rtol=5e-2), (out, ref)
    print("KERNEL_OK")
</pallas_src>

<mosaic_0001>
module attributes {stable_mosaic.version = 11 : i64} {
  func.func @kernel(%arg0: i32, %arg1: memref<512x64xbf16, #tpu.memory_space<vmem>>, %arg2: memref<64x64xbf16, #tpu.memory_space<vmem>>, %arg3: memref<1x64xf32, #tpu.memory_space<vmem>>, %arg4: memref<1600x128xbf16, #tpu.memory_space<vmem>>, %arg5: memref<1x128xf32, #tpu.memory_space<vmem>>, %arg6: memref<1408x256xbf16, #tpu.memory_space<vmem>>, %arg7: memref<1x256xf32, #tpu.memory_space<vmem>>, %arg8: memref<256x128xbf16, #tpu.memory_space<vmem>>, %arg9: memref<1x128xf32, #tpu.memory_space<vmem>>, %arg10: memref<1x128xf32, #tpu.memory_space<vmem>>, %arg11: memref<1x1xf32, #tpu.memory_space<vmem>>, %arg12: memref<1x2x1xf32, #tpu.memory_space<vmem>>, %arg13: memref<176x64xf32, #tpu.memory_space<vmem>>, %arg14: memref<128x1600xbf16, #tpu.memory_space<vmem>>, %arg15: memref<128x128xf32, #tpu.memory_space<vmem>>, %arg16: memref<64x128xf32, #tpu.memory_space<vmem>>, %arg17: memref<32x1408xbf16, #tpu.memory_space<vmem>>) attributes {dimension_semantics = [#tpu.dimension_semantics<parallel>], iteration_bounds = array<i64: 2>, scalar_prefetch = 0 : i64, scratch_operands = 5 : i64, tpu.core_type = #tpu.core_type<tc>, window_params = [{transform_indices = @transform_0, window_bounds = array<i64: 512, 64>}, {pipeline_mode = #tpu.pipeline_mode<synchronous>, transform_indices = @transform_1, window_bounds = array<i64: 64, 64>}, {pipeline_mode = #tpu.pipeline_mode<synchronous>, transform_indices = @transform_2, window_bounds = array<i64: 1, 64>}, {pipeline_mode = #tpu.pipeline_mode<synchronous>, transform_indices = @transform_3, window_bounds = array<i64: 1600, 128>}, {pipeline_mode = #tpu.pipeline_mode<synchronous>, transform_indices = @transform_4, window_bounds = array<i64: 1, 128>}, {pipeline_mode = #tpu.pipeline_mode<synchronous>, transform_indices = @transform_5, window_bounds = array<i64: 1408, 256>}, {pipeline_mode = #tpu.pipeline_mode<synchronous>, transform_indices = @transform_6, window_bounds = array<i64: 1, 256>}, {pipeline_mode = #tpu.pipeline_mode<synchronous>, transform_indices = @transform_7, window_bounds = array<i64: 256, 128>}, {pipeline_mode = #tpu.pipeline_mode<synchronous>, transform_indices = @transform_8, window_bounds = array<i64: 1, 128>}, {pipeline_mode = #tpu.pipeline_mode<synchronous>, transform_indices = @transform_9, window_bounds = array<i64: 1, 128>}, {pipeline_mode = #tpu.pipeline_mode<synchronous>, transform_indices = @transform_10, window_bounds = array<i64: 1, 1>}, {transform_indices = @transform_11, window_bounds = array<i64: 1, 2, 1>}]} {
    %c0 = arith.constant 0 : index
    %c0_0 = arith.constant 0 : index
    %0 = vector.load %arg2[%c0, %c0_0] : memref<64x64xbf16, #tpu.memory_space<vmem>>, vector<64x64xbf16>
    %c0_1 = arith.constant 0 : index
    %c0_2 = arith.constant 0 : index
    %1 = vector.load %arg3[%c0_1, %c0_2] : memref<1x64xf32, #tpu.memory_space<vmem>>, vector<1x64xf32>
    %c0_3 = arith.constant 0 : index
    %c0_4 = arith.constant 0 : index
    %2 = vector.load %arg1[%c0_3, %c0_4] : memref<512x64xbf16, #tpu.memory_space<vmem>>, vector<256x64xbf16>
    %cst = arith.constant dense<0.000000e+00> : vector<256x64xf32>
    %3 = tpu.matmul %2, %0, %cst {dimension_numbers = #tpu.dot_dimension_numbers<[1], [0], [0], [1], [0, 0, 1, 1], [], []>} : vector<256x64xbf16>, vector<64x64xbf16>, vector<256x64xf32> -> vector<256x64xf32>
    %4 = vector.broadcast %1 : vector<1x64xf32> to vector<256x64xf32>
    %5 = arith.addf %3, %4 : vector<256x64xf32>
    %cst_5 = arith.constant 0.000000e+00 : f32
    %6 = vector.broadcast %cst_5 : f32 to vector<256x64xf32>
    %7 = arith.maximumf %5, %6 : vector<256x64xf32>
    %8 = vector.extract_strided_slice %7 {offsets = [0, 0], sizes = [64, 64], strides = [1, 1]} : vector<256x64xf32> to vector<64x64xf32>
    %9 = vector.extract_strided_slice %7 {offsets = [64, 0], sizes = [64, 64], strides = [1, 1]} : vector<256x64xf32> to vector<64x64xf32>
    %10 = arith.maximumf %8, %9 : vector<64x64xf32>
    %11 = vector.extract_strided_slice %7 {offsets = [128, 0], sizes = [64, 64], strides = [1, 1]} : vector<256x64xf32> to vector<64x64xf32>
    %12 = vector.extract_strided_slice %7 {offsets = [192, 0], sizes = [64, 64], strides = [1, 1]} : vector<256x64xf32> to vector<64x64xf32>
    %13 = arith.maximumf %11, %12 : vector<64x64xf32>
    %14 = arith.maximumf %10, %13 : vector<64x64xf32>
    %cst_6 = arith.constant 0.000000e+00 : f32
    %15 = vector.broadcast %cst_6 : f32 to vector<12x64xf32>
    %c0_7 = arith.constant 0 : index
    %c0_8 = arith.constant 0 : index
    %16 = vector.load %arg13[%c0_7, %c0_8] : memref<176x64xf32, #tpu.memory_space<vmem>>, vector<12x64xf32>
    tpu.vector_store %arg13[%c0_7, %c0_8], %15 {strides = array<i32>} : memref<176x64xf32, #tpu.memory_space<vmem>>, vector<12x64xf32>,
    %c12 = arith.constant 12 : index
    %c0_9 = arith.constant 0 : index
    %17 = vector.load %arg13[%c12, %c0_9] : memref<176x64xf32, #tpu.memory_space<vmem>>, vector<64x64xf32>
    tpu.vector_store %arg13[%c12, %c0_9], %14 {strides = array<i32>} : memref<176x64xf32, #tpu.memory_space<vmem>>, vector<64x64xf32>,
    %cst_10 = arith.constant 0.000000e+00 : f32
    %18 = vector.broadcast %cst_10 : f32 to vector<12x64xf32>
    %c76 = arith.constant 76 : index
    %c0_11 = arith.constant 0 : index
    %19 = vector.load %arg13[%c76, %c0_11] : memref<176x64xf32, #tpu.memory_space<vmem>>, vector<12x64xf32>
    tpu.vector_store %arg13[%c76, %c0_11], %18 {strides = array<i32>} : memref<176x64xf32, #tpu.memory_space<vmem>>, vector<12x64xf32>,
    %c256 = arith.constant 256 : index
    %c0_12 = arith.constant 0 : index
    %20 = vector.load %arg1[%c256, %c0_12] : memref<512x64xbf16, #tpu.memory_space<vmem>>, vector<256x64xbf16>
    %cst_13 = arith.constant dense<0.000000e+00> : vector<256x64xf32>
    %21 = tpu.matmul %20, %0, %cst_13 {dimension_numbers = #tpu.dot_dimension_numbers<[1], [0], [0], [1], [0, 0, 1, 1], [], []>} : vector<256x64xbf16>, vector<64x64xbf16>, vector<256x64xf32> -> vector<256x64xf32>
    %22 = vector.broadcast %1 : vector<1x64xf32> to vector<256x64xf32>
    %23 = arith.addf %21, %22 : vector<256x64xf32>
    %cst_14 = arith.constant 0.000000e+00 : f32
    %24 = vector.broadcast %cst_14 : f32 to vector<256x64xf32>
    %25 = arith.maximumf %23, %24 : vector<256x64xf32>
    %26 = vector.extract_strided_slice %25 {offsets = [0, 0], sizes = [64, 64], strides = [1, 1]} : vector<256x64xf32> to vector<64x64xf32>
    %27 = vector.extract_strided_slice %25 {offsets = [64, 0], sizes = [64, 64], strides = [1, 1]} : vector<256x64xf32> to vector<64x64xf32>
    %28 = arith.maximumf %26, %27 : vector<64x64xf32>
    %29 = vector.extract_strided_slice %25 {offsets = [128, 0], sizes = [64, 64], strides = [1, 1]} : vector<256x64xf32> to vector<64x64xf32>
    %30 = vector.extract_strided_slice %25 {offsets = [192, 0], sizes = [64, 64], strides = [1, 1]} : vector<256x64xf32> to vector<64x64xf32>
    %31 = arith.maximumf %29, %30 : vector<64x64xf32>
    %32 = arith.maximumf %28, %31 : vector<64x64xf32>
    %cst_15 = arith.constant 0.000000e+00 : f32
    %33 = vector.broadcast %cst_15 : f32 to vector<12x64xf32>
    %c88 = arith.constant 88 : index
    %c0_16 = arith.constant 0 : index
    %34 = vector.load %arg13[%c88, %c0_16] : memref<176x64xf32, #tpu.memory_space<vmem>>, vector<12x64xf32>
    tpu.vector_store %arg13[%c88, %c0_16], %33 {strides = array<i32>} : memref<176x64xf32, #tpu.memory_space<vmem>>, vector<12x64xf32>,
    %c100 = arith.constant 100 : index
    %c0_17 = arith.constant 0 : index
    %35 = vector.load %arg13[%c100, %c0_17] : memref<176x64xf32, #tpu.memory_space<vmem>>, vector<64x64xf32>
    tpu.vector_store %arg13[%c100, %c0_17], %32 {strides = array<i32>} : memref<176x64xf32, #tpu.memory_space<vmem>>, vector<64x64xf32>,
    %cst_18 = arith.constant 0.000000e+00 : f32
    %36 = vector.broadcast %cst_18 : f32 to vector<12x64xf32>
    %c164 = arith.constant 164 : index
    %c0_19 = arith.constant 0 : index
    %37 = vector.load %arg13[%c164, %c0_19] : memref<176x64xf32, #tpu.memory_space<vmem>>, vector<12x64xf32>
    tpu.vector_store %arg13[%c164, %c0_19], %36 {strides = array<i32>} : memref<176x64xf32, #tpu.memory_space<vmem>>, vector<12x64xf32>,
    %c0_20 = arith.constant 0 : index
    %c0_21 = arith.constant 0 : index
    %38 = vector.load %arg13[%c0_20, %c0_21] : memref<176x64xf32, #tpu.memory_space<vmem>>, vector<64x64xf32>
    %39 = arith.truncf %38 : vector<64x64xf32> to vector<64x64xbf16>
    %c0_22 = arith.constant 0 : index
    %c0_23 = arith.constant 0 : index
    %40 = vector.load %arg14[%c0_22, %c0_23] : memref<128x1600xbf16, #tpu.memory_space<vmem>>, vector<64x64xbf16>
    tpu.vector_store %arg14[%c0_22, %c0_23], %39 {strides = array<i32>} : memref<128x1600xbf16, #tpu.memory_space<vmem>>, vector<64x64xbf16>,
    %c1 = arith.constant 1 : index
    %c0_24 = arith.constant 0 : index
    %41 = vector.load %arg13[%c1, %c0_24] : memref<176x64xf32, #tpu.memory_space<vmem>>, vector<64x64xf32>
    %42 = arith.truncf %41 : vector<64x64xf32> to vector<64x64xbf16>
    %c0_25 = arith.constant 0 : index
    %c64 = arith.constant 64 : index
    %43 = vector.load %arg14[%c0_25, %c64] : memref<128x1600xbf16, #tpu.memory_space<vmem>>, vector<64x64xbf16>
    tpu.vector_store %arg14[%c0_25, %c64], %42 {strides = array<i32>} : memref<128x1600xbf16, #tpu.memory_space<vmem>>, vector<64x64xbf16>,
    %c2 = arith.constant 2 : index
    %c0_26 = arith.constant 0 : index
    %44 = vector.load %arg13[%c2, %c0_26] : memref<176x64xf32, #tpu.memory_space<vmem>>, vector<64x64xf32>
    %45 = arith.truncf %44 : vector<64x64xf32> to vector<64x64xbf16>
    %c0_27 = arith.constant 0 : index
    %c128 = arith.constant 128 : index
    %46 = vector.load %arg14[%c0_27, %c128] : memref<128x1600xbf16, #tpu.memory_space<vmem>>, vector<64x64xbf16>
    tpu.vector_store %arg14[%c0_27, %c128], %45 {strides = array<i32>} : memref<128x1600xbf16, #tpu.memory_space<vmem>>, vector<64x64xbf16>,
    %c3 = arith.constant 3 : index
    %c0_28 = arith.constant 0 : index
    %47 = vector.load %arg13[%c3, %c0_28] : memref<176x64xf32, #tpu.memory_space<vmem>>, vector<64x64xf32>
    %48 = arith.truncf %47 : vector<64x64xf32> to vector<64x64xbf16>
    %c0_29 = arith.constant 0 : index
    %c192 = arith.constant 192 : index
    %49 = vector.load %arg14[%c0_29, %c192] : memref<128x1600xbf16, #tpu.memory_space<vmem>>, vector<64x64xbf16>
    tpu.vector_store %arg14[%c0_29, %c192], %48 {strides = array<i32>} : memref<128x1600xbf16, #tpu.memory_space<vmem>>, vector<64x64xbf16>,
    %c4 = arith.constant 4 : index
    %c0_30 = arith.constant 0 : index
    %50 = vector.load %arg13[%c4, %c0_30] : memref<176x64xf32, #tpu.memory_space<vmem>>, vector<64x64xf32>
    %51 = arith.truncf %50 : vector<64x64xf32> to vector<64x64xbf16>
    %c0_31 = arith.constant 0 : index
    %c256_32 = arith.constant 256 : index
    %52 = vector.load %arg14[%c0_31, %c256_32] : memref<128x1600xbf16, #tpu.memory_space<vmem>>, vector<64x64xbf16>
    tpu.vector_store %arg14[%c0_31, %c256_32], %51 {strides = array<i32>} : memref<128x1600xbf16, #tpu.memory_space<vmem>>, vector<64x64xbf16>,
    %c5 = arith.constant 5 : index
    %c0_33 = arith.constant 0 : index
    %53 = vector.load %arg13[%c5, %c0_33] : memref<176x64xf32, #tpu.memory_space<vmem>>, vector<64x64xf32>
    %54 = arith.truncf %53 : vector<64x64xf32> to vector<64x64xbf16>
    %c0_34 = arith.constant 0 : index
    %c320 = arith.constant 320 : index
    %55 = vector.load %arg14[%c0_34, %c320] : memref<128x1600xbf16, #tpu.memory_space<vmem>>, vector<64x64xbf16>
    tpu.vector_store %arg14[%c0_34, %c320], %54 {strides = array<i32>} : memref<128x1600xbf16, #tpu.memory_space<vmem>>, vector<64x64xbf16>,
    %c6 = arith.constant 6 : index
    %c0_35 = arith.constant 0 : index
    %56 = vector.load %arg13[%c6, %c0_35] : memref<176x64xf32, #tpu.memory_space<vmem>>, vector<64x64xf32>
    %57 = arith.truncf %56 : vector<64x64xf32> to vector<64x64xbf16>
    %c0_36 = arith.constant 0 : index
    %c384 = arith.constant 384 : index
    %58 = vector.load %arg14[%c0_36, %c384] : memref<128x1600xbf16, #tpu.memory_space<vmem>>, vector<64x64xbf16>
    tpu.vector_store %arg14[%c0_36, %c384], %57 {strides = array<i32>} : memref<128x1600xbf16, #tpu.memory_space<vmem>>, vector<64x64xbf16>,
    %c7 = arith.constant 7 : index
    %c0_37 = arith.constant 0 : index
    %59 = vector.load %arg13[%c7, %c0_37] : memref<176x64xf32, #tpu.memory_space<vmem>>, vector<64x64xf32>
    %60 = arith.truncf %59 : vector<64x64xf32> to vector<64x64xbf16>
    %c0_38 = arith.constant 0 : index
    %c448 = arith.constant 448 : index
    %61 = vector.load %arg14[%c0_38, %c448] : memref<128x1600xbf16, #tpu.memory_space<vmem>>, vector<64x64xbf16>
    tpu.vector_store %arg14[%c0_38, %c448], %60 {strides = array<i32>} : memref<128x1600xbf16, #tpu.memory_space<vmem>>, vector<64x64xbf16>,
    %c8 = arith.constant 8 : index
    %c0_39 = arith.constant 0 : index
    %62 = vector.load %arg13[%c8, %c0_39] : memref<176x64xf32, #tpu.memory_space<vmem>>, vector<64x64xf32>
    %63 = arith.truncf %62 : vector<64x64xf32> to vector<64x64xbf16>
    %c0_40 = arith.constant 0 : index
    %c512 = arith.constant 512 : index
    %64 = vector.load %arg14[%c0_40, %c512] : memref<128x1600xbf16, #tpu.memory_space<vmem>>, vector<64x64xbf16>
    tpu.vector_store %arg14[%c0_40, %c512], %63 {strides = array<i32>} : memref<128x1600xbf16, #tpu.memory_space<vmem>>, vector<64x64xbf16>,
    %c9 = arith.constant 9 : index
    %c0_41 = arith.constant 0 : index
    %65 = vector.load %arg13[%c9, %c0_41] : memref<176x64xf32, #tpu.memory_space<vmem>>, vector<64x64xf32>
    %66 = arith.truncf %65 : vector<64x64xf32> to vector<64x64xbf16>
    %c0_42 = arith.constant 0 : index
    %c576 = arith.constant 576 : index
    %67 = vector.load %arg14[%c0_42, %c576] : memref<128x1600xbf16, #tpu.memory_space<vmem>>, vector<64x64xbf16>
    tpu.vector_store %arg14[%c0_42, %c576], %66 {strides = array<i32>} : memref<128x1600xbf16, #tpu.memory_space<vmem>>, vector<64x64xbf16>,
    %c10 = arith.constant 10 : index
    %c0_43 = arith.constant 0 : index
    %68 = vector.load %arg13[%c10, %c0_43] : memref<176x64xf32, #tpu.memory_space<vmem>>, vector<64x64xf32>
    %69 = arith.truncf %68 : vector<64x64xf32> to vector<64x64xbf16>
    %c0_44 = arith.constant 0 : index
    %c640 = arith.constant 640 : index
    %70 = vector.load %arg14[%c0_44, %c640] : memref<128x1600xbf16, #tpu.memory_space<vmem>>, vector<64x64xbf16>
    tpu.vector_store %arg14[%c0_44, %c640], %69 {strides = array<i32>} : memref<128x1600xbf16, #tpu.memory_space<vmem>>, vector<64x64xbf16>,
    %c11 = arith.constant 11 : index
    %c0_45 = arith.constant 0 : index
    %71 = vector.load %arg13[%c11, %c0_45] : memref<176x64xf32, #tpu.memory_space<vmem>>, vector<64x64xf32>
    %72 = arith.truncf %71 : vector<64x64xf32> to vector<64x64xbf16>
    %c0_46 = arith.constant 0 : index
    %c704 = arith.constant 704 : index
    %73 = vector.load %arg14[%c0_46, %c704] : memref<128x1600xbf16, #tpu.memory_space<vmem>>, vector<64x64xbf16>
    tpu.vector_store %arg14[%c0_46, %c704], %72 {strides = array<i32>} : memref<128x1600xbf16, #tpu.memory_space<vmem>>, vector<64x64xbf16>,
    %c12_47 = arith.constant 12 : index
    %c0_48 = arith.constant 0 : index
    %74 = vector.load %arg13[%c12_47, %c0_48] : memref<176x64xf32, #tpu.memory_space<vmem>>, vector<64x64xf32>
    %75 = arith.truncf %74 : vector<64x64xf32> to vector<64x64xbf16>
    %c0_49 = arith.constant 0 : index
    %c768 = arith.constant 768 : index
    %76 = vector.load %arg14[%c0_49, %c768] : memref<128x1600xbf16, #tpu.memory_space<vmem>>, vector<64x64xbf16>
    tpu.vector_store %arg14[%c0_49, %c768], %75 {strides = array<i32>} : memref<128x1600xbf16, #tpu.memory_space<vmem>>, vector<64x64xbf16>,
    %c13 = arith.constant 13 : index
    %c0_50 = arith.constant 0 : index
    %77 = vector.load %arg13[%c13, %c0_50] : memref<176x64xf32, #tpu.memory_space<vmem>>, vector<64x64xf32>
    %78 = arith.truncf %77 : vector<64x64xf32> to vector<64x64xbf16>
    %c0_51 = arith.constant 0 : index
    %c832 = arith.constant 832 : index
    %79 = vector.load %arg14[%c0_51, %c832] : memref<128x1600xbf16, #tpu.memory_space<vmem>>, vector<64x64xbf16>
    tpu.vector_store %arg14[%c0_51, %c832], %78 {strides = array<i32>} : memref<128x1600xbf16, #tpu.memory_space<vmem>>, vector<64x64xbf16>,
    %c14 = arith.constant 14 : index
    %c0_52 = arith.constant 0 : index
    %80 = vector.load %arg13[%c14, %c0_52] : memref<176x64xf32, #tpu.memory_space<vmem>>, vector<64x64xf32>
    %81 = arith.truncf %80 : vector<64x64xf32> to vector<64x64xbf16>
    %c0_53 = arith.constant 0 : index
    %c896 = arith.constant 896 : index
    %82 = vector.load %arg14[%c0_53, %c896] : memref<128x1600xbf16, #tpu.memory_space<vmem>>, vector<64x64xbf16>
    tpu.vector_store %arg14[%c0_53, %c896], %81 {strides = array<i32>} : memref<128x1600xbf16, #tpu.memory_space<vmem>>, vector<64x64xbf16>,
    %c15 = arith.constant 15 : index
    %c0_54 = arith.constant 0 : index
    %83 = vector.load %arg13[%c15, %c0_54] : memref<176x64xf32, #tpu.memory_space<vmem>>, vector<64x64xf32>
    %84 = arith.truncf %83 : vector<64x64xf32> to vector<64x64xbf16>
    %c0_55 = arith.constant 0 : index
    %c960 = arith.constant 960 : index
    %85 = vector.load %arg14[%c0_55, %c960] : memref<128x1600xbf16, #tpu.memory_space<vmem>>, vector<64x64xbf16>
    tpu.vector_store %arg14[%c0_55, %c960], %84 {strides = array<i32>} : memref<128x1600xbf16, #tpu.memory_space<vmem>>, vector<64x64xbf16>,
    %c16 = arith.constant 16 : index
    %c0_56 = arith.constant 0 : index
    %86 = vector.load %arg13[%c16, %c0_56] : memref<176x64xf32, #tpu.memory_space<vmem>>, vector<64x64xf32>
    %87 = arith.truncf %86 : vector<64x64xf32> to vector<64x64xbf16>
    %c0_57 = arith.constant 0 : index
    %c1024 = arith.constant 1024 : index
    %88 = vector.load %arg14[%c0_57, %c1024] : memref<128x1600xbf16, #tpu.memory_space<vmem>>, vector<64x64xbf16>
    tpu.vector_store %arg14[%c0_57, %c1024], %87 {strides = array<i32>} : memref<128x1600xbf16, #tpu.memory_space<vmem>>, vector<64x64xbf16>,
    %c17 = arith.constant 17 : index
    %c0_58 = arith.constant 0 : index
    %89 = vector.load %arg13[%c17, %c0_58] : memref<176x64xf32, #tpu.memory_space<vmem>>, vector<64x64xf32>
    %90 = arith.truncf %89 : vector<64x64xf32> to vector<64x64xbf16>
    %c0_59 = arith.constant 0 : index
    %c1088 = arith.constant 1088 : index
    %91 = vector.load %arg14[%c0_59, %c1088] : memref<128x1600xbf16, #tpu.memory_space<vmem>>, vector<64x64xbf16>
    tpu.vector_store %arg14[%c0_59, %c1088], %90 {strides = array<i32>} : memref<128x1600xbf16, #tpu.memory_space<vmem>>, vector<64x64xbf16>,
    %c18 = arith.constant 18 : index
    %c0_60 = arith.constant 0 : index
    %92 = vector.load %arg13[%c18, %c0_60] : memref<176x64xf32, #tpu.memory_space<vmem>>, vector<64x64xf32>
    %93 = arith.truncf %92 : vector<64x64xf32> to vector<64x64xbf16>
    %c0_61 = arith.constant 0 : index
    %c1152 = arith.constant 1152 : index
    %94 = vector.load %arg14[%c0_61, %c1152] : memref<128x1600xbf16, #tpu.memory_space<vmem>>, vector<64x64xbf16>
    tpu.vector_store %arg14[%c0_61, %c1152], %93 {strides = array<i32>} : memref<128x1600xbf16, #tpu.memory_space<vmem>>, vector<64x64xbf16>,
    %c19 = arith.constant 19 : index
    %c0_62 = arith.constant 0 : index
    %95 = vector.load %arg13[%c19, %c0_62] : memref<176x64xf32, #tpu.memory_space<vmem>>, vector<64x64xf32>
    %96 = arith.truncf %95 : vector<64x64xf32> to vector<64x64xbf16>
    %c0_63 = arith.constant 0 : index
    %c1216 = arith.constant 1216 : index
    %97 = vector.load %arg14[%c0_63, %c1216] : memref<128x1600xbf16, #tpu.memory_space<vmem>>, vector<64x64xbf16>
    tpu.vector_store %arg14[%c0_63, %c1216], %96 {strides = array<i32>} : memref<128x1600xbf16, #tpu.memory_space<vmem>>, vector<64x64xbf16>,
    %c20 = arith.constant 20 : index
    %c0_64 = arith.constant 0 : index
    %98 = vector.load %arg13[%c20, %c0_64] : memref<176x64xf32, #tpu.memory_space<vmem>>, vector<64x64xf32>
    %99 = arith.truncf %98 : vector<64x64xf32> to vector<64x64xbf16>
    %c0_65 = arith.constant 0 : index
    %c1280 = arith.constant 1280 : index
    %100 = vector.load %arg14[%c0_65, %c1280] : memref<128x1600xbf16, #tpu.memory_space<vmem>>, vector<64x64xbf16>
    tpu.vector_store %arg14[%c0_65, %c1280], %99 {strides = array<i32>} : memref<128x1600xbf16, #tpu.memory_space<vmem>>, vector<64x64xbf16>,
    %c21 = arith.constant 21 : index
    %c0_66 = arith.constant 0 : index
    %101 = vector.load %arg13[%c21, %c0_66] : memref<176x64xf32, #tpu.memory_space<vmem>>, vector<64x64xf32>
    %102 = arith.truncf %101 : vector<64x64xf32> to vector<64x64xbf16>
    %c0_67 = arith.constant 0 : index
    %c1344 = arith.constant 1344 : index
    %103 = vector.load %arg14[%c0_67, %c1344] : memref<128x1600xbf16, #tpu.memory_space<vmem>>, vector<64x64xbf16>
    tpu.vector_store %arg14[%c0_67, %c1344], %102 {strides = array<i32>} : memref<128x1600xbf16, #tpu.memory_space<vmem>>, vector<64x64xbf16>,
    %c22 = arith.constant 22 : index
    %c0_68 = arith.constant 0 : index
    %104 = vector.load %arg13[%c22, %c0_68] : memref<176x64xf32, #tpu.memory_space<vmem>>, vector<64x64xf32>
    %105 = arith.truncf %104 : vector<64x64xf32> to vector<64x64xbf16>
    %c0_69 = arith.constant 0 : index
    %c1408 = arith.constant 1408 : index
    %106 = vector.load %arg14[%c0_69, %c1408] : memref<128x1600xbf16, #tpu.memory_space<vmem>>, vector<64x64xbf16>
    tpu.vector_store %arg14[%c0_69, %c1408], %105 {strides = array<i32>} : memref<128x1600xbf16, #tpu.memory_space<vmem>>, vector<64x64xbf16>,
    %c23 = arith.constant 23 : index
    %c0_70 = arith.constant 0 : index
    %107 = vector.load %arg13[%c23, %c0_70] : memref<176x64xf32, #tpu.memory_space<vmem>>, vector<64x64xf32>
    %108 = arith.truncf %107 : vector<64x64xf32> to vector<64x64xbf16>
    %c0_71 = arith.constant 0 : index
    %c1472 = arith.constant 1472 : index
    %109 = vector.load %arg14[%c0_71, %c1472] : memref<128x1600xbf16, #tpu.memory_space<vmem>>, vector<64x64xbf16>
    tpu.vector_store %arg14[%c0_71, %c1472], %108 {strides = array<i32>} : memref<128x1600xbf16, #tpu.memory_space<vmem>>, vector<64x64xbf16>,
    %c24 = arith.constant 24 : index
    %c0_72 = arith.constant 0 : index
    %110 = vector.load %arg13[%c24, %c0_72] : memref<176x64xf32, #tpu.memory_space<vmem>>, vector<64x64xf32>
    %111 = arith.truncf %110 : vector<64x64xf32> to vector<64x64xbf16>
    %c0_73 = arith.constant 0 : index
    %c1536 = arith.constant 1536 : index
    %112 = vector.load %arg14[%c0_73, %c1536] : memref<128x1600xbf16, #tpu.memory_space<vmem>>, vector<64x64xbf16>
    tpu.vector_store %arg14[%c0_73, %c1536], %111 {strides = array<i32>} : memref<128x1600xbf16, #tpu.memory_space<vmem>>, vector<64x64xbf16>,
    %c88_74 = arith.constant 88 : index
    %c0_75 = arith.constant 0 : index
    %113 = vector.load %arg13[%c88_74, %c0_75] : memref<176x64xf32, #tpu.memory_space<vmem>>, vector<64x64xf32>
    %114 = arith.truncf %113 : vector<64x64xf32> to vector<64x64xbf16>
    %c64_76 = arith.constant 64 : index
    %c0_77 = arith.constant 0 : index
    %115 = vector.load %arg14[%c64_76, %c0_77] : memref<128x1600xbf16, #tpu.memory_space<vmem>>, vector<64x64xbf16>
    tpu.vector_store %arg14[%c64_76, %c0_77], %114 {strides = array<i32>} : memref<128x1600xbf16, #tpu.memory_space<vmem>>, vector<64x64xbf16>,
    %c89 = arith.constant 89 : index
    %c0_78 = arith.constant 0 : index
    %116 = vector.load %arg13[%c89, %c0_78] : memref<176x64xf32, #tpu.memory_space<vmem>>, vector<64x64xf32>
    %117 = arith.truncf %116 : vector<64x64xf32> to vector<64x64xbf16>
    %c64_79 = arith.constant 64 : index
    %c64_80 = arith.constant 64 : index
    %118 = vector.load %arg14[%c64_79, %c64_80] : memref<128x1600xbf16, #tpu.memory_space<vmem>>, vector<64x64xbf16>
    tpu.vector_store %arg14[%c64_79, %c64_80], %117 {strides = array<i32>} : memref<128x1600xbf16, #tpu.memory_space<vmem>>, vector<64x64xbf16>,
    %c90 = arith.constant 90 : index
    %c0_81 = arith.constant 0 : index
    %119 = vector.load %arg13[%c90, %c0_81] : memref<176x64xf32, #tpu.memory_space<vmem>>, vector<64x64xf32>
    %120 = arith.truncf %119 : vector<64x64xf32> to vector<64x64xbf16>
    %c64_82 = arith.constant 64 : index
    %c128_83 = arith.constant 128 : index
    %121 = vector.load %arg14[%c64_82, %c128_83] : memref<128x1600xbf16, #tpu.memory_space<vmem>>, vector<64x64xbf16>
    tpu.vector_store %arg14[%c64_82, %c128_83], %120 {strides = array<i32>} : memref<128x1600xbf16, #tpu.memory_space<vmem>>, vector<64x64xbf16>,
    %c91 = arith.constant 91 : index
    %c0_84 = arith.constant 0 : index
    %122 = vector.load %arg13[%c91, %c0_84] : memref<176x64xf32, #tpu.memory_space<vmem>>, vector<64x64xf32>
    %123 = arith.truncf %122 : vector<64x64xf32> to vector<64x64xbf16>
    %c64_85 = arith.constant 64 : index
    %c192_86 = arith.constant 192 : index
    %124 = vector.load %arg14[%c64_85, %c192_86] : memref<128x1600xbf16, #tpu.memory_space<vmem>>, vector<64x64xbf16>
    tpu.vector_store %arg14[%c64_85, %c192_86], %123 {strides = array<i32>} : memref<128x1600xbf16, #tpu.memory_space<vmem>>, vector<64x64xbf16>,
    %c92 = arith.constant 92 : index
    %c0_87 = arith.constant 0 : index
    %125 = vector.load %arg13[%c92, %c0_87] : memref<176x64xf32, #tpu.memory_space<vmem>>, vector<64x64xf32>
    %126 = arith.truncf %125 : vector<64x64xf32> to vector<64x64xbf16>
    %c64_88 = arith.constant 64 : index
    %c256_89 = arith.constant 256 : index
    %127 = vector.load %arg14[%c64_88, %c256_89] : memref<128x1600xbf16, #tpu.memory_space<vmem>>, vector<64x64xbf16>
    tpu.vector_store %arg14[%c64_88, %c256_89], %126 {strides = array<i32>} : memref<128x1600xbf16, #tpu.memory_space<vmem>>, vector<64x64xbf16>,
    %c93 = arith.constant 93 : index
    %c0_90 = arith.constant 0 : index
    %128 = vector.load %arg13[%c93, %c0_90] : memref<176x64xf32, #tpu.memory_space<vmem>>, vector<64x64xf32>
    %129 = arith.truncf %128 : vector<64x64xf32> to vector<64x64xbf16>
    %c64_91 = arith.constant 64 : index
    %c320_92 = arith.constant 320 : index
    %130 = vector.load %arg14[%c64_91, %c320_92] : memref<128x1600xbf16, #tpu.memory_space<vmem>>, vector<64x64xbf16>
    tpu.vector_store %arg14[%c64_91, %c320_92], %129 {strides = array<i32>} : memref<128x1600xbf16, #tpu.memory_space<vmem>>, vector<64x64xbf16>,
    %c94 = arith.constant 94 : index
    %c0_93 = arith.constant 0 : index
    %131 = vector.load %arg13[%c94, %c0_93] : memref<176x64xf32, #tpu.memory_space<vmem>>, vector<64x64xf32>
    %132 = arith.truncf %131 : vector<64x64xf32> to vector<64x64xbf16>
    %c64_94 = arith.constant 64 : index
    %c384_95 = arith.constant 384 : index
    %133 = vector.load %arg14[%c64_94, %c384_95] : memref<128x1600xbf16, #tpu.memory_space<vmem>>, vector<64x64xbf16>
    tpu.vector_store %arg14[%c64_94, %c384_95], %132 {strides = array<i32>} : memref<128x1600xbf16, #tpu.memory_space<vmem>>, vector<64x64xbf16>,
    %c95 = arith.constant 95 : index
    %c0_96 = arith.constant 0 : index
    %134 = vector.load %arg13[%c95, %c0_96] : memref<176x64xf32, #tpu.memory_space<vmem>>, vector<64x64xf32>
    %135 = arith.truncf %134 : vector<64x64xf32> to vector<64x64xbf16>
    %c64_97 = arith.constant 64 : index
    %c448_98 = arith.constant 448 : index
    %136 = vector.load %arg14[%c64_97, %c448_98] : memref<128x1600xbf16, #tpu.memory_space<vmem>>, vector<64x64xbf16>
    tpu.vector_store %arg14[%c64_97, %c448_98], %135 {strides = array<i32>} : memref<128x1600xbf16, #tpu.memory_space<vmem>>, vector<64x64xbf16>,
    %c96 = arith.constant 96 : index
    %c0_99 = arith.constant 0 : index
    %137 = vector.load %arg13[%c96, %c0_99] : memref<176x64xf32, #tpu.memory_space<vmem>>, vector<64x64xf32>
    %138 = arith.truncf %137 : vector<64x64xf32> to vector<64x64xbf16>
    %c64_100 = arith.constant 64 : index
    %c512_101 = arith.constant 512 : index
    %139 = vector.load %arg14[%c64_100, %c512_101] : memref<128x1600xbf16, #tpu.memory_space<vmem>>, vector<64x64xbf16>
    tpu.vector_store %arg14[%c64_100, %c512_101], %138 {strides = array<i32>} : memref<128x1600xbf16, #tpu.memory_space<vmem>>, vector<64x64xbf16>,
    %c97 = arith.constant 97 : index
    %c0_102 = arith.constant 0 : index
    %140 = vector.load %arg13[%c97, %c0_102] : memref<176x64xf32, #tpu.memory_space<vmem>>, vector<64x64xf32>
    %141 = arith.truncf %140 : vector<64x64xf32> to vector<64x64xbf16>
    %c64_103 = arith.constant 64 : index
    %c576_104 = arith.constant 576 : index
    %142 = vector.load %arg14[%c64_103, %c576_104] : memref<128x1600xbf16, #tpu.memory_space<vmem>>, vector<64x64xbf16>
    tpu.vector_store %arg14[%c64_103, %c576_104], %141 {strides = array<i32>} : memref<128x1600xbf16, #tpu.memory_space<vmem>>, vector<64x64xbf16>,
    %c98 = arith.constant 98 : index
    %c0_105 = arith.constant 0 : index
    %143 = vector.load %arg13[%c98, %c0_105] : memref<176x64xf32, #tpu.memory_space<vmem>>, vector<64x64xf32>
    %144 = arith.truncf %143 : vector<64x64xf32> to vector<64x64xbf16>
    %c64_106 = arith.constant 64 : index
    %c640_107 = arith.constant 640 : index
    %145 = vector.load %arg14[%c64_106, %c640_107] : memref<128x1600xbf16, #tpu.memory_space<vmem>>, vector<64x64xbf16>
    tpu.vector_store %arg14[%c64_106, %c640_107], %144 {strides = array<i32>} : memref<128x1600xbf16, #tpu.memory_space<vmem>>, vector<64x64xbf16>,
    %c99 = arith.constant 99 : index
    %c0_108 = arith.constant 0 : index
    %146 = vector.load %arg13[%c99, %c0_108] : memref<176x64xf32, #tpu.memory_space<vmem>>, vector<64x64xf32>
    %147 = arith.truncf %146 : vector<64x64xf32> to vector<64x64xbf16>
    %c64_109 = arith.constant 64 : index
    %c704_110 = arith.constant 704 : index
    %148 = vector.load %arg14[%c64_109, %c704_110] : memref<128x1600xbf16, #tpu.memory_space<vmem>>, vector<64x64xbf16>
    tpu.vector_store %arg14[%c64_109, %c704_110], %147 {strides = array<i32>} : memref<128x1600xbf16, #tpu.memory_space<vmem>>, vector<64x64xbf16>,
    %c100_111 = arith.constant 100 : index
    %c0_112 = arith.constant 0 : index
    %149 = vector.load %arg13[%c100_111, %c0_112] : memref<176x64xf32, #tpu.memory_space<vmem>>, vector<64x64xf32>
    %150 = arith.truncf %149 : vector<64x64xf32> to vector<64x64xbf16>
    %c64_113 = arith.constant 64 : index
    %c768_114 = arith.constant 768 : index
    %151 = vector.load %arg14[%c64_113, %c768_114] : memref<128x1600xbf16, #tpu.memory_space<vmem>>, vector<64x64xbf16>
    tpu.vector_store %arg14[%c64_113, %c768_114], %150 {strides = array<i32>} : memref<128x1600xbf16, #tpu.memory_space<vmem>>, vector<64x64xbf16>,
    %c101 = arith.constant 101 : index
    %c0_115 = arith.constant 0 : index
    %152 = vector.load %arg13[%c101, %c0_115] : memref<176x64xf32, #tpu.memory_space<vmem>>, vector<64x64xf32>
    %153 = arith.truncf %152 : vector<64x64xf32> to vector<64x64xbf16>
    %c64_116 = arith.constant 64 : index
    %c832_117 = arith.constant 832 : index
    %154 = vector.load %arg14[%c64_116, %c832_117] : memref<128x1600xbf16, #tpu.memory_space<vmem>>, vector<64x64xbf16>
    tpu.vector_store %arg14[%c64_116, %c832_117], %153 {strides = array<i32>} : memref<128x1600xbf16, #tpu.memory_space<vmem>>, vector<64x64xbf16>,
    %c102 = arith.constant 102 : index
    %c0_118 = arith.constant 0 : index
    %155 = vector.load %arg13[%c102, %c0_118] : memref<176x64xf32, #tpu.memory_space<vmem>>, vector<64x64xf32>
    %156 = arith.truncf %155 : vector<64x64xf32> to vector<64x64xbf16>
    %c64_119 = arith.constant 64 : index
    %c896_120 = arith.constant 896 : index
    %157 = vector.load %arg14[%c64_119, %c896_120] : memref<128x1600xbf16, #tpu.memory_space<vmem>>, vector<64x64xbf16>
    tpu.vector_store %arg14[%c64_119, %c896_120], %156 {strides = array<i32>} : memref<128x1600xbf16, #tpu.memory_space<vmem>>, vector<64x64xbf16>,
    %c103 = arith.constant 103 : index
    %c0_121 = arith.constant 0 : index
    %158 = vector.load %arg13[%c103, %c0_121] : memref<176x64xf32, #tpu.memory_space<vmem>>, vector<64x64xf32>
    %159 = arith.truncf %158 : vector<64x64xf32> to vector<64x64xbf16>
    %c64_122 = arith.constant 64 : index
    %c960_123 = arith.constant 960 : index
    %160 = vector.load %arg14[%c64_122, %c960_123] : memref<128x1600xbf16, #tpu.memory_space<vmem>>, vector<64x64xbf16>
    tpu.vector_store %arg14[%c64_122, %c960_123], %159 {strides = array<i32>} : memref<128x1600xbf16, #tpu.memory_space<vmem>>, vector<64x64xbf16>,
    %c104 = arith.constant 104 : index
    %c0_124 = arith.constant 0 : index
    %161 = vector.load %arg13[%c104, %c0_124] : memref<176x64xf32, #tpu.memory_space<vmem>>, vector<64x64xf32>
    %162 = arith.truncf %161 : vector<64x64xf32> to vector<64x64xbf16>
    %c64_125 = arith.constant 64 : index
    %c1024_126 = arith.constant 1024 : index
    %163 = vector.load %arg14[%c64_125, %c1024_126] : memref<128x1600xbf16, #tpu.memory_space<vmem>>, vector<64x64xbf16>
    tpu.vector_store %arg14[%c64_125, %c1024_126], %162 {strides = array<i32>} : memref<128x1600xbf16, #tpu.memory_space<vmem>>, vector<64x64xbf16>,
    %c105 = arith.constant 105 : index
    %c0_127 = arith.constant 0 : index
    %164 = vector.load %arg13[%c105, %c0_127] : memref<176x64xf32, #tpu.memory_space<vmem>>, vector<64x64xf32>
    %165 = arith.truncf %164 : vector<64x64xf32> to vector<64x64xbf16>
    %c64_128 = arith.constant 64 : index
    %c1088_129 = arith.constant 1088 : index
    %166 = vector.load %arg14[%c64_128, %c1088_129] : memref<128x1600xbf16, #tpu.memory_space<vmem>>, vector<64x64xbf16>
    tpu.vector_store %arg14[%c64_128, %c1088_129], %165 {strides = array<i32>} : memref<128x1600xbf16, #tpu.memory_space<vmem>>, vector<64x64xbf16>,
    %c106 = arith.constant 106 : index
    %c0_130 = arith.constant 0 : index
    %167 = vector.load %arg13[%c106, %c0_130] : memref<176x64xf32, #tpu.memory_space<vmem>>, vector<64x64xf32>
    %168 = arith.truncf %167 : vector<64x64xf32> to vector<64x64xbf16>
    %c64_131 = arith.constant 64 : index
    %c1152_132 = arith.constant 1152 : index
    %169 = vector.load %arg14[%c64_131, %c1152_132] : memref<128x1600xbf16, #tpu.memory_space<vmem>>, vector<64x64xbf16>
    tpu.vector_store %arg14[%c64_131, %c1152_132], %168 {strides = array<i32>} : memref<128x1600xbf16, #tpu.memory_space<vmem>>, vector<64x64xbf16>,
    %c107 = arith.constant 107 : index
    %c0_133 = arith.constant 0 : index
    %170 = vector.load %arg13[%c107, %c0_133] : memref<176x64xf32, #tpu.memory_space<vmem>>, vector<64x64xf32>
    %171 = arith.truncf %170 : vector<64x64xf32> to vector<64x64xbf16>
    %c64_134 = arith.constant 64 : index
    %c1216_135 = arith.constant 1216 : index
    %172 = vector.load %arg14[%c64_134, %c1216_135] : memref<128x1600xbf16, #tpu.memory_space<vmem>>, vector<64x64xbf16>
    tpu.vector_store %arg14[%c64_134, %c1216_135], %171 {strides = array<i32>} : memref<128x1600xbf16, #tpu.memory_space<vmem>>, vector<64x64xbf16>,
    %c108 = arith.constant 108 : index
    %c0_136 = arith.constant 0 : index
    %173 = vector.load %arg13[%c108, %c0_136] : memref<176x64xf32, #tpu.memory_space<vmem>>, vector<64x64xf32>
    %174 = arith.truncf %173 : vector<64x64xf32> to vector<64x64xbf16>
    %c64_137 = arith.constant 64 : index
    %c1280_138 = arith.constant 1280 : index
    %175 = vector.load %arg14[%c64_137, %c1280_138] : memref<128x1600xbf16, #tpu.memory_space<vmem>>, vector<64x64xbf16>
    tpu.vector_store %arg14[%c64_137, %c1280_138], %174 {strides = array<i32>} : memref<128x1600xbf16, #tpu.memory_space<vmem>>, vector<64x64xbf16>,
    %c109 = arith.constant 109 : index
    %c0_139 = arith.constant 0 : index
    %176 = vector.load %arg13[%c109, %c0_139] : memref<176x64xf32, #tpu.memory_space<vmem>>, vector<64x64xf32>
    %177 = arith.truncf %176 : vector<64x64xf32> to vector<64x64xbf16>
    %c64_140 = arith.constant 64 : index
    %c1344_141 = arith.constant 1344 : index
    %178 = vector.load %arg14[%c64_140, %c1344_141] : memref<128x1600xbf16, #tpu.memory_space<vmem>>, vector<64x64xbf16>
    tpu.vector_store %arg14[%c64_140, %c1344_141], %177 {strides = array<i32>} : memref<128x1600xbf16, #tpu.memory_space<vmem>>, vector<64x64xbf16>,
    %c110 = arith.constant 110 : index
    %c0_142 = arith.constant 0 : index
    %179 = vector.load %arg13[%c110, %c0_142] : memref<176x64xf32, #tpu.memory_space<vmem>>, vector<64x64xf32>
    %180 = arith.truncf %179 : vector<64x64xf32> to vector<64x64xbf16>
    %c64_143 = arith.constant 64 : index
    %c1408_144 = arith.constant 1408 : index
    %181 = vector.load %arg14[%c64_143, %c1408_144] : memref<128x1600xbf16, #tpu.memory_space<vmem>>, vector<64x64xbf16>
    tpu.vector_store %arg14[%c64_143, %c1408_144], %180 {strides = array<i32>} : memref<128x1600xbf16, #tpu.memory_space<vmem>>, vector<64x64xbf16>,
    %c111 = arith.constant 111 : index
    %c0_145 = arith.constant 0 : index
    %182 = vector.load %arg13[%c111, %c0_145] : memref<176x64xf32, #tpu.memory_space<vmem>>, vector<64x64xf32>
    %183 = arith.truncf %182 : vector<64x64xf32> to vector<64x64xbf16>
    %c64_146 = arith.constant 64 : index
    %c1472_147 = arith.constant 1472 : index
    %184 = vector.load %arg14[%c64_146, %c1472_147] : memref<128x1600xbf16, #tpu.memory_space<vmem>>, vector<64x64xbf16>
    tpu.vector_store %arg14[%c64_146, %c1472_147], %183 {strides = array<i32>} : memref<128x1600xbf16, #tpu.memory_space<vmem>>, vector<64x64xbf16>,
    %c112 = arith.constant 112 : index
    %c0_148 = arith.constant 0 : index
    %185 = vector.load %arg13[%c112, %c0_148] : memref<176x64xf32, #tpu.memory_space<vmem>>, vector<64x64xf32>
    %186 = arith.truncf %185 : vector<64x64xf32> to vector<64x64xbf16>
    %c64_149 = arith.constant 64 : index
    %c1536_150 = arith.constant 1536 : index
    %187 = vector.load %arg14[%c64_149, %c1536_150] : memref<128x1600xbf16, #tpu.memory_space<vmem>>, vector<64x64xbf16>
    tpu.vector_store %arg14[%c64_149, %c1536_150], %186 {strides = array<i32>} : memref<128x1600xbf16, #tpu.memory_space<vmem>>, vector<64x64xbf16>,
    %c0_151 = arith.constant 0 : index
    %c0_152 = arith.constant 0 : index
    %188 = vector.load %arg14[%c0_151, %c0_152] : memref<128x1600xbf16, #tpu.memory_space<vmem>>, vector<128x1600xbf16>
    %c0_153 = arith.constant 0 : index
    %c0_154 = arith.constant 0 : index
    %189 = vector.load %arg4[%c0_153, %c0_154] : memref<1600x128xbf16, #tpu.memory_space<vmem>>, vector<1600x128xbf16>
    %cst_155 = arith.constant dense<0.000000e+00> : vector<128x128xf32>
    %190 = tpu.matmul %188, %189, %cst_155 {dimension_numbers = #tpu.dot_dimension_numbers<[1], [0], [0], [1], [0, 0, 1, 1], [], []>} : vector<128x1600xbf16>, vector<1600x128xbf16>, vector<128x128xf32> -> vector<128x128xf32>
    %c0_156 = arith.constant 0 : index
    %c0_157 = arith.constant 0 : index
    %191 = vector.load %arg5[%c0_156, %c0_157] : memref<1x128xf32, #tpu.memory_space<vmem>>, vector<1x128xf32>
    %192 = vector.broadcast %191 : vector<1x128xf32> to vector<128x128xf32>
    %193 = arith.addf %190, %192 : vector<128x128xf32>
    %cst_158 = arith.constant 0.000000e+00 : f32
    %194 = vector.broadcast %cst_158 : f32 to vector<128x128xf32>
    %195 = arith.maximumf %193, %194 : vector<128x128xf32>
    %c0_159 = arith.constant 0 : index
    %c0_160 = arith.constant 0 : index
    %196 = vector.load %arg15[%c0_159, %c0_160] : memref<128x128xf32, #tpu.memory_space<vmem>>, vector<128x128xf32>
    tpu.vector_store %arg15[%c0_159, %c0_160], %195 {strides = array<i32>} : memref<128x128xf32, #tpu.memory_space<vmem>>, vector<128x128xf32>,
    %c0_161 = arith.constant 0 : index
    %c0_162 = arith.constant 0 : index
    %197 = tpu.strided_load %arg15[%c0_161, %c0_162] {strides = array<i32: 4, 1>} : memref<128x128xf32, #tpu.memory_space<vmem>>, vector<32x128xf32>
    %c1_163 = arith.constant 1 : index
    %c0_164 = arith.constant 0 : index
    %198 = tpu.strided_load %arg15[%c1_163, %c0_164] {strides = array<i32: 4, 1>} : memref<128x128xf32, #tpu.memory_space<vmem>>, vector<32x128xf32>
    %199 = arith.maximumf %197, %198 : vector<32x128xf32>
    %c2_165 = arith.constant 2 : index
    %c0_166 = arith.constant 0 : index
    %200 = tpu.strided_load %arg15[%c2_165, %c0_166] {strides = array<i32: 4, 1>} : memref<128x128xf32, #tpu.memory_space<vmem>>, vector<32x128xf32>
    %201 = arith.maximumf %199, %200 : vector<32x128xf32>
    %c3_167 = arith.constant 3 : index
    %c0_168 = arith.constant 0 : index
    %202 = tpu.strided_load %arg15[%c3_167, %c0_168] {strides = array<i32: 4, 1>} : memref<128x128xf32, #tpu.memory_space<vmem>>, vector<32x128xf32>
    %203 = arith.maximumf %201, %202 : vector<32x128xf32>
    %cst_169 = arith.constant 0.000000e+00 : f32
    %204 = vector.broadcast %cst_169 : f32 to vector<5x128xf32>
    %c0_170 = arith.constant 0 : index
    %c0_171 = arith.constant 0 : index
    %205 = vector.load %arg16[%c0_170, %c0_171] : memref<64x128xf32, #tpu.memory_space<vmem>>, vector<5x128xf32>
    tpu.vector_store %arg16[%c0_170, %c0_171], %204 {strides = array<i32>} : memref<64x128xf32, #tpu.memory_space<vmem>>, vector<5x128xf32>,
    %206 = vector.extract_strided_slice %203 {offsets = [0, 0], sizes = [16, 128], strides = [1, 1]} : vector<32x128xf32> to vector<16x128xf32>
    %c5_172 = arith.constant 5 : index
    %c0_173 = arith.constant 0 : index
    %207 = vector.load %arg16[%c5_172, %c0_173] : memref<64x128xf32, #tpu.memory_space<vmem>>, vector<16x128xf32>
    tpu.vector_store %arg16[%c5_172, %c0_173], %206 {strides = array<i32>} : memref<64x128xf32, #tpu.memory_space<vmem>>, vector<16x128xf32>,
    %cst_174 = arith.constant 0.000000e+00 : f32
    %208 = vector.broadcast %cst_174 : f32 to vector<11x128xf32>
    %c21_175 = arith.constant 21 : index
    %c0_176 = arith.constant 0 : index
    %209 = vector.load %arg16[%c21_175, %c0_176] : memref<64x128xf32, #tpu.memory_space<vmem>>, vector<11x128xf32>
    tpu.vector_store %arg16[%c21_175, %c0_176], %208 {strides = array<i32>} : memref<64x128xf32, #tpu.memory_space<vmem>>, vector<11x128xf32>,
    %cst_177 = arith.constant 0.000000e+00 : f32
    %210 = vector.broadcast %cst_177 : f32 to vector<5x128xf32>
    %c32 = arith.constant 32 : index
    %c0_178 = arith.constant 0 : index
    %211 = vector.load %arg16[%c32, %c0_178] : memref<64x128xf32, #tpu.memory_space<vmem>>, vector<5x128xf32>
    tpu.vector_store %arg16[%c32, %c0_178], %210 {strides = array<i32>} : memref<64x128xf32, #tpu.memory_space<vmem>>, vector<5x128xf32>,
    %212 = vector.extract_strided_slice %203 {offsets = [16, 0], sizes = [16, 128], strides = [1, 1]} : vector<32x128xf32> to vector<16x128xf32>
    %c37 = arith.constant 37 : index
    %c0_179 = arith.constant 0 : index
    %213 = vector.load %arg16[%c37, %c0_179] : memref<64x128xf32, #tpu.memory_space<vmem>>, vector<16x128xf32>
    tpu.vector_store %arg16[%c37, %c0_179], %212 {strides = array<i32>} : memref<64x128xf32, #tpu.memory_space<vmem>>, vector<16x128xf32>,
    %cst_180 = arith.constant 0.000000e+00 : f32
    %214 = vector.broadcast %cst_180 : f32 to vector<11x128xf32>
    %c53 = arith.constant 53 : index
    %c0_181 = arith.constant 0 : index
    %215 = vector.load %arg16[%c53, %c0_181] : memref<64x128xf32, #tpu.memory_space<vmem>>, vector<11x128xf32>
    tpu.vector_store %arg16[%c53, %c0_181], %214 {strides = array<i32>} : memref<64x128xf32, #tpu.memory_space<vmem>>, vector<11x128xf32>,
    %c0_182 = arith.constant 0 : index
    %c0_183 = arith.constant 0 : index
    %216 = vector.load %arg16[%c0_182, %c0_183] : memref<64x128xf32, #tpu.memory_space<vmem>>, vector<16x128xf32>
    %217 = arith.truncf %216 : vector<16x128xf32> to vector<16x128xbf16>
    %c0_184 = arith.constant 0 : index
    %c0_185 = arith.constant 0 : index
    %218 = vector.load %arg17[%c0_184, %c0_185] : memref<32x1408xbf16, #tpu.memory_space<vmem>>, vector<16x128xbf16>
    tpu.vector_store %arg17[%c0_184, %c0_185], %217 {strides = array<i32>} : memref<32x1408xbf16, #tpu.memory_space<vmem>>, vector<16x128xbf16>,
    %c1_186 = arith.constant 1 : index
    %c0_187 = arith.constant 0 : index
    %219 = vector.load %arg16[%c1_186, %c0_187] : memref<64x128xf32, #tpu.memory_space<vmem>>, vector<16x128xf32>
    %220 = arith.truncf %219 : vector<16x128xf32> to vector<16x128xbf16>
    %c0_188 = arith.constant 0 : index
    %c128_189 = arith.constant 128 : index
    %221 = vector.load %arg17[%c0_188, %c128_189] : memref<32x1408xbf16, #tpu.memory_space<vmem>>, vector<16x128xbf16>
    tpu.vector_store %arg17[%c0_188, %c128_189], %220 {strides = array<i32>} : memref<32x1408xbf16, #tpu.memory_space<vmem>>, vector<16x128xbf16>,
    %c2_190 = arith.constant 2 : index
    %c0_191 = arith.constant 0 : index
    %222 = vector.load %arg16[%c2_190, %c0_191] : memref<64x128xf32, #tpu.memory_space<vmem>>, vector<16x128xf32>
    %223 = arith.truncf %222 : vector<16x128xf32> to vector<16x128xbf16>
    %c0_192 = arith.constant 0 : index
    %c256_193 = arith.constant 256 : index
    %224 = vector.load %arg17[%c0_192, %c256_193] : memref<32x1408xbf16, #tpu.memory_space<vmem>>, vector<16x128xbf16>
    tpu.vector_store %arg17[%c0_192, %c256_193], %223 {strides = array<i32>} : memref<32x1408xbf16, #tpu.memory_space<vmem>>, vector<16x128xbf16>,
    %c3_194 = arith.constant 3 : index
    %c0_195 = arith.constant 0 : index
    %225 = vector.load %arg16[%c3_194, %c0_195] : memref<64x128xf32, #tpu.memory_space<vmem>>, vector<16x128xf32>
    %226 = arith.truncf %225 : vector<16x128xf32> to vector<16x128xbf16>
    %c0_196 = arith.constant 0 : index
    %c384_197 = arith.constant 384 : index
    %227 = vector.load %arg17[%c0_196, %c384_197] : memref<32x1408xbf16, #tpu.memory_space<vmem>>, vector<16x128xbf16>
    tpu.vector_store %arg17[%c0_196, %c384_197], %226 {strides = array<i32>} : memref<32x1408xbf16, #tpu.memory_space<vmem>>, vector<16x128xbf16>,
    %c4_198 = arith.constant 4 : index
    %c0_199 = arith.constant 0 : index
    %228 = vector.load %arg16[%c4_198, %c0_199] : memref<64x128xf32, #tpu.memory_space<vmem>>, vector<16x128xf32>
    %229 = arith.truncf %228 : vector<16x128xf32> to vector<16x128xbf16>
    %c0_200 = arith.constant 0 : index
    %c512_201 = arith.constant 512 : index
    %230 = vector.load %arg17[%c0_200, %c512_201] : memref<32x1408xbf16, #tpu.memory_space<vmem>>, vector<16x128xbf16>
    tpu.vector_store %arg17[%c0_200, %c512_201], %229 {strides = array<i32>} : memref<32x1408xbf16, #tpu.memory_space<vmem>>, vector<16x128xbf16>,
    %c5_202 = arith.constant 5 : index
    %c0_203 = arith.constant 0 : index
    %231 = vector.load %arg16[%c5_202, %c0_203] : memref<64x128xf32, #tpu.memory_space<vmem>>, vector<16x128xf32>
    %232 = arith.truncf %231 : vector<16x128xf32> to vector<16x128xbf16>
    %c0_204 = arith.constant 0 : index
    %c640_205 = arith.constant 640 : index
    %233 = vector.load %arg17[%c0_204, %c640_205] : memref<32x1408xbf16, #tpu.memory_space<vmem>>, vector<16x128xbf16>
    tpu.vector_store %arg17[%c0_204, %c640_205], %232 {strides = array<i32>} : memref<32x1408xbf16, #tpu.memory_space<vmem>>, vector<16x128xbf16>,
    %c6_206 = arith.constant 6 : index
    %c0_207 = arith.constant 0 : index
    %234 = vector.load %arg16[%c6_206, %c0_207] : memref<64x128xf32, #tpu.memory_space<vmem>>, vector<16x128xf32>
    %235 = arith.truncf %234 : vector<16x128xf32> to vector<16x128xbf16>
    %c0_208 = arith.constant 0 : index
    %c768_209 = arith.constant 768 : index
    %236 = vector.load %arg17[%c0_208, %c768_209] : memref<32x1408xbf16, #tpu.memory_space<vmem>>, vector<16x128xbf16>
    tpu.vector_store %arg17[%c0_208, %c768_209], %235 {strides = array<i32>} : memref<32x1408xbf16, #tpu.memory_space<vmem>>, vector<16x128xbf16>,
    %c7_210 = arith.constant 7 : index
    %c0_211 = arith.constant 0 : index
    %237 = vector.load %arg16[%c7_210, %c0_211] : memref<64x128xf32, #tpu.memory_space<vmem>>, vector<16x128xf32>
    %238 = arith.truncf %237 : vector<16x128xf32> to vector<16x128xbf16>
    %c0_212 = arith.constant 0 : index
    %c896_213 = arith.constant 896 : index
    %239 = vector.load %arg17[%c0_212, %c896_213] : memref<32x1408xbf16, #tpu.memory_space<vmem>>, vector<16x128xbf16>
    tpu.vector_store %arg17[%c0_212, %c896_213], %238 {strides = array<i32>} : memref<32x1408xbf16, #tpu.memory_space<vmem>>, vector<16x128xbf16>,
    %c8_214 = arith.constant 8 : index
    %c0_215 = arith.constant 0 : index
    %240 = vector.load %arg16[%c8_214, %c0_215] : memref<64x128xf32, #tpu.memory_space<vmem>>, vector<16x128xf32>
    %241 = arith.truncf %240 : vector<16x128xf32> to vector<16x128xbf16>
    %c0_216 = arith.constant 0 : index
    %c1024_217 = arith.constant 1024 : index
    %242 = vector.load %arg17[%c0_216, %c1024_217] : memref<32x1408xbf16, #tpu.memory_space<vmem>>, vector<16x128xbf16>
    tpu.vector_store %arg17[%c0_216, %c1024_217], %241 {strides = array<i32>} : memref<32x1408xbf16, #tpu.memory_space<vmem>>, vector<16x128xbf16>,
    %c9_218 = arith.constant 9 : index
    %c0_219 = arith.constant 0 : index
    %243 = vector.load %arg16[%c9_218, %c0_219] : memref<64x128xf32, #tpu.memory_space<vmem>>, vector<16x128xf32>
    %244 = arith.truncf %243 : vector<16x128xf32> to vector<16x128xbf16>
    %c0_220 = arith.constant 0 : index
    %c1152_221 = arith.constant 1152 : index
    %245 = vector.load %arg17[%c0_220, %c1152_221] : memref<32x1408xbf16, #tpu.memory_space<vmem>>, vector<16x128xbf16>
    tpu.vector_store %arg17[%c0_220, %c1152_221], %244 {strides = array<i32>} : memref<32x1408xbf16, #tpu.memory_space<vmem>>, vector<16x128xbf16>,
    %c10_222 = arith.constant 10 : index
    %c0_223 = arith.constant 0 : index
    %246 = vector.load %arg16[%c10_222, %c0_223] : memref<64x128xf32, #tpu.memory_space<vmem>>, vector<16x128xf32>
    %247 = arith.truncf %246 : vector<16x128xf32> to vector<16x128xbf16>
    %c0_224 = arith.constant 0 : index
    %c1280_225 = arith.constant 1280 : index
    %248 = vector.load %arg17[%c0_224, %c1280_225] : memref<32x1408xbf16, #tpu.memory_space<vmem>>, vector<16x128xbf16>
    tpu.vector_store %arg17[%c0_224, %c1280_225], %247 {strides = array<i32>} : memref<32x1408xbf16, #tpu.memory_space<vmem>>, vector<16x128xbf16>,
    %c32_226 = arith.constant 32 : index
    %c0_227 = arith.constant 0 : index
    %249 = vector.load %arg16[%c32_226, %c0_227] : memref<64x128xf32, #tpu.memory_space<vmem>>, vector<16x128xf32>
    %250 = arith.truncf %249 : vector<16x128xf32> to vector<16x128xbf16>
    %c16_228 = arith.constant 16 : index
    %c0_229 = arith.constant 0 : index
    %251 = vector.load %arg17[%c16_228, %c0_229] : memref<32x1408xbf16, #tpu.memory_space<vmem>>, vector<16x128xbf16>
    tpu.vector_store %arg17[%c16_228, %c0_229], %250 {strides = array<i32>} : memref<32x1408xbf16, #tpu.memory_space<vmem>>, vector<16x128xbf16>,
    %c33 = arith.constant 33 : index
    %c0_230 = arith.constant 0 : index
    %252 = vector.load %arg16[%c33, %c0_230] : memref<64x128xf32, #tpu.memory_space<vmem>>, vector<16x128xf32>
    %253 = arith.truncf %252 : vector<16x128xf32> to vector<16x128xbf16>
    %c16_231 = arith.constant 16 : index
    %c128_232 = arith.constant 128 : index
    %254 = vector.load %arg17[%c16_231, %c128_232] : memref<32x1408xbf16, #tpu.memory_space<vmem>>, vector<16x128xbf16>
    tpu.vector_store %arg17[%c16_231, %c128_232], %253 {strides = array<i32>} : memref<32x1408xbf16, #tpu.memory_space<vmem>>, vector<16x128xbf16>,
    %c34 = arith.constant 34 : index
    %c0_233 = arith.constant 0 : index
    %255 = vector.load %arg16[%c34, %c0_233] : memref<64x128xf32, #tpu.memory_space<vmem>>, vector<16x128xf32>
    %256 = arith.truncf %255 : vector<16x128xf32> to vector<16x128xbf16>
    %c16_234 = arith.constant 16 : index
    %c256_235 = arith.constant 256 : index
    %257 = vector.load %arg17[%c16_234, %c256_235] : memref<32x1408xbf16, #tpu.memory_space<vmem>>, vector<16x128xbf16>
    tpu.vector_store %arg17[%c16_234, %c256_235], %256 {strides = array<i32>} : memref<32x1408xbf16, #tpu.memory_space<vmem>>, vector<16x128xbf16>,
    %c35 = arith.constant 35 : index
    %c0_236 = arith.constant 0 : index
    %258 = vector.load %arg16[%c35, %c0_236] : memref<64x128xf32, #tpu.memory_space<vmem>>, vector<16x128xf32>
    %259 = arith.truncf %258 : vector<16x128xf32> to vector<16x128xbf16>
    %c16_237 = arith.constant 16 : index
    %c384_238 = arith.constant 384 : index
    %260 = vector.load %arg17[%c16_237, %c384_238] : memref<32x1408xbf16, #tpu.memory_space<vmem>>, vector<16x128xbf16>
    tpu.vector_store %arg17[%c16_237, %c384_238], %259 {strides = array<i32>} : memref<32x1408xbf16, #tpu.memory_space<vmem>>, vector<16x128xbf16>,
    %c36 = arith.constant 36 : index
    %c0_239 = arith.constant 0 : index
    %261 = vector.load %arg16[%c36, %c0_239] : memref<64x128xf32, #tpu.memory_space<vmem>>, vector<16x128xf32>
    %262 = arith.truncf %261 : vector<16x128xf32> to vector<16x128xbf16>
    %c16_240 = arith.constant 16 : index
    %c512_241 = arith.constant 512 : index
    %263 = vector.load %arg17[%c16_240, %c512_241] : memref<32x1408xbf16, #tpu.memory_space<vmem>>, vector<16x128xbf16>
    tpu.vector_store %arg17[%c16_240, %c512_241], %262 {strides = array<i32>} : memref<32x1408xbf16, #tpu.memory_space<vmem>>, vector<16x128xbf16>,
    %c37_242 = arith.constant 37 : index
    %c0_243 = arith.constant 0 : index
    %264 = vector.load %arg16[%c37_242, %c0_243] : memref<64x128xf32, #tpu.memory_space<vmem>>, vector<16x128xf32>
    %265 = arith.truncf %264 : vector<16x128xf32> to vector<16x128xbf16>
    %c16_244 = arith.constant 16 : index
    %c640_245 = arith.constant 640 : index
    %266 = vector.load %arg17[%c16_244, %c640_245] : memref<32x1408xbf16, #tpu.memory_space<vmem>>, vector<16x128xbf16>
    tpu.vector_store %arg17[%c16_244, %c640_245], %265 {strides = array<i32>} : memref<32x1408xbf16, #tpu.memory_space<vmem>>, vector<16x128xbf16>,
    %c38 = arith.constant 38 : index
    %c0_246 = arith.constant 0 : index
    %267 = vector.load %arg16[%c38, %c0_246] : memref<64x128xf32, #tpu.memory_space<vmem>>, vector<16x128xf32>
    %268 = arith.truncf %267 : vector<16x128xf32> to vector<16x128xbf16>
    %c16_247 = arith.constant 16 : index
    %c768_248 = arith.constant 768 : index
    %269 = vector.load %arg17[%c16_247, %c768_248] : memref<32x1408xbf16, #tpu.memory_space<vmem>>, vector<16x128xbf16>
    tpu.vector_store %arg17[%c16_247, %c768_248], %268 {strides = array<i32>} : memref<32x1408xbf16, #tpu.memory_space<vmem>>, vector<16x128xbf16>,
    %c39 = arith.constant 39 : index
    %c0_249 = arith.constant 0 : index
    %270 = vector.load %arg16[%c39, %c0_249] : memref<64x128xf32, #tpu.memory_space<vmem>>, vector<16x128xf32>
    %271 = arith.truncf %270 : vector<16x128xf32> to vector<16x128xbf16>
    %c16_250 = arith.constant 16 : index
    %c896_251 = arith.constant 896 : index
    %272 = vector.load %arg17[%c16_250, %c896_251] : memref<32x1408xbf16, #tpu.memory_space<vmem>>, vector<16x128xbf16>
    tpu.vector_store %arg17[%c16_250, %c896_251], %271 {strides = array<i32>} : memref<32x1408xbf16, #tpu.memory_space<vmem>>, vector<16x128xbf16>,
    %c40 = arith.constant 40 : index
    %c0_252 = arith.constant 0 : index
    %273 = vector.load %arg16[%c40, %c0_252] : memref<64x128xf32, #tpu.memory_space<vmem>>, vector<16x128xf32>
    %274 = arith.truncf %273 : vector<16x128xf32> to vector<16x128xbf16>
    %c16_253 = arith.constant 16 : index
    %c1024_254 = arith.constant 1024 : index
    %275 = vector.load %arg17[%c16_253, %c1024_254] : memref<32x1408xbf16, #tpu.memory_space<vmem>>, vector<16x128xbf16>
    tpu.vector_store %arg17[%c16_253, %c1024_254], %274 {strides = array<i32>} : memref<32x1408xbf16, #tpu.memory_space<vmem>>, vector<16x128xbf16>,
    %c41 = arith.constant 41 : index
    %c0_255 = arith.constant 0 : index
    %276 = vector.load %arg16[%c41, %c0_255] : memref<64x128xf32, #tpu.memory_space<vmem>>, vector<16x128xf32>
    %277 = arith.truncf %276 : vector<16x128xf32> to vector<16x128xbf16>
    %c16_256 = arith.constant 16 : index
    %c1152_257 = arith.constant 1152 : index
    %278 = vector.load %arg17[%c16_256, %c1152_257] : memref<32x1408xbf16, #tpu.memory_space<vmem>>, vector<16x128xbf16>
    tpu.vector_store %arg17[%c16_256, %c1152_257], %277 {strides = array<i32>} : memref<32x1408xbf16, #tpu.memory_space<vmem>>, vector<16x128xbf16>,
    %c42 = arith.constant 42 : index
    %c0_258 = arith.constant 0 : index
    %279 = vector.load %arg16[%c42, %c0_258] : memref<64x128xf32, #tpu.memory_space<vmem>>, vector<16x128xf32>
    %280 = arith.truncf %279 : vector<16x128xf32> to vector<16x128xbf16>
    %c16_259 = arith.constant 16 : index
    %c1280_260 = arith.constant 1280 : index
    %281 = vector.load %arg17[%c16_259, %c1280_260] : memref<32x1408xbf16, #tpu.memory_space<vmem>>, vector<16x128xbf16>
    tpu.vector_store %arg17[%c16_259, %c1280_260], %280 {strides = array<i32>} : memref<32x1408xbf16, #tpu.memory_space<vmem>>, vector<16x128xbf16>,
    %c0_261 = arith.constant 0 : index
    %c0_262 = arith.constant 0 : index
    %282 = vector.load %arg17[%c0_261, %c0_262] : memref<32x1408xbf16, #tpu.memory_space<vmem>>, vector<32x1408xbf16>
    %c0_263 = arith.constant 0 : index
    %c0_264 = arith.constant 0 : index
    %283 = vector.load %arg6[%c0_263, %c0_264] : memref<1408x256xbf16, #tpu.memory_space<vmem>>, vector<1408x256xbf16>
    %cst_265 = arith.constant dense<0.000000e+00> : vector<32x256xf32>
    %284 = tpu.matmul %282, %283, %cst_265 {dimension_numbers = #tpu.dot_dimension_numbers<[1], [0], [0], [1], [0, 0, 1, 1], [], []>} : vector<32x1408xbf16>, vector<1408x256xbf16>, vector<32x256xf32> -> vector<32x256xf32>
    %c0_266 = arith.constant 0 : index
    %c0_267 = arith.constant 0 : index
    %285 = vector.load %arg7[%c0_266, %c0_267] : memref<1x256xf32, #tpu.memory_space<vmem>>, vector<1x256xf32>
    %286 = vector.broadcast %285 : vector<1x256xf32> to vector<32x256xf32>
    %287 = arith.addf %284, %286 : vector<32x256xf32>
    %cst_268 = arith.constant 0.000000e+00 : f32
    %288 = vector.broadcast %cst_268 : f32 to vector<32x256xf32>
    %289 = arith.maximumf %287, %288 : vector<32x256xf32>
    %290 = vector.extract_strided_slice %289 {offsets = [0, 0], sizes = [16, 256], strides = [1, 1]} : vector<32x256xf32> to vector<16x256xf32>
    %cst_269 = arith.constant dense<0.000000e+00> : vector<256xf32>
    %291 = vector.multi_reduction <add>, %290, %cst_269 [0] : vector<16x256xf32> to vector<256xf32>
    %292 = vector.shape_cast %291 : vector<256xf32> to vector<1x256xf32>
    %cst_270 = arith.constant 1.600000e+01 : f32
    %293 = vector.broadcast %cst_270 : f32 to vector<1x256xf32>
    %294 = arith.divf %292, %293 : vector<1x256xf32>
    %295 = vector.extract_strided_slice %289 {offsets = [16, 0], sizes = [16, 256], strides = [1, 1]} : vector<32x256xf32> to vector<16x256xf32>
    %cst_271 = arith.constant dense<0.000000e+00> : vector<256xf32>
    %296 = vector.multi_reduction <add>, %295, %cst_271 [0] : vector<16x256xf32> to vector<256xf32>
    %297 = vector.shape_cast %296 : vector<256xf32> to vector<1x256xf32>
    %cst_272 = arith.constant 1.600000e+01 : f32
    %298 = vector.broadcast %cst_272 : f32 to vector<1x256xf32>
    %299 = arith.divf %297, %298 : vector<1x256xf32>
    %300 = tpu.concatenate %294, %299 in 0 : vector<1x256xf32>, vector<1x256xf32> -> vector<2x256xf32>
    %301 = arith.truncf %300 : vector<2x256xf32> to vector<2x256xbf16>
    %c0_273 = arith.constant 0 : index
    %c0_274 = arith.constant 0 : index
    %302 = vector.load %arg8[%c0_273, %c0_274] : memref<256x128xbf16, #tpu.memory_space<vmem>>, vector<256x128xbf16>
    %cst_275 = arith.constant dense<0.000000e+00> : vector<2x128xf32>
    %303 = tpu.matmul %301, %302, %cst_275 {dimension_numbers = #tpu.dot_dimension_numbers<[1], [0], [0], [1], [0, 0, 1, 1], [], []>} : vector<2x256xbf16>, vector<256x128xbf16>, vector<2x128xf32> -> vector<2x128xf32>
    %c0_276 = arith.constant 0 : index
    %c0_277 = arith.constant 0 : index
    %304 = vector.load %arg9[%c0_276, %c0_277] : memref<1x128xf32, #tpu.memory_space<vmem>>, vector<1x128xf32>
    %305 = vector.broadcast %304 : vector<1x128xf32> to vector<2x128xf32>
    %306 = arith.addf %303, %305 : vector<2x128xf32>
    %cst_278 = arith.constant 0.000000e+00 : f32
    %307 = vector.broadcast %cst_278 : f32 to vector<2x128xf32>
    %308 = arith.maximumf %306, %307 : vector<2x128xf32>
    %c0_279 = arith.constant 0 : index
    %c0_280 = arith.constant 0 : index
    %309 = vector.load %arg10[%c0_279, %c0_280] : memref<1x128xf32, #tpu.memory_space<vmem>>, vector<1x128xf32>
    %310 = vector.broadcast %309 : vector<1x128xf32> to vector<2x128xf32>
    %311 = arith.mulf %308, %310 : vector<2x128xf32>
    %cst_281 = arith.constant dense<0.000000e+00> : vector<2xf32>
    %312 = vector.multi_reduction <add>, %311, %cst_281 [1] : vector<2x128xf32> to vector<2xf32>
    %313 = vector.shape_cast %312 : vector<2xf32> to vector<2x1xf32>
    %c0_282 = arith.constant 0 : index
    %c0_283 = arith.constant 0 : index
    %314 = vector.load %arg11[%c0_282, %c0_283] : memref<1x1xf32, #tpu.memory_space<vmem>>, vector<1x1xf32>
    %315 = vector.broadcast %314 : vector<1x1xf32> to vector<2x1xf32>
    %316 = arith.addf %313, %315 : vector<2x1xf32>
    %c0_284 = arith.constant 0 : index
    %c0_285 = arith.constant 0 : index
    %c0_286 = arith.constant 0 : index
    %317 = vector.load %arg12[%c0_284, %c0_285, %c0_286] : memref<1x2x1xf32, #tpu.memory_space<vmem>>, vector<1x2x1xf32>
    %318 = vector.shape_cast %317 : vector<1x2x1xf32> to vector<2x1xf32>
    %319 = vector.shape_cast %316 : vector<2x1xf32> to vector<1x2x1xf32>
    tpu.vector_store %arg12[%c0_284, %c0_285, %c0_286], %319 {strides = array<i32>} : memref<1x2x1xf32, #tpu.memory_space<vmem>>, vector<1x2x1xf32>,
    return
  }
  func.func @transform_0(%arg0: i32) -> (i32, i32) {
    %c0_i32 = arith.constant 0 : i32
    %c0_i32_0 = arith.constant 0 : i32
    return %arg0, %c0_i32 : i32, i32
  }
  func.func @transform_1(%arg0: i32) -> (i32, i32) {
    %c0_i32 = arith.constant 0 : i32
    %c0_i32_0 = arith.constant 0 : i32
    %c0_i32_1 = arith.constant 0 : i32
    return %c0_i32, %c0_i32_0 : i32, i32
  }
  func.func @transform_2(%arg0: i32) -> (i32, i32) {
    %c0_i32 = arith.constant 0 : i32
    %c0_i32_0 = arith.constant 0 : i32
    %c0_i32_1 = arith.constant 0 : i32
    return %c0_i32, %c0_i32_0 : i32, i32
  }
  func.func @transform_3(%arg0: i32) -> (i32, i32) {
    %c0_i32 = arith.constant 0 : i32
    %c0_i32_0 = arith.constant 0 : i32
    %c0_i32_1 = arith.constant 0 : i32
    return %c0_i32, %c0_i32_0 : i32, i32
  }
  func.func @transform_4(%arg0: i32) -> (i32, i32) {
    %c0_i32 = arith.constant 0 : i32
    %c0_i32_0 = arith.constant 0 : i32
    %c0_i32_1 = arith.constant 0 : i32
    return %c0_i32, %c0_i32_0 : i32, i32
  }
  func.func @transform_5(%arg0: i32) -> (i32, i32) {
    %c0_i32 = arith.constant 0 : i32
    %c0_i32_0 = arith.constant 0 : i32
    %c0_i32_1 = arith.constant 0 : i32
    return %c0_i32, %c0_i32_0 : i32, i32
  }
  func.func @transform_6(%arg0: i32) -> (i32, i32) {
    %c0_i32 = arith.constant 0 : i32
    %c0_i32_0 = arith.constant 0 : i32
    %c0_i32_1 = arith.constant 0 : i32
    return %c0_i32, %c0_i32_0 : i32, i32
  }
  func.func @transform_7(%arg0: i32) -> (i32, i32) {
    %c0_i32 = arith.constant 0 : i32
    %c0_i32_0 = arith.constant 0 : i32
    %c0_i32_1 = arith.constant 0 : i32
    return %c0_i32, %c0_i32_0 : i32, i32
  }
  func.func @transform_8(%arg0: i32) -> (i32, i32) {
    %c0_i32 = arith.constant 0 : i32
    %c0_i32_0 = arith.constant 0 : i32
    %c0_i32_1 = arith.constant 0 : i32
    return %c0_i32, %c0_i32_0 : i32, i32
  }
  func.func @transform_9(%arg0: i32) -> (i32, i32) {
    %c0_i32 = arith.constant 0 : i32
    %c0_i32_0 = arith.constant 0 : i32
    %c0_i32_1 = arith.constant 0 : i32
    return %c0_i32, %c0_i32_0 : i32, i32
  }
  func.func @transform_10(%arg0: i32) -> (i32, i32) {
    %c0_i32 = arith.constant 0 : i32
    %c0_i32_0 = arith.constant 0 : i32
    %c0_i32_1 = arith.constant 0 : i32
    return %c0_i32, %c0_i32_0 : i32, i32
  }
  func.func @transform_11(%arg0: i32) -> (i32, i32, i32) {
    %c0_i32 = arith.constant 0 : i32
    %c0_i32_0 = arith.constant 0 : i32
    %c0_i32_1 = arith.constant 0 : i32
    return %arg0, %c0_i32, %c0_i32_0 : i32, i32, i32
  }
}

</mosaic_0001>

<bundles_post_ra>
// kernel: tpu_custom_call.1
= control target key start
LH: loop header
LB: loop body
LE: loop exit
PB: predicated region body
PF: predicated region fallthrough
CT: control target
= control target key end

     0   :  { %s11350_s0 = inlined_call_operand.vmem [shape: bf16[1024,64], index: 0, kind: input, shape index: {}]   ;;  %s11351_s1 = inlined_call_operand.vmem [shape: bf16[64,64], index: 1, kind: input, shape index: {}]   ;;  %s11352_s2 = inlined_call_operand.vmem [shape: f32[1,64], index: 2, kind: input, shape index: {}]   ;;  %s11353_s3 = inlined_call_operand.hbm [shape: bf16[1600,128], index: 3, kind: input, shape index: {}]   ;;  %s11354_s4 = inlined_call_operand.vmem [shape: f32[1,128], index: 4, kind: input, shape index: {}]   ;;  %s11355_s5 = inlined_call_operand.hbm [shape: bf16[1408,256], index: 5, kind: input, shape index: {}]   ;;  %s11356_s6 = inlined_call_operand.vmem [shape: f32[1,256], index: 6, kind: input, shape index: {}]   ;;  %s11357_s7 = inlined_call_operand.vmem [shape: bf16[256,128], index: 7, kind: input, shape index: {}]   ;;  %s11358_s8 = inlined_call_operand.vmem [shape: f32[1,128], index: 8, kind: input, shape index: {}]   ;;  %s11359_s9 = inlined_call_operand.vmem [shape: f32[1,128], index: 9, kind: input, shape index: {}]   ;;  %s11360_s10 = inlined_call_operand.<no memory space> [shape: f32[1,1], index: 10, kind: input, shape index: {}]   ;;  %s11361_s11 = inlined_call_operand.vmem [shape: f32[2,2,1], index: 11, kind: output, shape index: {}]  }
   0x1   :  { %v16_v0 = vstv %s11360_s10 }
   0x2   :  { %17 = vst [vmem:[#allocation7] sm:$0x1] %v16_v0 }
   0x3   :  { %18 = vsyncpa [#allocation9], 0 }
   0x4   :  { %19 = vsyncpa [#allocation11], 0  ;;  %s9812_s19 = smov 0  }
   0x5 LB: > { %s309_s22 = sshll.u32 %s11353_s3, 4  ;;  %s9821_s23 = sadd.s32 4294967295, %s9738_s19   ;;  %s9738_s19 = sphi %s9812_s19, %s25_s19   ;;  %s310_s22 = int_to_ptr.hbm [resolvable:$true] %s309_s22 }
   0x6   : > { %p7299_p0 = scmp.ge.s32.totalorder %s9738_s19, 1  ;;  %p292_p1 = scmp.lt.s32.totalorder %s9738_s19, 3 }
   0x7   : > { %p9636_p2 = scmp.eq.s32.totalorder %s9821_s23, 0  ;;  %s9740_s24 = smov [#allocation8]  }
   0x8   : > { %p9826_p3 = pnand %p7299_p0, %p292_p1  ;;  %s311_s25 = sshll.u32 %s9740_s24, 4  ;;  %s312_s25 = int_to_ptr.vmem [resolvable:$true] %s311_s25 }
   0x9   : > { %s326_s28 = sshll.u32 %s11355_s5, 4  ;;  %s9741_s29 = smov [#allocation10]   ;;  %s327_s28 = int_to_ptr.hbm [resolvable:$true] %s326_s28 }
   0xa   : > { %p9629_p4 = pneg %p9826_p3  ;;  %s328_s30 = sshll.u32 %s9741_s29, 4  ;;  %s329_s30 = int_to_ptr.vmem [resolvable:$true] %s328_s30 }
   0xb   : > { %s9742_s12 = smov 64   ;;  %s9743_s13 = smov 4  }
   0xc   : > { %p9630_p5 = pnand %p9636_p2, %p9629_p4  ;;  %s9744_s14 = smov 128  }
   0xd   : > { %s9745_s15 = smov 8   ;;  %368 = sbr.rel (%p9826_p3) target bundleno = 1792 (0x700), region = 64 }
   0xe   : > { %9632 = dma.hbm_to_vmem [thread:$0]  (!%p9630_p5), %s310_s22, 12800, %s312_s25, [#allocation9], %s9742_s12, %s9742_s12, %s9743_s13  }
   0xf   : > { %9635 = dma.hbm_to_vmem [thread:$0]  (!%p9630_p5), %s327_s28, 22528, %s329_s30, [#allocation11], %s9744_s14, %s9744_s14, %s9745_s15  }
  0x12   : > { %9729 = dma.done.wait (%p9636_p2), [#allocation9], 12800  }
  0x13   : > { %9731 = vsyncadd (%p9636_p2), [#allocation9], 4294954496 }
  0x14   : > { %9733 = dma.done.wait (%p9636_p2), [#allocation11], 22528  }
  0x15   : > { %9735 = vsyncadd (%p9636_p2), [#allocation11], 4294944768  ;;  %s7306_s16 = sshll.u32 %s9821_s23, 6  ;;  %v9170_v1 = vld [vmem:[%s11351_s1 + $0x18] sm:$0xff]  ;;  %v9169_v2 = vld [vmem:[%s11351_s1 + $0x10] sm:$0xff]  ;;  %vm572_vm0 = vcmask 523264  }
  0x16   : > { %p414_p6 = scmp.lt.s32.totalorder %s7306_s16, 127  ;;  %625 = vmatpush.bf16.msra.mxu0 %v9170_v1  ;;  %943 = vmatpush.bf16.msra.mxu1 %v9170_v1  ;;  %v9168_v3 = vld [vmem:[%s11351_s1 + $0x8] sm:$0xff]  ;;  %v9167_v4 = vld [vmem:[%s11351_s1] sm:$0xff]  ;;  %vm767_vm1 = vcmask 519168   ;;  %s9747_s13 = smov 64   ;;  %vm1168_vm2 = vcmask 1043968  }
  0x17   : > { %v9932_v45 = vld [vmem:[%s11352_s2] ss:$0 sm:$0xff]  ;;  %vm7042_vm4 = vcmask 1040384   ;;  %vm7211_vm5 = vcmask 1041408   ;;  %p419_p7 = scmp.lt.s32.totalorder %s9821_s23, 1  ;;  %vm7220_vm6 = vcmask 1024  }
  0x18   : > { %s11364_s16 = smov (!%p414_p6, %s7306_s16), 127 }
  0x19   : > { %s7307_s24 = sshll.u32 %s11364_s16, 2  ;;  %s11366_s23 = smov (!%p419_p7, %s9821_s23), 1 }
  0x1a   : > { %626 = vmatpush.bf16.msra.mxu0 %v9169_v2  ;;  %944 = vmatpush.bf16.msra.mxu1 %v9169_v2  ;;  %s9863_s29 = scalar_lea.vmem %s11350_s0, %s7307_s24  ;;  %s7308_s18 = sshll.u32 %s11366_s23, 1 }
  0x1b   : > { %v9171_v5 = vld [vmem:[%s9863_s29] sm:$0xff]  ;;  %v9172_v7 = vld [vmem:[%s9863_s29 + $0x8] sm:$0xff]  ;;  %v9173_v9 = vld [vmem:[%s9863_s29 + $0x10] sm:$0xff]  ;;  %s422_s22 = scalar_lea.vmem %s11361_s11, %s7308_s18 }
  0x1c   : > { %v9187_v6 = vld [vmem:[%s9863_s29 + $0x80] sm:$0xff]  ;;  %v9188_v8 = vld [vmem:[%s9863_s29 + $0x88] sm:$0xff]  ;;  %v9189_v10 = vld [vmem:[%s9863_s29 + $0x90] sm:$0xff] }
  0x1d   : > { %v9174_v11 = vld [vmem:[%s9863_s29 + $0x18] sm:$0xff]  ;;  %v9175_v13 = vld [vmem:[%s9863_s29 + $0x20] sm:$0xff]  ;;  %v9176_v15 = vld [vmem:[%s9863_s29 + $0x28] sm:$0xff] }
  0x1e   : > { %627 = vmatpush.bf16.msra.mxu0 %v9168_v3  ;;  %945 = vmatpush.bf16.msra.mxu1 %v9168_v3  ;;  %v9190_v12 = vld [vmem:[%s9863_s29 + $0x98] sm:$0xff]  ;;  %v9191_v14 = vld [vmem:[%s9863_s29 + $0xa0] sm:$0xff]  ;;  %v9192_v16 = vld [vmem:[%s9863_s29 + $0xa8] sm:$0xff] }
  0x1f   : > { %v9177_v17 = vld [vmem:[%s9863_s29 + $0x30] sm:$0xff]  ;;  %v9178_v19 = vld [vmem:[%s9863_s29 + $0x38] sm:$0xff]  ;;  %v9179_v21 = vld [vmem:[%s9863_s29 + $0x40] sm:$0xff] }
  0x20   : > { %v9193_v18 = vld [vmem:[%s9863_s29 + $0xb0] sm:$0xff]  ;;  %v9194_v20 = vld [vmem:[%s9863_s29 + $0xb8] sm:$0xff]  ;;  %v9195_v22 = vld [vmem:[%s9863_s29 + $0xc0] sm:$0xff] }
  0x21   : > { %v9180_v27 = vld [vmem:[%s9863_s29 + $0x48] sm:$0xff]  ;;  %v9181_v33 = vld [vmem:[%s9863_s29 + $0x50] sm:$0xff]  ;;  %v9182_v39 = vld [vmem:[%s9863_s29 + $0x58] sm:$0xff] }
  0x22   : > { %628 = vmatpush.bf16.msra.mxu0 %v9167_v4  ;;  %946 = vmatpush.bf16.msra.mxu1 %v9167_v4  ;;  %v9196_v28 = vld [vmem:[%s9863_s29 + $0xc8] sm:$0xff]  ;;  %v9197_v34 = vld [vmem:[%s9863_s29 + $0xd0] sm:$0xff]  ;;  %v9198_v40 = vld [vmem:[%s9863_s29 + $0xd8] sm:$0xff] }
  0x23   : > { %v9183_v48 = vld [vmem:[%s9863_s29 + $0x60] sm:$0xff]  ;;  %v9184_v0 = vld [vmem:[%s9863_s29 + $0x68] sm:$0xff] }
  0x24   : > { %v9199_v49 = vld [vmem:[%s9863_s29 + $0xe0] sm:$0xff]  ;;  %v9200_v1 = vld [vmem:[%s9863_s29 + $0xe8] sm:$0xff] }
  0x25   : > { %7389 = vmatmul.msk.bf16.vlgmr.msra.gmra.mxu0 %vm572_vm0, %v9171_v5  ;;  %7469 = vmatmul.msk.bf16.vlgmr.msra.gmra.mxu1 %vm572_vm0, %v9187_v6 }
  0x35   : > { %7390 = vmatmul.msk.bf16.gmra.mxu0 %vm572_vm0, %v9172_v7  ;;  %7470 = vmatmul.msk.bf16.gmra.mxu1 %vm572_vm0, %v9188_v8 }
  0x45   : > { %7391 = vmatmul.msk.bf16.gmra.mxu0 %vm572_vm0, %v9173_v9  ;;  %7471 = vmatmul.msk.bf16.gmra.mxu1 %vm572_vm0, %v9189_v10 }
  0x55   : > { %7392 = vmatmul.msk.bf16.gmra.mxu0 %vm572_vm0, %v9174_v11  ;;  %7472 = vmatmul.msk.bf16.gmra.mxu1 %vm572_vm0, %v9190_v12 }
  0x65   : > { %7393 = vmatmul.msk.bf16.gmra.mxu0 %vm572_vm0, %v9175_v13  ;;  %7473 = vmatmul.msk.bf16.gmra.mxu1 %vm572_vm0, %v9191_v14 }
  0x75   : > { %7394 = vmatmul.msk.bf16.gmra.mxu0 %vm572_vm0, %v9176_v15  ;;  %7474 = vmatmul.msk.bf16.gmra.mxu1 %vm572_vm0, %v9192_v16  ;;  %v9185_v16 = vld [vmem:[%s9863_s29 + $0x70] sm:$0xff] }
  0x85   : > { %7395 = vmatmul.msk.bf16.gmra.mxu0 %vm572_vm0, %v9177_v17  ;;  %7475 = vmatmul.msk.bf16.gmra.mxu1 %vm572_vm0, %v9193_v18  ;;  %v9201_v17 = vld [vmem:[%s9863_s29 + $0xf0] sm:$0xff] }
  0x95   : > { %7396 = vmatmul.msk.bf16.gmra.mxu0 %vm572_vm0, %v9178_v19  ;;  %7476 = vmatmul.msk.bf16.gmra.mxu1 %vm572_vm0, %v9194_v20 }
  0xa2   : > { %v630_v23 = vpop.f32.mrf.mxu0  ;;  %v948_v24 = vpop.f32.mrf.mxu1 }
  0xa3   : > { %v631_v46 = vadd.f32 %v9932_v45, %v630_v23  ;;  %v949_v47 = vadd.f32 %v9932_v45, %v948_v24 }
  0xa5   : > { %7397 = vmatmul.msk.bf16.gmra.mxu0 %vm572_vm0, %v9179_v21  ;;  %7477 = vmatmul.msk.bf16.gmra.mxu1 %vm572_vm0, %v9195_v22  ;;  %v710_v54 = vmax.f32 %v631_v46, 0.0  ;;  %v1028_v55 = vmax.f32 %v949_v47, 0.0 }
  0xaa   : > { %v9901_v25 = vpop.f32.mrf.mxu0  ;;  %v9903_v26 = vpop.f32.mrf.mxu1 }
  0xb2   : > { %v635_v29 = vpop.f32.mrf.mxu0  ;;  %v953_v30 = vpop.f32.mrf.mxu1 }
  0xb3   : > { %v636_v62 = vadd.f32 %v9932_v45, %v635_v29  ;;  %v954_v63 = vadd.f32 %v9932_v45, %v953_v30 }
  0xb5   : > { %7398 = vmatmul.msk.bf16.gmra.mxu0 %vm572_vm0, %v9180_v27  ;;  %7478 = vmatmul.msk.bf16.gmra.mxu1 %vm572_vm0, %v9196_v28  ;;  %v712_v6 = vmax.f32 %v636_v62, 0.0  ;;  %v1030_v7 = vmax.f32 %v954_v63, 0.0 }
  0xba   : > { %v9909_v31 = vpop.f32.mrf.mxu0  ;;  %v9911_v32 = vpop.f32.mrf.mxu1 }
  0xc2   : > { %v640_v35 = vpop.f32.mrf.mxu0  ;;  %v958_v36 = vpop.f32.mrf.mxu1 }
  0xc3   : > { %v641_v14 = vadd.f32 %v9932_v45, %v640_v35  ;;  %v959_v15 = vadd.f32 %v9932_v45, %v958_v36  ;;  %v9186_v36 = vld [vmem:[%s9863_s29 + $0x78] sm:$0xff] }
  0xc5   : > { %7399 = vmatmul.msk.bf16.gmra.mxu0 %vm572_vm0, %v9181_v33  ;;  %7479 = vmatmul.msk.bf16.gmra.mxu1 %vm572_vm0, %v9197_v34  ;;  %v714_v22 = vmax.f32 %v641_v14, 0.0  ;;  %v1032_v23 = vmax.f32 %v959_v15, 0.0 }
  0xca   : > { %v9917_v37 = vpop.f32.mrf.mxu0  ;;  %v9919_v38 = vpop.f32.mrf.mxu1 }
  0xd2   : > { %v645_v41 = vpop.f32.mrf.mxu0  ;;  %v963_v42 = vpop.f32.mrf.mxu1 }
  0xd3   : > { %v646_v34 = vadd.f32 %v9932_v45, %v645_v41  ;;  %v964_v35 = vadd.f32 %v9932_v45, %v963_v42 }
  0xd5   : > { %7400 = vmatmul.msk.bf16.gmra.mxu0 %vm572_vm0, %v9182_v39  ;;  %7480 = vmatmul.msk.bf16.gmra.mxu1 %vm572_vm0, %v9198_v40  ;;  %v9202_v39 = vld [vmem:[%s9863_s29 + $0xf8] sm:$0xff] }
  0xda   : > { %v9925_v43 = vpop.f32.mrf.mxu0  ;;  %v9927_v44 = vpop.f32.mrf.mxu1 }
  0xe2   : > { %v650_v50 = vpop.f32.mrf.mxu0  ;;  %v968_v51 = vpop.f32.mrf.mxu1 }
  0xe3   : > { %v651_v52 = vadd.f32 %v9932_v45, %v650_v50  ;;  %v969_v53 = vadd.f32 %v9932_v45, %v968_v51  ;;  %v1034_v50 = vmax.f32 %v964_v35, 0.0 }
  0xe5   : > { %v718_v56 = vmax.f32 %v651_v52, 0.0  ;;  %v1036_v57 = vmax.f32 %v969_v53, 0.0  ;;  %7401 = vmatmul.msk.bf16.gmra.mxu0 %vm572_vm0, %v9183_v48  ;;  %7481 = vmatmul.msk.bf16.gmra.mxu1 %vm572_vm0, %v9199_v49  ;;  %v716_v49 = vmax.f32 %v646_v34, 0.0 }
  0xe7   : > { %v9942_v58 = vmax.f32 %v710_v54, %v718_v56  ;;  %v9944_v59 = vmax.f32 %v1028_v55, %v1036_v57 }
  0xea   : > { %v9946_v60 = vpop.f32.mrf.mxu0  ;;  %v9948_v61 = vpop.f32.mrf.mxu1 }
  0xf2   : > { %v655_v2 = vpop.f32.mrf.mxu0  ;;  %v973_v3 = vpop.f32.mrf.mxu1 }
  0xf3   : > { %v656_v4 = vadd.f32 %v9932_v45, %v655_v2  ;;  %v974_v5 = vadd.f32 %v9932_v45, %v973_v3 }
  0xf5   : > { %v720_v8 = vmax.f32 %v656_v4, 0.0  ;;  %v1038_v9 = vmax.f32 %v974_v5, 0.0  ;;  %7402 = vmatmul.msk.bf16.gmra.mxu0 %vm572_vm0, %v9184_v0  ;;  %7482 = vmatmul.msk.bf16.gmra.mxu1 %vm572_vm0, %v9200_v1  ;;  %v9746_v5 = vmov 0.0  }
  0xf6   : > { %766 = vst.msk [vmem:[#allocation2] sm:$0xff] %vm572_vm0, %v9746_v5 }
  0xf7   : > { %v9958_v10 = vmax.f32 %v712_v6, %v720_v8  ;;  %v9960_v11 = vmax.f32 %v1030_v7, %v1038_v9  ;;  %768 = vst.msk [vmem:[#allocation2 + $0x8] sm:$0xf] %vm767_vm1, %v9746_v5 }
  0xf8   : > { %777 = vst.msk [vmem:[#allocation2 + $0x4c] sm:$0xff] %vm572_vm0, %v9746_v5 }
  0xf9   : > { %778 = vst.msk [vmem:[#allocation2 + $0x54] sm:$0xf] %vm767_vm1, %v9746_v5 }
  0xfa   : > { %v9962_v12 = vpop.f32.mrf.mxu0  ;;  %v9964_v13 = vpop.f32.mrf.mxu1  ;;  %1084 = vst.msk [vmem:[#allocation2 + $0x58] sm:$0xff] %vm572_vm0, %v9746_v5 }
  0xfb   : > { %1085 = vst.msk [vmem:[#allocation2 + $0x60] sm:$0xf] %vm767_vm1, %v9746_v5 }
  0xfc   : > { %1094 = vst.msk [vmem:[#allocation2 + $0xa4] sm:$0xff] %vm572_vm0, %v9746_v5 }
  0xfd   : > { %1095 = vst.msk [vmem:[#allocation2 + $0xac] sm:$0xf] %vm767_vm1, %v9746_v5 }
  0xfe   : > { %v1201_v8 = vld [vmem:[#allocation2 + $0x3] sm:$0xff]  ;;  %5237 = vst [vmem:[#allocation5] sm:$0x1f] %v9746_v5 }
  0xff   : > { %v1120_v9 = vld [vmem:[#allocation2 + $0x1] sm:$0xff]  ;;  %v1209_v14 = vpack.c.bf16 %v1201_v8, %v1201_v8  ;;  %5240 = vst [vmem:[#allocation5 + $0x15] sm:$0xff] %v9746_v5 }
 0x100   : > { %v1128_v15 = vpack.c.bf16 %v1120_v9, %v1120_v9  ;;  %5242 = vst [vmem:[#allocation5 + $0x20] sm:$0x1f] %v9746_v5 }
 0x101   : > { %1225 = vrot.lane.b32.xlu1 %v1209_v14, %s9747_s13  ;;  %5245 = vst [vmem:[#allocation5 + $0x35] sm:$0xff] %v9746_v5 }
 0x102   : > { %v660_v18 = vpop.f32.mrf.mxu0  ;;  %v978_v19 = vpop.f32.mrf.mxu1  ;;  %1144 = vrot.lane.b32.xlu0 %v1128_v15, %s9747_s13 }
 0x103   : > { %v661_v20 = vadd.f32 %v9932_v45, %v660_v18  ;;  %v979_v21 = vadd.f32 %v9932_v45, %v978_v19 }
 0x105   : > { %v722_v24 = vmax.f32 %v661_v20, 0.0  ;;  %v1040_v27 = vmax.f32 %v979_v21, 0.0  ;;  %7403 = vmatmul.msk.bf16.gmra.mxu0 %vm572_vm0, %v9185_v16  ;;  %7483 = vmatmul.msk.bf16.gmra.mxu1 %vm572_vm0, %v9201_v17 }
 0x107   : > { %v9974_v28 = vmax.f32 %v714_v22, %v722_v24  ;;  %v9976_v29 = vmax.f32 %v1032_v23, %v1040_v27 }
 0x10a   : > { %v9978_v30 = vpop.f32.mrf.mxu0  ;;  %v9980_v33 = vpop.f32.mrf.mxu1 }
 0x112   : > { %v665_v40 = vpop.f32.mrf.mxu0  ;;  %v983_v46 = vpop.f32.mrf.mxu1 }
 0x113   : > { %v666_v47 = vadd.f32 %v9932_v45, %v665_v40  ;;  %v984_v48 = vadd.f32 %v9932_v45, %v983_v46  ;;  %v653_v40 = vadd.f32 %v9932_v45, %v9946_v60  ;;  %v971_v46 = vadd.f32 %v9932_v45, %v9948_v61 }
 0x115   : > { %v724_v51 = vmax.f32 %v666_v47, 0.0  ;;  %v1042_v52 = vmax.f32 %v984_v48, 0.0  ;;  %7404 = vmatmul.msk.bf16.gmra.mxu0 %vm572_vm0, %v9186_v36  ;;  %7484 = vmatmul.msk.bf16.gmra.mxu1 %vm572_vm0, %v9202_v39  ;;  %v719_v8 = vmax.f32 %v653_v40, 0.0  ;;  %v1037_v61 = vmax.f32 %v971_v46, 0.0 }
 0x117   : > { %v9990_v53 = vmax.f32 %v716_v49, %v724_v51  ;;  %v9992_v41 = vmax.f32 %v1034_v50, %v1042_v52  ;;  %v633_v49 = vadd.f32 %v9932_v45, %v9901_v25  ;;  %v951_v50 = vadd.f32 %v9932_v45, %v9903_v26 }
 0x119   : > { %v711_v14 = vmax.f32 %v633_v49, 0.0  ;;  %v1029_v26 = vmax.f32 %v951_v50, 0.0 }
 0x11a   : > { %v9994_v42 = vpop.f32.mrf.mxu0  ;;  %v9996_v54 = vpop.f32.mrf.mxu1 }
 0x122   : > { %v670_v55 = vpop.f32.mrf.mxu0  ;;  %v988_v56 = vpop.f32.mrf.mxu1 }
 0x123   : > { %v671_v20 = vadd.f32 %v9932_v45, %v670_v55  ;;  %v989_v21 = vadd.f32 %v9932_v45, %v988_v56 }
 0x125   : > { %v726_v34 = vmax.f32 %v671_v20, 0.0  ;;  %v1044_v35 = vmax.f32 %v989_v21, 0.0  ;;  %v1061_v21 = vmax.f32 %v1029_v26, %v1037_v61 }
 0x12a   : > { %v672_v57 = vpop.f32.mrf.mxu0  ;;  %v990_v62 = vpop.f32.mrf.mxu1 }
 0x12b   : > { %v673_v51 = vadd.f32 %v9932_v45, %v672_v57  ;;  %v991_v52 = vadd.f32 %v9932_v45, %v990_v62  ;;  %v9346_v57 = vld [vmem:[#allocation8 + $0x138] sm:$0xff] }
 0x12c   : > { %4721 = vmatpush.bf16.msrb.mxu0 %v9346_v57 }
 0x12d   : > { %v727_v62 = vmax.f32 %v673_v51, 0.0  ;;  %v1045_v15 = vmax.f32 %v991_v52, 0.0 }
 0x132   : > { %v9998_v63 = vpop.f32.mrf.mxu0  ;;  %v10000_v0 = vpop.f32.mrf.mxu1 }
 0x13a   : > { %v10002_v1 = vpop.f32.mrf.mxu0  ;;  %v10004_v2 = vpop.f32.mrf.mxu1 }
 0x142   : > { %v10006_v3 = vpop.f32.mrf.mxu0  ;;  %v10008_v4 = vpop.f32.mrf.mxu1 }
 0x14a   : > { %v10014_v6 = vpop.f32.mrf.mxu0  ;;  %v10016_v7 = vpop.f32.mrf.mxu1 }
 0x152   : > { %v10024_v16 = vpop.f32.mrf.mxu0  ;;  %v10026_v17 = vpop.f32.mrf.mxu1 }
 0x15a   : > { %v10028_v18 = vpop.f32.mrf.mxu0  ;;  %v10030_v19 = vpop.f32.mrf.mxu1 }
 0x162   : > { %v690_v22 = vpop.f32.mrf.mxu0  ;;  %v1008_v23 = vpop.f32.mrf.mxu1 }
 0x163   : > { %v691_v24 = vadd.f32 %v9932_v45, %v690_v22  ;;  %v1009_v27 = vadd.f32 %v9932_v45, %v1008_v23 }
 0x165   : > { %v734_v36 = vmax.f32 %v691_v24, 0.0  ;;  %v1052_v39 = vmax.f32 %v1009_v27, 0.0  ;;  %v676_v24 = vadd.f32 %v9932_v45, %v9998_v63  ;;  %v994_v27 = vadd.f32 %v9932_v45, %v10000_v0 }
 0x166   : > { %v638_v63 = vadd.f32 %v9932_v45, %v9909_v31  ;;  %v658_v31 = vadd.f32 %v9932_v45, %v9962_v12  ;;  %v996_v12 = vadd.f32 %v9932_v45, %v10004_v2 }
 0x167   : > { %v750_v47 = vmax.f32 %v726_v34, %v734_v36  ;;  %v1068_v48 = vmax.f32 %v1044_v35, %v1052_v39  ;;  %v728_v51 = vmax.f32 %v676_v24, 0.0  ;;  %v1046_v0 = vmax.f32 %v994_v27, 0.0 }
 0x169   : > { %v758_v55 = vmax.f32 %v9942_v58, %v750_v47  ;;  %v1076_v56 = vmax.f32 %v9944_v59, %v1068_v48  ;;  %v743_v59 = vmax.f32 %v711_v14, %v719_v8 }
 0x16a   : > { %v692_v60 = vpop.f32.mrf.mxu0  ;;  %v1010_v5 = vpop.f32.mrf.mxu1 }
 0x16b   : > { %769 = vst.msk [vmem:[#allocation2 + $0xc] sm:$0xff] %vm572_vm0, %v758_v55  ;;  %v693_v9 = vadd.f32 %v9932_v45, %v692_v60  ;;  %v1011_v25 = vadd.f32 %v9932_v45, %v1010_v5 }
 0x16c   : > { %1086 = vst.msk [vmem:[#allocation2 + $0x64] sm:$0xff] %vm572_vm0, %v1076_v56 }
 0x16d   : > { %v735_v58 = vmax.f32 %v693_v9, 0.0  ;;  %v1053_v20 = vmax.f32 %v1011_v25, 0.0  ;;  %v976_v25 = vadd.f32 %v9932_v45, %v9964_v13  ;;  %v713_v13 = vmax.f32 %v638_v63, 0.0 }
 0x16f   : > { %v751_v22 = vmax.f32 %v727_v62, %v735_v58  ;;  %v1069_v23 = vmax.f32 %v1045_v15, %v1053_v20  ;;  %v956_v58 = vadd.f32 %v9932_v45, %v9911_v32  ;;  %v678_v20 = vadd.f32 %v9932_v45, %v10002_v1 }
 0x171   : > { %v759_v34 = vmax.f32 %v743_v59, %v751_v22  ;;  %v1077_v35 = vmax.f32 %v1061_v21, %v1069_v23  ;;  %v721_v22 = vmax.f32 %v658_v31, 0.0  ;;  %v1039_v23 = vmax.f32 %v976_v25, 0.0 }
 0x172   : > { %v695_v36 = vpop.f32.mrf.mxu0  ;;  %v1013_v39 = vpop.f32.mrf.mxu1  ;;  %v1202_v40 = vld [vmem:[#allocation2 + $0xb] sm:$0xff]  ;;  %v681_v31 = vadd.f32 %v9932_v45, %v10006_v3  ;;  %v999_v25 = vadd.f32 %v9932_v45, %v10008_v4 }
 0x173   : > { %v1121_v46 = vld [vmem:[#allocation2 + $0x9] sm:$0xff]  ;;  %770 = vst.msk [vmem:[#allocation2 + $0x14] sm:$0xff] %vm572_vm0, %v759_v34  ;;  %v696_v47 = vadd.f32 %v9932_v45, %v695_v36  ;;  %v1014_v48 = vadd.f32 %v9932_v45, %v1013_v39  ;;  %v1210_v49 = vpack.c.bf16 %v1202_v40, %v1202_v40  ;;  %v2082_v55 = vld [vmem:[#allocation2 + $0x60] sm:$0xff]  ;;  %v1031_v36 = vmax.f32 %v956_v58, 0.0 }
 0x174   : > { %v10059_v50 = vpack.c.bf16 %v1121_v46, %v1121_v46  ;;  %1087 = vst.msk [vmem:[#allocation2 + $0x6c] sm:$0xff] %vm572_vm0, %v1077_v35  ;;  %v1178_v52 = vld [vmem:[#allocation2 + $0xa] sm:$0xff]  ;;  %v2090_v61 = vpack.c.bf16 %v2082_v55, %v2082_v55  ;;  %v2162_v9 = vld [vmem:[#allocation2 + $0x62] sm:$0xff]  ;;  %v729_v39 = vmax.f32 %v678_v20, 0.0  ;;  %v1047_v40 = vmax.f32 %v996_v12, 0.0 }
 0x175   : > { %v1097_v56 = vld [vmem:[#allocation2 + $0x8] sm:$0xff]  ;;  %v736_v60 = vmax.f32 %v696_v47, 0.0  ;;  %v1054_v5 = vmax.f32 %v1014_v48, 0.0  ;;  %1227 = vrot.lane.b32.xlu1 %v1210_v49, %s9747_s13  ;;  %v1186_v8 = vpack.c.bf16 %v1178_v52, %v1178_v52  ;;  %v2170_v26 = vpack.c.bf16 %v2162_v9, %v2162_v9  ;;  %v2185_v9 = vld [vmem:[#allocation2 + $0x5b] sm:$0xff] }
 0x176   : > { %1146 = vrot.lane.b32.xlu0 %v10059_v50, %s9747_s13  ;;  %v10071_v14 = vpack.c.bf16 %v1097_v56, %v1097_v56  ;;  %v1337_v15 = vld [vmem:[#allocation2 + $0x6] sm:$0xff]  ;;  %2098 = vst.msk [vmem:[#allocation3 + $0x1d4] sm:$0xf] %vm767_vm1, %v2090_v61  ;;  %v2193_v12 = vpack.c.bf16 %v2185_v9, %v2185_v9 }
 0x177   : > { %v752_v57 = vmax.f32 %v728_v51, %v736_v60  ;;  %v1070_v62 = vmax.f32 %v1046_v0, %v1054_v5  ;;  %1194 = vst.msk [vmem:[#allocation3 + $0x38] sm:$0xf] %vm767_vm1, %v1186_v8  ;;  %v1345_v1 = vpack.c.bf16 %v1337_v15, %v1337_v15  ;;  %v745_v60 = vmax.f32 %v713_v13, %v721_v22 }
 0x178   : > { %1113 = vst.msk [vmem:[#allocation3 + $0x34] sm:$0xf] %vm767_vm1, %v10071_v14  ;;  %v1063_v5 = vmax.f32 %v1031_v36, %v1039_v23  ;;  %v1048_v22 = vmax.f32 %v999_v25, 0.0  ;;  %v663_v36 = vadd.f32 %v9932_v45, %v9978_v30  ;;  %v683_v30 = vadd.f32 %v9932_v45, %v10014_v6 }
 0x179   : > { %v760_v59 = vmax.f32 %v9958_v10, %v752_v57  ;;  %v1078_v21 = vmax.f32 %v9960_v11, %v1070_v62  ;;  %2178 = vst.msk [vmem:[#allocation3 + $0x1d8] sm:$0xf] %vm767_vm1, %v2170_v26 }
 0x17a   : > { %v697_v24 = vpop.f32.mrf.mxu0  ;;  %v1015_v32 = vpop.f32.mrf.mxu1  ;;  %v1122_v27 = vld [vmem:[#allocation2 + $0x11] sm:$0xff]  ;;  %1353 = vst.msk [vmem:[#allocation3 + $0xc] sm:$0xf] %vm767_vm1, %v1345_v1 }
 0x17b   : > { %v1203_v34 = vld [vmem:[#allocation2 + $0x13] sm:$0xff]  ;;  %771 = vst.msk [vmem:[#allocation2 + $0x1c] sm:$0xff] %vm572_vm0, %v760_v59  ;;  %v698_v2 = vadd.f32 %v9932_v45, %v697_v24  ;;  %v1016_v10 = vadd.f32 %v9932_v45, %v1015_v32  ;;  %v10089_v35 = vpack.c.bf16 %v1122_v27, %v1122_v27  ;;  %v2083_v0 = vld [vmem:[#allocation2 + $0x68] sm:$0xff] }
 0x17c   : > { %v1211_v11 = vpack.c.bf16 %v1203_v34, %v1203_v34  ;;  %1088 = vst.msk [vmem:[#allocation2 + $0x74] sm:$0xff] %vm572_vm0, %v1078_v21  ;;  %v1098_v46 = vld [vmem:[#allocation2 + $0x10] sm:$0xff]  ;;  %v2091_v55 = vpack.c.bf16 %v2083_v0, %v2083_v0  ;;  %v730_v21 = vmax.f32 %v681_v31, 0.0 }
 0x17d   : > { %v1179_v47 = vld [vmem:[#allocation2 + $0x12] sm:$0xff]  ;;  %v737_v48 = vmax.f32 %v698_v2, 0.0  ;;  %v1055_v49 = vmax.f32 %v1016_v10, 0.0  ;;  %1148 = vrot.lane.b32.xlu2 %v10089_v35, %s9747_s13  ;;  %v10095_v63 = vpack.c.bf16 %v1098_v46, %v1098_v46  ;;  %v2163_v52 = vld [vmem:[#allocation2 + $0x6a] sm:$0xff]  ;;  %1433 = vst.msk [vmem:[#allocation3 + $0x10] sm:$0xf] %vm767_vm1, %v10071_v14 }
 0x17e   : > { %1229 = vrot.lane.b32.xlu0 %v1211_v11, %s9747_s13  ;;  %v1187_v51 = vpack.c.bf16 %v1179_v47, %v1179_v47  ;;  %v2171_v56 = vpack.c.bf16 %v2163_v52, %v2163_v52  ;;  %2099 = vst.msk [vmem:[#allocation3 + $0x208] sm:$0xf] %vm767_vm1, %v2091_v55  ;;  %v643_v11 = vadd.f32 %v9932_v45, %v9917_v37  ;;  %v1338_v47 = vld [vmem:[#allocation2 + $0xe] sm:$0xff]  ;;  %v2106_v55 = vld [vmem:[#allocation2 + $0x61] sm:$0xff] }
 0x17f   : > { %v753_v8 = vmax.f32 %v729_v39, %v737_v48  ;;  %v1071_v61 = vmax.f32 %v1047_v40, %v1055_v49  ;;  %1114 = vst.msk [vmem:[#allocation3 + $0x68] sm:$0xf] %vm767_vm1, %v10095_v63  ;;  %v2105_v39 = vld [vmem:[#allocation2 + $0x59] sm:$0xff]  ;;  %v981_v48 = vadd.f32 %v9932_v45, %v9980_v33  ;;  %v961_v37 = vadd.f32 %v9932_v45, %v9919_v38 }
 0x180   : > { %1195 = vst.msk [vmem:[#allocation3 + $0x6c] sm:$0xf] %vm767_vm1, %v1187_v51  ;;  %v1259_v0 = vld [vmem:[#allocation2 + $0x14] sm:$0xff]  ;;  %v1001_v52 = vadd.f32 %v9932_v45, %v10016_v7  ;;  %v10138_v25 = vpack.c.bf16 %v2106_v55, %v2106_v55 }
 0x181   : > { %v761_v26 = vmax.f32 %v745_v60, %v753_v8  ;;  %v1079_v57 = vmax.f32 %v1063_v5, %v1071_v61  ;;  %2179 = vst.msk [vmem:[#allocation3 + $0x20c] sm:$0xf] %vm767_vm1, %v2171_v56  ;;  %v2113_v60 = vpack.c.bf16 %v2105_v39, %v2105_v39  ;;  %v1346_v5 = vpack.c.bf16 %v1338_v47, %v1338_v47 }
 0x182   : > { %v700_v62 = vpop.f32.mrf.mxu0  ;;  %v1018_v15 = vpop.f32.mrf.mxu1  ;;  %v1204_v58 = vld [vmem:[#allocation2 + $0x1b] sm:$0xff]  ;;  %v715_v8 = vmax.f32 %v643_v11, 0.0  ;;  %v723_v61 = vmax.f32 %v663_v36, 0.0  ;;  %v1267_v6 = vpack.c.bf16 %v1259_v0, %v1259_v0  ;;  %v1041_v31 = vmax.f32 %v981_v48, 0.0  ;;  %1434 = vst.msk [vmem:[#allocation3 + $0x44] sm:$0xf] %vm767_vm1, %v10095_v63 }
 0x183   : > { %v1123_v20 = vld [vmem:[#allocation2 + $0x19] sm:$0xff]  ;;  %772 = vst.msk [vmem:[#allocation2 + $0x24] sm:$0xff] %vm572_vm0, %v761_v26  ;;  %v701_v3 = vadd.f32 %v9932_v45, %v700_v62  ;;  %v1019_v13 = vadd.f32 %v9932_v45, %v1018_v15  ;;  %v1212_v4 = vpack.c.bf16 %v1204_v58, %v1204_v58  ;;  %v2084_v10 = vld [vmem:[#allocation2 + $0x70] sm:$0xff]  ;;  %v731_v26 = vmax.f32 %v683_v30, 0.0 }
 0x184   : > { %v10110_v59 = vpack.c.bf16 %v1123_v20, %v1123_v20  ;;  %1089 = vst.msk [vmem:[#allocation2 + $0x7c] sm:$0xff] %vm572_vm0, %v1079_v57  ;;  %v1099_v23 = vld [vmem:[#allocation2 + $0x18] sm:$0xff]  ;;  %v2092_v46 = vpack.c.bf16 %v2084_v10, %v2084_v10  ;;  %v1049_v57 = vmax.f32 %v1001_v52, 0.0  ;;  %v1004_v10 = vadd.f32 %v9932_v45, %v10026_v17 }
 0x185   : > { %v1180_v24 = vld [vmem:[#allocation2 + $0x1a] sm:$0xff]  ;;  %v738_v32 = vmax.f32 %v701_v3, 0.0  ;;  %v1056_v27 = vmax.f32 %v1019_v13, 0.0  ;;  %1231 = vrot.lane.b32.xlu1 %v1212_v4, %s9747_s13  ;;  %v1107_v34 = vpack.c.bf16 %v1099_v23, %v1099_v23  ;;  %v2164_v2 = vld [vmem:[#allocation2 + $0x72] sm:$0xff]  ;;  %1354 = vst.msk [vmem:[#allocation3 + $0x40] sm:$0xf] %vm767_vm1, %v1346_v5  ;;  %v747_v4 = vmax.f32 %v715_v8, %v723_v61 }
 0x186   : > { %1150 = vrot.lane.b32.xlu2 %v10110_v59, %s9747_s13  ;;  %v1188_v1 = vpack.c.bf16 %v1180_v24, %v1180_v24  ;;  %2209 = vrot.lane.b32.xlu0 %v2193_v12, %s9747_s13  ;;  %v2172_v40 = vpack.c.bf16 %v2164_v2, %v2164_v2  ;;  %2100 = vst.msk [vmem:[#allocation3 + $0x23c] sm:$0xf] %vm767_vm1, %v2092_v46  ;;  %v1050_v30 = vmax.f32 %v1004_v10, 0.0 }
 0x187   : > { %v754_v49 = vmax.f32 %v730_v21, %v738_v32  ;;  %v1072_v51 = vmax.f32 %v1048_v22, %v1056_v27  ;;  %1115 = vst.msk [vmem:[#allocation3 + $0x9c] sm:$0xf] %vm767_vm1, %v1107_v34  ;;  %v9345_v21 = vld [vmem:[#allocation8 + $0x130] sm:$0xff]  ;;  %v686_v2 = vadd.f32 %v9932_v45, %v10024_v16  ;;  %v648_v0 = vadd.f32 %v9932_v45, %v9925_v43 }
 0x188   : > { %1196 = vst.msk [vmem:[#allocation3 + $0xa0] sm:$0xf] %vm767_vm1, %v1188_v1  ;;  %4722 = vmatpush.bf16.msrb.mxu0 %v9345_v21  ;;  %v668_v43 = vadd.f32 %v9932_v45, %v9994_v42  ;;  %v1006_v42 = vadd.f32 %v9932_v45, %v10030_v19 }
 0x189   : > { %v762_v56 = vmax.f32 %v9974_v28, %v754_v49  ;;  %v1080_v33 = vmax.f32 %v9976_v29, %v1072_v51  ;;  %2180 = vst.msk [vmem:[#allocation3 + $0x240] sm:$0xf] %vm767_vm1, %v2172_v40  ;;  %v1033_v29 = vmax.f32 %v961_v37, 0.0  ;;  %v732_v37 = vmax.f32 %v686_v2, 0.0 }
 0x18a   : > { %v702_v38 = vpop.f32.mrf.mxu0  ;;  %v1020_v9 = vpop.f32.mrf.mxu1  ;;  %v1100_v62 = vld [vmem:[#allocation2 + $0x20] sm:$0xff]  ;;  %1275 = vst.msk [vmem:[#allocation3 + $0x70] sm:$0xf] %vm767_vm1, %v1267_v6 }
 0x18b   : > { %773 = vst.msk [vmem:[#allocation2 + $0x2c] sm:$0xff] %vm572_vm0, %v762_v56  ;;  %v703_v7 = vadd.f32 %v9932_v45, %v702_v38  ;;  %v1021_v28 = vadd.f32 %v9932_v45, %v1020_v9  ;;  %v1181_v15 = vld [vmem:[#allocation2 + $0x22] sm:$0xff]  ;;  %v10144_v12 = vpack.c.bf16 %v1100_v62, %v1100_v62  ;;  %v2165_v13 = vld [vmem:[#allocation2 + $0x7a] sm:$0xff]  ;;  %v1065_v24 = vmax.f32 %v1033_v29, %v1041_v31 }
 0x18c   : > { %1090 = vst.msk [vmem:[#allocation2 + $0x84] sm:$0xff] %vm572_vm0, %v1080_v33  ;;  %v1189_v3 = vpack.c.bf16 %v1181_v15, %v1181_v15  ;;  %v2173_v22 = vpack.c.bf16 %v2165_v13, %v2165_v13  ;;  %v2085_v23 = vld [vmem:[#allocation2 + $0x78] sm:$0xff]  ;;  %v1205_v34 = vld [vmem:[#allocation2 + $0x23] sm:$0xff]  ;;  %v986_v38 = vadd.f32 %v9932_v45, %v9996_v54  ;;  %v966_v29 = vadd.f32 %v9932_v45, %v9927_v44 }
 0x18d   : > { %v739_v58 = vmax.f32 %v703_v7, 0.0  ;;  %v1057_v20 = vmax.f32 %v1021_v28, 0.0  ;;  %2129 = vrot.lane.b32.xlu1 %v2113_v60, %s9747_s13  ;;  %1116 = vst.msk [vmem:[#allocation3 + $0xd0] sm:$0xf] %vm767_vm1, %v10144_v12  ;;  %v10150_v1 = vpack.c.bf16 %v2085_v23, %v2085_v23  ;;  %v1124_v11 = vld [vmem:[#allocation2 + $0x21] sm:$0xff]  ;;  %v1213_v47 = vpack.c.bf16 %v1205_v34, %v1205_v34 }
 0x18e   : > { %2131 = vrot.lane.b32.xlu2 %v10138_v25, %s9747_s13  ;;  %1197 = vst.msk [vmem:[#allocation3 + $0xd4] sm:$0xf] %vm767_vm1, %v1189_v3  ;;  %v10163_v49 = vpack.c.bf16 %v1124_v11, %v1124_v11  ;;  %v1340_v31 = vld [vmem:[#allocation2 + $0x1e] sm:$0xff]  ;;  %v717_v44 = vmax.f32 %v648_v0, 0.0  ;;  %v725_v3 = vmax.f32 %v668_v43, 0.0  ;;  %v1043_v13 = vmax.f32 %v986_v38, 0.0 }
 0x18f   : > { %v755_v32 = vmax.f32 %v731_v26, %v739_v58  ;;  %v1073_v27 = vmax.f32 %v1049_v57, %v1057_v20  ;;  %2181 = vst.msk [vmem:[#allocation3 + $0x274] sm:$0xf] %vm767_vm1, %v2173_v22  ;;  %v688_v26 = vadd.f32 %v9932_v45, %v10028_v18  ;;  %v2186_v54 = vld [vmem:[#allocation2 + $0x63] sm:$0xff]  ;;  %v2108_v58 = vld [vmem:[#allocation2 + $0x71] sm:$0xff]  ;;  %v1348_v20 = vpack.c.bf16 %v1340_v31, %v1340_v31 }
 0x190   : > { %2101 = vst.msk [vmem:[#allocation3 + $0x270] sm:$0xf] %vm767_vm1, %v10150_v1 }
 0x191   : > { %v763_v36 = vmax.f32 %v747_v4, %v755_v32  ;;  %v1081_v39 = vmax.f32 %v1065_v24, %v1073_v27  ;;  %v733_v23 = vmax.f32 %v688_v26, 0.0  ;;  %v1051_v24 = vmax.f32 %v1006_v42, 0.0  ;;  %1356 = vst.msk [vmem:[#allocation3 + $0xa8] sm:$0xf] %vm767_vm1, %v1348_v20  ;;  %v1260_v26 = vld [vmem:[#allocation2 + $0x1c] sm:$0xff]  ;;  %v2187_v42 = vld [vmem:[#allocation2 + $0x6b] sm:$0xff] }
 0x192   : > { %v705_v40 = vpop.f32.mrf.mxu0  ;;  %v1023_v46 = vpop.f32.mrf.mxu1  ;;  %v1125_v48 = vld [vmem:[#allocation2 + $0x29] sm:$0xff]  ;;  %v10198_v32 = vpack.c.bf16 %v2108_v58, %v2108_v58  ;;  %1436 = vst.msk [vmem:[#allocation3 + $0xac] sm:$0xf] %vm767_vm1, %v10144_v12  ;;  %v9322_v12 = vld [vmem:[#allocation8 + $0x78] sm:$0xff] }
 0x193   : > { %774 = vst.msk [vmem:[#allocation2 + $0x34] sm:$0xff] %vm572_vm0, %v763_v36  ;;  %v706_v16 = vadd.f32 %v9932_v45, %v705_v40  ;;  %v1024_v17 = vadd.f32 %v9932_v45, %v1023_v46  ;;  %v10165_v51 = vpack.c.bf16 %v1125_v48, %v1125_v48  ;;  %v1182_v52 = vld [vmem:[#allocation2 + $0x2a] sm:$0xff]  ;;  %v2086_v8 = vld [vmem:[#allocation2 + $0x80] sm:$0xff]  ;;  %4574 = vmatpush.bf16.msra.mxu3 %v9322_v12 }
 0x194   : > { %1091 = vst.msk [vmem:[#allocation2 + $0x8c] sm:$0xff] %vm572_vm0, %v1081_v39  ;;  %v1101_v55 = vld [vmem:[#allocation2 + $0x28] sm:$0xff]  ;;  %v1190_v60 = vpack.c.bf16 %v1182_v52, %v1182_v52  ;;  %v2094_v9 = vpack.c.bf16 %v2086_v8, %v2086_v8  ;;  %v749_v39 = vmax.f32 %v717_v44, %v725_v3 }
 0x195   : > { %v740_v56 = vmax.f32 %v706_v16, 0.0  ;;  %v1058_v33 = vmax.f32 %v1024_v17, 0.0  ;;  %1233 = vrot.lane.b32.xlu1 %v1213_v47, %s9747_s13  ;;  %v10173_v5 = vpack.c.bf16 %v1101_v55, %v1101_v55  ;;  %v2166_v61 = vld [vmem:[#allocation2 + $0x82] sm:$0xff]  ;;  %1154 = vrot.lane.b32.xlu0 %v10165_v51, %s9747_s13  ;;  %v1206_v57 = vld [vmem:[#allocation2 + $0x2b] sm:$0xff]  ;;  %2420 = vst.msk [vmem:[#allocation3 + $0x24c] sm:$0xf] %vm767_vm1, %v10150_v1 }
 0x196   : > { %1152 = vrot.lane.b32.xlu2 %v10163_v49, %s9747_s13  ;;  %v2174_v6 = vpack.c.bf16 %v2166_v61, %v2166_v61  ;;  %1198 = vst.msk [vmem:[#allocation3 + $0x108] sm:$0xf] %vm767_vm1, %v1190_v60  ;;  %v1214_v22 = vpack.c.bf16 %v1206_v57, %v1206_v57  ;;  %v9344_v40 = vld [vmem:[#allocation8 + $0x128] sm:$0xff]  ;;  %v1339_v61 = vld [vmem:[#allocation2 + $0x16] sm:$0xff]  ;;  %v1268_v57 = vpack.c.bf16 %v1260_v26, %v1260_v26  ;;  %v9343_v12 = vld [vmem:[#allocation8 + $0x120] sm:$0xff] }
 0x197   : > { %v756_v7 = vmax.f32 %v732_v37, %v740_v56  ;;  %v1074_v28 = vmax.f32 %v1050_v30, %v1058_v33  ;;  %1117 = vst.msk [vmem:[#allocation3 + $0x104] sm:$0xf] %vm767_vm1, %v10173_v5  ;;  %v1261_v37 = vld [vmem:[#allocation2 + $0x24] sm:$0xff]  ;;  %4723 = vmatpush.bf16.msrb.mxu0 %v9344_v40  ;;  %v1258_v33 = vld [vmem:[#allocation2 + $0xc] sm:$0xff] }
 0x198   : > { %2102 = vst.msk [vmem:[#allocation3 + $0x2a4] sm:$0xf] %vm767_vm1, %v2094_v9  ;;  %v2107_v30 = vld [vmem:[#allocation2 + $0x69] sm:$0xff]  ;;  %v1269_v8 = vpack.c.bf16 %v1261_v37, %v1261_v37 }
 0x199   : > { %v764_v62 = vmax.f32 %v9990_v53, %v756_v7  ;;  %v1082_v15 = vmax.f32 %v9992_v41, %v1074_v28  ;;  %2182 = vst.msk [vmem:[#allocation3 + $0x2a8] sm:$0xf] %vm767_vm1, %v2174_v6  ;;  %v2194_v53 = vpack.c.bf16 %v2186_v54, %v2186_v54  ;;  %v1035_v41 = vmax.f32 %v966_v29, 0.0  ;;  %v1341_v58 = vld [vmem:[#allocation2 + $0x26] sm:$0xff] }
 0x19a   : > { %v707_v18 = vpop.f32.mrf.mxu0  ;;  %v1025_v4 = vpop.f32.mrf.mxu1  ;;  %v1183_v27 = vld [vmem:[#allocation2 + $0x32] sm:$0xff]  ;;  %v10217_v38 = vpack.c.bf16 %v2107_v30, %v2107_v30  ;;  %v10222_v7 = vpack.c.bf16 %v1258_v33, %v1258_v33  ;;  %v10229_v29 = vpack.c.bf16 %v1339_v61, %v1339_v61  ;;  %1277 = vst.msk [vmem:[#allocation3 + $0xd8] sm:$0xf] %vm767_vm1, %v1269_v8  ;;  %v2322_v44 = vld [vmem:[#allocation2 + $0x66] sm:$0xff] }
 0x19b   : > { %775 = vst.msk [vmem:[#allocation2 + $0x3c] sm:$0xff] %vm572_vm0, %v764_v62  ;;  %v708_v19 = vadd.f32 %v9932_v45, %v707_v18  ;;  %v1026_v21 = vadd.f32 %v9932_v45, %v1025_v4  ;;  %v1102_v34 = vld [vmem:[#allocation2 + $0x30] sm:$0xff]  ;;  %v1191_v11 = vpack.c.bf16 %v1183_v27, %v1183_v27  ;;  %v2087_v45 = vld [vmem:[#allocation2 + $0x88] sm:$0xff]  ;;  %v1067_v48 = vmax.f32 %v1035_v41, %v1043_v13  ;;  %v1419_v62 = vld [vmem:[#allocation2 + $0x18] sm:$0xff] }
 0x19c   : > { %1092 = vst.msk [vmem:[#allocation2 + $0x94] sm:$0xff] %vm572_vm0, %v1082_v15  ;;  %v10202_v36 = vpack.c.bf16 %v1102_v34, %v1102_v34  ;;  %v2095_v46 = vpack.c.bf16 %v2087_v45, %v2087_v45  ;;  %v2167_v47 = vld [vmem:[#allocation2 + $0x8a] sm:$0xff]  ;;  %v1207_v54 = vld [vmem:[#allocation2 + $0x33] sm:$0xff]  ;;  %v2195_v18 = vpack.c.bf16 %v2187_v42, %v2187_v42  ;;  %v2330_v14 = vpack.c.bf16 %v2322_v44, %v2322_v44  ;;  %v2321_v45 = vld [vmem:[#allocation2 + $0x5e] sm:$0xff] }
 0x19d   : > { %v741_v2 = vmax.f32 %v708_v19, 0.0  ;;  %v1059_v10 = vmax.f32 %v1026_v21, 0.0  ;;  %2211 = vrot.lane.b32.xlu1 %v2194_v53, %s9747_s13  ;;  %2135 = vrot.lane.b32.xlu0 %v10198_v32, %s9747_s13  ;;  %1199 = vst.msk [vmem:[#allocation3 + $0x13c] sm:$0xf] %vm767_vm1, %v1191_v11  ;;  %v2175_v0 = vpack.c.bf16 %v2167_v47, %v2167_v47  ;;  %v1126_v56 = vld [vmem:[#allocation2 + $0x31] sm:$0xff]  ;;  %v1215_v4 = vpack.c.bf16 %v1207_v54, %v1207_v54 }
 0x19e   : > { %1235 = vrot.lane.b32.xlu2 %v1214_v22, %s9747_s13  ;;  %1118 = vst.msk [vmem:[#allocation3 + $0x138] sm:$0xf] %vm767_vm1, %v10202_v36  ;;  %v10220_v6 = vpack.c.bf16 %v1126_v56, %v1126_v56  ;;  %v1427_v19 = vpack.c.bf16 %v1419_v62, %v1419_v62  ;;  %v1349_v22 = vpack.c.bf16 %v1341_v58, %v1341_v58  ;;  %v1262_v41 = vld [vmem:[#allocation2 + $0x2c] sm:$0xff]  ;;  %v2244_v62 = vld [vmem:[#allocation2 + $0x74] sm:$0xff] }
 0x19f   : > { %v757_v16 = vmax.f32 %v733_v23, %v741_v2  ;;  %v1075_v17 = vmax.f32 %v1051_v24, %v1059_v10  ;;  %2103 = vst.msk [vmem:[#allocation3 + $0x2d8] sm:$0xf] %vm767_vm1, %v2095_v46  ;;  %v9314_v23 = vld [vmem:[#allocation8 + $0x38] sm:$0xff]  ;;  %v2243_v24 = vld [vmem:[#allocation2 + $0x6c] sm:$0xff]  ;;  %v1270_v34 = vpack.c.bf16 %v1262_v41, %v1262_v41  ;;  %v2110_v2 = vld [vmem:[#allocation2 + $0x81] sm:$0xff]  ;;  %4724 = vmatpush.bf16.msrb.mxu0 %v9343_v12 }
 0x1a0   : > { %2183 = vst.msk [vmem:[#allocation3 + $0x2dc] sm:$0xf] %vm767_vm1, %v2175_v0  ;;  %v1342_v27 = vld [vmem:[#allocation2 + $0x2e] sm:$0xff]  ;;  %4525 = vmatpush.bf16.msra.mxu2 %v9314_v23  ;;  %v2251_v40 = vpack.c.bf16 %v2243_v24, %v2243_v24  ;;  %v2324_v46 = vld [vmem:[#allocation2 + $0x76] sm:$0xff]  ;;  %v10253_v47 = vpack.c.bf16 %v2110_v2, %v2110_v2  ;;  %v2242_v0 = vld [vmem:[#allocation2 + $0x64] sm:$0xff]  ;;  %v1226_v2 = vpop.permute.xlu1 %1225 }
 0x1a1   : > { %v765_v52 = vmax.f32 %v749_v39, %v757_v16  ;;  %v1083_v55 = vmax.f32 %v1067_v48, %v1075_v17  ;;  %1274 = vst.msk [vmem:[#allocation3 + $0x3c] sm:$0xf] %vm767_vm1, %v10222_v7  ;;  %v2188_v10 = vld [vmem:[#allocation2 + $0x73] sm:$0xff]  ;;  %v1350_v11 = vpack.c.bf16 %v1342_v27, %v1342_v27  ;;  %v2329_v16 = vpack.c.bf16 %v2321_v45, %v2321_v45  ;;  %v1096_v41 = vld [vmem:[#allocation2] sm:$0xff] }
 0x1a2   : > { %v1127_v60 = vld [vmem:[#allocation2 + $0x39] sm:$0xff]  ;;  %1355 = vst.msk [vmem:[#allocation3 + $0x74] sm:$0xf] %vm767_vm1, %v10229_v29  ;;  %v2196_v48 = vpack.c.bf16 %v2188_v10, %v2188_v10  ;;  %v2332_v30 = vpack.c.bf16 %v2324_v46, %v2324_v46  ;;  %v9313_v56 = vld [vmem:[#allocation8 + $0x30] sm:$0xff]  ;;  %v2250_v61 = vpack.c.bf16 %v2242_v0, %v2242_v0  ;;  %v1104_v23 = vpack.c.bf16 %v1096_v41, %v1096_v41  ;;  %v2326_v0 = vld [vmem:[#allocation2 + $0x86] sm:$0xff] }
 0x1a3   : > { %v1103_v63 = vld [vmem:[#allocation2 + $0x38] sm:$0xff]  ;;  %776 = vst.msk [vmem:[#allocation2 + $0x44] sm:$0xff] %vm572_vm0, %v765_v52  ;;  %v10215_v43 = vpack.c.bf16 %v1127_v60, %v1127_v60  ;;  %v2088_v37 = vld [vmem:[#allocation2 + $0x90] sm:$0xff]  ;;  %v2402_v52 = vld [vmem:[#allocation2 + $0x68] sm:$0xff] }
 0x1a4   : > { %v1111_v9 = vpack.c.bf16 %v1103_v63, %v1103_v63  ;;  %1093 = vst.msk [vmem:[#allocation2 + $0x9c] sm:$0xff] %vm572_vm0, %v1083_v55  ;;  %v1184_v31 = vld [vmem:[#allocation2 + $0x3a] sm:$0xff]  ;;  %v9321_v33 = vld [vmem:[#allocation8 + $0x70] sm:$0xff]  ;;  %v10266_v60 = vpack.c.bf16 %v2088_v37, %v2088_v37  ;;  %v2111_v63 = vld [vmem:[#allocation2 + $0x89] sm:$0xff]  ;;  %4526 = vmatpush.bf16.msra.mxu2 %v9313_v56  ;;  %v2410_v42 = vpack.c.bf16 %v2402_v52, %v2402_v52 }
 0x1a5   : > { %1158 = vrot.lane.b32.xlu1 %v10215_v43, %s9747_s13  ;;  %v1192_v28 = vpack.c.bf16 %v1184_v31, %v1184_v31  ;;  %1156 = vrot.lane.b32.xlu0 %v10220_v6, %s9747_s13  ;;  %v1208_v15 = vld [vmem:[#allocation2 + $0x3b] sm:$0xff]  ;;  %1276 = vst.msk [vmem:[#allocation3 + $0xa4] sm:$0xf] %vm767_vm1, %v1268_v57  ;;  %v2168_v8 = vld [vmem:[#allocation2 + $0x92] sm:$0xff]  ;;  %v9312_v31 = vld [vmem:[#allocation8 + $0x28] sm:$0xff]  ;;  %v10275_v58 = vpack.c.bf16 %v2111_v63, %v2111_v63 }
 0x1a6   : > { %2133 = vrot.lane.b32.xlu2 %v10217_v38, %s9747_s13  ;;  %1119 = vst.msk [vmem:[#allocation3 + $0x16c] sm:$0xf] %vm767_vm1, %v1111_v9  ;;  %v1216_v53 = vpack.c.bf16 %v1208_v15, %v1208_v15  ;;  %v2109_v39 = vld [vmem:[#allocation2 + $0x79] sm:$0xff]  ;;  %4575 = vmatpush.bf16.msra.mxu3 %v9321_v33  ;;  %v2176_v26 = vpack.c.bf16 %v2168_v8, %v2168_v8  ;;  %v2323_v54 = vld [vmem:[#allocation2 + $0x6e] sm:$0xff]  ;;  %v2190_v57 = vld [vmem:[#allocation2 + $0x83] sm:$0xff] }
 0x1a7   : > { %1200 = vst.msk [vmem:[#allocation3 + $0x170] sm:$0xf] %vm767_vm1, %v1192_v28  ;;  %v10256_v17 = vpack.c.bf16 %v2109_v39, %v2109_v39  ;;  %v2189_v55 = vld [vmem:[#allocation2 + $0x7b] sm:$0xff]  ;;  %v9320_v28 = vld [vmem:[#allocation8 + $0x68] sm:$0xff]  ;;  %v2331_v44 = vpack.c.bf16 %v2323_v54, %v2323_v54  ;;  %v1145_v39 = vpop.permute.xlu0 %1144  ;;  %v9317_v56 = vld [vmem:[#allocation8 + $0x50] sm:$0xff] }
 0x1a8   : > { %1435 = vst.msk [vmem:[#allocation3 + $0x78] sm:$0xf] %vm767_vm1, %v1427_v19  ;;  %v2401_v9 = vld [vmem:[#allocation2 + $0x60] sm:$0xff]  ;;  %4527 = vmatpush.bf16.msra.mxu2 %v9312_v31  ;;  %v2247_v37 = vld [vmem:[#allocation2 + $0x8c] sm:$0xff]  ;;  %v1578_v12 = vld [vmem:[#allocation2 + $0x14] sm:$0xff] }
 0x1a9   : > { %1357 = vst.msk [vmem:[#allocation3 + $0xdc] sm:$0xf] %vm767_vm1, %v1349_v22  ;;  %v2409_v15 = vpack.c.bf16 %v2401_v9, %v2401_v9  ;;  %v9319_v19 = vld [vmem:[#allocation8 + $0x60] sm:$0xff]  ;;  %v9310_v24 = vld [vmem:[#allocation8 + $0x18] sm:$0xff]  ;;  %v2255_v33 = vpack.c.bf16 %v2247_v37, %v2247_v37  ;;  %v1282_v8 = vld [vmem:[#allocation2 + $0xd] sm:$0xff] }
 0x1aa   : > { %v2062_v20 = vld [vmem:[#allocation2 + $0x40] sm:$0xff]  ;;  %2338 = vst.msk [vmem:[#allocation3 + $0x1e0] sm:$0xf] %vm767_vm1, %v2330_v14  ;;  %4576 = vmatpush.bf16.msra.mxu3 %v9320_v28  ;;  %v2403_v14 = vld [vmem:[#allocation2 + $0x70] sm:$0xff]  ;;  %v10305_v54 = vpack.c.bf16 %v1282_v8, %v1282_v8 }
 0x1ab   : > { %v2070_v3 = vpack.c.bf16 %v2062_v20, %v2062_v20  ;;  %v3046_v13 = vld [vmem:[#allocation2 + $0x98] sm:$0xff]  ;;  %1358 = vst.msk [vmem:[#allocation3 + $0x110] sm:$0xf] %vm767_vm1, %v1350_v11  ;;  %v2197_v20 = vpack.c.bf16 %v2189_v55, %v2189_v55  ;;  %v2411_v46 = vpack.c.bf16 %v2403_v14, %v2403_v14  ;;  %v2246_v63 = vld [vmem:[#allocation2 + $0x84] sm:$0xff] }
 0x1ac   : > { %v3054_v21 = vpack.c.bf16 %v3046_v13, %v3046_v13  ;;  %1278 = vst.msk [vmem:[#allocation3 + $0x10c] sm:$0xf] %vm767_vm1, %v1270_v34  ;;  %v2252_v13 = vpack.c.bf16 %v2244_v62, %v2244_v62  ;;  %v9318_v27 = vld [vmem:[#allocation8 + $0x58] sm:$0xff]  ;;  %v2191_v34 = vld [vmem:[#allocation2 + $0x8b] sm:$0xff]  ;;  %v2254_v1 = vpack.c.bf16 %v2246_v63, %v2246_v63 }
 0x1ad   : > { %2078 = vst.msk [vmem:[#allocation3 + $0x134] sm:$0xf] %vm767_vm1, %v2070_v3  ;;  %2213 = vrot.lane.b32.xlu1 %v2195_v18, %s9747_s13  ;;  %1239 = vrot.lane.b32.xlu0 %v1216_v53, %s9747_s13  ;;  %v2198_v3 = vpack.c.bf16 %v2190_v57, %v2190_v57  ;;  %v1361_v18 = vld [vmem:[#allocation2 + $0x7] sm:$0xff]  ;;  %v2325_v10 = vld [vmem:[#allocation2 + $0x7e] sm:$0xff]  ;;  %v9309_v55 = vld [vmem:[#allocation8 + $0x10] sm:$0xff] }
 0x1ae   : > { %1237 = vrot.lane.b32.xlu2 %v1215_v4, %s9747_s13  ;;  %3062 = vst.msk [vmem:[#allocation3 + $0x2d4] sm:$0xf] %vm767_vm1, %v3054_v21  ;;  %v9311_v4 = vld [vmem:[#allocation8 + $0x20] sm:$0xff]  ;;  %4577 = vmatpush.bf16.msra.mxu3 %v9319_v19  ;;  %v1369_v11 = vpack.c.bf16 %v1361_v18, %v1361_v18  ;;  %v2333_v52 = vpack.c.bf16 %v2325_v10, %v2325_v10  ;;  %v9316_v9 = vld [vmem:[#allocation8 + $0x48] sm:$0xff]  ;;  %v9338_v37 = vld [vmem:[#allocation8 + $0xf8] sm:$0xff] }
 0x1af   : > { %1438 = vst.msk [vmem:[#allocation3 + $0x114] sm:$0xf] %vm767_vm1, %v10202_v36  ;;  %v2245_v36 = vld [vmem:[#allocation2 + $0x7c] sm:$0xff]  ;;  %v1281_v53 = vld [vmem:[#allocation2 + $0x5] sm:$0xff]  ;;  %4528 = vmatpush.bf16.msra.mxu2 %v9311_v4  ;;  %v1657_v18 = vld [vmem:[#allocation2 + $0xe] sm:$0xff]  ;;  %v1586_v10 = vpack.c.bf16 %v1578_v12, %v1578_v12 }
 0x1b0   : > { %2259 = vst.msk [vmem:[#allocation3 + $0x210] sm:$0xf] %vm767_vm1, %v2251_v40  ;;  %v1177_v21 = vld [vmem:[#allocation2 + $0x2] sm:$0xff]  ;;  %v1289_v45 = vpack.c.bf16 %v1281_v53, %v1281_v53  ;;  %v1263_v40 = vld [vmem:[#allocation2 + $0x34] sm:$0xff] }
 0x1b1   : > { %1437 = vst.msk [vmem:[#allocation3 + $0xe0] sm:$0xf] %vm767_vm1, %v10173_v5  ;;  %v2253_v5 = vpack.c.bf16 %v2245_v36, %v2245_v36  ;;  %v1185_v22 = vpack.c.bf16 %v1177_v21, %v1177_v21  ;;  %v1362_v36 = vld [vmem:[#allocation2 + $0xf] sm:$0xff]  ;;  %v2405_v31 = vld [vmem:[#allocation2 + $0x80] sm:$0xff]  ;;  %v1665_v21 = vpack.c.bf16 %v1657_v18, %v1657_v18 }
 0x1b2   : > { %2337 = vst.msk [vmem:[#allocation3 + $0x1ac] sm:$0xf] %vm767_vm1, %v2329_v16  ;;  %4578 = vmatpush.bf16.msra.mxu3 %v9318_v27  ;;  %v1271_v16 = vpack.c.bf16 %v1263_v40, %v1263_v40  ;;  %v10301_v28 = vpack.c.bf16 %v1362_v36, %v1362_v36  ;;  %v1264_v62 = vld [vmem:[#allocation2 + $0x3c] sm:$0xff]  ;;  %v1580_v53 = vld [vmem:[#allocation2 + $0x24] sm:$0xff] }
 0x1b3   : > { %2104 = vst.msk [vmem:[#allocation3 + $0x30c] sm:$0xf] %vm767_vm1, %v10266_v60  ;;  %4529 = vmatpush.bf16.msra.mxu2 %v9310_v24  ;;  %v1283_v4 = vld [vmem:[#allocation2 + $0x15] sm:$0xff]  ;;  %v1344_v14 = vld [vmem:[#allocation2 + $0x3e] sm:$0xff]  ;;  %v1660_v8 = vld [vmem:[#allocation2 + $0x26] sm:$0xff] }
 0x1b4   : > { %2340 = vst.msk [vmem:[#allocation3 + $0x248] sm:$0xf] %vm767_vm1, %v2332_v30  ;;  %v2334_v30 = vpack.c.bf16 %v2326_v0, %v2326_v0  ;;  %v10324_v41 = vpack.c.bf16 %v1283_v4, %v1283_v4  ;;  %v1352_v24 = vpack.c.bf16 %v1344_v14, %v1344_v14  ;;  %v1284_v40 = vld [vmem:[#allocation2 + $0x1d] sm:$0xff]  ;;  %v1365_v12 = vld [vmem:[#allocation2 + $0x27] sm:$0xff] }
 0x1b5   : > { %2139 = vrot.lane.b32.xlu1 %v10253_v47, %s9747_s13  ;;  %2137 = vrot.lane.b32.xlu0 %v10256_v17, %s9747_s13  ;;  %2184 = vst.msk [vmem:[#allocation3 + $0x310] sm:$0xf] %vm767_vm1, %v2176_v26  ;;  %v1343_v26 = vld [vmem:[#allocation2 + $0x36] sm:$0xff]  ;;  %v1292_v63 = vpack.c.bf16 %v1284_v40, %v1284_v40 }
 0x1b6   : > { %2215 = vrot.lane.b32.xlu2 %v2196_v48, %s9747_s13  ;;  %2258 = vst.msk [vmem:[#allocation3 + $0x1dc] sm:$0xf] %vm767_vm1, %v2250_v61  ;;  %v2199_v48 = vpack.c.bf16 %v2191_v34, %v2191_v34  ;;  %4579 = vmatpush.bf16.msra.mxu3 %v9317_v56  ;;  %v9308_v61 = vld [vmem:[#allocation8 + $0x8] sm:$0xff]  ;;  %v10307_v57 = vpack.c.bf16 %v1343_v26, %v1343_v26  ;;  %v9330_v0 = vld [vmem:[#allocation8 + $0xb8] sm:$0xff] }
 0x1b7   : > { %2418 = vst.msk [vmem:[#allocation3 + $0x1e4] sm:$0xf] %vm767_vm1, %v2410_v42  ;;  %4530 = vmatpush.bf16.msra.mxu2 %v9309_v55  ;;  %v1737_v42 = vld [vmem:[#allocation2 + $0x10] sm:$0xff]  ;;  %v1588_v34 = vpack.c.bf16 %v1580_v53, %v1580_v53  ;;  %v1738_v36 = vld [vmem:[#allocation2 + $0x18] sm:$0xff]  ;;  %v1285_v26 = vld [vmem:[#allocation2 + $0x25] sm:$0xff] }
 0x1b8   : > { %2261 = vst.msk [vmem:[#allocation3 + $0x278] sm:$0xf] %vm767_vm1, %v2253_v5  ;;  %v1423_v5 = vld [vmem:[#allocation2 + $0x38] sm:$0xff]  ;;  %v1293_v18 = vpack.c.bf16 %v1285_v26, %v1285_v26 }
 0x1b9   : > { %2417 = vst.msk [vmem:[#allocation3 + $0x1b0] sm:$0xf] %vm767_vm1, %v2409_v15  ;;  %v1431_v15 = vpack.c.bf16 %v1423_v5, %v1423_v5  ;;  %v1659_v5 = vld [vmem:[#allocation2 + $0x1e] sm:$0xff] }
 0x1ba   : > { %2339 = vst.msk [vmem:[#allocation3 + $0x214] sm:$0xf] %vm767_vm1, %v2331_v44  ;;  %4580 = vmatpush.bf16.msra.mxu3 %v9316_v9  ;;  %v9307_v44 = vld [vmem:[#allocation8] sm:$0xff]  ;;  %v9342_v4 = vld [vmem:[#allocation8 + $0x118] sm:$0xff] }
 0x1bb   : > { %2260 = vst.msk [vmem:[#allocation3 + $0x244] sm:$0xf] %vm767_vm1, %v2252_v13  ;;  %4531 = vmatpush.bf16.msra.mxu2 %v9308_v61  ;;  %v1745_v13 = vpack.c.bf16 %v1737_v42, %v1737_v42  ;;  %v1746_v61 = vpack.c.bf16 %v1738_v36, %v1738_v36  ;;  %v1740_v9 = vld [vmem:[#allocation2 + $0x28] sm:$0xff]  ;;  %4725 = vmatpush.bf16.msrb.mxu0 %v9342_v4 }
 0x1bc   : > { %1193 = vst.msk [vmem:[#allocation3 + $0x4] sm:$0xf] %vm767_vm1, %v1185_v22  ;;  %v2642_v4 = vld [vmem:[#allocation2 + $0x6e] sm:$0xff] }
 0x1bd   : > { %2141 = vrot.lane.b32.xlu1 %v10275_v58, %s9747_s13  ;;  %2219 = vrot.lane.b32.xlu0 %v2198_v3, %s9747_s13  ;;  %1249 = vst.msk [vmem:[#allocation3 + $0x4] sm:$0xf] %vm1168_vm2, %v1226_v2  ;;  %v9315_v3 = vld [vmem:[#allocation8 + $0x40] sm:$0xff]  ;;  %v1498_v2 = vld [vmem:[#allocation2 + $0x12] sm:$0xff] }
 0x1be   : > { %2217 = vrot.lane.b32.xlu2 %v2197_v20, %s9747_s13  ;;  %1112 = vst.msk [vmem:[#allocation3] sm:$0xf] %vm767_vm1, %v1104_v23  ;;  %v1272_v20 = vpack.c.bf16 %v1264_v62, %v1264_v62  ;;  %4581 = vmatpush.bf16.msra.mxu3 %v9315_v3  ;;  %v1424_v23 = vld [vmem:[#allocation2 + $0x40] sm:$0xff]  ;;  %v1667_v3 = vpack.c.bf16 %v1659_v5, %v1659_v5  ;;  %v2328_v5 = vld [vmem:[#allocation2 + $0x96] sm:$0xff] }
 0x1bf   : > { %1169 = vst.msk [vmem:[#allocation3] sm:$0xf] %vm1168_vm2, %v1145_v39  ;;  %4532 = vmatpush.bf16.msra.mxu2 %v9307_v44  ;;  %v1432_v27 = vpack.c.bf16 %v1424_v23, %v1424_v23  ;;  %v1364_v39 = vld [vmem:[#allocation2 + $0x1f] sm:$0xff]  ;;  %v1748_v44 = vpack.c.bf16 %v1740_v9, %v1740_v9 }
 0x1c0   : > { %1279 = vst.msk [vmem:[#allocation3 + $0x140] sm:$0xf] %vm767_vm1, %v1271_v16  ;;  %v1579_v16 = vld [vmem:[#allocation2 + $0x1c] sm:$0xff]  ;;  %v1372_v56 = vpack.c.bf16 %v1364_v39, %v1364_v39 }
 0x1c1   : > { %2419 = vst.msk [vmem:[#allocation3 + $0x218] sm:$0xf] %vm767_vm1, %v2411_v46  ;;  %v2327_v46 = vld [vmem:[#allocation2 + $0x8e] sm:$0xff]  ;;  %v2161_v62 = vld [vmem:[#allocation2 + $0x5a] sm:$0xff] }
 0x1c2   : > { %2342 = vst.msk [vmem:[#allocation3 + $0x2b0] sm:$0xf] %vm767_vm1, %v2334_v30  ;;  %v9354_v30 = vld [vmem:[#allocation8 + $0x178] sm:$0xff]  ;;  %4672 = vmatpush.bf16.msrb.mxu3 %v9338_v37 }
 0x1c3   : > { %2341 = vst.msk [vmem:[#allocation3 + $0x27c] sm:$0xf] %vm767_vm1, %v2333_v52  ;;  %v2335_v52 = vpack.c.bf16 %v2327_v46, %v2327_v46  ;;  %4623 = vmatpush.bf16.msrb.mxu2 %v9330_v0  ;;  %4770 = vmatpush.bf16.msrb.mxu1 %v9354_v30  ;;  %v2562_v46 = vld [vmem:[#allocation2 + $0x6c] sm:$0xff] }
 0x1c4   : > { %2263 = vst.msk [vmem:[#allocation3 + $0x2e0] sm:$0xf] %vm767_vm1, %v2255_v33  ;;  %v1587_v33 = vpack.c.bf16 %v1579_v16, %v1579_v16  ;;  %v1581_v0 = vld [vmem:[#allocation2 + $0x2c] sm:$0xff]  ;;  %v9203_v37 = vld [vmem:[#allocation3 + $0x4] sm:$0xf] }
 0x1c5   : > { %1385 = vrot.lane.b32.xlu1 %v1369_v11, %s9747_s13  ;;  %2221 = vrot.lane.b32.xlu0 %v2199_v48, %s9747_s13  ;;  %1593 = vst.msk [vmem:[#allocation3 + $0x18] sm:$0xf] %vm767_vm1, %v10222_v7  ;;  %v2413_v7 = vpack.c.bf16 %v2405_v31, %v2405_v31  ;;  %v1499_v11 = vld [vmem:[#allocation2 + $0x1a] sm:$0xff]  ;;  %v1506_v48 = vpack.c.bf16 %v1498_v2, %v1498_v2  ;;  %v1286_v2 = vld [vmem:[#allocation2 + $0x2d] sm:$0xff] }
 0x1c6   : > { %1305 = vrot.lane.b32.xlu2 %v1289_v45, %s9747_s13  ;;  %2262 = vst.msk [vmem:[#allocation3 + $0x2ac] sm:$0xf] %vm767_vm1, %v2254_v1  ;;  %v2081_v1 = vld [vmem:[#allocation2 + $0x58] sm:$0xff]  ;;  %v1501_v30 = vld [vmem:[#allocation2 + $0x2a] sm:$0xff] }
 0x1c7   : > { %1674 = vst.msk [vmem:[#allocation3 + $0x50] sm:$0xf] %vm767_vm1, %v10229_v29  ;;  %v2406_v29 = vld [vmem:[#allocation2 + $0x88] sm:$0xff]  ;;  %v2089_v42 = vpack.c.bf16 %v2081_v1, %v2081_v1  ;;  %v1509_v1 = vpack.c.bf16 %v1501_v30, %v1501_v30  ;;  %v2643_v30 = vld [vmem:[#allocation2 + $0x76] sm:$0xff] }
 0x1c8   : > { %1359 = vst.msk [vmem:[#allocation3 + $0x144] sm:$0xf] %vm767_vm1, %v10307_v57  ;;  %v2414_v19 = vpack.c.bf16 %v2406_v29, %v2406_v29  ;;  %v1661_v29 = vld [vmem:[#allocation2 + $0x2e] sm:$0xff] }
 0x1c9   : > { %1439 = vst.msk [vmem:[#allocation3 + $0x148] sm:$0xf] %vm767_vm1, %v1431_v15  ;;  %v1668_v15 = vpack.c.bf16 %v1660_v8, %v1660_v8  ;;  %v1669_v14 = vpack.c.bf16 %v1661_v29, %v1661_v29  ;;  %v1366_v8 = vld [vmem:[#allocation2 + $0x2f] sm:$0xff]  ;;  %v2266_v29 = vld [vmem:[#allocation2 + $0x65] sm:$0xff] }
 0x1ca   : > { %1280 = vst.msk [vmem:[#allocation3 + $0x174] sm:$0xf] %vm767_vm1, %v1272_v20  ;;  %v1739_v20 = vld [vmem:[#allocation2 + $0x20] sm:$0xff] }
 0x1cb   : > { %2421 = vst.msk [vmem:[#allocation3 + $0x280] sm:$0xf] %vm767_vm1, %v2413_v7  ;;  %v2169_v7 = vpack.c.bf16 %v2161_v62, %v2161_v62  ;;  %v2336_v62 = vpack.c.bf16 %v2328_v5, %v2328_v5 }
 0x1cc   : > { %1753 = vst.msk [vmem:[#allocation3 + $0x20] sm:$0xf] %vm767_vm1, %v1745_v13 }
 0x1cd   : > { %1467 = vrot.lane.b32.xlu1 %v10089_v35, %s9747_s13  ;;  %1307 = vrot.lane.b32.xlu0 %v10305_v54, %s9747_s13  ;;  %v1363_v35 = vld [vmem:[#allocation2 + $0x17] sm:$0xff]  ;;  %2422 = vst.msk [vmem:[#allocation3 + $0x2b4] sm:$0xf] %vm767_vm1, %v2414_v19 }
 0x1ce   : > { %1387 = vrot.lane.b32.xlu2 %v10301_v28, %s9747_s13  ;;  %v1371_v22 = vpack.c.bf16 %v1363_v35, %v1363_v35  ;;  %2423 = vst.msk [vmem:[#allocation3 + $0x2e8] sm:$0xf] %vm767_vm1, %v10266_v60  ;;  %v1497_v60 = vld [vmem:[#allocation2 + $0xa] sm:$0xff]  ;;  %v1747_v35 = vpack.c.bf16 %v1739_v20, %v1739_v20  ;;  %v1502_v19 = vld [vmem:[#allocation2 + $0x32] sm:$0xff] }
 0x1cf   : > { %1673 = vst.msk [vmem:[#allocation3 + $0x1c] sm:$0xf] %vm767_vm1, %v1665_v21  ;;  %v1505_v55 = vpack.c.bf16 %v1497_v60, %v1497_v60  ;;  %v1500_v21 = vld [vmem:[#allocation2 + $0x22] sm:$0xff]  ;;  %v2248_v60 = vld [vmem:[#allocation2 + $0x94] sm:$0xff] }
 0x1d0   : > { %1360 = vst.msk [vmem:[#allocation3 + $0x178] sm:$0xf] %vm767_vm1, %v1352_v24  ;;  %v2112_v24 = vld [vmem:[#allocation2 + $0x91] sm:$0xff]  ;;  %v2256_v16 = vpack.c.bf16 %v2248_v60, %v2248_v60 }
 0x1d1   : > { %1440 = vst.msk [vmem:[#allocation3 + $0x17c] sm:$0xf] %vm767_vm1, %v1432_v27  ;;  %v1510_v27 = vpack.c.bf16 %v1502_v19, %v1502_v19  ;;  %v10366_v39 = vpack.c.bf16 %v2112_v24, %v2112_v24  ;;  %v2722_v20 = vld [vmem:[#allocation2 + $0x70] sm:$0xff]  ;;  %v2641_v24 = vld [vmem:[#allocation2 + $0x66] sm:$0xff] }
 0x1d2   : > { %1596 = vst.msk [vmem:[#allocation3 + $0xb4] sm:$0xf] %vm767_vm1, %v1588_v34  ;;  %v1582_v34 = vld [vmem:[#allocation2 + $0x34] sm:$0xff] }
 0x1d3   : > { %1594 = vst.msk [vmem:[#allocation3 + $0x4c] sm:$0xf] %vm767_vm1, %v1586_v10  ;;  %v9329_v10 = vld [vmem:[#allocation8 + $0xb0] sm:$0xff]  ;;  %v1590_v40 = vpack.c.bf16 %v1582_v34, %v1582_v34 }
 0x1d4   : > { %2343 = vst.msk [vmem:[#allocation3 + $0x2e4] sm:$0xf] %vm767_vm1, %v2335_v52  ;;  %4624 = vmatpush.bf16.msrb.mxu2 %v9329_v10  ;;  %v2570_v52 = vpack.c.bf16 %v2562_v46, %v2562_v46  ;;  %v2482_v10 = vld [vmem:[#allocation2 + $0x6a] sm:$0xff] }
 0x1d5   : > { %1389 = vrot.lane.b32.xlu1 %v1371_v22, %s9747_s13  ;;  %1465 = vrot.lane.b32.xlu0 %v10059_v50, %s9747_s13  ;;  %v1507_v50 = vpack.c.bf16 %v1499_v11, %v1499_v11  ;;  %1514 = vst.msk [vmem:[#allocation3 + $0x48] sm:$0xf] %vm767_vm1, %v1506_v48  ;;  %v9337_v11 = vld [vmem:[#allocation8 + $0xf0] sm:$0xff]  ;;  %v1294_v48 = vpack.c.bf16 %v1286_v2, %v1286_v2  ;;  %v2721_v2 = vld [vmem:[#allocation2 + $0x68] sm:$0xff] }
 0x1d6   : > { %1309 = vrot.lane.b32.xlu2 %v10324_v41, %s9747_s13  ;;  %1513 = vst.msk [vmem:[#allocation3 + $0x14] sm:$0xf] %vm767_vm1, %v1505_v55  ;;  %4673 = vmatpush.bf16.msrb.mxu3 %v9337_v11 }
 0x1d7   : > { %v1149_v45 = vpop.permute.xlu2 %1148  ;;  %1515 = vst.msk [vmem:[#allocation3 + $0x7c] sm:$0xf] %vm767_vm1, %v1507_v50  ;;  %v2481_v50 = vld [vmem:[#allocation2 + $0x62] sm:$0xff] }
 0x1d8   : > { %1171 = vst.msk [vmem:[#allocation3 + $0x68] sm:$0xf] %vm1168_vm2, %v1149_v45  ;;  %v10364_v45 = vpack.c.bf16 %v1365_v12, %v1365_v12  ;;  %v2650_v12 = vpack.c.bf16 %v2642_v4, %v2642_v4  ;;  %v9335_v4 = vld [vmem:[#allocation8 + $0xe0] sm:$0xff] }
 0x1d9   : > { %1595 = vst.msk [vmem:[#allocation3 + $0x80] sm:$0xf] %vm767_vm1, %v1587_v33  ;;  %v1589_v33 = vpack.c.bf16 %v1581_v0, %v1581_v0  ;;  %v1257_v0 = vld [vmem:[#allocation2 + $0x4] sm:$0xff] }
 0x1da   : > { %2097 = vst.msk [vmem:[#allocation3 + $0x1a0] sm:$0xf] %vm767_vm1, %v2089_v42  ;;  %v1374_v42 = vpack.c.bf16 %v1366_v8, %v1366_v8  ;;  %v2651_v8 = vpack.c.bf16 %v2643_v30, %v2643_v30  ;;  %v1744_v30 = vld [vmem:[#allocation2 + $0x48] sm:$0xff] }
 0x1db   : > { %1754 = vst.msk [vmem:[#allocation3 + $0x54] sm:$0xf] %vm767_vm1, %v1746_v61  ;;  %v7487_v61 = vld [vmem:[#allocation3] sm:$0xf] }
 0x1dc   : > { %2177 = vst.msk [vmem:[#allocation3 + $0x1a4] sm:$0xf] %vm767_vm1, %v2169_v7  ;;  %v2561_v7 = vld [vmem:[#allocation2 + $0x64] sm:$0xff] }
 0x1dd   : > { %1471 = vrot.lane.b32.xlu1 %v10163_v49, %s9747_s13  ;;  %1311 = vrot.lane.b32.xlu0 %v1292_v63, %s9747_s13  ;;  %v2192_v49 = vld [vmem:[#allocation2 + $0x93] sm:$0xff]  ;;  %1676 = vst.msk [vmem:[#allocation3 + $0xb8] sm:$0xf] %vm767_vm1, %v1668_v15  ;;  %v2569_v19 = vpack.c.bf16 %v2561_v7, %v2561_v7  ;;  %v1583_v7 = vld [vmem:[#allocation2 + $0x3c] sm:$0xff] }
 0x1de   : > { %1391 = vrot.lane.b32.xlu2 %v1372_v56, %s9747_s13  ;;  %v2200_v13 = vpack.c.bf16 %v2192_v49, %v2192_v49  ;;  %1756 = vst.msk [vmem:[#allocation3 + $0xbc] sm:$0xf] %vm767_vm1, %v1748_v44  ;;  %v2408_v49 = vld [vmem:[#allocation2 + $0x98] sm:$0xff] }
 0x1df   : > { %1675 = vst.msk [vmem:[#allocation3 + $0x84] sm:$0xf] %vm767_vm1, %v1667_v3  ;;  %v2416_v15 = vpack.c.bf16 %v2408_v49, %v2408_v49  ;;  %v2267_v49 = vld [vmem:[#allocation2 + $0x6d] sm:$0xff] }
 0x1e0   : > { %v1151_v31 = vpop.permute.xlu2 %1150  ;;  %1755 = vst.msk [vmem:[#allocation3 + $0x88] sm:$0xf] %vm767_vm1, %v1747_v35  ;;  %v2730_v35 = vpack.c.bf16 %v2722_v20, %v2722_v20  ;;  %v2268_v20 = vld [vmem:[#allocation2 + $0x75] sm:$0xff] }
 0x1e1   : > { %1172 = vst.msk [vmem:[#allocation3 + $0x9c] sm:$0xf] %vm1168_vm2, %v1151_v31  ;;  %v2489_v31 = vpack.c.bf16 %v2481_v50, %v2481_v50  ;;  %v1265_v50 = vpack.c.bf16 %v1257_v0, %v1257_v0  ;;  %v1584_v0 = vld [vmem:[#allocation2 + $0x44] sm:$0xff] }
 0x1e2   : > { %1677 = vst.msk [vmem:[#allocation3 + $0xec] sm:$0xf] %vm767_vm1, %v1669_v14 }
 0x1e3   : > { %1518 = vst.msk [vmem:[#allocation3 + $0x118] sm:$0xf] %vm767_vm1, %v1510_v27  ;;  %v2274_v27 = vpack.c.bf16 %v2266_v29, %v2266_v29 }
 0x1e4   : > { %2264 = vst.msk [vmem:[#allocation3 + $0x314] sm:$0xf] %vm767_vm1, %v2256_v16  ;;  %v2346_v16 = vld [vmem:[#allocation2 + $0x67] sm:$0xff] }
 0x1e5   : > { %2223 = vrot.lane.b32.xlu1 %v2200_v13, %s9747_s13  ;;  %1469 = vrot.lane.b32.xlu0 %v10110_v59, %s9747_s13  ;;  %v1508_v59 = vpack.c.bf16 %v1500_v21, %v1500_v21  ;;  %1598 = vst.msk [vmem:[#allocation3 + $0x11c] sm:$0xf] %vm767_vm1, %v1590_v40  ;;  %v2345_v13 = vld [vmem:[#allocation2 + $0x5f] sm:$0xff]  ;;  %v9336_v21 = vld [vmem:[#allocation8 + $0xe8] sm:$0xff] }
 0x1e6   : > { %1313 = vrot.lane.b32.xlu2 %v1293_v18, %s9747_s13  ;;  %2578 = vst.msk [vmem:[#allocation3 + $0x1ec] sm:$0xf] %vm767_vm1, %v2570_v52  ;;  %v2265_v18 = vld [vmem:[#allocation2 + $0x5d] sm:$0xff]  ;;  %4674 = vmatpush.bf16.msrb.mxu3 %v9336_v21  ;;  %v7539_v52 = vld [vmem:[#allocation3 + $0x68] sm:$0xf] }
 0x1e7   : > { %v1228_v53 = vpop.permute.xlu1 %1227  ;;  %1516 = vst.msk [vmem:[#allocation3 + $0xb0] sm:$0xf] %vm767_vm1, %v1508_v59  ;;  %v2273_v14 = vpack.c.bf16 %v2265_v18, %v2265_v18  ;;  %v1503_v18 = vld [vmem:[#allocation2 + $0x3a] sm:$0xff] }
 0x1e8   : > { %v2132_v22 = vpop.permute.xlu2 %2131  ;;  %1250 = vst.msk [vmem:[#allocation3 + $0x38] sm:$0xf] %vm1168_vm2, %v1228_v53  ;;  %v1147_v23 = vpop.permute.xlu0 %1146  ;;  %v9353_v53 = vld [vmem:[#allocation8 + $0x170] sm:$0xff]  ;;  %v9222_v59 = vld [vmem:[#allocation3 + $0x98] sm:$0xf0]  ;;  %v1511_v29 = vpack.c.bf16 %v1503_v18, %v1503_v18 }
 0x1e9   : > { %2154 = vst.msk [vmem:[#allocation3 + $0x1d4] sm:$0xf] %vm1168_vm2, %v2132_v22  ;;  %v2353_v22 = vpack.c.bf16 %v2345_v13, %v2345_v13  ;;  %4771 = vmatpush.bf16.msrb.mxu1 %v9353_v53  ;;  %v1591_v13 = vpack.c.bf16 %v1583_v7, %v1583_v7  ;;  %v1287_v18 = vld [vmem:[#allocation2 + $0x35] sm:$0xff] }
 0x1ea   : > { %1170 = vst.msk [vmem:[#allocation3 + $0x34] sm:$0xf] %vm1168_vm2, %v1147_v23  ;;  %v1741_v23 = vld [vmem:[#allocation2 + $0x30] sm:$0xff]  ;;  %4675 = vmatpush.bf16.msrb.mxu3 %v9335_v4  ;;  %v1288_v4 = vld [vmem:[#allocation2 + $0x3d] sm:$0xff] }
 0x1eb   : > { %1597 = vst.msk [vmem:[#allocation3 + $0xe8] sm:$0xf] %vm767_vm1, %v1589_v33  ;;  %v1749_v34 = vpack.c.bf16 %v1741_v23, %v1741_v23  ;;  %v2490_v33 = vpack.c.bf16 %v2482_v10, %v2482_v10  ;;  %v1664_v10 = vld [vmem:[#allocation2 + $0x46] sm:$0xff] }
 0x1ec   : > { %1517 = vst.msk [vmem:[#allocation3 + $0xe4] sm:$0xf] %vm767_vm1, %v1509_v1  ;;  %v9341_v1 = vld [vmem:[#allocation8 + $0x110] sm:$0xff] }
 0x1ed   : > { %1393 = vrot.lane.b32.xlu1 %v10364_v45, %s9747_s13  ;;  %1315 = vrot.lane.b32.xlu0 %v1294_v48, %s9747_s13  ;;  %2497 = vst.msk [vmem:[#allocation3 + $0x1b4] sm:$0xf] %vm767_vm1, %v2489_v31 }
 0x1ee   : > { %2143 = vrot.lane.b32.xlu2 %v10366_v39, %s9747_s13  ;;  %2344 = vst.msk [vmem:[#allocation3 + $0x318] sm:$0xf] %vm767_vm1, %v2336_v62  ;;  %4726 = vmatpush.bf16.msrb.mxu0 %v9341_v1  ;;  %v1752_v1 = vpack.c.bf16 %v1744_v30, %v1744_v30 }
 0x1ef   : > { %v7489_v56 = vld [vmem:[#allocation3 + $0x34] sm:$0xf0]  ;;  %2424 = vst.msk [vmem:[#allocation3 + $0x31c] sm:$0xf] %vm767_vm1, %v2416_v15  ;;  %v2564_v15 = vld [vmem:[#allocation2 + $0x7c] sm:$0xff] }
 0x1f0   : > { %v1153_v55 = vpop.permute.xlu2 %1152  ;;  %v1230_v36 = vpop.permute.xlu0 %1229  ;;  %v7492_v63 = vor.u32 %v9203_v37, %v7489_v56  ;;  %1678 = vst.msk [vmem:[#allocation3 + $0x120] sm:$0xf] %vm767_vm1, %v10307_v57  ;;  %v2649_v57 = vpack.c.bf16 %v2641_v24, %v2641_v24  ;;  %v2729_v37 = vpack.c.bf16 %v2721_v2, %v2721_v2  ;;  %v1742_v56 = vld [vmem:[#allocation2 + $0x38] sm:$0xff] }
 0x1f1   : > { %1173 = vst.msk [vmem:[#allocation3 + $0xd0] sm:$0xf] %vm1168_vm2, %v1153_v55  ;;  %v9209_v9 = vld [vmem:[#allocation3 + $0x30] sm:$0xf0]  ;;  %v7540_v55 = vor.u32 %v9222_v59, %v7539_v52 }
 0x1f2   : > { %1251 = vst.msk [vmem:[#allocation3 + $0x6c] sm:$0xf] %vm1168_vm2, %v1230_v36  ;;  %v7488_v26 = vor.u32 %v9209_v9, %v7487_v61  ;;  %4582 = vmatmul.bf16.vlgmr.msra.gmra.mxu3 %v7492_v63  ;;  %v2354_v36 = vpack.c.bf16 %v2346_v16, %v2346_v16  ;;  %v1750_v63 = vpack.c.bf16 %v1742_v56, %v1742_v56  ;;  %v2484_v61 = vld [vmem:[#allocation2 + $0x7a] sm:$0xff]  ;;  %v2646_v56 = vld [vmem:[#allocation2 + $0x8e] sm:$0xff] }
 0x1f3   : > { %2738 = vst.msk [vmem:[#allocation3 + $0x1f4] sm:$0xf] %vm767_vm1, %v2730_v35  ;;  %v2563_v9 = vld [vmem:[#allocation2 + $0x74] sm:$0xff]  ;;  %v2276_v35 = vpack.c.bf16 %v2268_v20, %v2268_v20 }
 0x1f4   : > { %4533 = vmatmul.bf16.vlgmr.msra.gmra.mxu2 %v7488_v26  ;;  %2577 = vst.msk [vmem:[#allocation3 + $0x1b8] sm:$0xf] %vm767_vm1, %v2569_v19  ;;  %v2571_v62 = vpack.c.bf16 %v2563_v9, %v2563_v9  ;;  %v2565_v19 = vld [vmem:[#allocation2 + $0x84] sm:$0xff] }
 0x1f5   : > { %1475 = vrot.lane.b32.xlu1 %v10220_v6, %s9747_s13  ;;  %1473 = vrot.lane.b32.xlu0 %v10165_v51, %s9747_s13  ;;  %v9328_v51 = vld [vmem:[#allocation8 + $0xa8] sm:$0xff]  ;;  %1757 = vst.msk [vmem:[#allocation3 + $0xf0] sm:$0xf] %vm767_vm1, %v1749_v34  ;;  %v2573_v23 = vpack.c.bf16 %v2565_v19, %v2565_v19 }
 0x1f6   : > { %1395 = vrot.lane.b32.xlu2 %v1374_v42, %s9747_s13  ;;  %4625 = vmatpush.bf16.msrb.mxu2 %v9328_v51  ;;  %2658 = vst.msk [vmem:[#allocation3 + $0x1f0] sm:$0xf] %vm767_vm1, %v2650_v12  ;;  %v2492_v42 = vpack.c.bf16 %v2484_v61, %v2484_v61  ;;  %v2483_v51 = vld [vmem:[#allocation2 + $0x72] sm:$0xff]  ;;  %v2654_v61 = vpack.c.bf16 %v2646_v56, %v2646_v56 }
 0x1f7   : > { %v1232_v44 = vpop.permute.xlu1 %1231  ;;  %2657 = vst.msk [vmem:[#allocation3 + $0x1bc] sm:$0xf] %vm767_vm1, %v2649_v57  ;;  %v2491_v34 = vpack.c.bf16 %v2483_v51, %v2483_v51 }
 0x1f8   : > { %v1236_v3 = vpop.permute.xlu2 %1235  ;;  %1252 = vst.msk [vmem:[#allocation3 + $0xa0] sm:$0xf] %vm1168_vm2, %v1232_v44  ;;  %v2210_v6 = vpop.permute.xlu0 %2209  ;;  %v7591_v2 = vld [vmem:[#allocation3 + $0xd0] sm:$0xf] }
 0x1f9   : > { %1254 = vst.msk [vmem:[#allocation3 + $0x108] sm:$0xf] %vm1168_vm2, %v1236_v3  ;;  %v9216_v40 = vld [vmem:[#allocation3 + $0x6c] sm:$0xf]  ;;  %v2275_v3 = vpack.c.bf16 %v2267_v49, %v2267_v49  ;;  %v2725_v49 = vld [vmem:[#allocation2 + $0x88] sm:$0xff] }
 0x1fa   : > { %2233 = vst.msk [vmem:[#allocation3 + $0x1a4] sm:$0xf] %vm1168_vm2, %v2210_v6  ;;  %v2572_v6 = vpack.c.bf16 %v2564_v15, %v2564_v15 }
 0x1fb   : > { %1273 = vst.msk [vmem:[#allocation3 + $0x8] sm:$0xf] %vm767_vm1, %v1265_v50 }
 0x1fc   : > { %2737 = vst.msk [vmem:[#allocation3 + $0x1c0] sm:$0xf] %vm767_vm1, %v2729_v37  ;;  %v1504_v37 = vld [vmem:[#allocation2 + $0x42] sm:$0xff] }
 0x1fd   : > { %2369 = vrot.lane.b32.xlu1 %v2353_v22, %s9747_s13  ;;  %2291 = vrot.lane.b32.xlu0 %v2274_v27, %s9747_s13  ;;  %1758 = vst.msk [vmem:[#allocation3 + $0x124] sm:$0xf] %vm767_vm1, %v1750_v63  ;;  %v2348_v27 = vld [vmem:[#allocation2 + $0x77] sm:$0xff]  ;;  %v1512_v63 = vpack.c.bf16 %v1504_v37, %v1504_v37 }
 0x1fe   : > { %2289 = vrot.lane.b32.xlu2 %v2273_v14, %s9747_s13  ;;  %2498 = vst.msk [vmem:[#allocation3 + $0x1e8] sm:$0xf] %vm767_vm1, %v2490_v33  ;;  %v1367_v33 = vld [vmem:[#allocation2 + $0x37] sm:$0xff] }
 0x1ff   : > { %v2130_v11 = vpop.permute.xlu1 %2129  ;;  %v7541_v46 = vld [vmem:[#allocation3 + $0x9c] sm:$0xf0]  ;;  %2659 = vst.msk [vmem:[#allocation3 + $0x224] sm:$0xf] %vm767_vm1, %v2651_v8  ;;  %v2644_v8 = vld [vmem:[#allocation2 + $0x7e] sm:$0xff]  ;;  %v10443_v9 = vpack.c.bf16 %v1367_v33, %v1367_v33 }
 0x200   : > { %v2134_v60 = vpop.permute.xlu2 %2133  ;;  %2153 = vst.msk [vmem:[#allocation3 + $0x1a0] sm:$0xf] %vm1168_vm2, %v2130_v11  ;;  %v7544_v48 = vor.u32 %v9216_v40, %v7541_v46  ;;  %v7593_v14 = vld [vmem:[#allocation3 + $0x104] sm:$0xf0]  ;;  %v1743_v11 = vld [vmem:[#allocation2 + $0x40] sm:$0xff]  ;;  %v1672_v40 = vpack.c.bf16 %v1664_v10, %v1664_v10 }
 0x201   : > { %2155 = vst.msk [vmem:[#allocation3 + $0x208] sm:$0xf] %vm1168_vm2, %v2134_v60  ;;  %v2356_v60 = vpack.c.bf16 %v2348_v27, %v2348_v27  ;;  %v1751_v46 = vpack.c.bf16 %v1743_v11, %v1743_v11  ;;  %v2568_v27 = vld [vmem:[#allocation2 + $0x9c] sm:$0xff] }
 0x202   : > { %4587 = vmatmul.bf16.gmra.mxu3 %v7544_v48  ;;  %2500 = vst.msk [vmem:[#allocation3 + $0x250] sm:$0xf] %vm767_vm1, %v2492_v42  ;;  %v1663_v48 = vld [vmem:[#allocation2 + $0x3e] sm:$0xff]  ;;  %v2576_v37 = vpack.c.bf16 %v2568_v27, %v2568_v27 }
 0x203   : > { %2579 = vst.msk [vmem:[#allocation3 + $0x220] sm:$0xf] %vm767_vm1, %v2571_v62  ;;  %v1671_v16 = vpack.c.bf16 %v1663_v48, %v1663_v48  ;;  %v9334_v42 = vld [vmem:[#allocation8 + $0xd8] sm:$0xff]  ;;  %v2485_v10 = vld [vmem:[#allocation2 + $0x82] sm:$0xff] }
 0x204   : > { %4538 = vmatmul.bf16.gmra.mxu2 %v7540_v55  ;;  %1599 = vst.msk [vmem:[#allocation3 + $0x150] sm:$0xf] %vm767_vm1, %v1591_v13  ;;  %v1592_v55 = vpack.c.bf16 %v1584_v0, %v1584_v0  ;;  %4676 = vmatpush.bf16.msrb.mxu3 %v9334_v42  ;;  %v2723_v62 = vld [vmem:[#allocation2 + $0x78] sm:$0xff] }
 0x205   : > { %2451 = vrot.lane.b32.xlu1 %v10217_v38, %s9747_s13  ;;  %2449 = vrot.lane.b32.xlu0 %v10138_v25, %s9747_s13  ;;  %v2347_v38 = vld [vmem:[#allocation2 + $0x6f] sm:$0xff]  ;;  %v9327_v25 = vld [vmem:[#allocation8 + $0xa0] sm:$0xff]  ;;  %1519 = vst.msk [vmem:[#allocation3 + $0x14c] sm:$0xf] %vm767_vm1, %v1511_v29  ;;  %v2731_v29 = vpack.c.bf16 %v2723_v62, %v2723_v62 }
 0x206   : > { %2371 = vrot.lane.b32.xlu2 %v2354_v36, %s9747_s13  ;;  %v2355_v44 = vpack.c.bf16 %v2347_v38, %v2347_v38  ;;  %4626 = vmatpush.bf16.msrb.mxu2 %v9327_v25  ;;  %2580 = vst.msk [vmem:[#allocation3 + $0x254] sm:$0xf] %vm767_vm1, %v2572_v6  ;;  %v2269_v36 = vld [vmem:[#allocation2 + $0x7d] sm:$0xff]  ;;  %v2733_v6 = vpack.c.bf16 %v2725_v49, %v2725_v49  ;;  %v2567_v48 = vld [vmem:[#allocation2 + $0x94] sm:$0xff]  ;;  %v2350_v49 = vld [vmem:[#allocation2 + $0x87] sm:$0xff] }
 0x207   : > { %v1234_v31 = vpop.permute.xlu1 %1233  ;;  %v1155_v5 = vpop.permute.xlu0 %1154  ;;  %2581 = vst.msk [vmem:[#allocation3 + $0x288] sm:$0xf] %vm767_vm1, %v2573_v23  ;;  %v2724_v38 = vld [vmem:[#allocation2 + $0x80] sm:$0xff]  ;;  %v9340_v23 = vld [vmem:[#allocation8 + $0x108] sm:$0xff] }
 0x208   : > { %v1238_v26 = vpop.permute.xlu2 %1237  ;;  %1253 = vst.msk [vmem:[#allocation3 + $0xd4] sm:$0xf] %vm1168_vm2, %v1234_v31  ;;  %v2277_v31 = vpack.c.bf16 %v2269_v36, %v2269_v36  ;;  %v2732_v7 = vpack.c.bf16 %v2724_v38, %v2724_v38  ;;  %v2349_v13 = vld [vmem:[#allocation2 + $0x7f] sm:$0xff]  ;;  %4727 = vmatpush.bf16.msrb.mxu0 %v9340_v23  ;;  %v9333_v36 = vld [vmem:[#allocation8 + $0xd0] sm:$0xff] }
 0x209   : > { %1255 = vst.msk [vmem:[#allocation3 + $0x13c] sm:$0xf] %vm1168_vm2, %v1238_v26  ;;  %v2652_v26 = vpack.c.bf16 %v2644_v8, %v2644_v8  ;;  %v2726_v8 = vld [vmem:[#allocation2 + $0x90] sm:$0xff]  ;;  %4677 = vmatpush.bf16.msrb.mxu3 %v9333_v36 }
 0x20a   : > { %1174 = vst.msk [vmem:[#allocation3 + $0x104] sm:$0xf] %vm1168_vm2, %v1155_v5  ;;  %v9352_v5 = vld [vmem:[#allocation8 + $0x168] sm:$0xff]  ;;  %v2734_v62 = vpack.c.bf16 %v2726_v8, %v2726_v8 }
 0x20b   : > { %2499 = vst.msk [vmem:[#allocation3 + $0x21c] sm:$0xf] %vm767_vm1, %v2491_v34  ;;  %4772 = vmatpush.bf16.msrb.mxu1 %v9352_v5  ;;  %v1977_v5 = vld [vmem:[#allocation2 + $0x16] sm:$0xff]  ;;  %v1900_v8 = vld [vmem:[#allocation2 + $0x2c] sm:$0xff] }
 0x20c   : > { %1680 = vst.msk [vmem:[#allocation3 + $0x188] sm:$0xf] %vm767_vm1, %v1672_v40  ;;  %v1368_v40 = vld [vmem:[#allocation2 + $0x3f] sm:$0xff] }
 0x20d   : > { %2373 = vrot.lane.b32.xlu1 %v2355_v44, %s9747_s13  ;;  %2295 = vrot.lane.b32.xlu0 %v2276_v35, %s9747_s13  ;;  %1759 = vst.msk [vmem:[#allocation3 + $0x158] sm:$0xf] %vm767_vm1, %v1751_v46  ;;  %v2645_v44 = vld [vmem:[#allocation2 + $0x86] sm:$0xff]  ;;  %v2487_v35 = vld [vmem:[#allocation2 + $0x92] sm:$0xff]  ;;  %v1376_v56 = vpack.c.bf16 %v1368_v40, %v1368_v40 }
 0x20e   : > { %2293 = vrot.lane.b32.xlu2 %v2275_v3, %s9747_s13  ;;  %1679 = vst.msk [vmem:[#allocation3 + $0x154] sm:$0xf] %vm767_vm1, %v1671_v16  ;;  %v2653_v51 = vpack.c.bf16 %v2645_v44, %v2645_v44  ;;  %v1985_v44 = vpack.c.bf16 %v1977_v5, %v1977_v5  ;;  %v1897_v40 = vld [vmem:[#allocation2 + $0x14] sm:$0xff] }
 0x20f   : > { %v2212_v21 = vpop.permute.xlu1 %2211  ;;  %v9229_v22 = vld [vmem:[#allocation3 + $0xd4] sm:$0xf]  ;;  %v2136_v12 = vpop.permute.xlu0 %2135  ;;  %1600 = vst.msk [vmem:[#allocation3 + $0x184] sm:$0xf] %vm767_vm1, %v1592_v55  ;;  %v1522_v5 = vld [vmem:[#allocation2 + $0x13] sm:$0xff] }
 0x210   : > { %v2216_v53 = vpop.permute.xlu2 %2215  ;;  %2234 = vst.msk [vmem:[#allocation3 + $0x1d8] sm:$0xf] %vm1168_vm2, %v2212_v21  ;;  %v7596_v24 = vor.u32 %v9229_v22, %v7593_v14  ;;  %v2357_v21 = vpack.c.bf16 %v2349_v13, %v2349_v13  ;;  %v2495_v22 = vpack.c.bf16 %v2487_v35, %v2487_v35  ;;  %v1296_v14 = vpack.c.bf16 %v1288_v4, %v1288_v4  ;;  %v9242_v16 = vld [vmem:[#allocation3 + $0x13c] sm:$0xf] }
 0x211   : > { %2236 = vst.msk [vmem:[#allocation3 + $0x240] sm:$0xf] %vm1168_vm2, %v2216_v53  ;;  %v9235_v59 = vld [vmem:[#allocation3 + $0x100] sm:$0xf0]  ;;  %v10458_v53 = vpack.c.bf16 %v1287_v18, %v1287_v18  ;;  %v1898_v18 = vld [vmem:[#allocation2 + $0x1c] sm:$0xff] }
 0x212   : > { %2156 = vst.msk [vmem:[#allocation3 + $0x23c] sm:$0xf] %vm1168_vm2, %v2136_v12  ;;  %v7592_v57 = vor.u32 %v9235_v59, %v7591_v2  ;;  %4592 = vmatmul.bf16.gmra.mxu3 %v7596_v24  ;;  %v2566_v12 = vld [vmem:[#allocation2 + $0x8c] sm:$0xff] }
 0x213   : > { %1520 = vst.msk [vmem:[#allocation3 + $0x180] sm:$0xf] %vm767_vm1, %v1512_v63  ;;  %v2486_v24 = vld [vmem:[#allocation2 + $0x8a] sm:$0xff]  ;;  %v2728_v63 = vld [vmem:[#allocation2 + $0xa0] sm:$0xff] }
 0x214   : > { %4543 = vmatmul.bf16.gmra.mxu2 %v7592_v57  ;;  %1760 = vst.msk [vmem:[#allocation3 + $0x18c] sm:$0xf] %vm767_vm1, %v1752_v1  ;;  %v2270_v59 = vld [vmem:[#allocation2 + $0x85] sm:$0xff]  ;;  %v2574_v57 = vpack.c.bf16 %v2566_v12, %v2566_v12  ;;  %v2494_v46 = vpack.c.bf16 %v2486_v24, %v2486_v24  ;;  %v2736_v42 = vpack.c.bf16 %v2728_v63, %v2728_v63 }
 0x215   : > { %2455 = vrot.lane.b32.xlu1 %v10256_v17, %s9747_s13  ;;  %2453 = vrot.lane.b32.xlu0 %v10198_v32, %s9747_s13  ;;  %v9326_v32 = vld [vmem:[#allocation8 + $0x98] sm:$0xff]  ;;  %2662 = vst.msk [vmem:[#allocation3 + $0x2c0] sm:$0xf] %vm767_vm1, %v2654_v61  ;;  %v2278_v33 = vpack.c.bf16 %v2270_v59, %v2270_v59  ;;  %v9339_v1 = vld [vmem:[#allocation8 + $0x100] sm:$0xff]  ;;  %v9324_v12 = vld [vmem:[#allocation8 + $0x88] sm:$0xff] }
 0x216   : > { %2375 = vrot.lane.b32.xlu2 %v2356_v60, %s9747_s13  ;;  %4627 = vmatpush.bf16.msrb.mxu2 %v9326_v32  ;;  %2660 = vst.msk [vmem:[#allocation3 + $0x258] sm:$0xf] %vm767_vm1, %v2652_v26  ;;  %v1448_v60 = vld [vmem:[#allocation2 + $0x41] sm:$0xff]  ;;  %v7695_v26 = vld [vmem:[#allocation3 + $0x1a0] sm:$0xf] }
 0x217   : > { %v1159_v52 = vpop.permute.xlu1 %1158  ;;  %v1157_v17 = vpop.permute.xlu0 %1156  ;;  %2740 = vst.msk [vmem:[#allocation3 + $0x25c] sm:$0xf] %vm767_vm1, %v2732_v7  ;;  %v1456_v55 = vpack.c.bf16 %v1448_v60, %v1448_v60  ;;  %v2648_v32 = vld [vmem:[#allocation2 + $0x9e] sm:$0xff]  ;;  %4728 = vmatpush.bf16.msrb.mxu0 %v9339_v1  ;;  %v7697_v4 = vld [vmem:[#allocation3 + $0x1d4] sm:$0xf0] }
 0x218   : > { %v2218_v50 = vpop.permute.xlu2 %2217  ;;  %1176 = vst.msk [vmem:[#allocation3 + $0x16c] sm:$0xf] %vm1168_vm2, %v1159_v52  ;;  %v9325_v52 = vld [vmem:[#allocation8 + $0x90] sm:$0xff]  ;;  %v9332_v59 = vld [vmem:[#allocation8 + $0xc8] sm:$0xff]  ;;  %v2488_v60 = vld [vmem:[#allocation2 + $0x9a] sm:$0xff] }
 0x219   : > { %2237 = vst.msk [vmem:[#allocation3 + $0x274] sm:$0xf] %vm1168_vm2, %v2218_v50  ;;  %v10472_v50 = vpack.c.bf16 %v2485_v10, %v2485_v10  ;;  %4678 = vmatpush.bf16.msrb.mxu3 %v9332_v59  ;;  %v1899_v1 = vld [vmem:[#allocation2 + $0x24] sm:$0xff] }
 0x21a   : > { %1175 = vst.msk [vmem:[#allocation3 + $0x138] sm:$0xf] %vm1168_vm2, %v1157_v17  ;;  %v2575_v17 = vpack.c.bf16 %v2567_v48, %v2567_v48  ;;  %4628 = vmatpush.bf16.msrb.mxu2 %v9325_v52 }
 0x21b   : > { %2741 = vst.msk [vmem:[#allocation3 + $0x290] sm:$0xf] %vm767_vm1, %v2733_v6  ;;  %v1979_v6 = vld [vmem:[#allocation2 + $0x26] sm:$0xff] }
 0x21c   : > { %2739 = vst.msk [vmem:[#allocation3 + $0x228] sm:$0xf] %vm767_vm1, %v2731_v29  ;;  %v2351_v29 = vld [vmem:[#allocation2 + $0x8f] sm:$0xff] }
 0x21d   : > { %1397 = vrot.lane.b32.xlu1 %v10443_v9, %s9747_s13  ;;  %1477 = vrot.lane.b32.xlu0 %v10215_v43, %s9747_s13  ;;  %2661 = vst.msk [vmem:[#allocation3 + $0x28c] sm:$0xf] %vm767_vm1, %v2653_v51  ;;  %v2241_v51 = vld [vmem:[#allocation2 + $0x5c] sm:$0xff]  ;;  %v2359_v24 = vpack.c.bf16 %v2351_v29, %v2351_v29  ;;  %v1761_v29 = vld [vmem:[#allocation2 + $0x11] sm:$0xff] }
 0x21e   : > { %2297 = vrot.lane.b32.xlu2 %v2277_v31, %s9747_s13  ;;  %2503 = vst.msk [vmem:[#allocation3 + $0x2ec] sm:$0xf] %vm767_vm1, %v2495_v22  ;;  %v9255_v22 = vld [vmem:[#allocation3 + $0x1a4] sm:$0xf]  ;;  %4629 = vmatpush.bf16.msrb.mxu2 %v9324_v12  ;;  %v1603_v12 = vld [vmem:[#allocation2 + $0x1d] sm:$0xff] }
 0x21f   : > { %v2214_v15 = vpop.permute.xlu1 %2213  ;;  %v9248_v25 = vld [vmem:[#allocation3 + $0x168] sm:$0xf0]  ;;  %v1240_v3 = vpop.permute.xlu0 %1239  ;;  %2582 = vst.msk [vmem:[#allocation3 + $0x2bc] sm:$0xf] %vm767_vm1, %v2574_v57  ;;  %v7700_v23 = vor.u32 %v9255_v22, %v7697_v4  ;;  %v9351_v57 = vld [vmem:[#allocation8 + $0x160] sm:$0xff]  ;;  %v1980_v4 = vld [vmem:[#allocation2 + $0x2e] sm:$0xff] }
 0x220   : > { %v1306_v20 = vpop.permute.xlu2 %1305  ;;  %2235 = vst.msk [vmem:[#allocation3 + $0x20c] sm:$0xf] %vm1168_vm2, %v2214_v15  ;;  %v1818_v15 = vld [vmem:[#allocation2 + $0x1a] sm:$0xff]  ;;  %4773 = vmatpush.bf16.msrb.mxu1 %v9351_v57 }
 0x221   : > { %1329 = vst.msk [vmem:[#allocation3 + $0x8] sm:$0xf] %vm1168_vm2, %v1306_v20  ;;  %v7643_v43 = vld [vmem:[#allocation3 + $0x138] sm:$0xf]  ;;  %v9261_v20 = vld [vmem:[#allocation3 + $0x1d0] sm:$0xf0]  ;;  %v1826_v13 = vpack.c.bf16 %v1818_v15, %v1818_v15 }
 0x222   : > { %1256 = vst.msk [vmem:[#allocation3 + $0x170] sm:$0xf] %vm1168_vm2, %v1240_v3  ;;  %v7644_v19 = vor.u32 %v9248_v25, %v7643_v43  ;;  %v10485_v25 = vpack.c.bf16 %v2648_v32, %v2648_v32  ;;  %v7696_v7 = vor.u32 %v9261_v20, %v7695_v26  ;;  %v2358_v3 = vpack.c.bf16 %v2350_v49, %v2350_v49  ;;  %v7749_v49 = vld [vmem:[#allocation3 + $0x23c] sm:$0xf0]  ;;  %v9323_v15 = vld [vmem:[#allocation8 + $0x80] sm:$0xff]  ;;  %v1981_v20 = vld [vmem:[#allocation2 + $0x36] sm:$0xff] }
 0x223   : > { %2502 = vst.msk [vmem:[#allocation3 + $0x2b8] sm:$0xf] %vm767_vm1, %v2494_v46  ;;  %v1817_v46 = vld [vmem:[#allocation2 + $0x12] sm:$0xff]  ;;  %v1908_v26 = vpack.c.bf16 %v1900_v8, %v1900_v8  ;;  %4630 = vmatpush.bf16.msrb.mxu2 %v9323_v15  ;;  %v1983_v8 = vld [vmem:[#allocation2 + $0x46] sm:$0xff] }
 0x224   : > { %4548 = vmatmul.bf16.gmra.mxu2 %v7644_v19  ;;  %2584 = vst.msk [vmem:[#allocation3 + $0x324] sm:$0xf] %vm767_vm1, %v2576_v37  ;;  %v2271_v19 = vld [vmem:[#allocation2 + $0x8d] sm:$0xff]  ;;  %v2496_v37 = vpack.c.bf16 %v2488_v60, %v2488_v60  ;;  %v1902_v60 = vld [vmem:[#allocation2 + $0x3c] sm:$0xff] }
 0x225   : > { %2377 = vrot.lane.b32.xlu1 %v2357_v21, %s9747_s13  ;;  %1319 = vrot.lane.b32.xlu0 %v1296_v14, %s9747_s13  ;;  %2501 = vst.msk [vmem:[#allocation3 + $0x284] sm:$0xf] %vm767_vm1, %v10472_v50  ;;  %v1906_v21 = vpack.c.bf16 %v1898_v18, %v1898_v18  ;;  %v2249_v14 = vpack.c.bf16 %v2241_v51, %v2241_v51  ;;  %v1822_v18 = vld [vmem:[#allocation2 + $0x3a] sm:$0xff]  ;;  %v2961_v15 = vld [vmem:[#allocation2 + $0x6e] sm:$0xff] }
 0x226   : > { %1317 = vrot.lane.b32.xlu2 %v10458_v53, %s9747_s13  ;;  %2583 = vst.msk [vmem:[#allocation3 + $0x2f0] sm:$0xf] %vm767_vm1, %v2575_v17  ;;  %v2279_v27 = vpack.c.bf16 %v2271_v19, %v2271_v19  ;;  %v1825_v17 = vpack.c.bf16 %v1817_v46, %v1817_v46  ;;  %v2058_v19 = vld [vmem:[#allocation2 + $0x20] sm:$0xff]  ;;  %v1769_v46 = vpack.c.bf16 %v1761_v29, %v1761_v29 }
 0x227   : > { %v2140_v34 = vpop.permute.xlu1 %2139  ;;  %v2138_v11 = vpop.permute.xlu0 %2137  ;;  %2744 = vst.msk [vmem:[#allocation3 + $0x32c] sm:$0xf] %vm767_vm1, %v2736_v42  ;;  %v1819_v42 = vld [vmem:[#allocation2 + $0x22] sm:$0xff]  ;;  %v2066_v57 = vpack.c.bf16 %v2058_v19, %v2058_v19 }
 0x228   : > { %v1388_v2 = vpop.permute.xlu2 %1387  ;;  %2158 = vst.msk [vmem:[#allocation3 + $0x2a4] sm:$0xf] %vm1168_vm2, %v2140_v34  ;;  %v2647_v34 = vld [vmem:[#allocation2 + $0x96] sm:$0xff] }
 0x229   : > { %1410 = vst.msk [vmem:[#allocation3 + $0x40] sm:$0xf] %vm1168_vm2, %v1388_v2  ;;  %v7645_v0 = vld [vmem:[#allocation3 + $0x16c] sm:$0xf0]  ;;  %v2727_v2 = vld [vmem:[#allocation2 + $0x98] sm:$0xff]  ;;  %v2655_v10 = vpack.c.bf16 %v2647_v34, %v2647_v34 }
 0x22a   : > { %2157 = vst.msk [vmem:[#allocation3 + $0x270] sm:$0xf] %vm1168_vm2, %v2138_v11  ;;  %v7648_v30 = vor.u32 %v9242_v16, %v7645_v0  ;;  %v2735_v11 = vpack.c.bf16 %v2727_v2, %v2727_v2  ;;  %v9274_v0 = vld [vmem:[#allocation3 + $0x238] sm:$0xf0]  ;;  %v1901_v34 = vld [vmem:[#allocation2 + $0x34] sm:$0xff] }
 0x22b   : > { %2742 = vst.msk [vmem:[#allocation3 + $0x2c4] sm:$0xf] %vm767_vm1, %v2734_v62  ;;  %v1521_v62 = vld [vmem:[#allocation2 + $0xb] sm:$0xff] }
 0x22c   : > { %4597 = vmatmul.bf16.gmra.mxu3 %v7648_v30  ;;  %2664 = vst.msk [vmem:[#allocation3 + $0x328] sm:$0xf] %vm767_vm1, %v10485_v25  ;;  %v1820_v30 = vld [vmem:[#allocation2 + $0x2a] sm:$0xff] }
 0x22d   : > { %1479 = vrot.lane.b32.xlu1 %v1456_v55, %s9747_s13  ;;  %2299 = vrot.lane.b32.xlu0 %v2278_v33, %s9747_s13  ;;  %1993 = vst.msk [vmem:[#allocation3 + $0x2c] sm:$0xf] %vm767_vm1, %v1985_v44  ;;  %v1905_v55 = vpack.c.bf16 %v1897_v40, %v1897_v40  ;;  %v1828_v36 = vpack.c.bf16 %v1820_v30, %v1820_v30 }
 0x22e   : > { %1399 = vrot.lane.b32.xlu2 %v1376_v56, %s9747_s13  ;;  %1834 = vst.msk [vmem:[#allocation3 + $0x58] sm:$0xf] %vm767_vm1, %v1826_v13  ;;  %v1978_v56 = vld [vmem:[#allocation2 + $0x1e] sm:$0xff]  ;;  %v1530_v44 = vpack.c.bf16 %v1522_v5, %v1522_v5  ;;  %v1989_v13 = vpack.c.bf16 %v1981_v20, %v1981_v20  ;;  %v1611_v40 = vpack.c.bf16 %v1603_v12, %v1603_v12  ;;  %v2802_v20 = vld [vmem:[#allocation2 + $0x72] sm:$0xff] }
 0x22f   : > { %v2142_v61 = vpop.permute.xlu1 %2141  ;;  %v2220_v38 = vpop.permute.xlu0 %2219  ;;  %2257 = vst.msk [vmem:[#allocation3 + $0x1a8] sm:$0xf] %vm767_vm1, %v2249_v14  ;;  %v1986_v63 = vpack.c.bf16 %v1978_v56, %v1978_v56  ;;  %v9287_v14 = vld [vmem:[#allocation3 + $0x2a0] sm:$0xf0]  ;;  %v1683_v56 = vld [vmem:[#allocation2 + $0x1f] sm:$0xff] }
 0x230   : > { %v1310_v31 = vpop.permute.xlu2 %1309  ;;  %2159 = vst.msk [vmem:[#allocation3 + $0x2d8] sm:$0xf] %vm1168_vm2, %v2142_v61 }
 0x231   : > { %1331 = vst.msk [vmem:[#allocation3 + $0x70] sm:$0xf] %vm1168_vm2, %v1310_v31  ;;  %v9268_v31 = vld [vmem:[#allocation3 + $0x20c] sm:$0xf]  ;;  %v7799_v22 = vld [vmem:[#allocation3 + $0x270] sm:$0xf] }
 0x232   : > { %2238 = vst.msk [vmem:[#allocation3 + $0x2a8] sm:$0xf] %vm1168_vm2, %v2220_v38  ;;  %v1907_v38 = vpack.c.bf16 %v1899_v1, %v1899_v1  ;;  %v1824_v1 = vld [vmem:[#allocation2 + $0x4a] sm:$0xff] }
 0x233   : > { %1914 = vst.msk [vmem:[#allocation3 + $0x5c] sm:$0xf] %vm767_vm1, %v1906_v21 }
 0x234   : > { %4553 = vmatmul.bf16.gmra.mxu2 %v7696_v7  ;;  %2663 = vst.msk [vmem:[#allocation3 + $0x2f4] sm:$0xf] %vm767_vm1, %v2655_v10  ;;  %v1827_v7 = vpack.c.bf16 %v1819_v42, %v1819_v42  ;;  %v7800_v10 = vor.u32 %v9287_v14, %v7799_v22  ;;  %v1832_v42 = vpack.c.bf16 %v1824_v1, %v1824_v1  ;;  %v2061_v14 = vld [vmem:[#allocation2 + $0x38] sm:$0xff] }
 0x235   : > { %2459 = vrot.lane.b32.xlu1 %v10275_v58, %s9747_s13  ;;  %2457 = vrot.lane.b32.xlu0 %v10253_v47, %s9747_s13  ;;  %v1987_v47 = vpack.c.bf16 %v1979_v6, %v1979_v6  ;;  %2743 = vst.msk [vmem:[#allocation3 + $0x2f8] sm:$0xf] %vm767_vm1, %v2735_v11  ;;  %v1529_v6 = vpack.c.bf16 %v1521_v62, %v1521_v62  ;;  %v9350_v62 = vld [vmem:[#allocation8 + $0x158] sm:$0xff] }
 0x236   : > { %2379 = vrot.lane.b32.xlu2 %v2358_v3, %s9747_s13  ;;  %2504 = vst.msk [vmem:[#allocation3 + $0x320] sm:$0xf] %vm767_vm1, %v2496_v37  ;;  %v1821_v37 = vld [vmem:[#allocation2 + $0x32] sm:$0xff]  ;;  %4774 = vmatpush.bf16.msrb.mxu1 %v9350_v62  ;;  %v2069_v12 = vpack.c.bf16 %v2061_v14, %v2061_v14 }
 0x237   : > { %v1386_v35 = vpop.permute.xlu1 %1385  ;;  %v2222_v58 = vpop.permute.xlu0 %2221  ;;  %1995 = vst.msk [vmem:[#allocation3 + $0x94] sm:$0xf] %vm767_vm1, %v1987_v47  ;;  %v1988_v47 = vpack.c.bf16 %v1980_v4, %v1980_v4  ;;  %v2969_v4 = vpack.c.bf16 %v2961_v15, %v2961_v15  ;;  %v1605_v62 = vld [vmem:[#allocation2 + $0x2d] sm:$0xff]  ;;  %v7495_v15 = vld [vmem:[#allocation3 + $0x8] sm:$0xf] }
 0x238   : > { %v1392_v43 = vpop.permute.xlu2 %1391  ;;  %1409 = vst.msk [vmem:[#allocation3 + $0xc] sm:$0xf] %vm1168_vm2, %v1386_v35  ;;  %v9331_v35 = vld [vmem:[#allocation8 + $0xc0] sm:$0xff] }
 0x239   : > { %1412 = vst.msk [vmem:[#allocation3 + $0xa8] sm:$0xf] %vm1168_vm2, %v1392_v43  ;;  %v1830_v43 = vpack.c.bf16 %v1822_v18, %v1822_v18  ;;  %4679 = vmatpush.bf16.msrb.mxu3 %v9331_v35  ;;  %v1523_v18 = vld [vmem:[#allocation2 + $0x1b] sm:$0xff]  ;;  %v7851_v35 = vld [vmem:[#allocation3 + $0x2d8] sm:$0xf] }
 0x23a   : > { %2239 = vst.msk [vmem:[#allocation3 + $0x2dc] sm:$0xf] %vm1168_vm2, %v2222_v58  ;;  %v2057_v58 = vld [vmem:[#allocation2 + $0x18] sm:$0xff] }
 0x23b   : > { %1913 = vst.msk [vmem:[#allocation3 + $0x28] sm:$0xf] %vm767_vm1, %v1905_v55  ;;  %v7801_v55 = vld [vmem:[#allocation3 + $0x2a4] sm:$0xf0] }
 0x23c   : > { %4602 = vmatmul.bf16.gmra.mxu3 %v7700_v23  ;;  %1833 = vst.msk [vmem:[#allocation3 + $0x24] sm:$0xf] %vm767_vm1, %v1825_v17 }
 0x23d   : > { %2381 = vrot.lane.b32.xlu1 %v2359_v24, %s9747_s13  ;;  %2461 = vrot.lane.b32.xlu0 %v10366_v39, %s9747_s13  ;;  %v7747_v39 = vld [vmem:[#allocation3 + $0x208] sm:$0xf]  ;;  %1836 = vst.msk [vmem:[#allocation3 + $0xc0] sm:$0xf] %vm767_vm1, %v1828_v36  ;;  %v1604_v36 = vld [vmem:[#allocation2 + $0x25] sm:$0xff] }
 0x23e   : > { %2301 = vrot.lane.b32.xlu2 %v2279_v27, %s9747_s13  ;;  %v7748_v33 = vor.u32 %v9274_v0, %v7747_v39  ;;  %1994 = vst.msk [vmem:[#allocation3 + $0x60] sm:$0xf] %vm767_vm1, %v1986_v63  ;;  %v1762_v24 = vld [vmem:[#allocation2 + $0x19] sm:$0xff]  ;;  %v2065_v27 = vpack.c.bf16 %v2057_v58, %v2057_v58  ;;  %v1829_v39 = vpack.c.bf16 %v1821_v37, %v1821_v37  ;;  %v2059_v63 = vld [vmem:[#allocation2 + $0x28] sm:$0xff] }
 0x23f   : > { %v1468_v48 = vpop.permute.xlu1 %1467  ;;  %v1308_v52 = vpop.permute.xlu0 %1307  ;;  %1916 = vst.msk [vmem:[#allocation3 + $0xc4] sm:$0xf] %vm767_vm1, %v1908_v26  ;;  %v1770_v0 = vpack.c.bf16 %v1762_v24, %v1762_v24  ;;  %v1991_v26 = vpack.c.bf16 %v1983_v8, %v1983_v8  ;;  %v1612_v5 = vpack.c.bf16 %v1604_v36, %v1604_v36  ;;  %v2882_v58 = vld [vmem:[#allocation2 + $0x74] sm:$0xff] }
 0x240   : > { %v1314_v16 = vpop.permute.xlu2 %1313  ;;  %1490 = vst.msk [vmem:[#allocation3 + $0x44] sm:$0xf] %vm1168_vm2, %v1468_v48  ;;  %v1910_v48 = vpack.c.bf16 %v1902_v60, %v1902_v60  ;;  %v2890_v24 = vpack.c.bf16 %v2882_v58, %v2882_v58 }
 0x241   : > { %1333 = vst.msk [vmem:[#allocation3 + $0xd8] sm:$0xf] %vm1168_vm2, %v1314_v16  ;;  %v1909_v16 = vpack.c.bf16 %v1901_v34, %v1901_v34  ;;  %v9378_v34 = vld [vmem:[#allocation8 + $0x238] sm:$0xff]  ;;  %v9294_v37 = vld [vmem:[#allocation3 + $0x2dc] sm:$0xf] }
 0x242   : > { %1330 = vst.msk [vmem:[#allocation3 + $0x3c] sm:$0xf] %vm1168_vm2, %v1308_v52  ;;  %4917 = vmatpush.bf16.msra.mxu0 %v9378_v34 }
 0x243   : > { %1915 = vst.msk [vmem:[#allocation3 + $0x90] sm:$0xf] %vm767_vm1, %v1907_v38  ;;  %v1691_v38 = vpack.c.bf16 %v1683_v56, %v1683_v56  ;;  %v9361_v56 = vld [vmem:[#allocation8 + $0x1b0] sm:$0xff] }
 0x244   : > { %4558 = vmatmul.bf16.gmra.mxu2 %v7748_v33  ;;  %1997 = vst.msk [vmem:[#allocation3 + $0xfc] sm:$0xf] %vm767_vm1, %v1989_v13  ;;  %v9281_v33 = vld [vmem:[#allocation3 + $0x274] sm:$0xf] }
 0x245   : > { %1705 = vrot.lane.b32.xlu1 %v10301_v28, %s9747_s13  ;;  %1627 = vrot.lane.b32.xlu0 %v10324_v41, %s9747_s13  ;;  %v7752_v41 = vor.u32 %v9268_v31, %v7749_v49  ;;  %1835 = vst.msk [vmem:[#allocation3 + $0x8c] sm:$0xf] %vm767_vm1, %v1827_v7  ;;  %v9362_v31 = vld [vmem:[#allocation8 + $0x1b8] sm:$0xff]  ;;  %v1763_v13 = vld [vmem:[#allocation2 + $0x21] sm:$0xff] }
 0x246   : > { %1625 = vrot.lane.b32.xlu2 %v10305_v54, %s9747_s13  ;;  %v1682_v54 = vld [vmem:[#allocation2 + $0x17] sm:$0xff]  ;;  %1838 = vst.msk [vmem:[#allocation3 + $0x128] sm:$0xf] %vm767_vm1, %v1830_v43  ;;  %4819 = vmatpush.bf16.msra.mxu2 %v9362_v31 }
 0x247   : > { %v1390_v32 = vpop.permute.xlu1 %1389  ;;  %v1466_v28 = vpop.permute.xlu0 %1465  ;;  %v1690_v3 = vpack.c.bf16 %v1682_v54, %v1682_v54  ;;  %v9211_v59 = vld [vmem:[#allocation3 + $0x40] sm:$0xf0]  ;;  %1996 = vst.msk [vmem:[#allocation3 + $0xc8] sm:$0xf] %vm767_vm1, %v1988_v47  ;;  %v2067_v54 = vpack.c.bf16 %v2059_v63, %v2059_v63  ;;  %v9370_v49 = vld [vmem:[#allocation8 + $0x1f8] sm:$0xff]  ;;  %v1771_v47 = vpack.c.bf16 %v1763_v13, %v1763_v13 }
 0x248   : > { %v2144_v61 = vpop.permute.xlu2 %2143  ;;  %1411 = vst.msk [vmem:[#allocation3 + $0x74] sm:$0xf] %vm1168_vm2, %v1390_v32  ;;  %v1982_v32 = vld [vmem:[#allocation2 + $0x3e] sm:$0xff]  ;;  %4868 = vmatpush.bf16.msra.mxu3 %v9370_v49  ;;  %v2272_v43 = vld [vmem:[#allocation2 + $0x95] sm:$0xff]  ;;  %v1764_v49 = vld [vmem:[#allocation2 + $0x29] sm:$0xff] }
 0x249   : > { %2160 = vst.msk [vmem:[#allocation3 + $0x30c] sm:$0xf] %vm1168_vm2, %v2144_v61  ;;  %v7804_v61 = vor.u32 %v9281_v33, %v7801_v55  ;;  %v9210_v31 = vld [vmem:[#allocation3 + $0x38] sm:$0xf0] }
 0x24a   : > { %1489 = vst.msk [vmem:[#allocation3 + $0x10] sm:$0xf] %vm1168_vm2, %v1466_v28  ;;  %v1990_v28 = vpack.c.bf16 %v1982_v32, %v1982_v32  ;;  %4820 = vmatpush.bf16.msra.mxu2 %v9361_v56  ;;  %v9369_v32 = vld [vmem:[#allocation8 + $0x1f0] sm:$0xff] }
 0x24b   : > { %2073 = vst.msk [vmem:[#allocation3 + $0x30] sm:$0xf] %vm767_vm1, %v2065_v27  ;;  %v2280_v27 = vpack.c.bf16 %v2272_v43, %v2272_v43  ;;  %v2803_v43 = vld [vmem:[#allocation2 + $0x7a] sm:$0xff] }
 0x24c   : > { %4607 = vmatmul.bf16.gmra.mxu3 %v7752_v41  ;;  %2074 = vst.msk [vmem:[#allocation3 + $0x64] sm:$0xf] %vm767_vm1, %v2066_v57  ;;  %v2060_v41 = vld [vmem:[#allocation2 + $0x30] sm:$0xff] }
 0x24d   : > { %1547 = vrot.lane.b32.xlu1 %v1530_v44, %s9747_s13  ;;  %1545 = vrot.lane.b32.xlu0 %v1529_v6, %s9747_s13  ;;  %1918 = vst.msk [vmem:[#allocation3 + $0x12c] sm:$0xf] %vm767_vm1, %v1910_v48  ;;  %v2068_v6 = vpack.c.bf16 %v2060_v41, %v2060_v41  ;;  %v2432_v48 = vld [vmem:[#allocation2 + $0x99] sm:$0xff] }
 0x24e   : > { %1707 = vrot.lane.b32.xlu2 %v1690_v3, %s9747_s13  ;;  %1917 = vst.msk [vmem:[#allocation3 + $0xf8] sm:$0xf] %vm767_vm1, %v1909_v16  ;;  %v2352_v16 = vld [vmem:[#allocation2 + $0x97] sm:$0xff]  ;;  %v2440_v36 = vpack.c.bf16 %v2432_v48, %v2432_v48  ;;  %4869 = vmatpush.bf16.msra.mxu3 %v9369_v32 }
 0x24f   : > { %v1472_v51 = vpop.permute.xlu1 %1471  ;;  %v1312_v23 = vpop.permute.xlu0 %1311  ;;  %1837 = vst.msk [vmem:[#allocation3 + $0xf4] sm:$0xf] %vm767_vm1, %v1829_v39  ;;  %v2360_v63 = vpack.c.bf16 %v2352_v16, %v2352_v16  ;;  %v2064_v16 = vld [vmem:[#allocation2 + $0x50] sm:$0xff] }
 0x250   : > { %v1396_v21 = vpop.permute.xlu2 %1395  ;;  %1492 = vst.msk [vmem:[#allocation3 + $0xac] sm:$0xf] %vm1168_vm2, %v1472_v51  ;;  %v9300_v3 = vld [vmem:[#allocation3 + $0x308] sm:$0xf0]  ;;  %v2810_v51 = vpack.c.bf16 %v2802_v20, %v2802_v20  ;;  %v1765_v32 = vld [vmem:[#allocation2 + $0x31] sm:$0xff] }
 0x251   : > { %1414 = vst.msk [vmem:[#allocation3 + $0x110] sm:$0xf] %vm1168_vm2, %v1396_v21  ;;  %v7503_v2 = vld [vmem:[#allocation3 + $0x10] sm:$0xf]  ;;  %v7852_v21 = vor.u32 %v9300_v3, %v7851_v35  ;;  %v2965_v35 = vld [vmem:[#allocation2 + $0x8e] sm:$0xff] }
 0x252   : > { %1332 = vst.msk [vmem:[#allocation3 + $0xa4] sm:$0xf] %vm1168_vm2, %v1312_v23  ;;  %v7504_v11 = vor.u32 %v9211_v59, %v7503_v2  ;;  %v1531_v23 = vpack.c.bf16 %v1523_v18, %v1523_v18  ;;  %v2963_v2 = vld [vmem:[#allocation2 + $0x7e] sm:$0xff]  ;;  %v1772_v18 = vpack.c.bf16 %v1764_v49, %v1764_v49  ;;  %v2973_v58 = vpack.c.bf16 %v2965_v35, %v2965_v35 }
 0x253   : > { %1999 = vst.msk [vmem:[#allocation3 + $0x164] sm:$0xf] %vm767_vm1, %v1991_v26  ;;  %v2971_v60 = vpack.c.bf16 %v2963_v2, %v2963_v2  ;;  %v2884_v26 = vld [vmem:[#allocation2 + $0x84] sm:$0xff] }
 0x254   : > { %4563 = vmatmul.bf16.gmra.mxu2 %v7800_v10  ;;  %4729 = vmatmul.bf16.vlgmr.msrb.gmra.mxu0 %v7504_v11  ;;  %1840 = vst.msk [vmem:[#allocation3 + $0x190] sm:$0xf] %vm767_vm1, %v1832_v42  ;;  %v1524_v11 = vld [vmem:[#allocation2 + $0x23] sm:$0xff] }
 0x255   : > { %1629 = vrot.lane.b32.xlu1 %v1611_v40, %s9747_s13  ;;  %1787 = vrot.lane.b32.xlu0 %v1770_v0, %s9747_s13  ;;  %1998 = vst.msk [vmem:[#allocation3 + $0x130] sm:$0xf] %vm767_vm1, %v1990_v28  ;;  %v2881_v40 = vld [vmem:[#allocation2 + $0x6c] sm:$0xff]  ;;  %v1532_v1 = vpack.c.bf16 %v1524_v11, %v1524_v11 }
 0x256   : > { %1785 = vrot.lane.b32.xlu2 %v1769_v46, %s9747_s13  ;;  %2075 = vst.msk [vmem:[#allocation3 + $0x98] sm:$0xf] %vm767_vm1, %v2067_v54  ;;  %v2801_v0 = vld [vmem:[#allocation2 + $0x6a] sm:$0xff]  ;;  %v2889_v33 = vpack.c.bf16 %v2881_v40, %v2881_v40  ;;  %v2883_v54 = vld [vmem:[#allocation2 + $0x7c] sm:$0xff] }
 0x257   : > { %v2224_v30 = vpop.permute.xlu1 %2223  ;;  %v1470_v17 = vpop.permute.xlu0 %1469  ;;  %v9224_v19 = vld [vmem:[#allocation3 + $0xa8] sm:$0xf0]  ;;  %2076 = vst.msk [vmem:[#allocation3 + $0xcc] sm:$0xf] %vm767_vm1, %v2068_v6  ;;  %v2809_v8 = vpack.c.bf16 %v2801_v0, %v2801_v0  ;;  %v2891_v13 = vpack.c.bf16 %v2883_v54, %v2883_v54  ;;  %v1613_v6 = vpack.c.bf16 %v1605_v62, %v1605_v62  ;;  %v9349_v40 = vld [vmem:[#allocation8 + $0x150] sm:$0xff]  ;;  %v9376_v54 = vld [vmem:[#allocation8 + $0x228] sm:$0xff] }
 0x258   : > { %v2290_v52 = vpop.permute.xlu2 %2289  ;;  %2240 = vst.msk [vmem:[#allocation3 + $0x310] sm:$0xf] %vm1168_vm2, %v2224_v30  ;;  %v1903_v30 = vld [vmem:[#allocation2 + $0x44] sm:$0xff]  ;;  %4775 = vmatpush.bf16.msrb.mxu1 %v9349_v40 }
 0x259   : > { %2313 = vst.msk [vmem:[#allocation3 + $0x1a8] sm:$0xf] %vm1168_vm2, %v2290_v52  ;;  %v1823_v52 = vld [vmem:[#allocation2 + $0x42] sm:$0xff]  ;;  %v1911_v39 = vpack.c.bf16 %v1903_v30, %v1903_v30  ;;  %v2886_v30 = vld [vmem:[#allocation2 + $0x94] sm:$0xff] }
 0x25a   : > { %1491 = vst.msk [vmem:[#allocation3 + $0x78] sm:$0xf] %vm1168_vm2, %v1470_v17  ;;  %v1831_v17 = vpack.c.bf16 %v1823_v52, %v1823_v52  ;;  %v9223_v56 = vld [vmem:[#allocation3 + $0xa0] sm:$0xf0]  ;;  %v2808_v62 = vld [vmem:[#allocation2 + $0xa2] sm:$0xff] }
 0x25b   : > { %2977 = vst.msk [vmem:[#allocation3 + $0x1cc] sm:$0xf] %vm767_vm1, %v2969_v4  ;;  %v2585_v35 = vld [vmem:[#allocation2 + $0x65] sm:$0xff] }
 0x25c   : > { %4612 = vmatmul.bf16.gmra.mxu3 %v7804_v61  ;;  %2818 = vst.msk [vmem:[#allocation3 + $0x1f8] sm:$0xf] %vm767_vm1, %v2810_v51  ;;  %v2962_v61 = vld [vmem:[#allocation2 + $0x76] sm:$0xff] }
 0x25d   : > { %1711 = vrot.lane.b32.xlu1 %v10364_v45, %s9747_s13  ;;  %1709 = vrot.lane.b32.xlu0 %v1691_v38, %s9747_s13  ;;  %2077 = vst.msk [vmem:[#allocation3 + $0x100] sm:$0xf] %vm767_vm1, %v2069_v12  ;;  %v2970_v41 = vpack.c.bf16 %v2962_v61, %v2962_v61  ;;  %v1685_v12 = vld [vmem:[#allocation2 + $0x2f] sm:$0xff]  ;;  %v2894_v61 = vpack.c.bf16 %v2886_v30, %v2886_v30 }
 0x25e   : > { %1631 = vrot.lane.b32.xlu2 %v1612_v5, %s9747_s13  ;;  %2898 = vst.msk [vmem:[#allocation3 + $0x1fc] sm:$0xf] %vm767_vm1, %v2890_v24  ;;  %v1693_v11 = vpack.c.bf16 %v1685_v12, %v1685_v12  ;;  %v2666_v30 = vld [vmem:[#allocation2 + $0x6f] sm:$0xff] }
 0x25f   : > { %v1394_v7 = vpop.permute.xlu1 %1393  ;;  %v1316_v45 = vpop.permute.xlu0 %1315  ;;  %v7853_v10 = vld [vmem:[#allocation3 + $0x30c] sm:$0xf0]  ;;  %2979 = vst.msk [vmem:[#allocation3 + $0x234] sm:$0xf] %vm767_vm1, %v2971_v60  ;;  %v9368_v60 = vld [vmem:[#allocation8 + $0x1e8] sm:$0xff] }
 0x260   : > { %v2372_v44 = vpop.permute.xlu2 %2371  ;;  %1413 = vst.msk [vmem:[#allocation3 + $0xdc] sm:$0xf] %vm1168_vm2, %v1394_v7  ;;  %v7856_v55 = vor.u32 %v9294_v37, %v7853_v10  ;;  %v2892_v7 = vpack.c.bf16 %v2884_v26, %v2884_v26  ;;  %v3042_v37 = vld [vmem:[#allocation2 + $0x78] sm:$0xff]  ;;  %4870 = vmatpush.bf16.msra.mxu3 %v9368_v60 }
 0x261   : > { %2394 = vst.msk [vmem:[#allocation3 + $0x1e0] sm:$0xf] %vm1168_vm2, %v2372_v44  ;;  %v7555_v29 = vld [vmem:[#allocation3 + $0x78] sm:$0xf]  ;;  %v7496_v44 = vor.u32 %v9210_v31, %v7495_v15  ;;  %v2966_v15 = vld [vmem:[#allocation2 + $0x96] sm:$0xff] }
 0x262   : > { %1334 = vst.msk [vmem:[#allocation3 + $0x10c] sm:$0xf] %vm1168_vm2, %v1316_v45  ;;  %v7556_v22 = vor.u32 %v9224_v19, %v7555_v29  ;;  %v9377_v45 = vld [vmem:[#allocation8 + $0x230] sm:$0xff] }
 0x263   : > { %1919 = vst.msk [vmem:[#allocation3 + $0x160] sm:$0xf] %vm767_vm1, %v1911_v39  ;;  %v2806_v29 = vld [vmem:[#allocation2 + $0x92] sm:$0xff]  ;;  %4918 = vmatpush.bf16.msra.mxu0 %v9377_v45  ;;  %v2072_v39 = vpack.c.bf16 %v2064_v16, %v2064_v16 }
 0x264   : > { %4568 = vmatmul.bf16.gmra.mxu2 %v7852_v21  ;;  %4734 = vmatmul.bf16.gmra.mxu0 %v7556_v22  ;;  %1839 = vst.msk [vmem:[#allocation3 + $0x15c] sm:$0xf] %vm767_vm1, %v1831_v17  ;;  %v9204_v21 = vld [vmem:[#allocation3 + $0xc] sm:$0xf]  ;;  %v3041_v22 = vld [vmem:[#allocation2 + $0x70] sm:$0xff]  ;;  %v2814_v24 = vpack.c.bf16 %v2806_v29, %v2806_v29  ;;  %v3044_v29 = vld [vmem:[#allocation2 + $0x88] sm:$0xff] }
 0x265   : > { %1789 = vrot.lane.b32.xlu1 %v1771_v47, %s9747_s13  ;;  %2303 = vrot.lane.b32.xlu0 %v2280_v27, %s9747_s13  ;;  %2897 = vst.msk [vmem:[#allocation3 + $0x1c8] sm:$0xf] %vm767_vm1, %v2889_v33  ;;  %v7497_v27 = vld [vmem:[#allocation3 + $0x3c] sm:$0xf0]  ;;  %v3052_v12 = vpack.c.bf16 %v3044_v29, %v3044_v29 }
 0x266   : > { %1549 = vrot.lane.b32.xlu2 %v1531_v23, %s9747_s13  ;;  %2817 = vst.msk [vmem:[#allocation3 + $0x1c4] sm:$0xf] %vm767_vm1, %v2809_v8  ;;  %v1525_v23 = vld [vmem:[#allocation2 + $0x2b] sm:$0xff]  ;;  %v7500_v2 = vor.u32 %v9204_v21, %v7497_v27  ;;  %v3050_v8 = vpack.c.bf16 %v3042_v37, %v3042_v37  ;;  %v9367_v27 = vld [vmem:[#allocation8 + $0x1e0] sm:$0xff] }
 0x267   : > { %v1476_v59 = vpop.permute.xlu1 %1475  ;;  %v1474_v46 = vpop.permute.xlu0 %1473  ;;  %2820 = vst.msk [vmem:[#allocation3 + $0x260] sm:$0xf] %vm767_vm1, %v10472_v50  ;;  %v2964_v50 = vld [vmem:[#allocation2 + $0x86] sm:$0xff]  ;;  %v1533_v10 = vpack.c.bf16 %v1525_v23, %v1525_v23  ;;  %4919 = vmatpush.bf16.msra.mxu0 %v9376_v54  ;;  %4871 = vmatpush.bf16.msra.mxu3 %v9367_v27 }
 0x268   : > { %v2294_v57 = vpop.permute.xlu2 %2293  ;;  %1494 = vst.msk [vmem:[#allocation3 + $0x114] sm:$0xf] %vm1168_vm2, %v1476_v59  ;;  %v2972_v34 = vpack.c.bf16 %v2964_v50, %v2964_v50  ;;  %v9360_v59 = vld [vmem:[#allocation8 + $0x1a8] sm:$0xff]  ;;  %v1527_v50 = vld [vmem:[#allocation2 + $0x3b] sm:$0xff] }
 0x269   : > { %2315 = vst.msk [vmem:[#allocation3 + $0x210] sm:$0xf] %vm1168_vm2, %v2294_v57  ;;  %v3049_v57 = vpack.c.bf16 %v3041_v22, %v3041_v22  ;;  %4821 = vmatpush.bf16.msra.mxu2 %v9360_v59  ;;  %v9359_v22 = vld [vmem:[#allocation8 + $0x1a0] sm:$0xff]  ;;  %v9236_v60 = vld [vmem:[#allocation3 + $0x108] sm:$0xf0] }
 0x26a   : > { %1493 = vst.msk [vmem:[#allocation3 + $0xe0] sm:$0xf] %vm1168_vm2, %v1474_v46  ;;  %v2063_v46 = vld [vmem:[#allocation2 + $0x48] sm:$0xff]  ;;  %v2807_v59 = vld [vmem:[#allocation2 + $0x9a] sm:$0xff] }
 0x26b   : > { %2978 = vst.msk [vmem:[#allocation3 + $0x200] sm:$0xf] %vm767_vm1, %v2970_v41  ;;  %v2071_v0 = vpack.c.bf16 %v2063_v46, %v2063_v46  ;;  %v10625_v41 = vld [vmem:[%s11354_s4] ss:$0 sm:$0xff]  ;;  %v9230_v54 = vld [vmem:[#allocation3 + $0xdc] sm:$0xf] }
 0x26c   : > { %4617 = vmatmul.bf16.gmra.mxu3 %v7856_v55  ;;  %2900 = vst.msk [vmem:[#allocation3 + $0x264] sm:$0xf] %vm767_vm1, %v2892_v7  ;;  %v3047_v46 = vld [vmem:[#allocation2 + $0xa0] sm:$0xff] }
 0x26d   : > { %2463 = vrot.lane.b32.xlu1 %v2440_v36, %s9747_s13  ;;  %1551 = vrot.lane.b32.xlu0 %v1532_v1, %s9747_s13  ;;  %2899 = vst.msk [vmem:[#allocation3 + $0x230] sm:$0xf] %vm767_vm1, %v2891_v13  ;;  %v1766_v36 = vld [vmem:[#allocation2 + $0x39] sm:$0xff] }
 0x26e   : > { %2383 = vrot.lane.b32.xlu2 %v2360_v63, %s9747_s13  ;;  %2981 = vst.msk [vmem:[#allocation3 + $0x29c] sm:$0xf] %vm767_vm1, %v2973_v58  ;;  %v1526_v63 = vld [vmem:[#allocation2 + $0x33] sm:$0xff]  ;;  %v7547_v1 = vld [vmem:[#allocation3 + $0x70] sm:$0xf]  ;;  %v1774_v26 = vpack.c.bf16 %v1766_v36, %v1766_v36  ;;  %v2816_v58 = vpack.c.bf16 %v2808_v62, %v2808_v62  ;;  %4822 = vmatpush.bf16.msra.mxu2 %v9359_v22 }
 0x26f   : > { %v2370_v42 = vpop.permute.xlu1 %2369  ;;  %v9237_v5 = vld [vmem:[#allocation3 + $0x110] sm:$0xf0]  ;;  %v2292_v38 = vpop.permute.xlu0 %2291  ;;  %2822 = vst.msk [vmem:[#allocation3 + $0x2c8] sm:$0xf] %vm767_vm1, %v2814_v24  ;;  %v7548_v31 = vor.u32 %v9223_v56, %v7547_v1  ;;  %v1535_v24 = vpack.c.bf16 %v1527_v50, %v1527_v50  ;;  %v2815_v56 = vpack.c.bf16 %v2807_v59, %v2807_v59  ;;  %v2674_v1 = vpack.c.bf16 %v2666_v30, %v2666_v30 }
 0x270   : > { %v2376_v28 = vpop.permute.xlu2 %2375  ;;  %2393 = vst.msk [vmem:[#allocation3 + $0x1ac] sm:$0xf] %vm1168_vm2, %v2370_v42  ;;  %v1534_v42 = vpack.c.bf16 %v1526_v63, %v1526_v63  ;;  %v3043_v13 = vld [vmem:[#allocation2 + $0x80] sm:$0xff] }
 0x271   : > { %2396 = vst.msk [vmem:[#allocation3 + $0x248] sm:$0xf] %vm1168_vm2, %v2376_v28  ;;  %v7607_v20 = vld [vmem:[#allocation3 + $0xe0] sm:$0xf]  ;;  %v1687_v22 = vld [vmem:[#allocation2 + $0x3f] sm:$0xff] }
 0x272   : > { %2314 = vst.msk [vmem:[#allocation3 + $0x1dc] sm:$0xf] %vm1168_vm2, %v2292_v38  ;;  %v7608_v3 = vor.u32 %v9237_v5, %v7607_v20  ;;  %v1773_v5 = vpack.c.bf16 %v1765_v32, %v1765_v32  ;;  %v2805_v38 = vld [vmem:[#allocation2 + $0x8a] sm:$0xff] }
 0x273   : > { %2980 = vst.msk [vmem:[#allocation3 + $0x268] sm:$0xf] %vm767_vm1, %v2972_v34  ;;  %v2887_v34 = vld [vmem:[#allocation2 + $0x9c] sm:$0xff] }
 0x274   : > { %4631 = vmatmul.bf16.vlgmr.msrb.gmra.mxu2 %v7496_v44  ;;  %4739 = vmatmul.bf16.gmra.mxu0 %v7608_v3  ;;  %3057 = vst.msk [vmem:[#allocation3 + $0x1d0] sm:$0xf] %vm767_vm1, %v3049_v57  ;;  %v9217_v44 = vld [vmem:[#allocation3 + $0x74] sm:$0xf]  ;;  %v2813_v3 = vpack.c.bf16 %v2805_v38, %v2805_v38  ;;  %v3045_v57 = vld [vmem:[#allocation2 + $0x90] sm:$0xff]  ;;  %v2895_v40 = vpack.c.bf16 %v2887_v34, %v2887_v34 }
 0x275   : > { %1635 = vrot.lane.b32.xlu1 %v10458_v53, %s9747_s13  ;;  %v10589_v4 = vpop.f32.mrf.mxu3  ;;  %1633 = vrot.lane.b32.xlu0 %v1613_v6, %s9747_s13  ;;  %v2811_v53 = vpack.c.bf16 %v2803_v43, %v2803_v43  ;;  %2079 = vst.msk [vmem:[#allocation3 + $0x168] sm:$0xf] %vm767_vm1, %v2071_v0  ;;  %v2586_v43 = vld [vmem:[#allocation2 + $0x6d] sm:$0xff]  ;;  %v3053_v36 = vpack.c.bf16 %v3045_v57, %v3045_v57 }
 0x276   : > { %1791 = vrot.lane.b32.xlu2 %v1772_v18, %s9747_s13  ;;  %2080 = vst.msk [vmem:[#allocation3 + $0x19c] sm:$0xf] %vm767_vm1, %v2072_v39  ;;  %v2594_v23 = vpack.c.bf16 %v2586_v43, %v2586_v43  ;;  %v3048_v39 = vld [vmem:[#allocation2 + $0xa8] sm:$0xff]  ;;  %v9366_v43 = vld [vmem:[#allocation8 + $0x1d8] sm:$0xff] }
 0x277   : > { %v10595_v19 = vpop.f32.mrf.mxu2  ;;  %v2452_v51 = vpop.permute.xlu1 %2451  ;;  %2819 = vst.msk [vmem:[#allocation3 + $0x22c] sm:$0xf] %vm767_vm1, %v2811_v53  ;;  %4872 = vmatpush.bf16.msra.mxu3 %v9366_v43 }
 0x278   : > { %2474 = vst.msk [vmem:[#allocation3 + $0x1e4] sm:$0xf] %vm1168_vm2, %v2452_v51  ;;  %v2298_v14 = vpop.permute.xlu2 %2297  ;;  %v2450_v47 = vpop.permute.xlu0 %2449  ;;  %v2974_v51 = vpack.c.bf16 %v2966_v15, %v2966_v15  ;;  %v2745_v15 = vld [vmem:[#allocation2 + $0x69] sm:$0xff] }
 0x279   : > { %2317 = vst.msk [vmem:[#allocation3 + $0x278] sm:$0xf] %vm1168_vm2, %v2298_v14  ;;  %v3051_v14 = vpack.c.bf16 %v3043_v13, %v3043_v13 }
 0x27a   : > { %2473 = vst.msk [vmem:[#allocation3 + $0x1b0] sm:$0xf] %vm1168_vm2, %v2450_v47  ;;  %v2593_v47 = vpack.c.bf16 %v2585_v35, %v2585_v35 }
 0x27b   : > { %3058 = vst.msk [vmem:[#allocation3 + $0x204] sm:$0xf] %vm767_vm1, %v3050_v8 }
 0x27c   : > { %4680 = vmatmul.bf16.vlgmr.msrb.gmra.mxu3 %v7500_v2  ;;  %2902 = vst.msk [vmem:[#allocation3 + $0x2cc] sm:$0xf] %vm767_vm1, %v2894_v61  ;;  %v3056_v61 = vpack.c.bf16 %v3048_v39, %v3048_v39  ;;  %v9347_v39 = vld [vmem:[#allocation8 + $0x140] sm:$0xff] }
 0x27d   : > { %1553 = vrot.lane.b32.xlu1 %v1533_v10, %s9747_s13  ;;  %v10604_v48 = vpop.f32.mrf.mxu3  ;;  %1715 = vrot.lane.b32.xlu0 %v10443_v9, %s9747_s13  ;;  %v2885_v9 = vld [vmem:[#allocation2 + $0x8c] sm:$0xff]  ;;  %2983 = vst.msk [vmem:[#allocation3 + $0x304] sm:$0xf] %vm767_vm1, %v10485_v25  ;;  %v7549_v25 = vld [vmem:[#allocation3 + $0xa4] sm:$0xf0] }
 0x27e   : > { %1713 = vrot.lane.b32.xlu2 %v1693_v11, %s9747_s13  ;;  %v2893_v28 = vpack.c.bf16 %v2885_v9, %v2885_v9  ;;  %v7552_v53 = vor.u32 %v9217_v44, %v7549_v25  ;;  %2821 = vst.msk [vmem:[#allocation3 + $0x294] sm:$0xf] %vm767_vm1, %v2813_v3  ;;  %v3055_v9 = vpack.c.bf16 %v3047_v46, %v3047_v46  ;;  %v2506_v44 = vld [vmem:[#allocation2 + $0x6b] sm:$0xff] }
 0x27f   : > { %v10611_v52 = vpop.f32.mrf.mxu2  ;;  %v2374_v55 = vpop.permute.xlu1 %2373  ;;  %2824 = vst.msk [vmem:[#allocation3 + $0x330] sm:$0xf] %vm767_vm1, %v2816_v58  ;;  %v2514_v35 = vpack.c.bf16 %v2506_v44, %v2506_v44  ;;  %v9348_v58 = vld [vmem:[#allocation8 + $0x148] sm:$0xff]  ;;  %v9263_v43 = vld [vmem:[#allocation3 + $0x1e0] sm:$0xf0] }
 0x280   : > { %2395 = vst.msk [vmem:[#allocation3 + $0x214] sm:$0xf] %vm1168_vm2, %v2374_v55  ;;  %v1318_v17 = vpop.permute.xlu2 %1317  ;;  %v2296_v33 = vpop.permute.xlu0 %2295  ;;  %v2505_v55 = vld [vmem:[#allocation2 + $0x63] sm:$0xff]  ;;  %4776 = vmatpush.bf16.msrb.mxu1 %v9348_v58 }
 0x281   : > { %1335 = vst.msk [vmem:[#allocation3 + $0x140] sm:$0xf] %vm1168_vm2, %v1318_v17  ;;  %v7599_v17 = vld [vmem:[#allocation3 + $0xd8] sm:$0xf]  ;;  %v2513_v32 = vpack.c.bf16 %v2505_v55, %v2505_v55 }
 0x282   : > { %2316 = vst.msk [vmem:[#allocation3 + $0x244] sm:$0xf] %vm1168_vm2, %v2296_v33  ;;  %v2665_v33 = vld [vmem:[#allocation2 + $0x67] sm:$0xff]  ;;  %v7600_v8 = vor.u32 %v9236_v60, %v7599_v17 }
 0x283   : > { %2901 = vst.msk [vmem:[#allocation3 + $0x298] sm:$0xf] %vm767_vm1, %v2893_v28  ;;  %v1528_v55 = vld [vmem:[#allocation2 + $0x43] sm:$0xff] }
 0x284   : > { %4636 = vmatmul.bf16.gmra.mxu2 %v7548_v31  ;;  %2982 = vst.msk [vmem:[#allocation3 + $0x2d0] sm:$0xf] %vm767_vm1, %v2974_v51  ;;  %v2673_v31 = vpack.c.bf16 %v2665_v33, %v2665_v33  ;;  %v2587_v33 = vld [vmem:[#allocation2 + $0x75] sm:$0xff]  ;;  %4777 = vmatpush.bf16.msrb.mxu1 %v9347_v39 }
 0x285   : > { %1795 = vrot.lane.b32.xlu1 %v1774_v26, %s9747_s13  ;;  %v4588_v49 = vpop.f32.mrf.mxu3  ;;  %1793 = vrot.lane.b32.xlu0 %v1773_v5, %s9747_s13  ;;  %3059 = vst.msk [vmem:[#allocation3 + $0x238] sm:$0xf] %vm767_vm1, %v3051_v14  ;;  %v9375_v26 = vld [vmem:[#allocation8 + $0x220] sm:$0xff] }
 0x286   : > { %1555 = vrot.lane.b32.xlu2 %v1534_v42, %s9747_s13  ;;  %3060 = vst.msk [vmem:[#allocation3 + $0x26c] sm:$0xf] %vm767_vm1, %v3052_v12  ;;  %4920 = vmatpush.bf16.msra.mxu0 %v9375_v26  ;;  %v1607_v14 = vld [vmem:[#allocation2 + $0x3d] sm:$0xff] }
 0x287   : > { %v4539_v20 = vpop.f32.mrf.mxu2  ;;  %v2456_v7 = vpop.permute.xlu1 %2455  ;;  %2903 = vst.msk [vmem:[#allocation3 + $0x300] sm:$0xf] %vm767_vm1, %v2895_v40  ;;  %v1615_v59 = vpack.c.bf16 %v1607_v14, %v1607_v14  ;;  %v2508_v39 = vld [vmem:[#allocation2 + $0x7b] sm:$0xff] }
 0x288   : > { %v4540_v18 = vadd.f32 %v10625_v41, %v4539_v20  ;;  %2476 = vst.msk [vmem:[#allocation3 + $0x24c] sm:$0xf] %vm1168_vm2, %v2456_v7  ;;  %v1400_v6 = vpop.permute.xlu2 %1399  ;;  %v2454_v45 = vpop.permute.xlu0 %2453  ;;  %v2746_v20 = vld [vmem:[#allocation2 + $0x71] sm:$0xff]  ;;  %v7601_v7 = vld [vmem:[#allocation3 + $0x10c] sm:$0xf0] }
 0x289   : > { %1416 = vst.msk [vmem:[#allocation3 + $0x178] sm:$0xf] %vm1168_vm2, %v1400_v6  ;;  %v7604_v13 = vor.u32 %v9230_v54, %v7601_v7  ;;  %v2754_v6 = vpack.c.bf16 %v2746_v20, %v2746_v20  ;;  %v7651_v12 = vld [vmem:[#allocation3 + $0x140] sm:$0xf]  ;;  %v7703_v20 = vld [vmem:[#allocation3 + $0x1a8] sm:$0xf] }
 0x28a   : > { %v10634_v21 = vadd.f32 %v4588_v49, %v4540_v18  ;;  %2475 = vst.msk [vmem:[#allocation3 + $0x218] sm:$0xf] %vm1168_vm2, %v2454_v45  ;;  %v2753_v18 = vpack.c.bf16 %v2745_v15, %v2745_v15  ;;  %v9358_v45 = vld [vmem:[#allocation8 + $0x198] sm:$0xff]  ;;  %v1768_v7 = vld [vmem:[#allocation2 + $0x49] sm:$0xff] }
 0x28b   : > { %2823 = vst.msk [vmem:[#allocation3 + $0x2fc] sm:$0xf] %vm767_vm1, %v2815_v56  ;;  %4823 = vmatpush.bf16.msra.mxu2 %v9358_v45  ;;  %v1688_v56 = vld [vmem:[#allocation2 + $0x47] sm:$0xff]  ;;  %v9373_v45 = vld [vmem:[#allocation8 + $0x210] sm:$0xff] }
 0x28c   : > { %4685 = vmatmul.bf16.gmra.mxu3 %v7552_v53  ;;  %3061 = vst.msk [vmem:[#allocation3 + $0x2a0] sm:$0xf] %vm767_vm1, %v3053_v36 }
 0x28d   : > { %2609 = vrot.lane.b32.xlu1 %v2593_v47, %s9747_s13  ;;  %v4590_v2 = vpop.f32.mrf.mxu3  ;;  %1557 = vrot.lane.b32.xlu0 %v1535_v24, %s9747_s13  ;;  %3063 = vst.msk [vmem:[#allocation3 + $0x308] sm:$0xf] %vm767_vm1, %v3055_v9  ;;  %v1608_v47 = vld [vmem:[#allocation2 + $0x45] sm:$0xff]  ;;  %v1696_v9 = vpack.c.bf16 %v1688_v56, %v1688_v56 }
 0x28e   : > { %2611 = vrot.lane.b32.xlu2 %v2594_v23, %s9747_s13  ;;  %3064 = vst.msk [vmem:[#allocation3 + $0x33c] sm:$0xf] %vm767_vm1, %v3056_v61  ;;  %v1616_v57 = vpack.c.bf16 %v1608_v47, %v1608_v47  ;;  %v9365_v61 = vld [vmem:[#allocation8 + $0x1d0] sm:$0xff]  ;;  %v2748_v56 = vld [vmem:[#allocation2 + $0x81] sm:$0xff] }
 0x28f   : > { %v4541_v10 = vpop.f32.mrf.mxu2  ;;  %v1398_v11 = vpop.permute.xlu1 %1397  ;;  %4873 = vmatpush.bf16.msra.mxu3 %v9365_v61  ;;  %v2507_v47 = vld [vmem:[#allocation2 + $0x73] sm:$0xff] }
 0x290   : > { %v4542_v16 = vadd.f32 %v10625_v41, %v4541_v10  ;;  %1415 = vst.msk [vmem:[#allocation3 + $0x144] sm:$0xf] %vm1168_vm2, %v1398_v11  ;;  %v2380_v0 = vpop.permute.xlu2 %2379  ;;  %v1478_v37 = vpop.permute.xlu0 %1477  ;;  %v9374_v10 = vld [vmem:[#allocation8 + $0x218] sm:$0xff]  ;;  %v7653_v17 = vld [vmem:[#allocation3 + $0x174] sm:$0xf0] }
 0x291   : > { %2398 = vst.msk [vmem:[#allocation3 + $0x2b0] sm:$0xf] %vm1168_vm2, %v2380_v0  ;;  %4921 = vmatpush.bf16.msra.mxu0 %v9374_v10  ;;  %v9356_v10 = vld [vmem:[#allocation8 + $0x188] sm:$0xff] }
 0x292   : > { %v10648_v63 = vadd.f32 %v4590_v2, %v4542_v16  ;;  %1495 = vst.msk [vmem:[#allocation3 + $0x148] sm:$0xf] %vm1168_vm2, %v1478_v37  ;;  %v1695_v2 = vpack.c.bf16 %v1687_v22, %v1687_v22  ;;  %v7763_v61 = vld [vmem:[#allocation3 + $0x218] sm:$0xf] }
 0x294   : > { %4641 = vmatmul.bf16.gmra.mxu2 %v7600_v8  ;;  %v1536_v8 = vpack.c.bf16 %v1528_v55, %v1528_v55 }
 0x295   : > { %2691 = vrot.lane.b32.xlu1 %v2674_v1, %s9747_s13  ;;  %2689 = vrot.lane.b32.xlu0 %v2673_v31, %s9747_s13  ;;  %v4593_v42 = vpop.f32.mrf.mxu3  ;;  %v9357_v1 = vld [vmem:[#allocation8 + $0x190] sm:$0xff] }
 0x296   : > { %2529 = vrot.lane.b32.xlu2 %v2513_v32, %s9747_s13  ;;  %v2595_v32 = vpack.c.bf16 %v2587_v33, %v2587_v33  ;;  %4824 = vmatpush.bf16.msra.mxu2 %v9357_v1  ;;  %v7755_v33 = vld [vmem:[#allocation3 + $0x210] sm:$0xf]  ;;  %v2516_v1 = vpack.c.bf16 %v2508_v39, %v2508_v39 }
 0x297   : > { %v4544_v28 = vpop.f32.mrf.mxu2  ;;  %v2378_v5 = vpop.permute.xlu1 %2377  ;;  %v9243_v40 = vld [vmem:[#allocation3 + $0x144] sm:$0xf]  ;;  %4922 = vmatpush.bf16.msra.mxu0 %v9373_v45 }
 0x298   : > { %v4545_v38 = vadd.f32 %v10625_v41, %v4544_v28  ;;  %2397 = vst.msk [vmem:[#allocation3 + $0x27c] sm:$0xf] %vm1168_vm2, %v2378_v5  ;;  %v2302_v49 = vpop.permute.xlu2 %2301  ;;  %v1320_v62 = vpop.permute.xlu0 %1319  ;;  %v7656_v36 = vor.u32 %v9243_v40, %v7653_v17  ;;  %v9262_v28 = vld [vmem:[#allocation3 + $0x1d8] sm:$0xf0] }
 0x299   : > { %2319 = vst.msk [vmem:[#allocation3 + $0x2e0] sm:$0xf] %vm1168_vm2, %v2302_v49  ;;  %v7659_v46 = vld [vmem:[#allocation3 + $0x148] sm:$0xf]  ;;  %v2588_v49 = vld [vmem:[#allocation2 + $0x7d] sm:$0xff]  ;;  %v7704_v44 = vor.u32 %v9262_v28, %v7703_v20  ;;  %v2590_v45 = vld [vmem:[#allocation2 + $0x8d] sm:$0xff] }
 0x29a   : > { %v10662_v3 = vadd.f32 %v4593_v42, %v4545_v38  ;;  %1336 = vst.msk [vmem:[#allocation3 + $0x174] sm:$0xf] %vm1168_vm2, %v1320_v62  ;;  %v1767_v62 = vld [vmem:[#allocation2 + $0x41] sm:$0xff]  ;;  %4825 = vmatpush.bf16.msra.mxu2 %v9356_v10 }
 0x29b   : > { %v7807_v10 = vld [vmem:[#allocation3 + $0x278] sm:$0xf] }
 0x29c   : > { %4690 = vmatmul.bf16.gmra.mxu3 %v7604_v13  ;;  %v2596_v13 = vpack.c.bf16 %v2588_v49, %v2588_v49 }
 0x29d   : > { %2769 = vrot.lane.b32.xlu1 %v2753_v18, %s9747_s13  ;;  %2531 = vrot.lane.b32.xlu0 %v2514_v35, %s9747_s13  ;;  %v4595_v23 = vpop.f32.mrf.mxu3  ;;  %v1775_v18 = vpack.c.bf16 %v1767_v62, %v1767_v62  ;;  %v7711_v35 = vld [vmem:[#allocation3 + $0x1b0] sm:$0xf] }
 0x29e   : > { %2771 = vrot.lane.b32.xlu2 %v2754_v6, %s9747_s13  ;;  %v1776_v6 = vpack.c.bf16 %v1768_v7, %v1768_v7  ;;  %v7712_v14 = vor.u32 %v9263_v43, %v7711_v35 }
 0x29f   : > { %v4546_v29 = vpop.f32.mrf.mxu2  ;;  %v1480_v25 = vpop.permute.xlu1 %1479 }
 0x2a0   : > { %v4547_v50 = vadd.f32 %v10625_v41, %v4546_v29  ;;  %1496 = vst.msk [vmem:[#allocation3 + $0x17c] sm:$0xf] %vm1168_vm2, %v1480_v25  ;;  %v1626_v51 = vpop.permute.xlu2 %1625  ;;  %v2300_v53 = vpop.permute.xlu0 %2299 }
 0x2a1   : > { %1649 = vst.msk [vmem:[#allocation3 + $0x18] sm:$0xf] %vm1168_vm2, %v1626_v51  ;;  %v9249_v24 = vld [vmem:[#allocation3 + $0x170] sm:$0xf0] }
 0x2a2   : > { %v10671_v27 = vadd.f32 %v4595_v23, %v4547_v50  ;;  %2318 = vst.msk [vmem:[#allocation3 + $0x2ac] sm:$0xf] %vm1168_vm2, %v2300_v53  ;;  %v7652_v34 = vor.u32 %v9249_v24, %v7651_v12  ;;  %v9256_v50 = vld [vmem:[#allocation3 + $0x1ac] sm:$0xf]  ;;  %v7705_v24 = vld [vmem:[#allocation3 + $0x1dc] sm:$0xf0] }
 0x2a3   : > { %v2667_v23 = vld [vmem:[#allocation2 + $0x77] sm:$0xff] }
 0x2a4   : > { %4646 = vmatmul.bf16.gmra.mxu2 %v7652_v34  ;;  %v2668_v34 = vld [vmem:[#allocation2 + $0x7f] sm:$0xff] }
 0x2a5   : > { %1717 = vrot.lane.b32.xlu1 %v1695_v2, %s9747_s13  ;;  %1639 = vrot.lane.b32.xlu0 %v1616_v57, %s9747_s13  ;;  %v7708_v2 = vor.u32 %v9256_v50, %v7705_v24  ;;  %v2675_v57 = vpack.c.bf16 %v2667_v23, %v2667_v23 }
 0x2a6   : > { %1637 = vrot.lane.b32.xlu2 %v1615_v59, %s9747_s13  ;;  %v2515_v59 = vpack.c.bf16 %v2507_v47, %v2507_v47 }
 0x2a7   : > { %v4549_v11 = vpop.f32.mrf.mxu2  ;;  %v2460_v60 = vpop.permute.xlu1 %2459  ;;  %v9250_v16 = vld [vmem:[#allocation3 + $0x178] sm:$0xf0] }
 0x2a8   : > { %2478 = vst.msk [vmem:[#allocation3 + $0x2b4] sm:$0xf] %vm1168_vm2, %v2460_v60  ;;  %v1708_v0 = vpop.permute.xlu2 %1707  ;;  %v2458_v37 = vpop.permute.xlu0 %2457  ;;  %v7660_v30 = vor.u32 %v9250_v16, %v7659_v46  ;;  %v4550_v31 = vadd.f32 %v10625_v41, %v4549_v11  ;;  %v2676_v11 = vpack.c.bf16 %v2668_v34, %v2668_v34  ;;  %v9364_v60 = vld [vmem:[#allocation8 + $0x1c8] sm:$0xff] }
 0x2a9   : > { %1730 = vst.msk [vmem:[#allocation3 + $0x50] sm:$0xf] %vm1168_vm2, %v1708_v0  ;;  %v9275_v0 = vld [vmem:[#allocation3 + $0x240] sm:$0xf0]  ;;  %4874 = vmatpush.bf16.msra.mxu3 %v9364_v60  ;;  %v2509_v60 = vld [vmem:[#allocation2 + $0x83] sm:$0xff] }
 0x2aa   : > { %2477 = vst.msk [vmem:[#allocation3 + $0x280] sm:$0xf] %vm1168_vm2, %v2458_v37  ;;  %4744 = vmatmul.bf16.gmra.mxu0 %v7660_v30 }
 0x2ac   : > { %4695 = vmatmul.bf16.gmra.mxu3 %v7656_v36  ;;  %v2747_v36 = vld [vmem:[#allocation2 + $0x79] sm:$0xff] }
 0x2ad   : > { %1559 = vrot.lane.b32.xlu1 %v1536_v8, %s9747_s13  ;;  %2613 = vrot.lane.b32.xlu0 %v2595_v32, %s9747_s13  ;;  %v7756_v8 = vor.u32 %v9275_v0, %v7755_v33  ;;  %v2755_v32 = vpack.c.bf16 %v2747_v36, %v2747_v36  ;;  %v2517_v0 = vpack.c.bf16 %v2509_v60, %v2509_v60  ;;  %v9282_v36 = vld [vmem:[#allocation3 + $0x27c] sm:$0xf] }
 0x2ae   : > { %1719 = vrot.lane.b32.xlu2 %v1696_v9, %s9747_s13  ;;  %v2756_v9 = vpack.c.bf16 %v2748_v56, %v2748_v56  ;;  %v9371_v56 = vld [vmem:[#allocation8 + $0x200] sm:$0xff] }
 0x2af   : > { %v4551_v26 = vpop.f32.mrf.mxu2  ;;  %v4598_v42 = vpop.f32.mrf.mxu3 }
 0x2b0   : > { %v10684_v5 = vadd.f32 %v4598_v42, %v4550_v31  ;;  %v2382_v54 = vpop.permute.xlu1 %2381  ;;  %v1786_v38 = vpop.permute.xlu2 %1785  ;;  %v4552_v58 = vadd.f32 %v10625_v41, %v4551_v26  ;;  %v9276_v31 = vld [vmem:[#allocation3 + $0x248] sm:$0xf0]  ;;  %v9372_v26 = vld [vmem:[#allocation8 + $0x208] sm:$0xff] }
 0x2b1   : > { %2399 = vst.msk [vmem:[#allocation3 + $0x2e4] sm:$0xf] %vm1168_vm2, %v2382_v54  ;;  %v2462_v15 = vpop.permute.xlu0 %2461  ;;  %4923 = vmatpush.bf16.msra.mxu0 %v9372_v26  ;;  %v7764_v20 = vor.u32 %v9276_v31, %v7763_v61  ;;  %v2591_v61 = vld [vmem:[#allocation2 + $0x95] sm:$0xff]  ;;  %v7809_v26 = vld [vmem:[#allocation3 + $0x2ac] sm:$0xf0] }
 0x2b2   : > { %1809 = vst.msk [vmem:[#allocation3 + $0x20] sm:$0xf] %vm1168_vm2, %v1786_v38  ;;  %v9269_v38 = vld [vmem:[#allocation3 + $0x214] sm:$0xf] }
 0x2b3   : > { %2479 = vst.msk [vmem:[#allocation3 + $0x2e8] sm:$0xf] %vm1168_vm2, %v2462_v15 }
 0x2b4   : > { %4651 = vmatmul.bf16.gmra.mxu2 %v7704_v44  ;;  %v2669_v44 = vld [vmem:[#allocation2 + $0x87] sm:$0xff] }
 0x2b5   : > { %2615 = vrot.lane.b32.xlu1 %v2596_v13, %s9747_s13  ;;  %1799 = vrot.lane.b32.xlu0 %v1776_v6, %s9747_s13  ;;  %v2589_v6 = vld [vmem:[#allocation2 + $0x85] sm:$0xff] }
 0x2b6   : > { %1797 = vrot.lane.b32.xlu2 %v1775_v18, %s9747_s13  ;;  %v7757_v18 = vld [vmem:[#allocation3 + $0x244] sm:$0xf0]  ;;  %v2597_v50 = vpack.c.bf16 %v2589_v6, %v2589_v6  ;;  %4924 = vmatpush.bf16.msra.mxu0 %v9371_v56 }
 0x2b7   : > { %v4554_v29 = vpop.f32.mrf.mxu2  ;;  %v4600_v25 = vpop.f32.mrf.mxu3  ;;  %v7760_v35 = vor.u32 %v9269_v38, %v7757_v18  ;;  %v2599_v38 = vpack.c.bf16 %v2591_v61, %v2591_v61  ;;  %v9393_v61 = vld [vmem:[#allocation8 + $0x2b0] sm:$0xff] }
 0x2b8   : > { %v10693_v51 = vadd.f32 %v4600_v25, %v4552_v58  ;;  %v1706_v53 = vpop.permute.xlu1 %1705  ;;  %v1632_v22 = vpop.permute.xlu2 %1631  ;;  %v4555_v40 = vadd.f32 %v10625_v41, %v4554_v29  ;;  %v2677_v29 = vpack.c.bf16 %v2669_v44, %v2669_v44  ;;  %v9355_v25 = vld [vmem:[#allocation8 + $0x180] sm:$0xff]  ;;  %v9402_v44 = vld [vmem:[#allocation8 + $0x2f8] sm:$0xff] }
 0x2b9   : > { %1729 = vst.msk [vmem:[#allocation3 + $0x1c] sm:$0xf] %vm1168_vm2, %v1706_v53  ;;  %v1628_v12 = vpop.permute.xlu0 %1627  ;;  %v2598_v53 = vpack.c.bf16 %v2590_v45, %v2590_v45  ;;  %4826 = vmatpush.bf16.msra.mxu2 %v9355_v25  ;;  %v2511_v25 = vld [vmem:[#allocation2 + $0x93] sm:$0xff] }
 0x2ba   : > { %1652 = vst.msk [vmem:[#allocation3 + $0xb4] sm:$0xf] %vm1168_vm2, %v1632_v22  ;;  %4749 = vmatmul.bf16.gmra.mxu0 %v7712_v14  ;;  %v9363_v22 = vld [vmem:[#allocation8 + $0x1c0] sm:$0xff] }
 0x2bb   : > { %1650 = vst.msk [vmem:[#allocation3 + $0x4c] sm:$0xf] %vm1168_vm2, %v1628_v12  ;;  %v9288_v12 = vld [vmem:[#allocation3 + $0x2a8] sm:$0xf0]  ;;  %4875 = vmatpush.bf16.msra.mxu3 %v9363_v22 }
 0x2bc   : > { %4700 = vmatmul.bf16.gmra.mxu3 %v7708_v2 }
 0x2bd   : > { %2533 = vrot.lane.b32.xlu1 %v2515_v59, %s9747_s13  ;;  %2695 = vrot.lane.b32.xlu0 %v2676_v11, %s9747_s13  ;;  %v2510_v59 = vld [vmem:[#allocation2 + $0x8b] sm:$0xff] }
 0x2be   : > { %2693 = vrot.lane.b32.xlu2 %v2675_v57, %s9747_s13  ;;  %v2670_v11 = vld [vmem:[#allocation2 + $0x8f] sm:$0xff] }
 0x2bf   : > { %v4556_v46 = vpop.f32.mrf.mxu2  ;;  %v4603_v16 = vpop.f32.mrf.mxu3  ;;  %5064 = vmatpush.bf16.msrb.mxu3 %v9402_v44 }
 0x2c0   : > { %v10702_v37 = vadd.f32 %v4603_v16, %v4555_v40  ;;  %v1548_v30 = vpop.permute.xlu1 %1547  ;;  %v1550_v55 = vpop.permute.xlu2 %1549  ;;  %v4557_v42 = vadd.f32 %v10625_v41, %v4556_v46  ;;  %v7808_v40 = vor.u32 %v9288_v12, %v7807_v10  ;;  %v2518_v46 = vpack.c.bf16 %v2510_v59, %v2510_v59 }
 0x2c1   : > { %1570 = vst.msk [vmem:[#allocation3 + $0x48] sm:$0xf] %vm1168_vm2, %v1548_v30  ;;  %v1546_v17 = vpop.permute.xlu0 %1545  ;;  %v2678_v16 = vpack.c.bf16 %v2670_v11, %v2670_v11  ;;  %v7815_v30 = vld [vmem:[#allocation3 + $0x280] sm:$0xf] }
 0x2c2   : > { %1571 = vst.msk [vmem:[#allocation3 + $0x7c] sm:$0xf] %vm1168_vm2, %v1550_v55  ;;  %v9289_v55 = vld [vmem:[#allocation3 + $0x2b0] sm:$0xf0] }
 0x2c3   : > { %1569 = vst.msk [vmem:[#allocation3 + $0x14] sm:$0xf] %vm1168_vm2, %v1546_v17 }
 0x2c4   : > { %4656 = vmatmul.bf16.gmra.mxu2 %v7756_v8 }
 0x2c5   : > { %2775 = vrot.lane.b32.xlu1 %v2756_v9, %s9747_s13  ;;  %2773 = vrot.lane.b32.xlu0 %v2755_v32, %s9747_s13  ;;  %v7816_v32 = vor.u32 %v9289_v55, %v7815_v30  ;;  %v9295_v55 = vld [vmem:[#allocation3 + $0x2e4] sm:$0xf] }
 0x2c6   : > { %2535 = vrot.lane.b32.xlu2 %v2516_v1, %s9747_s13 }
 0x2c7   : > { %v4559_v28 = vpop.f32.mrf.mxu2  ;;  %v4605_v54 = vpop.f32.mrf.mxu3 }
 0x2c8   : > { %v10711_v49 = vadd.f32 %v4605_v54, %v4557_v42  ;;  %v1630_v62 = vpop.permute.xlu1 %1629  ;;  %v2384_v15 = vpop.permute.xlu2 %2383  ;;  %v7505_v7 = vld [vmem:[#allocation3 + $0x44] sm:$0xf0]  ;;  %v4560_v14 = vadd.f32 %v10625_v41, %v4559_v28  ;;  %v2749_v42 = vld [vmem:[#allocation2 + $0x89] sm:$0xff]  ;;  %v7812_v54 = vor.u32 %v9282_v36, %v7809_v26 }
 0x2c9   : > { %1651 = vst.msk [vmem:[#allocation3 + $0x80] sm:$0xf] %vm1168_vm2, %v1630_v62  ;;  %v1788_v13 = vpop.permute.xlu0 %1787  ;;  %v2750_v28 = vld [vmem:[#allocation2 + $0x91] sm:$0xff]  ;;  %v9394_v62 = vld [vmem:[#allocation8 + $0x2b8] sm:$0xff]  ;;  %v9218_v36 = vld [vmem:[#allocation3 + $0x7c] sm:$0xf] }
 0x2ca   : > { %2400 = vst.msk [vmem:[#allocation3 + $0x318] sm:$0xf] %vm1168_vm2, %v2384_v15  ;;  %4754 = vmatmul.bf16.gmra.mxu0 %v7764_v20  ;;  %v9205_v43 = vld [vmem:[#allocation3 + $0x14] sm:$0xf]  ;;  %v2757_v15 = vpack.c.bf16 %v2749_v42, %v2749_v42  ;;  %v2758_v20 = vpack.c.bf16 %v2750_v28, %v2750_v28  ;;  %5015 = vmatpush.bf16.msrb.mxu2 %v9394_v62  ;;  %v9401_v28 = vld [vmem:[#allocation8 + $0x2f0] sm:$0xff] }
 0x2cb   : > { %1810 = vst.msk [vmem:[#allocation3 + $0x54] sm:$0xf] %vm1168_vm2, %v1788_v13  ;;  %v7508_v58 = vor.u32 %v9205_v43, %v7505_v7  ;;  %v9386_v13 = vld [vmem:[#allocation8 + $0x278] sm:$0xff]  ;;  %5065 = vmatpush.bf16.msrb.mxu3 %v9401_v28 }
 0x2cc   : > { %4705 = vmatmul.bf16.gmra.mxu3 %v7760_v35  ;;  %4966 = vmatpush.bf16.msra.mxu1 %v9386_v13  ;;  %v9212_v13 = vld [vmem:[#allocation3 + $0x48] sm:$0xf0] }
 0x2cd   : > { %4778 = vmatmul.bf16.vlgmr.msrb.gmra.mxu1 %v7508_v58  ;;  %2697 = vrot.lane.b32.xlu1 %v2677_v29, %s9747_s13  ;;  %v2672_v58 = vld [vmem:[#allocation2 + $0x9f] sm:$0xff] }
 0x2ce   : > { %2617 = vrot.lane.b32.xlu2 %v2597_v50, %s9747_s13  ;;  %2619 = vrot.lane.b32.xlu0 %v2598_v53, %s9747_s13  ;;  %v2671_v50 = vld [vmem:[#allocation2 + $0x97] sm:$0xff]  ;;  %v7859_v53 = vld [vmem:[#allocation3 + $0x2e0] sm:$0xf] }
 0x2cf   : > { %v4561_v47 = vpop.f32.mrf.mxu2  ;;  %v4608_v23 = vpop.f32.mrf.mxu3  ;;  %v2679_v12 = vpack.c.bf16 %v2671_v50, %v2671_v50  ;;  %5016 = vmatpush.bf16.msrb.mxu2 %v9393_v61 }
 0x2d0   : > { %v10720_v24 = vadd.f32 %v4608_v23, %v4560_v14  ;;  %v1712_v34 = vpop.permute.xlu1 %1711  ;;  %v1792_v2 = vpop.permute.xlu2 %1791  ;;  %v4562_v39 = vadd.f32 %v10625_v41, %v4561_v47  ;;  %v2680_v47 = vpack.c.bf16 %v2672_v58, %v2672_v58  ;;  %v2519_v23 = vpack.c.bf16 %v2511_v25, %v2511_v25 }
 0x2d1   : > { %1732 = vst.msk [vmem:[#allocation3 + $0xb8] sm:$0xf] %vm1168_vm2, %v1712_v34  ;;  %v1710_v57 = vpop.permute.xlu0 %1709  ;;  %v9406_v34 = vld [vmem:[#allocation8 + $0x318] sm:$0xff]  ;;  %v7861_v10 = vld [vmem:[#allocation3 + $0x314] sm:$0xf0]  ;;  %v4535_v58 = vadd.f32 %v10625_v41, %v10595_v19 }
 0x2d2   : > { %1812 = vst.msk [vmem:[#allocation3 + $0xbc] sm:$0xf] %vm1168_vm2, %v1792_v2  ;;  %5117 = vmatpush.bf16.msrb.mxu0 %v9406_v34 }
 0x2d3   : > { %1731 = vst.msk [vmem:[#allocation3 + $0x84] sm:$0xf] %vm1168_vm2, %v1710_v57  ;;  %v4584_v19 = vadd.f32 %v10589_v4, %v4535_v58  ;;  %v2001_v4 = vld [vmem:[#allocation2 + $0x17] sm:$0xff] }
 0x2d4   : > { %4661 = vmatmul.bf16.gmra.mxu2 %v7808_v40 }
 0x2d5   : > { %2539 = vrot.lane.b32.xlu1 %v2518_v46, %s9747_s13  ;;  %v7867_v46 = vld [vmem:[#allocation3 + $0x2e8] sm:$0xf] }
 0x2d6   : > { %2699 = vrot.lane.b32.xlu2 %v2678_v16, %s9747_s13  ;;  %2537 = vrot.lane.b32.xlu0 %v2517_v0, %s9747_s13  ;;  %v2751_v0 = vld [vmem:[#allocation2 + $0x99] sm:$0xff] }
 0x2d7   : > { %v4564_v17 = vpop.f32.mrf.mxu2  ;;  %v4610_v33 = vpop.f32.mrf.mxu3 }
 0x2d8   : > { %v10729_v8 = vadd.f32 %v4610_v33, %v4562_v39  ;;  %v1790_v9 = vpop.permute.xlu1 %1789  ;;  %v1714_v1 = vpop.permute.xlu2 %1713  ;;  %v4565_v7 = vadd.f32 %v10625_v41, %v4564_v17  ;;  %v2592_v39 = vld [vmem:[#allocation2 + $0x9d] sm:$0xff]  ;;  %v7864_v33 = vor.u32 %v9295_v55, %v7861_v10 }
 0x2d9   : > { %1811 = vst.msk [vmem:[#allocation3 + $0x88] sm:$0xf] %vm1168_vm2, %v1790_v9  ;;  %v2304_v31 = vpop.permute.xlu0 %2303  ;;  %v2512_v17 = vld [vmem:[#allocation2 + $0x9b] sm:$0xff]  ;;  %v2600_v26 = vpack.c.bf16 %v2592_v39, %v2592_v39 }
 0x2da   : > { %1733 = vst.msk [vmem:[#allocation3 + $0xec] sm:$0xf] %vm1168_vm2, %v1714_v1  ;;  %4759 = vmatmul.bf16.gmra.mxu0 %v7816_v32  ;;  %v2759_v32 = vpack.c.bf16 %v2751_v0, %v2751_v0  ;;  %v2520_v42 = vpack.c.bf16 %v2512_v17, %v2512_v17  ;;  %v7519_v0 = vld [vmem:[#allocation3 + $0x20] sm:$0xf]  ;;  %v2002_v17 = vld [vmem:[#allocation2 + $0x1f] sm:$0xff] }
 0x2db   : > { %2320 = vst.msk [vmem:[#allocation3 + $0x314] sm:$0xf] %vm1168_vm2, %v2304_v31  ;;  %v10752_v31 = vpop.f32.mrf.mxu0  ;;  %v2010_v61 = vpack.c.bf16 %v2002_v17, %v2002_v17  ;;  %v9399_v17 = vld [vmem:[#allocation8 + $0x2e0] sm:$0xff] }
 0x2dc   : > { %4710 = vmatmul.bf16.gmra.mxu3 %v7812_v54  ;;  %v9385_v54 = vld [vmem:[#allocation8 + $0x270] sm:$0xff] }
 0x2dd   : > { %2621 = vrot.lane.b32.xlu1 %v2599_v38, %s9747_s13  ;;  %4967 = vmatpush.bf16.msra.mxu1 %v9385_v54 }
 0x2de   : > { %2777 = vrot.lane.b32.xlu2 %v2757_v15, %s9747_s13  ;;  %2779 = vrot.lane.b32.xlu0 %v2758_v20, %s9747_s13 }
 0x2df   : > { %v4566_v18 = vpop.f32.mrf.mxu2  ;;  %v4613_v6 = vpop.f32.mrf.mxu3 }
 0x2e0   : > { %v10738_v45 = vadd.f32 %v4613_v6, %v4565_v7  ;;  %v2464_v35 = vpop.permute.xlu1 %2463  ;;  %v1556_v43 = vpop.permute.xlu2 %1555  ;;  %v4567_v2 = vadd.f32 %v10625_v41, %v4566_v18  ;;  %v1922_v18 = vld [vmem:[#allocation2 + $0x1d] sm:$0xff] }
 0x2e1   : > { %2480 = vst.msk [vmem:[#allocation3 + $0x31c] sm:$0xf] %vm1168_vm2, %v2464_v35  ;;  %v1552_v29 = vpop.permute.xlu0 %1551  ;;  %v2752_v35 = vld [vmem:[#allocation2 + $0xa1] sm:$0xff]  ;;  %v1930_v50 = vpack.c.bf16 %v1922_v18, %v1922_v18 }
 0x2e2   : > { %1574 = vst.msk [vmem:[#allocation3 + $0x118] sm:$0xf] %vm1168_vm2, %v1556_v43  ;;  %v9301_v22 = vld [vmem:[#allocation3 + $0x310] sm:$0xf0]  ;;  %v1921_v43 = vld [vmem:[#allocation2 + $0x15] sm:$0xff] }
 0x2e3   : > { %1572 = vst.msk [vmem:[#allocation3 + $0xb0] sm:$0xf] %vm1168_vm2, %v1552_v29  ;;  %v7860_v14 = vor.u32 %v9301_v22, %v7859_v53  ;;  %v7511_v29 = vld [vmem:[#allocation3 + $0x18] sm:$0xf]  ;;  %v2760_v53 = vpack.c.bf16 %v2752_v35, %v2752_v35  ;;  %v1929_v22 = vpack.c.bf16 %v1921_v43, %v1921_v43  ;;  %v1842_v18 = vld [vmem:[#allocation2 + $0x1b] sm:$0xff] }
 0x2e4   : > { %v7512_v25 = vor.u32 %v9212_v13, %v7511_v29  ;;  %v1850_v29 = vpack.c.bf16 %v1842_v18, %v1842_v18 }
 0x2e5   : > { %4666 = vmatmul.bf16.gmra.mxu2 %v7860_v14  ;;  %2703 = vrot.lane.b32.xlu1 %v2680_v47, %s9747_s13  ;;  %v10766_v14 = vpop.f32.mrf.mxu0 }
 0x2e6   : > { %2541 = vrot.lane.b32.xlu2 %v2519_v23, %s9747_s13  ;;  %2701 = vrot.lane.b32.xlu0 %v2679_v12, %s9747_s13  ;;  %v9213_v23 = vld [vmem:[#allocation3 + $0x50] sm:$0xf0] }
 0x2e7   : > { %v4569_v59 = vpop.f32.mrf.mxu2  ;;  %v4615_v57 = vpop.f32.mrf.mxu3  ;;  %v7520_v39 = vor.u32 %v9213_v23, %v7519_v0  ;;  %v7565_v23 = vld [vmem:[#allocation3 + $0xb4] sm:$0xf0]  ;;  %v2004_v0 = vld [vmem:[#allocation2 + $0x2f] sm:$0xff] }
 0x2e8   : > { %v10747_v11 = vadd.f32 %v4615_v57, %v4567_v2  ;;  %v1636_v60 = vpop.permute.xlu1 %1635  ;;  %v2612_v40 = vpop.permute.xlu2 %2611  ;;  %v9302_v16 = vld [vmem:[#allocation3 + $0x318] sm:$0xf0]  ;;  %v4570_v38 = vadd.f32 %v10625_v41, %v4569_v59  ;;  %v1841_v59 = vld [vmem:[#allocation2 + $0x13] sm:$0xff] }
 0x2e9   : > { %1654 = vst.msk [vmem:[#allocation3 + $0x11c] sm:$0xf] %vm1168_vm2, %v1636_v60  ;;  %v1634_v30 = vpop.permute.xlu0 %1633  ;;  %v7868_v56 = vor.u32 %v9302_v16, %v7867_v46  ;;  %v9206_v2 = vld [vmem:[#allocation3 + $0x1c] sm:$0xf]  ;;  %v7609_v16 = vld [vmem:[#allocation3 + $0x114] sm:$0xf0] }
 0x2ea   : > { %2634 = vst.msk [vmem:[#allocation3 + $0x1ec] sm:$0xf] %vm1168_vm2, %v2612_v40  ;;  %v7557_v9 = vld [vmem:[#allocation3 + $0xac] sm:$0xf0] }
 0x2eb   : > { %1653 = vst.msk [vmem:[#allocation3 + $0xe8] sm:$0xf] %vm1168_vm2, %v1634_v30  ;;  %4764 = vmatmul.bf16.gmra.mxu0 %v7868_v56  ;;  %v7560_v1 = vor.u32 %v9218_v36, %v7557_v9  ;;  %v7513_v56 = vld [vmem:[#allocation3 + $0x4c] sm:$0xf0]  ;;  %v1849_v9 = vpack.c.bf16 %v1841_v59, %v1841_v59 }
 0x2ec   : > { %4715 = vmatmul.bf16.gmra.mxu3 %v7864_v33  ;;  %v4537_v33 = vadd.f32 %v10625_v41, %v10611_v52  ;;  %v7516_v36 = vor.u32 %v9206_v2, %v7513_v56 }
 0x2ed   : > { %4783 = vmatmul.bf16.gmra.mxu1 %v7560_v1  ;;  %2781 = vrot.lane.b32.xlu1 %v2759_v32, %s9747_s13  ;;  %v9392_v1 = vld [vmem:[#allocation8 + $0x2a8] sm:$0xff]  ;;  %v2009_v32 = vpack.c.bf16 %v2001_v4, %v2001_v4  ;;  %v10786_v35 = vpop.f32.mrf.mxu0  ;;  %v2012_v4 = vpack.c.bf16 %v2004_v0, %v2004_v0 }
 0x2ee   : > { %2623 = vrot.lane.b32.xlu2 %v2600_v26, %s9747_s13  ;;  %2543 = vrot.lane.b32.xlu0 %v2520_v42, %s9747_s13  ;;  %v9400_v26 = vld [vmem:[#allocation8 + $0x2e8] sm:$0xff]  ;;  %v4586_v52 = vadd.f32 %v10604_v48, %v4537_v33  ;;  %v9225_v48 = vld [vmem:[#allocation3 + $0xb0] sm:$0xf0] }
 0x2ef   : > { %v4571_v62 = vpop.f32.mrf.mxu2  ;;  %v4618_v15 = vpop.f32.mrf.mxu3  ;;  %v9384_v42 = vld [vmem:[#allocation8 + $0x268] sm:$0xff]  ;;  %5017 = vmatpush.bf16.msrb.mxu2 %v9392_v1  ;;  %5066 = vmatpush.bf16.msrb.mxu3 %v9400_v26  ;;  %v9383_v33 = vld [vmem:[#allocation8 + $0x260] sm:$0xff] }
 0x2f0   : > { %v10758_v20 = vadd.f32 %v4618_v15, %v4570_v38  ;;  %v1554_v7 = vpop.permute.xlu1 %1553  ;;  %v2530_v44 = vpop.permute.xlu2 %2529  ;;  %v4572_v47 = vadd.f32 %v10625_v41, %v4571_v62  ;;  %4968 = vmatpush.bf16.msra.mxu1 %v9384_v42  ;;  %v1928_v0 = vld [vmem:[#allocation2 + $0x4d] sm:$0xff] }
 0x2f1   : > { %1573 = vst.msk [vmem:[#allocation3 + $0xe4] sm:$0xf] %vm1168_vm2, %v1554_v7  ;;  %v1716_v6 = vpop.permute.xlu0 %1715  ;;  %v7563_v7 = vld [vmem:[#allocation3 + $0x80] sm:$0xf] }
 0x2f2   : > { %2553 = vst.msk [vmem:[#allocation3 + $0x1b4] sm:$0xf] %vm1168_vm2, %v2530_v44  ;;  %v1924_v44 = vld [vmem:[#allocation2 + $0x2d] sm:$0xff]  ;;  %v7564_v43 = vor.u32 %v9225_v48, %v7563_v7  ;;  %v7615_v42 = vld [vmem:[#allocation3 + $0xe8] sm:$0xf] }
 0x2f3   : > { %1734 = vst.msk [vmem:[#allocation3 + $0x120] sm:$0xf] %vm1168_vm2, %v1716_v6  ;;  %v1923_v6 = vld [vmem:[#allocation2 + $0x25] sm:$0xff]  ;;  %v1932_v58 = vpack.c.bf16 %v1924_v44, %v1924_v44  ;;  %5067 = vmatpush.bf16.msrb.mxu3 %v9399_v17 }
 0x2f4   : > { %4969 = vmatpush.bf16.msra.mxu1 %v9383_v33 }
 0x2f5   : > { %4827 = vmatmul.bf16.vlgmr.msra.gmra.mxu2 %v7512_v25  ;;  %1947 = vrot.lane.b32.xlu1 %v1930_v50, %s9747_s13  ;;  %v1931_v25 = vpack.c.bf16 %v1923_v6, %v1923_v6  ;;  %v9405_v50 = vld [vmem:[#allocation8 + $0x310] sm:$0xff]  ;;  %v10799_v56 = vpop.f32.mrf.mxu0 }
 0x2f6   : > { %2783 = vrot.lane.b32.xlu2 %v2760_v53, %s9747_s13  ;;  %1945 = vrot.lane.b32.xlu0 %v1929_v22, %s9747_s13  ;;  %v7571_v53 = vld [vmem:[#allocation3 + $0x88] sm:$0xf] }
 0x2f7   : > { %v4620_v12 = vpop.f32.mrf.mxu3  ;;  %v4632_v34 = vpop.f32.mrf.mxu2  ;;  %5118 = vmatpush.bf16.msrb.mxu0 %v9405_v50 }
 0x2f8   : > { %v10772_v57 = vadd.f32 %v4620_v12, %v4572_v47  ;;  %v4633_v10 = vadd.f32 %v4632_v34, %v4584_v19  ;;  %v1796_v60 = vpop.permute.xlu1 %1795  ;;  %v2772_v40 = vpop.permute.xlu2 %2771  ;;  %v9231_v46 = vld [vmem:[#allocation3 + $0xe4] sm:$0xf] }
 0x2f9   : > { %1814 = vst.msk [vmem:[#allocation3 + $0x124] sm:$0xf] %vm1168_vm2, %v1796_v60  ;;  %v1794_v30 = vpop.permute.xlu0 %1793  ;;  %v7612_v55 = vor.u32 %v9231_v46, %v7609_v16  ;;  %v9219_v19 = vld [vmem:[#allocation3 + $0x84] sm:$0xf]  ;;  %v1843_v60 = vld [vmem:[#allocation2 + $0x23] sm:$0xff] }
 0x2fa   : > { %2794 = vst.msk [vmem:[#allocation3 + $0x1f4] sm:$0xf] %vm1168_vm2, %v2772_v40  ;;  %v2003_v16 = vld [vmem:[#allocation2 + $0x27] sm:$0xff] }
 0x2fb   : > { %1813 = vst.msk [vmem:[#allocation3 + $0xf0] sm:$0xf] %vm1168_vm2, %v1794_v30  ;;  %4925 = vmatmul.bf16.vlgmr.msra.gmra.mxu0 %v7520_v39  ;;  %v7568_v30 = vor.u32 %v9219_v19, %v7565_v23  ;;  %v2011_v39 = vpack.c.bf16 %v2003_v16, %v2003_v16  ;;  %v9232_v19 = vld [vmem:[#allocation3 + $0xec] sm:$0xf] }
 0x2fc   : > { %4876 = vmatmul.bf16.vlgmr.msra.gmra.mxu3 %v7516_v36  ;;  %v9382_v16 = vld [vmem:[#allocation8 + $0x258] sm:$0xff] }
 0x2fd   : > { %4788 = vmatmul.bf16.gmra.mxu1 %v7612_v55  ;;  %1865 = vrot.lane.b32.xlu1 %v1849_v9, %s9747_s13  ;;  %v1851_v55 = vpack.c.bf16 %v1843_v60, %v1843_v60 }
 0x2fe   : > { %2025 = vrot.lane.b32.xlu2 %v2009_v32, %s9747_s13  ;;  %2027 = vrot.lane.b32.xlu0 %v2010_v61, %s9747_s13 }
 0x2ff   : > { %v4634_v41 = vpop.f32.mrf.mxu2  ;;  %v4681_v28 = vpop.f32.mrf.mxu3  ;;  %4970 = vmatpush.bf16.msra.mxu1 %v9382_v16 }
 0x300   : > { %v4635_v54 = vadd.f32 %v4634_v41, %v4586_v52  ;;  %v10783_v38 = vadd.f32 %v4681_v28, %v4633_v10  ;;  %v2610_v62 = vpop.permute.xlu1 %2609  ;;  %v1638_v15 = vpop.permute.xlu2 %1637  ;;  %v9226_v10 = vld [vmem:[#allocation3 + $0xb8] sm:$0xf0]  ;;  %v1926_v41 = vld [vmem:[#allocation2 + $0x3d] sm:$0xff]  ;;  %v9239_v6 = vld [vmem:[#allocation3 + $0x120] sm:$0xf0] }
 0x301   : > { %2633 = vst.msk [vmem:[#allocation3 + $0x1b8] sm:$0xf] %vm1168_vm2, %v2610_v62  ;;  %v1558_v13 = vpop.permute.xlu0 %1557  ;;  %v7572_v46 = vor.u32 %v9226_v10, %v7571_v53  ;;  %v9238_v52 = vld [vmem:[#allocation3 + $0x118] sm:$0xf0]  ;;  %v1925_v62 = vld [vmem:[#allocation2 + $0x35] sm:$0xff]  ;;  %v1934_v7 = vpack.c.bf16 %v1926_v41, %v1926_v41 }
 0x302   : > { %1655 = vst.msk [vmem:[#allocation3 + $0x150] sm:$0xf] %vm1168_vm2, %v1638_v15  ;;  %v7616_v15 = vor.u32 %v9238_v52, %v7615_v42  ;;  %v7623_v18 = vld [vmem:[#allocation3 + $0xf0] sm:$0xf] }
 0x303   : > { %1575 = vst.msk [vmem:[#allocation3 + $0x14c] sm:$0xf] %vm1168_vm2, %v1558_v13  ;;  %v10811_v13 = vpop.f32.mrf.mxu0  ;;  %v7624_v23 = vor.u32 %v9239_v6, %v7623_v18 }
 0x305   : > { %4832 = vmatmul.bf16.gmra.mxu2 %v7564_v43  ;;  %1951 = vrot.lane.b32.xlu1 %v1932_v58, %s9747_s13  ;;  %v7617_v58 = vld [vmem:[#allocation3 + $0x11c] sm:$0xf0] }
 0x306   : > { %1867 = vrot.lane.b32.xlu2 %v1850_v29, %s9747_s13  ;;  %1949 = vrot.lane.b32.xlu0 %v1931_v25, %s9747_s13 }
 0x307   : > { %v4637_v22 = vpop.f32.mrf.mxu2  ;;  %v4683_v47 = vpop.f32.mrf.mxu3 }
 0x308   : > { %v4638_v12 = vadd.f32 %v4637_v22, %v10634_v21  ;;  %v10794_v34 = vadd.f32 %v4683_v47, %v4635_v54  ;;  %v2692_v2 = vpop.permute.xlu1 %2691  ;;  %v1720_v59 = vpop.permute.xlu2 %1719  ;;  %v9391_v21 = vld [vmem:[#allocation8 + $0x2a0] sm:$0xff]  ;;  %v1844_v54 = vld [vmem:[#allocation2 + $0x2b] sm:$0xff]  ;;  %v1845_v22 = vld [vmem:[#allocation2 + $0x33] sm:$0xff] }
 0x309   : > { %2714 = vst.msk [vmem:[#allocation3 + $0x1f0] sm:$0xf] %vm1168_vm2, %v2692_v2  ;;  %v2690_v40 = vpop.permute.xlu0 %2689  ;;  %5018 = vmatpush.bf16.msrb.mxu2 %v9391_v21  ;;  %v1852_v44 = vpack.c.bf16 %v1844_v54, %v1844_v54  ;;  %v2006_v2 = vld [vmem:[#allocation2 + $0x3f] sm:$0xff]  ;;  %v1853_v10 = vpack.c.bf16 %v1845_v22, %v1845_v22 }
 0x30a   : > { %1736 = vst.msk [vmem:[#allocation3 + $0x188] sm:$0xf] %vm1168_vm2, %v1720_v59  ;;  %v7620_v59 = vor.u32 %v9232_v19, %v7617_v58  ;;  %v1847_v58 = vld [vmem:[#allocation2 + $0x43] sm:$0xff] }
 0x30b   : > { %2713 = vst.msk [vmem:[#allocation3 + $0x1bc] sm:$0xf] %vm1168_vm2, %v2690_v40  ;;  %4930 = vmatmul.bf16.gmra.mxu0 %v7572_v46  ;;  %v2014_v40 = vpack.c.bf16 %v2006_v2, %v2006_v2  ;;  %v9398_v46 = vld [vmem:[#allocation8 + $0x2d8] sm:$0xff]  ;;  %v10827_v33 = vpop.f32.mrf.mxu0 }
 0x30c   : > { %4881 = vmatmul.bf16.gmra.mxu3 %v7568_v30 }
 0x30d   : > { %1869 = vrot.lane.b32.xlu1 %v1851_v55, %s9747_s13  ;;  %5068 = vmatpush.bf16.msrb.mxu3 %v9398_v46 }
 0x30e   : > { %2029 = vrot.lane.b32.xlu2 %v2011_v39, %s9747_s13  ;;  %2031 = vrot.lane.b32.xlu0 %v2012_v4, %s9747_s13 }
 0x30f   : > { %v4639_v36 = vpop.f32.mrf.mxu2  ;;  %v4686_v9 = vpop.f32.mrf.mxu3 }
 0x310   : > { %v4640_v1 = vadd.f32 %v4639_v36, %v10648_v63  ;;  %v10805_v32 = vadd.f32 %v4686_v9, %v4638_v12  ;;  %v2770_v61 = vpop.permute.xlu1 %2769  ;;  %v1798_v26 = vpop.permute.xlu2 %1797  ;;  %v1933_v63 = vpack.c.bf16 %v1925_v62, %v1925_v62  ;;  %v2005_v12 = vld [vmem:[#allocation2 + $0x37] sm:$0xff]  ;;  %v1936_v9 = vpack.c.bf16 %v1928_v0, %v1928_v0 }
 0x311   : > { %2793 = vst.msk [vmem:[#allocation3 + $0x1c0] sm:$0xf] %vm1168_vm2, %v2770_v61  ;;  %v2532_v28 = vpop.permute.xlu0 %2531  ;;  %v2013_v60 = vpack.c.bf16 %v2005_v12, %v2005_v12  ;;  %v1927_v61 = vld [vmem:[#allocation2 + $0x45] sm:$0xff]  ;;  %v7669_v22 = vld [vmem:[#allocation3 + $0x184] sm:$0xf0] }
 0x312   : > { %1815 = vst.msk [vmem:[#allocation3 + $0x158] sm:$0xf] %vm1168_vm2, %v1798_v26  ;;  %v7667_v26 = vld [vmem:[#allocation3 + $0x150] sm:$0xf]  ;;  %v1935_v41 = vpack.c.bf16 %v1927_v61, %v1927_v61  ;;  %v9389_v12 = vld [vmem:[#allocation8 + $0x290] sm:$0xff] }
 0x313   : > { %2554 = vst.msk [vmem:[#allocation3 + $0x1e8] sm:$0xf] %vm1168_vm2, %v2532_v28  ;;  %v9404_v28 = vld [vmem:[#allocation8 + $0x308] sm:$0xff] }
 0x314   : > { %5119 = vmatpush.bf16.msrb.mxu0 %v9404_v28 }
 0x315   : > { %4837 = vmatmul.bf16.gmra.mxu2 %v7616_v15  ;;  %1955 = vrot.lane.b32.xlu1 %v1934_v7, %s9747_s13  ;;  %v2008_v7 = vld [vmem:[#allocation2 + $0x4f] sm:$0xff] }
 0x316   : > { %1871 = vrot.lane.b32.xlu2 %v1852_v44, %s9747_s13  ;;  %1953 = vrot.lane.b32.xlu0 %v1933_v63, %s9747_s13 }
 0x317   : > { %v4642_v48 = vpop.f32.mrf.mxu2  ;;  %v4688_v43 = vpop.f32.mrf.mxu3 }
 0x318   : > { %v4643_v29 = vadd.f32 %v4642_v48, %v10662_v3  ;;  %v10816_v25 = vadd.f32 %v4688_v43, %v4640_v1  ;;  %v1718_v50 = vpop.permute.xlu1 %1717  ;;  %v2694_v53 = vpop.permute.xlu2 %2693  ;;  %v9390_v3 = vld [vmem:[#allocation8 + $0x298] sm:$0xff] }
 0x319   : > { %1735 = vst.msk [vmem:[#allocation3 + $0x154] sm:$0xf] %vm1168_vm2, %v1718_v50  ;;  %v1640_v47 = vpop.permute.xlu0 %1639  ;;  %5019 = vmatpush.bf16.msrb.mxu2 %v9390_v3  ;;  %v1846_v1 = vld [vmem:[#allocation2 + $0x3b] sm:$0xff] }
 0x31a   : > { %2715 = vst.msk [vmem:[#allocation3 + $0x224] sm:$0xf] %vm1168_vm2, %v2694_v53  ;;  %v9244_v48 = vld [vmem:[#allocation3 + $0x14c] sm:$0xf] }
 0x31b   : > { %1656 = vst.msk [vmem:[#allocation3 + $0x184] sm:$0xf] %vm1168_vm2, %v1640_v47  ;;  %4935 = vmatmul.bf16.gmra.mxu0 %v7624_v23  ;;  %v2007_v47 = vld [vmem:[#allocation2 + $0x47] sm:$0xff]  ;;  %v2016_v23 = vpack.c.bf16 %v2008_v7, %v2008_v7 }
 0x31c   : > { %4886 = vmatmul.bf16.gmra.mxu3 %v7620_v59  ;;  %v2015_v2 = vpack.c.bf16 %v2007_v47, %v2007_v47  ;;  %v9397_v59 = vld [vmem:[#allocation8 + $0x2d0] sm:$0xff] }
 0x31d   : > { %1873 = vrot.lane.b32.xlu1 %v1853_v10, %s9747_s13  ;;  %v9381_v10 = vld [vmem:[#allocation8 + $0x250] sm:$0xff]  ;;  %5020 = vmatpush.bf16.msrb.mxu2 %v9389_v12  ;;  %v9396_v12 = vld [vmem:[#allocation8 + $0x2c8] sm:$0xff] }
 0x31e   : > { %2033 = vrot.lane.b32.xlu2 %v2013_v60, %s9747_s13  ;;  %2035 = vrot.lane.b32.xlu0 %v2014_v40, %s9747_s13 }
 0x31f   : > { %v4644_v30 = vpop.f32.mrf.mxu2  ;;  %v4691_v55 = vpop.f32.mrf.mxu3  ;;  %5069 = vmatpush.bf16.msrb.mxu3 %v9397_v59  ;;  %4971 = vmatpush.bf16.msra.mxu1 %v9381_v10 }
 0x320   : > { %v4645_v21 = vadd.f32 %v4644_v30, %v10671_v27  ;;  %v10825_v39 = vadd.f32 %v4691_v55, %v4643_v29  ;;  %v1560_v4 = vpop.permute.xlu1 %1559  ;;  %v2536_v17 = vpop.permute.xlu2 %2535  ;;  %v1854_v27 = vpack.c.bf16 %v1846_v1, %v1846_v1  ;;  %v9245_v15 = vld [vmem:[#allocation3 + $0x154] sm:$0xf]  ;;  %v7719_v30 = vld [vmem:[#allocation3 + $0x1b8] sm:$0xf]  ;;  %v2905_v55 = vld [vmem:[#allocation2 + $0x6d] sm:$0xff] }
 0x321   : > { %1576 = vst.msk [vmem:[#allocation3 + $0x180] sm:$0xf] %vm1168_vm2, %v1560_v4  ;;  %v2614_v36 = vpop.permute.xlu0 %2613  ;;  %v7672_v19 = vor.u32 %v9245_v15, %v7669_v22  ;;  %v7675_v1 = vld [vmem:[#allocation3 + $0x158] sm:$0xf]  ;;  %v7721_v15 = vld [vmem:[#allocation3 + $0x1ec] sm:$0xf0] }
 0x322   : > { %2556 = vst.msk [vmem:[#allocation3 + $0x250] sm:$0xf] %vm1168_vm2, %v2536_v17  ;;  %v9251_v42 = vld [vmem:[#allocation3 + $0x180] sm:$0xf0]  ;;  %v9264_v17 = vld [vmem:[#allocation3 + $0x1e8] sm:$0xf0] }
 0x323   : > { %2635 = vst.msk [vmem:[#allocation3 + $0x220] sm:$0xf] %vm1168_vm2, %v2614_v36  ;;  %v7668_v52 = vor.u32 %v9251_v42, %v7667_v26  ;;  %v2906_v36 = vld [vmem:[#allocation2 + $0x75] sm:$0xff]  ;;  %5070 = vmatpush.bf16.msrb.mxu3 %v9396_v12  ;;  %v2988_v12 = vld [vmem:[#allocation2 + $0x87] sm:$0xff] }
 0x324   : > { %v2914_v42 = vpack.c.bf16 %v2906_v36, %v2906_v36  ;;  %v2985_v22 = vld [vmem:[#allocation2 + $0x6f] sm:$0xff]  ;;  %v2908_v36 = vld [vmem:[#allocation2 + $0x85] sm:$0xff] }
 0x325   : > { %4842 = vmatmul.bf16.gmra.mxu2 %v7668_v52  ;;  %1959 = vrot.lane.b32.xlu1 %v1936_v9, %s9747_s13  ;;  %v1848_v9 = vld [vmem:[#allocation2 + $0x4b] sm:$0xff] }
 0x326   : > { %1875 = vrot.lane.b32.xlu2 %v1854_v27, %s9747_s13  ;;  %1957 = vrot.lane.b32.xlu0 %v1935_v41, %s9747_s13  ;;  %v1856_v52 = vpack.c.bf16 %v1848_v9, %v1848_v9  ;;  %v2913_v27 = vpack.c.bf16 %v2905_v55, %v2905_v55  ;;  %v7713_v41 = vld [vmem:[#allocation3 + $0x1e4] sm:$0xf0]  ;;  %v7727_v55 = vld [vmem:[#allocation3 + $0x1c0] sm:$0xf] }
 0x327   : > { %v4647_v54 = vpop.f32.mrf.mxu2  ;;  %v4693_v62 = vpop.f32.mrf.mxu3  ;;  %v2826_v9 = vld [vmem:[#allocation2 + $0x73] sm:$0xff] }
 0x328   : > { %v4648_v44 = vadd.f32 %v4647_v54, %v10684_v5  ;;  %v10836_v63 = vadd.f32 %v4693_v62, %v4645_v21  ;;  %v2616_v18 = vpop.permute.xlu1 %2615  ;;  %v2618_v6 = vpop.permute.xlu2 %2617  ;;  %v7661_v43 = vld [vmem:[#allocation3 + $0x17c] sm:$0xf0]  ;;  %v1855_v5 = vpack.c.bf16 %v1847_v58, %v1847_v58  ;;  %v9258_v62 = vld [vmem:[#allocation3 + $0x1bc] sm:$0xf] }
 0x329   : > { %2636 = vst.msk [vmem:[#allocation3 + $0x254] sm:$0xf] %vm1168_vm2, %v2616_v18  ;;  %v10839_v29 = vpop.f32.mrf.mxu0  ;;  %v1800_v50 = vpop.permute.xlu0 %1799  ;;  %v7664_v53 = vor.u32 %v9244_v48, %v7661_v43  ;;  %v9257_v48 = vld [vmem:[#allocation3 + $0x1b4] sm:$0xf]  ;;  %v7724_v47 = vor.u32 %v9258_v62, %v7721_v15 }
 0x32a   : > { %2637 = vst.msk [vmem:[#allocation3 + $0x288] sm:$0xf] %vm1168_vm2, %v2618_v6 }
 0x32b   : > { %1816 = vst.msk [vmem:[#allocation3 + $0x18c] sm:$0xf] %vm1168_vm2, %v1800_v50  ;;  %4793 = vmatmul.bf16.gmra.mxu1 %v7664_v53  ;;  %v7716_v50 = vor.u32 %v9257_v48, %v7713_v41  ;;  %v2825_v53 = vld [vmem:[#allocation2 + $0x6b] sm:$0xff]  ;;  %v9403_v41 = vld [vmem:[#allocation8 + $0x300] sm:$0xff] }
 0x32c   : > { %4891 = vmatmul.bf16.gmra.mxu3 %v7672_v19  ;;  %v2986_v19 = vld [vmem:[#allocation2 + $0x77] sm:$0xff]  ;;  %5120 = vmatpush.bf16.msrb.mxu0 %v9403_v41 }
 0x32d   : > { %1877 = vrot.lane.b32.xlu1 %v1855_v5, %s9747_s13  ;;  %v2993_v5 = vpack.c.bf16 %v2985_v22, %v2985_v22  ;;  %v2994_v59 = vpack.c.bf16 %v2986_v19, %v2986_v19  ;;  %v9271_v19 = vld [vmem:[#allocation3 + $0x224] sm:$0xf] }
 0x32e   : > { %2037 = vrot.lane.b32.xlu2 %v2015_v2, %s9747_s13  ;;  %2039 = vrot.lane.b32.xlu0 %v2016_v23, %s9747_s13  ;;  %v2833_v23 = vpack.c.bf16 %v2825_v53, %v2825_v53  ;;  %v9380_v2 = vld [vmem:[#allocation8 + $0x248] sm:$0xff]  ;;  %v4731_v53 = vadd.f32 %v10752_v31, %v10783_v38  ;;  %v2996_v31 = vpack.c.bf16 %v2988_v12, %v2988_v12  ;;  %v9395_v38 = vld [vmem:[#allocation8 + $0x2c0] sm:$0xff] }
 0x32f   : > { %v4649_v3 = vpop.f32.mrf.mxu2  ;;  %v4696_v60 = vpop.f32.mrf.mxu3  ;;  %4972 = vmatpush.bf16.msra.mxu1 %v9380_v2  ;;  %5071 = vmatpush.bf16.msrb.mxu3 %v9395_v38  ;;  %v2829_v12 = vld [vmem:[#allocation2 + $0x8b] sm:$0xff] }
 0x330   : > { %v4650_v40 = vadd.f32 %v4649_v3, %v10693_v51  ;;  %v10847_v46 = vadd.f32 %v4696_v60, %v4648_v44  ;;  %v2534_v16 = vpop.permute.xlu1 %2533  ;;  %v2700_v0 = vpop.permute.xlu2 %2699  ;;  %v7720_v51 = vor.u32 %v9264_v17, %v7719_v30  ;;  %v9277_v30 = vld [vmem:[#allocation3 + $0x250] sm:$0xf0] }
 0x331   : > { %2555 = vst.msk [vmem:[#allocation3 + $0x21c] sm:$0xf] %vm1168_vm2, %v2534_v16  ;;  %v10850_v21 = vpop.f32.mrf.mxu0  ;;  %v2696_v4 = vpop.permute.xlu0 %2695 }
 0x332   : > { %2718 = vst.msk [vmem:[#allocation3 + $0x2c0] sm:$0xf] %vm1168_vm2, %v2700_v0  ;;  %v9252_v61 = vld [vmem:[#allocation3 + $0x188] sm:$0xf0] }
 0x333   : > { %2716 = vst.msk [vmem:[#allocation3 + $0x258] sm:$0xf] %vm1168_vm2, %v2696_v4  ;;  %v7676_v26 = vor.u32 %v9252_v61, %v7675_v1  ;;  %v2907_v1 = vld [vmem:[#allocation2 + $0x7d] sm:$0xff]  ;;  %v7771_v61 = vld [vmem:[#allocation3 + $0x220] sm:$0xf] }
 0x335   : > { %4847 = vmatmul.bf16.gmra.mxu2 %v7720_v51  ;;  %4940 = vmatmul.bf16.gmra.mxu0 %v7676_v26  ;;  %v9265_v51 = vld [vmem:[#allocation3 + $0x1f0] sm:$0xf0] }
 0x336   : > { %2931 = vrot.lane.b32.xlu1 %v2914_v42, %s9747_s13  ;;  %1879 = vrot.lane.b32.xlu2 %v1856_v52, %s9747_s13  ;;  %v7728_v26 = vor.u32 %v9265_v51, %v7727_v55  ;;  %v2916_v42 = vpack.c.bf16 %v2908_v36, %v2908_v36  ;;  %v2834_v52 = vpack.c.bf16 %v2826_v9, %v2826_v9 }
 0x337   : > { %2929 = vrot.lane.b32.xlu0 %v2913_v27, %s9747_s13  ;;  %v4652_v28 = vpop.f32.mrf.mxu2  ;;  %v4698_v54 = vpop.f32.mrf.mxu3  ;;  %v2915_v27 = vpack.c.bf16 %v2907_v1, %v2907_v1 }
 0x338   : > { %v4653_v7 = vadd.f32 %v4652_v28, %v10702_v37  ;;  %v10858_v44 = vadd.f32 %v4698_v54, %v4650_v40  ;;  %v2776_v18 = vpop.permute.xlu1 %2775  ;;  %v2778_v6 = vpop.permute.xlu2 %2777  ;;  %v9388_v37 = vld [vmem:[#allocation8 + $0x288] sm:$0xff] }
 0x339   : > { %2796 = vst.msk [vmem:[#allocation3 + $0x25c] sm:$0xf] %vm1168_vm2, %v2776_v18  ;;  %v10861_v43 = vpop.f32.mrf.mxu0  ;;  %v2774_v58 = vpop.permute.xlu0 %2773  ;;  %5021 = vmatpush.bf16.msrb.mxu2 %v9388_v37  ;;  %v9270_v28 = vld [vmem:[#allocation3 + $0x21c] sm:$0xf]  ;;  %v2827_v37 = vld [vmem:[#allocation2 + $0x7b] sm:$0xff] }
 0x33a   : > { %2797 = vst.msk [vmem:[#allocation3 + $0x290] sm:$0xf] %vm1168_vm2, %v2778_v6  ;;  %v7773_v15 = vld [vmem:[#allocation3 + $0x254] sm:$0xf0] }
 0x33b   : > { %2795 = vst.msk [vmem:[#allocation3 + $0x228] sm:$0xf] %vm1168_vm2, %v2774_v58  ;;  %4798 = vmatmul.bf16.gmra.mxu1 %v7716_v50  ;;  %v7765_v58 = vld [vmem:[#allocation3 + $0x24c] sm:$0xf0] }
 0x33c   : > { %4896 = vmatmul.bf16.gmra.mxu3 %v7724_v47  ;;  %v7768_v47 = vor.u32 %v9270_v28, %v7765_v58 }
 0x33e   : > { %2849 = vrot.lane.b32.xlu1 %v2833_v23, %s9747_s13  ;;  %3009 = vrot.lane.b32.xlu2 %v2993_v5, %s9747_s13  ;;  %v2987_v23 = vld [vmem:[#allocation2 + $0x7f] sm:$0xff]  ;;  %v7776_v5 = vor.u32 %v9271_v19, %v7773_v15 }
 0x33f   : > { %3011 = vrot.lane.b32.xlu0 %v2994_v59, %s9747_s13  ;;  %v4654_v10 = vpop.f32.mrf.mxu2  ;;  %v4701_v3 = vpop.f32.mrf.mxu3  ;;  %v9387_v59 = vld [vmem:[#allocation8 + $0x280] sm:$0xff] }
 0x340   : > { %v4655_v60 = vadd.f32 %v4654_v10, %v10711_v49  ;;  %v10869_v40 = vadd.f32 %v4701_v3, %v4653_v7  ;;  %v2698_v16 = vpop.permute.xlu1 %2697  ;;  %v2542_v0 = vpop.permute.xlu2 %2541  ;;  %v7772_v49 = vor.u32 %v9277_v30, %v7771_v61  ;;  %v2835_v10 = vpack.c.bf16 %v2827_v37, %v2827_v37  ;;  %5022 = vmatpush.bf16.msrb.mxu2 %v9387_v59  ;;  %v9278_v61 = vld [vmem:[#allocation3 + $0x258] sm:$0xf0] }
 0x341   : > { %2717 = vst.msk [vmem:[#allocation3 + $0x28c] sm:$0xf] %vm1168_vm2, %v2698_v16  ;;  %v10872_v4 = vpop.f32.mrf.mxu0  ;;  %v2620_v17 = vpop.permute.xlu0 %2619  ;;  %v2995_v3 = vpack.c.bf16 %v2987_v23, %v2987_v23  ;;  %v2989_v59 = vld [vmem:[#allocation2 + $0x8f] sm:$0xff] }
 0x342   : > { %2559 = vst.msk [vmem:[#allocation3 + $0x2ec] sm:$0xf] %vm1168_vm2, %v2542_v0  ;;  %v7779_v1 = vld [vmem:[#allocation3 + $0x228] sm:$0xf] }
 0x343   : > { %2638 = vst.msk [vmem:[#allocation3 + $0x2bc] sm:$0xf] %vm1168_vm2, %v2620_v17  ;;  %v7780_v41 = vor.u32 %v9278_v61, %v7779_v1 }
 0x345   : > { %4852 = vmatmul.bf16.gmra.mxu2 %v7772_v49  ;;  %4945 = vmatmul.bf16.gmra.mxu0 %v7728_v26  ;;  %v2910_v26 = vld [vmem:[#allocation2 + $0x95] sm:$0xff] }
 0x346   : > { %2935 = vrot.lane.b32.xlu1 %v2916_v42, %s9747_s13  ;;  %2851 = vrot.lane.b32.xlu2 %v2834_v52, %s9747_s13  ;;  %v2828_v42 = vld [vmem:[#allocation2 + $0x83] sm:$0xff]  ;;  %v7823_v52 = vld [vmem:[#allocation3 + $0x288] sm:$0xf]  ;;  %v2918_v28 = vpack.c.bf16 %v2910_v26, %v2910_v26 }
 0x347   : > { %2933 = vrot.lane.b32.xlu0 %v2915_v27, %s9747_s13  ;;  %v4657_v54 = vpop.f32.mrf.mxu2  ;;  %v4703_v62 = vpop.f32.mrf.mxu3  ;;  %v2909_v27 = vld [vmem:[#allocation2 + $0x8d] sm:$0xff] }
 0x348   : > { %v4658_v7 = vadd.f32 %v4657_v54, %v10720_v24  ;;  %v10880_v18 = vadd.f32 %v4703_v62, %v4655_v60  ;;  %v2540_v6 = vpop.permute.xlu1 %2539  ;;  %v2624_v48 = vpop.permute.xlu2 %2623  ;;  %v9379_v60 = vld [vmem:[#allocation8 + $0x240] sm:$0xff]  ;;  %v2836_v54 = vpack.c.bf16 %v2828_v42, %v2828_v42  ;;  %v2917_v62 = vpack.c.bf16 %v2909_v27, %v2909_v27  ;;  %v9284_v58 = vld [vmem:[#allocation3 + $0x28c] sm:$0xf]  ;;  %v2830_v42 = vld [vmem:[#allocation2 + $0x93] sm:$0xff] }
 0x349   : > { %2558 = vst.msk [vmem:[#allocation3 + $0x2b8] sm:$0xf] %vm1168_vm2, %v2540_v6  ;;  %v10883_v50 = vpop.f32.mrf.mxu0  ;;  %v2538_v22 = vpop.permute.xlu0 %2537  ;;  %4973 = vmatpush.bf16.msra.mxu1 %v9379_v60 }
 0x34a   : > { %2640 = vst.msk [vmem:[#allocation3 + $0x324] sm:$0xf] %vm1168_vm2, %v2624_v48  ;;  %v4779_v24 = vpop.f32.mrf.mxu1  ;;  %v9290_v9 = vld [vmem:[#allocation3 + $0x2b8] sm:$0xf0] }
 0x34b   : > { %v10888_v2 = vadd.f32 %v4779_v24, %v4731_v53  ;;  %2557 = vst.msk [vmem:[#allocation3 + $0x284] sm:$0xf] %vm1168_vm2, %v2538_v22  ;;  %4803 = vmatmul.bf16.gmra.mxu1 %v7768_v47 }
 0x34c   : > { %4901 = vmatmul.bf16.gmra.mxu3 %v7776_v5  ;;  %v7825_v5 = vld [vmem:[#allocation3 + $0x2bc] sm:$0xf0] }
 0x34e   : > { %2853 = vrot.lane.b32.xlu1 %v2835_v10, %s9747_s13  ;;  %3013 = vrot.lane.b32.xlu2 %v2995_v3, %s9747_s13  ;;  %v7828_v10 = vor.u32 %v9284_v58, %v7825_v5  ;;  %v2990_v3 = vld [vmem:[#allocation2 + $0x97] sm:$0xff]  ;;  %v4736_v5 = vadd.f32 %v10786_v35, %v10805_v32 }
 0x34f   : > { %v4706_v16 = vpop.f32.mrf.mxu3  ;;  %3015 = vrot.lane.b32.xlu0 %v2996_v31, %s9747_s13  ;;  %v4659_v0 = vpop.f32.mrf.mxu2  ;;  %v2997_v31 = vpack.c.bf16 %v2989_v59, %v2989_v59  ;;  %v2998_v38 = vpack.c.bf16 %v2990_v3, %v2990_v3  ;;  %v2991_v59 = vld [vmem:[#allocation2 + $0x9f] sm:$0xff] }
 0x350   : > { %v10894_v30 = vadd.f32 %v4706_v16, %v4658_v7  ;;  %v4660_v55 = vadd.f32 %v4659_v0, %v10729_v8  ;;  %v2622_v17 = vpop.permute.xlu1 %2621  ;;  %v2784_v36 = vpop.permute.xlu2 %2783  ;;  %v7824_v8 = vor.u32 %v9290_v9, %v7823_v52  ;;  %v7817_v7 = vld [vmem:[#allocation3 + $0x2b4] sm:$0xf0]  ;;  %v2911_v52 = vld [vmem:[#allocation2 + $0x9d] sm:$0xff] }
 0x351   : > { %2639 = vst.msk [vmem:[#allocation3 + $0x2f0] sm:$0xf] %vm1168_vm2, %v2622_v17  ;;  %v10898_v51 = vpop.f32.mrf.mxu0  ;;  %v2780_v49 = vpop.permute.xlu0 %2779  ;;  %v2912_v0 = vld [vmem:[#allocation2 + $0xa5] sm:$0xff] }
 0x352   : > { %2800 = vst.msk [vmem:[#allocation3 + $0x32c] sm:$0xf] %vm1168_vm2, %v2784_v36  ;;  %v9283_v15 = vld [vmem:[#allocation3 + $0x284] sm:$0xf]  ;;  %v10922_v27 = vpop.f32.mrf.mxu1 }
 0x353   : > { %2798 = vst.msk [vmem:[#allocation3 + $0x2c4] sm:$0xf] %vm1168_vm2, %v2780_v49  ;;  %v7820_v24 = vor.u32 %v9283_v15, %v7817_v7  ;;  %v2838_v15 = vpack.c.bf16 %v2830_v42, %v2830_v42  ;;  %v2919_v7 = vpack.c.bf16 %v2911_v52, %v2911_v52 }
 0x355   : > { %4857 = vmatmul.bf16.gmra.mxu2 %v7824_v8  ;;  %4950 = vmatmul.bf16.gmra.mxu0 %v7780_v41  ;;  %v9303_v8 = vld [vmem:[#allocation3 + $0x320] sm:$0xf0]  ;;  %v7831_v41 = vld [vmem:[#allocation3 + $0x290] sm:$0xf] }
 0x356   : > { %2939 = vrot.lane.b32.xlu1 %v2918_v28, %s9747_s13  ;;  %2855 = vrot.lane.b32.xlu2 %v2836_v54, %s9747_s13  ;;  %v2920_v28 = vpack.c.bf16 %v2912_v0, %v2912_v0 }
 0x357   : > { %v4708_v6 = vpop.f32.mrf.mxu3  ;;  %2937 = vrot.lane.b32.xlu0 %v2917_v62, %s9747_s13  ;;  %v4662_v48 = vpop.f32.mrf.mxu2 }
 0x358   : > { %v10905_v53 = vadd.f32 %v4708_v6, %v4660_v55  ;;  %v4663_v22 = vadd.f32 %v4662_v48, %v10738_v45  ;;  %v2704_v47 = vpop.permute.xlu1 %2703  ;;  %v2026_v19 = vpop.permute.xlu2 %2025  ;;  %v2837_v45 = vpack.c.bf16 %v2829_v12, %v2829_v12  ;;  %v7875_v1 = vld [vmem:[#allocation3 + $0x2f0] sm:$0xf] }
 0x359   : > { %2720 = vst.msk [vmem:[#allocation3 + $0x328] sm:$0xf] %vm1168_vm2, %v2704_v47  ;;  %v10909_v37 = vpop.f32.mrf.mxu0  ;;  %v2702_v23 = vpop.permute.xlu0 %2701  ;;  %v7876_v54 = vor.u32 %v9303_v8, %v7875_v1  ;;  %v2992_v47 = vld [vmem:[#allocation2 + $0xa7] sm:$0xff]  ;;  %v2831_v12 = vld [vmem:[#allocation2 + $0x9b] sm:$0xff] }
 0x35a   : > { %2049 = vst.msk [vmem:[#allocation3 + $0x2c] sm:$0xf] %vm1168_vm2, %v2026_v19  ;;  %v9291_v61 = vld [vmem:[#allocation3 + $0x2c0] sm:$0xf0]  ;;  %v2839_v0 = vpack.c.bf16 %v2831_v12, %v2831_v12  ;;  %v2832_v8 = vld [vmem:[#allocation2 + $0xa3] sm:$0xff] }
 0x35b   : > { %2719 = vst.msk [vmem:[#allocation3 + $0x2f4] sm:$0xf] %vm1168_vm2, %v2702_v23  ;;  %4808 = vmatmul.bf16.gmra.mxu1 %v7820_v24  ;;  %v7832_v62 = vor.u32 %v9291_v61, %v7831_v41 }
 0x35c   : > { %4906 = vmatmul.bf16.gmra.mxu3 %v7828_v10 }
 0x35e   : > { %2857 = vrot.lane.b32.xlu1 %v2837_v45, %s9747_s13  ;;  %3017 = vrot.lane.b32.xlu2 %v2997_v31, %s9747_s13  ;;  %v9296_v45 = vld [vmem:[#allocation3 + $0x2ec] sm:$0xf] }
 0x35f   : > { %v4711_v60 = vpop.f32.mrf.mxu3  ;;  %3019 = vrot.lane.b32.xlu0 %v2998_v38, %s9747_s13  ;;  %v4664_v16 = vpop.f32.mrf.mxu2 }
 0x360   : > { %v10916_v55 = vadd.f32 %v4711_v60, %v4663_v22  ;;  %v4665_v17 = vadd.f32 %v4664_v16, %v10747_v11  ;;  %v2782_v36 = vpop.permute.xlu1 %2781  ;;  %v1868_v9 = vpop.permute.xlu2 %1867  ;;  %v10927_v11 = vadd.f32 %v10827_v33, %v10836_v63  ;;  %v7877_v58 = vld [vmem:[#allocation3 + $0x324] sm:$0xf0]  ;;  %v3000_v16 = vpack.c.bf16 %v2992_v47, %v2992_v47 }
 0x361   : > { %2799 = vst.msk [vmem:[#allocation3 + $0x2f8] sm:$0xf] %vm1168_vm2, %v2782_v36  ;;  %v10920_v49 = vpop.f32.mrf.mxu0  ;;  %v2544_v26 = vpop.permute.xlu0 %2543 }
 0x362   : > { %1890 = vst.msk [vmem:[#allocation3 + $0x58] sm:$0xf] %vm1168_vm2, %v1868_v9  ;;  %v9297_v48 = vld [vmem:[#allocation3 + $0x2f4] sm:$0xf] }
 0x363   : > { %2560 = vst.msk [vmem:[#allocation3 + $0x320] sm:$0xf] %vm1168_vm2, %v2544_v26  ;;  %v7880_v38 = vor.u32 %v9297_v48, %v7877_v58 }
 0x365   : > { %4862 = vmatmul.bf16.gmra.mxu2 %v7876_v54  ;;  %4955 = vmatmul.bf16.gmra.mxu0 %v7832_v62  ;;  %v9304_v54 = vld [vmem:[#allocation3 + $0x328] sm:$0xf0] }
 0x366   : > { %2943 = vrot.lane.b32.xlu1 %v2920_v28, %s9747_s13  ;;  %2859 = vrot.lane.b32.xlu2 %v2838_v15, %s9747_s13 }
 0x367   : > { %v4713_v6 = vpop.f32.mrf.mxu3  ;;  %2941 = vrot.lane.b32.xlu0 %v2919_v7, %s9747_s13 }
 0x368   : > { %v10933_v22 = vadd.f32 %v4713_v6, %v4665_v17  ;;  %v4667_v33 = vpop.f32.mrf.mxu2  ;;  %v1948_v63 = vpop.permute.xlu1 %1947  ;;  %v2999_v17 = vpack.c.bf16 %v2991_v59, %v2991_v59  ;;  %v7883_v1 = vld [vmem:[#allocation3 + $0x2f8] sm:$0xf]  ;;  %v2840_v6 = vpack.c.bf16 %v2832_v8, %v2832_v8  ;;  %v7535_v8 = vld [vmem:[#allocation3 + $0x30] sm:$0xf] }
 0x369   : > { %v4668_v19 = vadd.f32 %v4667_v33, %v10758_v20  ;;  %1970 = vst.msk [vmem:[#allocation3 + $0x5c] sm:$0xf] %vm1168_vm2, %v1948_v63  ;;  %v2030_v23 = vpop.permute.xlu2 %2029  ;;  %v10937_v24 = vpop.f32.mrf.mxu0  ;;  %v7884_v15 = vor.u32 %v9304_v54, %v7883_v1  ;;  %v7521_v47 = vld [vmem:[#allocation3 + $0x54] sm:$0xf0]  ;;  %v9215_v1 = vld [vmem:[#allocation3 + $0x60] sm:$0xf0] }
 0x36a   : > { %2051 = vst.msk [vmem:[#allocation3 + $0x94] sm:$0xf] %vm1168_vm2, %v2030_v23  ;;  %v4784_v10 = vpop.f32.mrf.mxu1  ;;  %v1946_v3 = vpop.permute.xlu0 %1945  ;;  %v7869_v31 = vld [vmem:[#allocation3 + $0x31c] sm:$0xf0]  ;;  %v7536_v54 = vor.u32 %v9215_v1, %v7535_v8 }
 0x36b   : > { %v10942_v60 = vadd.f32 %v4784_v10, %v4736_v5  ;;  %1969 = vst.msk [vmem:[#allocation3 + $0x28] sm:$0xf] %vm1168_vm2, %v1946_v3  ;;  %v7872_v20 = vor.u32 %v9296_v45, %v7869_v31  ;;  %v4741_v5 = vadd.f32 %v10811_v13, %v10825_v39  ;;  %v1904_v10 = vld [vmem:[#allocation2 + $0x4c] sm:$0xff]  ;;  %v9208_v31 = vld [vmem:[#allocation3 + $0x2c] sm:$0xf]  ;;  %v4733_v13 = vadd.f32 %v10766_v14, %v10794_v34 }
 0x36c   : > { %4911 = vmatmul.bf16.gmra.mxu3 %v7880_v38 }
 0x36d   : > { %4813 = vmatmul.bf16.gmra.mxu1 %v7872_v20  ;;  %v1912_v20 = vpack.c.bf16 %v1904_v10, %v1904_v10  ;;  %v4782_v39 = vadd.f32 %v10922_v27, %v4733_v13 }
 0x36e   : > { %2861 = vrot.lane.b32.xlu1 %v2839_v0, %s9747_s13  ;;  %3021 = vrot.lane.b32.xlu2 %v2999_v17, %s9747_s13 }
 0x36f   : > { %v4716_v35 = vpop.f32.mrf.mxu3  ;;  %3023 = vrot.lane.b32.xlu0 %v3000_v16, %s9747_s13  ;;  %1920 = vst.msk [vmem:[#allocation3 + $0x194] sm:$0xf] %vm767_vm1, %v1912_v20 }
 0x370   : > { %v10948_v32 = vadd.f32 %v4716_v35, %v4668_v19  ;;  %v4669_v36 = vpop.f32.mrf.mxu2  ;;  %v1866_v9 = vpop.permute.xlu1 %1865  ;;  %v9214_v61 = vld [vmem:[#allocation3 + $0x58] sm:$0xf0] }
 0x371   : > { %v4670_v26 = vadd.f32 %v4669_v36, %v10772_v57  ;;  %1889 = vst.msk [vmem:[#allocation3 + $0x24] sm:$0xf] %vm1168_vm2, %v1866_v9  ;;  %v1872_v42 = vpop.permute.xlu2 %1871  ;;  %v10952_v52 = vpop.f32.mrf.mxu0 }
 0x372   : > { %1892 = vst.msk [vmem:[#allocation3 + $0xc0] sm:$0xf] %vm1168_vm2, %v1872_v42  ;;  %v10955_v41 = vpop.f32.mrf.mxu1  ;;  %v2028_v28 = vpop.permute.xlu0 %2027  ;;  %v7527_v62 = vld [vmem:[#allocation3 + $0x28] sm:$0xf] }
 0x373   : > { %2050 = vst.msk [vmem:[#allocation3 + $0x60] sm:$0xf] %vm1168_vm2, %v2028_v28  ;;  %v7528_v7 = vor.u32 %v9214_v61, %v7527_v62  ;;  %v1984_v28 = vld [vmem:[#allocation2 + $0x4e] sm:$0xff] }
 0x374   : > { %v1992_v62 = vpack.c.bf16 %v1984_v28, %v1984_v28 }
 0x375   : > { %4960 = vmatmul.bf16.gmra.mxu0 %v7884_v15  ;;  %5023 = vmatmul.bf16.vlgmr.msrb.gmra.mxu2 %v7528_v7 }
 0x376   : > { %2863 = vrot.lane.b32.xlu2 %v2840_v6, %s9747_s13  ;;  %2000 = vst.msk [vmem:[#allocation3 + $0x198] sm:$0xf] %vm767_vm1, %v1992_v62 }
 0x377   : > { %v4718_v57 = vpop.f32.mrf.mxu3 }
 0x378   : > { %v10959_v48 = vadd.f32 %v4718_v57, %v4670_v26  ;;  %v4828_v58 = vpop.f32.mrf.mxu2  ;;  %v1952_v33 = vpop.permute.xlu1 %1951  ;;  %v9207_v63 = vld [vmem:[#allocation3 + $0x24] sm:$0xf] }
 0x379   : > { %v4829_v19 = vadd.f32 %v4828_v58, %v10888_v2  ;;  %1972 = vst.msk [vmem:[#allocation3 + $0xc4] sm:$0xf] %vm1168_vm2, %v1952_v33  ;;  %v2034_v23 = vpop.permute.xlu2 %2033  ;;  %v10965_v12 = vpop.f32.mrf.mxu0  ;;  %v7524_v59 = vor.u32 %v9207_v63, %v7521_v47  ;;  %v7573_v33 = vld [vmem:[#allocation3 + $0xbc] sm:$0xf0] }
 0x37a   : > { %2053 = vst.msk [vmem:[#allocation3 + $0xfc] sm:$0xf] %vm1168_vm2, %v2034_v23  ;;  %v4789_v3 = vpop.f32.mrf.mxu1  ;;  %v1950_v45 = vpop.permute.xlu0 %1949  ;;  %v7529_v38 = vld [vmem:[#allocation3 + $0x5c] sm:$0xf0] }
 0x37b   : > { %v10968_v16 = vadd.f32 %v4789_v3, %v4741_v5  ;;  %1971 = vst.msk [vmem:[#allocation3 + $0x90] sm:$0xf] %vm1168_vm2, %v1950_v45  ;;  %v7532_v2 = vor.u32 %v9208_v31, %v7529_v38  ;;  %v9221_v5 = vld [vmem:[#allocation3 + $0x94] sm:$0xf]  ;;  %v4738_v45 = vadd.f32 %v10799_v56, %v10816_v25  ;;  %v7587_v56 = vld [vmem:[#allocation3 + $0x98] sm:$0xf] }
 0x37d   : > { %4974 = vmatmul.bf16.vlgmr.msra.gmra.mxu1 %v7524_v59  ;;  %5072 = vmatmul.bf16.vlgmr.msrb.gmra.mxu3 %v7532_v2 }
 0x37f   : > { %v4877_v0 = vpop.f32.mrf.mxu3 }
 0x380   : > { %v4830_v17 = vpop.f32.mrf.mxu2  ;;  %v10975_v35 = vadd.f32 %v4877_v0, %v4829_v19  ;;  %v1870_v36 = vpop.permute.xlu1 %1869  ;;  %v9227_v9 = vld [vmem:[#allocation3 + $0xc0] sm:$0xf0] }
 0x381   : > { %v4831_v61 = vadd.f32 %v4830_v17, %v4782_v39  ;;  %1891 = vst.msk [vmem:[#allocation3 + $0x8c] sm:$0xf] %vm1168_vm2, %v1870_v36  ;;  %v1876_v26 = vpop.permute.xlu2 %1875  ;;  %v10978_v42 = vpop.f32.mrf.mxu0  ;;  %v9228_v39 = vld [vmem:[#allocation3 + $0xc8] sm:$0xf0] }
 0x382   : > { %1894 = vst.msk [vmem:[#allocation3 + $0x128] sm:$0xf] %vm1168_vm2, %v1876_v26  ;;  %v2032_v14 = vpop.permute.xlu0 %2031  ;;  %v7579_v34 = vld [vmem:[#allocation3 + $0x90] sm:$0xf] }
 0x383   : > { %2052 = vst.msk [vmem:[#allocation3 + $0xc8] sm:$0xf] %vm1168_vm2, %v2032_v14  ;;  %v7580_v27 = vor.u32 %v9227_v9, %v7579_v34 }
 0x385   : > { %5028 = vmatmul.bf16.gmra.mxu2 %v7580_v27  ;;  %8301 = vmatmul.msk.bf16.vlgmr.msrb.gmra.mxu0 %vm572_vm0, %v7536_v54 }
 0x387   : > { %v4879_v15 = vpop.f32.mrf.mxu3 }
 0x388   : > { %v4833_v7 = vpop.f32.mrf.mxu2  ;;  %v10984_v6 = vadd.f32 %v4879_v15, %v4831_v61  ;;  %v1956_v57 = vpop.permute.xlu1 %1955  ;;  %v9220_v58 = vld [vmem:[#allocation3 + $0x8c] sm:$0xf] }
 0x389   : > { %v4834_v63 = vadd.f32 %v4833_v7, %v10942_v60  ;;  %1974 = vst.msk [vmem:[#allocation3 + $0x12c] sm:$0xf] %vm1168_vm2, %v1956_v57  ;;  %v2038_v47 = vpop.permute.xlu2 %2037  ;;  %v7576_v19 = vor.u32 %v9220_v58, %v7573_v33  ;;  %v10989_v10 = vpop.f32.mrf.mxu0  ;;  %v4787_v60 = vadd.f32 %v10955_v41, %v4738_v45  ;;  %v7588_v41 = vor.u32 %v9228_v39, %v7587_v56  ;;  %v7625_v28 = vld [vmem:[#allocation3 + $0x124] sm:$0xf0]  ;;  %v9234_v7 = vld [vmem:[#allocation3 + $0xfc] sm:$0xf] }
 0x38a   : > { %2055 = vst.msk [vmem:[#allocation3 + $0x164] sm:$0xf] %vm1168_vm2, %v2038_v47  ;;  %v1954_v23 = vpop.permute.xlu0 %1953  ;;  %v7581_v59 = vld [vmem:[#allocation3 + $0xc4] sm:$0xf0]  ;;  %v4791_v33 = vpop.f32.mrf.mxu1 }
 0x38b   : > { %1973 = vst.msk [vmem:[#allocation3 + $0xf8] sm:$0xf] %vm1168_vm2, %v1954_v23  ;;  %v7584_v3 = vor.u32 %v9221_v5, %v7581_v59 }
 0x38d   : > { %4979 = vmatmul.bf16.gmra.mxu1 %v7576_v19  ;;  %5077 = vmatmul.bf16.gmra.mxu3 %v7584_v3  ;;  %v9241_v3 = vld [vmem:[#allocation3 + $0x130] sm:$0xf0] }
 0x38f   : > { %v4882_v31 = vpop.f32.mrf.mxu3 }
 0x390   : > { %v4835_v38 = vpop.f32.mrf.mxu2  ;;  %v10995_v20 = vadd.f32 %v4882_v31, %v4834_v63  ;;  %v1874_v2 = vpop.permute.xlu1 %1873  ;;  %v9240_v13 = vld [vmem:[#allocation3 + $0x128] sm:$0xf0]  ;;  %v4792_v63 = vadd.f32 %v4791_v33, %v10927_v11 }
 0x391   : > { %v4836_v0 = vadd.f32 %v4835_v38, %v4787_v60  ;;  %1893 = vst.msk [vmem:[#allocation3 + $0xf4] sm:$0xf] %vm1168_vm2, %v1874_v2  ;;  %v1880_v17 = vpop.permute.xlu2 %1879  ;;  %v11000_v1 = vpop.f32.mrf.mxu0  ;;  %v7639_v2 = vld [vmem:[#allocation3 + $0x100] sm:$0xf] }
 0x392   : > { %1896 = vst.msk [vmem:[#allocation3 + $0x190] sm:$0xf] %vm1168_vm2, %v1880_v17  ;;  %v2036_v36 = vpop.permute.xlu0 %2035  ;;  %v7631_v9 = vld [vmem:[#allocation3 + $0xf8] sm:$0xf] }
 0x393   : > { %2054 = vst.msk [vmem:[#allocation3 + $0x130] sm:$0xf] %vm1168_vm2, %v2036_v36  ;;  %v7632_v25 = vor.u32 %v9240_v13, %v7631_v9  ;;  %v7640_v13 = vor.u32 %v9241_v3, %v7639_v2  ;;  %v4746_v9 = vadd.f32 %v10839_v29, %v10847_v46 }
 0x395   : > { %5033 = vmatmul.bf16.gmra.mxu2 %v7632_v25  ;;  %8302 = vmatmul.msk.bf16.gmra.mxu0 %vm572_vm0, %v7588_v41 }
 0x397   : > { %v4884_v61 = vpop.f32.mrf.mxu3 }
 0x398   : > { %v4838_v26 = vpop.f32.mrf.mxu2  ;;  %v11003_v8 = vadd.f32 %v4884_v61, %v4836_v0  ;;  %v1960_v14 = vpop.permute.xlu1 %1959  ;;  %v9233_v34 = vld [vmem:[#allocation3 + $0xf4] sm:$0xf] }
 0x399   : > { %v4839_v27 = vadd.f32 %v4838_v26, %v10968_v16  ;;  %1976 = vst.msk [vmem:[#allocation3 + $0x194] sm:$0xf] %vm1168_vm2, %v1960_v14  ;;  %v3010_v54 = vpop.permute.xlu2 %3009  ;;  %v7628_v62 = vor.u32 %v9233_v34, %v7625_v28  ;;  %v11010_v47 = vpop.f32.mrf.mxu0  ;;  %v7677_v25 = vld [vmem:[#allocation3 + $0x18c] sm:$0xf0] }
 0x39a   : > { %3033 = vst.msk [vmem:[#allocation3 + $0x1cc] sm:$0xf] %vm1168_vm2, %v3010_v54  ;;  %v1958_v15 = vpop.permute.xlu0 %1957  ;;  %v7633_v57 = vld [vmem:[#allocation3 + $0x12c] sm:$0xf0] }
 0x39b   : > { %1975 = vst.msk [vmem:[#allocation3 + $0x160] sm:$0xf] %vm1168_vm2, %v1958_v15  ;;  %v7636_v58 = vor.u32 %v9234_v7, %v7633_v57 }
 0x39d   : > { %4984 = vmatmul.bf16.gmra.mxu1 %v7628_v62  ;;  %5082 = vmatmul.bf16.gmra.mxu3 %v7636_v58  ;;  %v4748_v58 = vadd.f32 %v10850_v21, %v10858_v44 }
 0x39f   : > { %v4887_v16 = vpop.f32.mrf.mxu3 }
 0x3a0   : > { %v4840_v19 = vpop.f32.mrf.mxu2  ;;  %v11012_v23 = vadd.f32 %v4887_v16, %v4839_v27  ;;  %v1878_v5 = vpop.permute.xlu1 %1877  ;;  %v9253_v59 = vld [vmem:[#allocation3 + $0x190] sm:$0xf0]  ;;  %v9247_v27 = vld [vmem:[#allocation3 + $0x164] sm:$0xf]  ;;  %v9254_v16 = vld [vmem:[#allocation3 + $0x198] sm:$0xf0] }
 0x3a1   : > { %v4841_v45 = vadd.f32 %v4840_v19, %v4792_v63  ;;  %1895 = vst.msk [vmem:[#allocation3 + $0x15c] sm:$0xf] %vm1168_vm2, %v1878_v5  ;;  %v2852_v60 = vpop.permute.xlu2 %2851  ;;  %v11023_v14 = vpop.f32.mrf.mxu0  ;;  %v7691_v63 = vld [vmem:[#allocation3 + $0x168] sm:$0xf] }
 0x3a2   : > { %2874 = vst.msk [vmem:[#allocation3 + $0x1f8] sm:$0xf] %vm1168_vm2, %v2852_v60  ;;  %v2040_v31 = vpop.permute.xlu0 %2039  ;;  %v7683_v38 = vld [vmem:[#allocation3 + $0x160] sm:$0xf]  ;;  %v7692_v2 = vor.u32 %v9254_v16, %v7691_v63 }
 0x3a3   : > { %2056 = vst.msk [vmem:[#allocation3 + $0x198] sm:$0xf] %vm1168_vm2, %v2040_v31  ;;  %v7684_v11 = vor.u32 %v9253_v59, %v7683_v38 }
 0x3a5   : > { %5038 = vmatmul.bf16.gmra.mxu2 %v7684_v11  ;;  %8303 = vmatmul.msk.bf16.gmra.mxu0 %vm572_vm0, %v7640_v13 }
 0x3a7   : > { %v4889_v39 = vpop.f32.mrf.mxu3 }
 0x3a8   : > { %v4843_v0 = vpop.f32.mrf.mxu2  ;;  %v11018_v17 = vadd.f32 %v4889_v39, %v4841_v45  ;;  %v2932_v36 = vpop.permute.xlu1 %2931  ;;  %v9246_v56 = vld [vmem:[#allocation3 + $0x15c] sm:$0xf] }
 0x3a9   : > { %2954 = vst.msk [vmem:[#allocation3 + $0x1fc] sm:$0xf] %vm1168_vm2, %v2932_v36  ;;  %v3014_v41 = vpop.permute.xlu2 %3013  ;;  %v4794_v61 = vpop.f32.mrf.mxu1  ;;  %v7680_v26 = vor.u32 %v9246_v56, %v7677_v25  ;;  %v2888_v56 = vld [vmem:[#allocation2 + $0xa4] sm:$0xff] }
 0x3aa   : > { %3035 = vst.msk [vmem:[#allocation3 + $0x234] sm:$0xf] %vm1168_vm2, %v3014_v41  ;;  %v4795_v34 = vadd.f32 %v4794_v61, %v4746_v9  ;;  %v2930_v28 = vpop.permute.xlu0 %2929  ;;  %v7685_v54 = vld [vmem:[#allocation3 + $0x194] sm:$0xf0] }
 0x3ab   : > { %2953 = vst.msk [vmem:[#allocation3 + $0x1c8] sm:$0xf] %vm1168_vm2, %v2930_v28  ;;  %v7688_v62 = vor.u32 %v9247_v27, %v7685_v54  ;;  %v7729_v9 = vld [vmem:[#allocation3 + $0x1f4] sm:$0xf0]  ;;  %v9260_v54 = vld [vmem:[#allocation3 + $0x1cc] sm:$0xf] }
 0x3ac   : > { %v4844_v15 = vadd.f32 %v4843_v0, %v4795_v34  ;;  %v4751_v0 = vadd.f32 %v10861_v43, %v10869_v40 }
 0x3ad   : > { %4989 = vmatmul.bf16.gmra.mxu1 %v7680_v26  ;;  %5087 = vmatmul.bf16.gmra.mxu3 %v7688_v62  ;;  %v2896_v26 = vpack.c.bf16 %v2888_v56, %v2888_v56 }
 0x3af   : > { %v4892_v29 = vpop.f32.mrf.mxu3  ;;  %2904 = vst.msk [vmem:[#allocation3 + $0x334] sm:$0xf] %vm767_vm1, %v2896_v26 }
 0x3b0   : > { %v4845_v46 = vpop.f32.mrf.mxu2  ;;  %v4893_v7 = vadd.f32 %v4892_v29, %v4844_v15  ;;  %v2850_v57 = vpop.permute.xlu1 %2849  ;;  %v9266_v33 = vld [vmem:[#allocation3 + $0x1f8] sm:$0xf0] }
 0x3b1   : > { %2873 = vst.msk [vmem:[#allocation3 + $0x1c4] sm:$0xf] %vm1168_vm2, %v2850_v57  ;;  %v2856_v19 = vpop.permute.xlu2 %2855  ;;  %v4796_v5 = vpop.f32.mrf.mxu1 }
 0x3b2   : > { %2876 = vst.msk [vmem:[#allocation3 + $0x260] sm:$0xf] %vm1168_vm2, %v2856_v19  ;;  %v4797_v59 = vadd.f32 %v4796_v5, %v4748_v58  ;;  %v4941_v3 = vpop.f32.mrf.mxu0  ;;  %v3012_v45 = vpop.permute.xlu0 %3011  ;;  %v7735_v60 = vld [vmem:[#allocation3 + $0x1c8] sm:$0xf] }
 0x3b3   : > { %v11031_v31 = vadd.f32 %v4941_v3, %v4893_v7  ;;  %3034 = vst.msk [vmem:[#allocation3 + $0x200] sm:$0xf] %vm1168_vm2, %v3012_v45  ;;  %v7736_v38 = vor.u32 %v9266_v33, %v7735_v60  ;;  %v9267_v33 = vld [vmem:[#allocation3 + $0x200] sm:$0xf0]  ;;  %v7743_v3 = vld [vmem:[#allocation3 + $0x1d0] sm:$0xf] }
 0x3b4   : > { %v4846_v21 = vadd.f32 %v4845_v46, %v4797_v59 }
 0x3b5   : > { %5043 = vmatmul.bf16.gmra.mxu2 %v7736_v38  ;;  %8304 = vmatmul.msk.bf16.gmra.mxu0 %vm572_vm0, %v7692_v2  ;;  %v7744_v38 = vor.u32 %v9267_v33, %v7743_v3  ;;  %v2968_v2 = vld [vmem:[#allocation2 + $0xa6] sm:$0xff] }
 0x3b7   : > { %v4894_v44 = vpop.f32.mrf.mxu3 }
 0x3b8   : > { %v4848_v11 = vpop.f32.mrf.mxu2  ;;  %v4895_v13 = vadd.f32 %v4894_v44, %v4846_v21  ;;  %v2936_v39 = vpop.permute.xlu1 %2935  ;;  %v9259_v36 = vld [vmem:[#allocation3 + $0x1c4] sm:$0xf]  ;;  %v2976_v21 = vpack.c.bf16 %v2968_v2, %v2968_v2 }
 0x3b9   : > { %2956 = vst.msk [vmem:[#allocation3 + $0x264] sm:$0xf] %vm1168_vm2, %v2936_v39  ;;  %v3018_v25 = vpop.permute.xlu2 %3017  ;;  %v4799_v41 = vpop.f32.mrf.mxu1  ;;  %v7732_v61 = vor.u32 %v9259_v36, %v7729_v9  ;;  %v4756_v39 = vadd.f32 %v10883_v50, %v10894_v30  ;;  %v7781_v36 = vld [vmem:[#allocation3 + $0x25c] sm:$0xf0] }
 0x3ba   : > { %3037 = vst.msk [vmem:[#allocation3 + $0x29c] sm:$0xf] %vm1168_vm2, %v3018_v25  ;;  %v4800_v34 = vadd.f32 %v4799_v41, %v4751_v0  ;;  %v4943_v28 = vpop.f32.mrf.mxu0  ;;  %v2934_v27 = vpop.permute.xlu0 %2933  ;;  %v7737_v62 = vld [vmem:[#allocation3 + $0x1fc] sm:$0xf0] }
 0x3bb   : > { %v11039_v15 = vadd.f32 %v4943_v28, %v4895_v13  ;;  %2955 = vst.msk [vmem:[#allocation3 + $0x230] sm:$0xf] %vm1168_vm2, %v2934_v27  ;;  %v7740_v43 = vor.u32 %v9260_v54, %v7737_v62 }
 0x3bc   : > { %v4849_v40 = vadd.f32 %v4848_v11, %v4800_v34  ;;  %2984 = vst.msk [vmem:[#allocation3 + $0x338] sm:$0xf] %vm767_vm1, %v2976_v21  ;;  %v9273_v34 = vld [vmem:[#allocation3 + $0x234] sm:$0xf]  ;;  %v4761_v21 = vadd.f32 %v10909_v37, %v10916_v55 }
 0x3bd   : > { %4994 = vmatmul.bf16.gmra.mxu1 %v7732_v61  ;;  %5092 = vmatmul.bf16.gmra.mxu3 %v7740_v43 }
 0x3bf   : > { %v4897_v29 = vpop.f32.mrf.mxu3 }
 0x3c0   : > { %v11043_v46 = vpop.f32.mrf.mxu2  ;;  %v4898_v7 = vadd.f32 %v4897_v29, %v4849_v40  ;;  %v2854_v57 = vpop.permute.xlu1 %2853  ;;  %v9279_v58 = vld [vmem:[#allocation3 + $0x260] sm:$0xf0]  ;;  %v9280_v29 = vld [vmem:[#allocation3 + $0x268] sm:$0xf0] }
 0x3c1   : > { %2875 = vst.msk [vmem:[#allocation3 + $0x22c] sm:$0xf] %vm1168_vm2, %v2854_v57  ;;  %v2860_v63 = vpop.permute.xlu2 %2859  ;;  %v11046_v16 = vpop.f32.mrf.mxu1 }
 0x3c2   : > { %2878 = vst.msk [vmem:[#allocation3 + $0x2c8] sm:$0xf] %vm1168_vm2, %v2860_v63  ;;  %v4946_v19 = vpop.f32.mrf.mxu0  ;;  %v3016_v5 = vpop.permute.xlu0 %3015  ;;  %v7787_v59 = vld [vmem:[#allocation3 + $0x230] sm:$0xf] }
 0x3c3   : > { %v11049_v45 = vadd.f32 %v4946_v19, %v4898_v7  ;;  %3036 = vst.msk [vmem:[#allocation3 + $0x268] sm:$0xf] %vm1168_vm2, %v3016_v5  ;;  %v7788_v60 = vor.u32 %v9279_v58, %v7787_v59  ;;  %v7795_v19 = vld [vmem:[#allocation3 + $0x238] sm:$0xf] }
 0x3c4   : > { %v7796_v3 = vor.u32 %v9280_v29, %v7795_v19 }
 0x3c5   : > { %5048 = vmatmul.bf16.gmra.mxu2 %v7788_v60  ;;  %8305 = vmatmul.msk.bf16.gmra.mxu0 %vm572_vm0, %v7744_v38 }
 0x3c7   : > { %v11054_v44 = vpop.f32.mrf.mxu3 }
 0x3c8   : > { %v4853_v11 = vpop.f32.mrf.mxu2  ;;  %v2940_v13 = vpop.permute.xlu1 %2939  ;;  %v9272_v0 = vld [vmem:[#allocation3 + $0x22c] sm:$0xf] }
 0x3c9   : > { %2958 = vst.msk [vmem:[#allocation3 + $0x2cc] sm:$0xf] %vm1168_vm2, %v2940_v13  ;;  %v3022_v9 = vpop.permute.xlu2 %3021  ;;  %v4804_v56 = vpop.f32.mrf.mxu1  ;;  %v7784_v25 = vor.u32 %v9272_v0, %v7781_v36  ;;  %v7833_v13 = vld [vmem:[#allocation3 + $0x2c4] sm:$0xf0] }
 0x3ca   : > { %3039 = vst.msk [vmem:[#allocation3 + $0x304] sm:$0xf] %vm1168_vm2, %v3022_v9  ;;  %v4805_v41 = vadd.f32 %v4804_v56, %v4756_v39  ;;  %v11060_v61 = vpop.f32.mrf.mxu0  ;;  %v2938_v26 = vpop.permute.xlu0 %2937  ;;  %v7789_v28 = vld [vmem:[#allocation3 + $0x264] sm:$0xf0] }
 0x3cb   : > { %2957 = vst.msk [vmem:[#allocation3 + $0x298] sm:$0xf] %vm1168_vm2, %v2938_v26  ;;  %v7792_v27 = vor.u32 %v9273_v34, %v7789_v28 }
 0x3cc   : > { %v4854_v54 = vadd.f32 %v4853_v11, %v4805_v41 }
 0x3cd   : > { %4999 = vmatmul.bf16.gmra.mxu1 %v7784_v25  ;;  %5097 = vmatmul.bf16.gmra.mxu3 %v7792_v27  ;;  %v9286_v25 = vld [vmem:[#allocation3 + $0x29c] sm:$0xf] }
 0x3cf   : > { %v4902_v50 = vpop.f32.mrf.mxu3 }
 0x3d0   : > { %v11063_v30 = vpop.f32.mrf.mxu2  ;;  %v4903_v62 = vadd.f32 %v4902_v50, %v4854_v54  ;;  %v2858_v43 = vpop.permute.xlu1 %2857  ;;  %v9292_v40 = vld [vmem:[#allocation3 + $0x2c8] sm:$0xf0]  ;;  %v9293_v50 = vld [vmem:[#allocation3 + $0x2d0] sm:$0xf0] }
 0x3d1   : > { %2877 = vst.msk [vmem:[#allocation3 + $0x294] sm:$0xf] %vm1168_vm2, %v2858_v43  ;;  %v2864_v7 = vpop.permute.xlu2 %2863  ;;  %v11066_v57 = vpop.f32.mrf.mxu1 }
 0x3d2   : > { %2880 = vst.msk [vmem:[#allocation3 + $0x330] sm:$0xf] %vm1168_vm2, %v2864_v7  ;;  %v4951_v58 = vpop.f32.mrf.mxu0  ;;  %v3020_v33 = vpop.permute.xlu0 %3019  ;;  %v7839_v63 = vld [vmem:[#allocation3 + $0x298] sm:$0xf]  ;;  %v7847_v7 = vld [vmem:[#allocation3 + $0x2a0] sm:$0xf] }
 0x3d3   : > { %v11069_v5 = vadd.f32 %v4951_v58, %v4903_v62  ;;  %3038 = vst.msk [vmem:[#allocation3 + $0x2d0] sm:$0xf] %vm1168_vm2, %v3020_v33  ;;  %v7840_v59 = vor.u32 %v9292_v40, %v7839_v63  ;;  %v7848_v63 = vor.u32 %v9293_v50, %v7847_v7 }
 0x3d5   : > { %5053 = vmatmul.bf16.gmra.mxu2 %v7840_v59  ;;  %8306 = vmatmul.msk.bf16.gmra.mxu0 %vm572_vm0, %v7796_v3 }
 0x3d7   : > { %v11073_v60 = vpop.f32.mrf.mxu3 }
 0x3d8   : > { %v4858_v38 = vpop.f32.mrf.mxu2  ;;  %v2944_v2 = vpop.permute.xlu1 %2943  ;;  %v9285_v11 = vld [vmem:[#allocation3 + $0x294] sm:$0xf] }
 0x3d9   : > { %2960 = vst.msk [vmem:[#allocation3 + $0x334] sm:$0xf] %vm1168_vm2, %v2944_v2  ;;  %v4809_v39 = vpop.f32.mrf.mxu1  ;;  %v7836_v0 = vor.u32 %v9285_v11, %v7833_v13  ;;  %v4766_v2 = vadd.f32 %v10937_v24, %v10948_v32 }
 0x3da   : > { %v4810_v36 = vadd.f32 %v4809_v39, %v4761_v21  ;;  %v11078_v9 = vpop.f32.mrf.mxu0  ;;  %v2942_v56 = vpop.permute.xlu0 %2941  ;;  %v7841_v41 = vld [vmem:[#allocation3 + $0x2cc] sm:$0xf0]  ;;  %v9299_v39 = vld [vmem:[#allocation3 + $0x304] sm:$0xf] }
 0x3db   : > { %2959 = vst.msk [vmem:[#allocation3 + $0x300] sm:$0xf] %vm1168_vm2, %v2942_v56  ;;  %v7844_v26 = vor.u32 %v9286_v25, %v7841_v41 }
 0x3dc   : > { %v4859_v34 = vadd.f32 %v4858_v38, %v4810_v36  ;;  %v7885_v38 = vld [vmem:[#allocation3 + $0x32c] sm:$0xf0] }
 0x3dd   : > { %5004 = vmatmul.bf16.gmra.mxu1 %v7836_v0  ;;  %5102 = vmatmul.bf16.gmra.mxu3 %v7844_v26 }
 0x3df   : > { %v4907_v28 = vpop.f32.mrf.mxu3 }
 0x3e0   : > { %v11081_v37 = vpop.f32.mrf.mxu2  ;;  %v4908_v55 = vadd.f32 %v4907_v28, %v4859_v34  ;;  %v2862_v27 = vpop.permute.xlu1 %2861  ;;  %v9305_v54 = vld [vmem:[#allocation3 + $0x330] sm:$0xf0]  ;;  %v7899_v28 = vld [vmem:[#allocation3 + $0x308] sm:$0xf] }
 0x3e1   : > { %2879 = vst.msk [vmem:[#allocation3 + $0x2fc] sm:$0xf] %vm1168_vm2, %v2862_v27  ;;  %v11084_v62 = vpop.f32.mrf.mxu1  ;;  %v8455_v27 = vld [vmem:[#allocation10 + $0x70] sm:$0xf] }
 0x3e2   : > { %v4956_v43 = vpop.f32.mrf.mxu0  ;;  %v3024_v40 = vpop.permute.xlu0 %3023  ;;  %v7891_v29 = vld [vmem:[#allocation3 + $0x300] sm:$0xf] }
 0x3e3   : > { %v11086_v58 = vadd.f32 %v4956_v43, %v4908_v55  ;;  %3040 = vst.msk [vmem:[#allocation3 + $0x338] sm:$0xf] %vm1168_vm2, %v3024_v40  ;;  %v7892_v33 = vor.u32 %v9305_v54, %v7891_v29  ;;  %v9306_v55 = vld [vmem:[#allocation3 + $0x338] sm:$0xf0]  ;;  %v9444_v54 = vld [vmem:[#allocation10 + $0x74] sm:$0xf0] }
 0x3e4   : > { %v8456_v50 = vor.u32 %v9444_v54, %v8455_v27  ;;  %v7900_v40 = vor.u32 %v9306_v55, %v7899_v28  ;;  %v4932_v55 = vadd.f32 %v10989_v10, %v10995_v20  ;;  %v4934_v20 = vadd.f32 %v11000_v1, %v11003_v8  ;;  %v9474_v1 = vld [vmem:[#allocation10 + $0x164] sm:$0xf0] }
 0x3e5   : > { %5058 = vmatmul.bf16.gmra.mxu2 %v7892_v33  ;;  %8307 = vmatmul.msk.bf16.gmra.mxu0 %vm572_vm0, %v7848_v63  ;;  %v4927_v33 = vadd.f32 %v10965_v12, %v10975_v35 }
 0x3e6   : > { %6577 = vmatpush.bf16.msrb.mxu1 %v8456_v50 }
 0x3e7   : > { %v11090_v19 = vpop.f32.mrf.mxu3 }
 0x3e8   : > { %v4863_v59 = vpop.f32.mrf.mxu2  ;;  %v9298_v3 = vld [vmem:[#allocation3 + $0x2fc] sm:$0xf] }
 0x3e9   : > { %v7888_v21 = vor.u32 %v9298_v3, %v7885_v38 }
 0x3ea   : > { %v4814_v11 = vpop.f32.mrf.mxu1  ;;  %v11094_v13 = vpop.f32.mrf.mxu0  ;;  %v7893_v0 = vld [vmem:[#allocation3 + $0x334] sm:$0xf0] }
 0x3eb   : > { %v4815_v36 = vadd.f32 %v4814_v11, %v4766_v2  ;;  %v7896_v56 = vor.u32 %v9299_v39, %v7893_v0  ;;  %v4929_v39 = vadd.f32 %v10978_v42, %v10984_v6  ;;  %v9442_v42 = vld [vmem:[#allocation10 + $0x64] sm:$0xf0] }
 0x3ed   : > { %5009 = vmatmul.bf16.gmra.mxu1 %v7888_v21  ;;  %5107 = vmatmul.bf16.gmra.mxu3 %v7896_v56  ;;  %v4864_v25 = vadd.f32 %v4863_v59, %v4815_v36 }
 0x3ef   : > { %v4912_v41 = vpop.f32.mrf.mxu3 }
 0x3f0   : > { %v11096_v26 = vpop.f32.mrf.mxu2  ;;  %v4913_v34 = vadd.f32 %v4912_v41, %v4864_v25 }
 0x3f2   : > { %v11098_v24 = vpop.f32.mrf.mxu1  ;;  %v4961_v32 = vpop.f32.mrf.mxu0 }
 0x3f3   : > { %v11100_v43 = vadd.f32 %v4961_v32, %v4913_v34 }
 0x3f5   : > { %8308 = vmatmul.msk.bf16.gmra.mxu0 %vm572_vm0, %v7900_v40 }
 0x3f7   : > { %v11103_v29 = vpop.f32.mrf.mxu3 }
 0x3f8   : > { %v5024_v7 = vpop.f32.mrf.mxu2 }
 0x3fa   : > { %v11107_v63 = vpop.f32.mrf.mxu0  ;;  %v4975_v59 = vpop.f32.mrf.mxu1 }
 0x3fb   : > { %v4976_v3 = vadd.f32 %v4975_v59, %v4927_v33  ;;  %v8519_v33 = vld [vmem:[#allocation10 + $0xf0] sm:$0xf]  ;;  %v9460_v59 = vld [vmem:[#allocation10 + $0xf4] sm:$0xf0] }
 0x3fd   : > { %v5025_v38 = vadd.f32 %v5024_v7, %v4976_v3  ;;  %v8447_v7 = vld [vmem:[#allocation10 + $0x60] sm:$0xf]  ;;  %v8583_v3 = vld [vmem:[#allocation10 + $0x170] sm:$0xf] }
 0x3fe   : > { %v8448_v6 = vor.u32 %v9442_v42, %v8447_v7  ;;  %v8575_v7 = vld [vmem:[#allocation10 + $0x160] sm:$0xf]  ;;  %v4937_v42 = vadd.f32 %v11010_v47, %v11012_v23 }
 0x400   : > { %v5026_v2 = vpop.f32.mrf.mxu2  ;;  %v5073_v21 = vpop.f32.mrf.mxu3  ;;  %6578 = vmatpush.bf16.msrb.mxu1 %v8448_v6  ;;  %v8576_v6 = vor.u32 %v9474_v1, %v8575_v7 }
 0x401   : > { %v5074_v11 = vadd.f32 %v5073_v21, %v5025_v38  ;;  %v9476_v21 = vld [vmem:[#allocation10 + $0x174] sm:$0xf0] }
 0x402   : > { %v4977_v0 = vpop.f32.mrf.mxu1  ;;  %v5122_v36 = vpop.f32.mrf.mxu0 }
 0x403   : > { %v4978_v56 = vadd.f32 %v4977_v0, %v4929_v39  ;;  %v5123_v25 = vadd.f32 %v5122_v36, %v5074_v11  ;;  %v8584_v0 = vor.u32 %v9476_v21, %v8583_v3  ;;  %v8439_v36 = vld [vmem:[#allocation10 + $0x50] sm:$0xf] }
 0x405   : > { %v5162_v41 = vmax.f32 %v5123_v25, 0.0  ;;  %v5027_v34 = vadd.f32 %v5026_v2, %v4978_v56  ;;  %v8520_v2 = vor.u32 %v9460_v59, %v8519_v33  ;;  %v9440_v56 = vld [vmem:[#allocation10 + $0x54] sm:$0xf0]  ;;  %6615 = vmatpush.bf16.msra.mxu3 %v8584_v0 }
 0x407   : > { %5178 = vst [vmem:[#allocation4] sm:$0xff] %v5162_v41  ;;  %6596 = vmatpush.bf16.msra.mxu2 %v8520_v2 }
 0x408   : > { %v5029_v28 = vpop.f32.mrf.mxu2  ;;  %v5075_v12 = vpop.f32.mrf.mxu3 }
 0x409   : > { %v5076_v35 = vadd.f32 %v5075_v12, %v5027_v34  ;;  %v8440_v34 = vor.u32 %v9440_v56, %v8439_v36  ;;  %6616 = vmatpush.bf16.msra.mxu3 %v8576_v6 }
 0x40a   : > { %v4980_v27 = vpop.f32.mrf.mxu1  ;;  %v5124_v54 = vpop.f32.mrf.mxu0 }
 0x40b   : > { %v4981_v32 = vadd.f32 %v4980_v27, %v4932_v55  ;;  %v5125_v50 = vadd.f32 %v5124_v54, %v5076_v35  ;;  %6579 = vmatpush.bf16.msrb.mxu1 %v8440_v34  ;;  %v8511_v27 = vld [vmem:[#allocation10 + $0xe0] sm:$0xf]  ;;  %v9458_v54 = vld [vmem:[#allocation10 + $0xe4] sm:$0xf0] }
 0x40d   : > { %v5163_v40 = vmax.f32 %v5125_v50, 0.0  ;;  %v5030_v38 = vadd.f32 %v5029_v28, %v4981_v32 }
 0x40f   : > { %5179 = vst [vmem:[#allocation4 + $0x8] sm:$0xff] %v5163_v40  ;;  %v8512_v40 = vor.u32 %v9458_v54, %v8511_v27 }
 0x410   : > { %v5031_v11 = vpop.f32.mrf.mxu2  ;;  %v5078_v39 = vpop.f32.mrf.mxu3 }
 0x411   : > { %v5079_v10 = vadd.f32 %v5078_v39, %v5030_v38  ;;  %6597 = vmatpush.bf16.msra.mxu2 %v8512_v40 }
 0x412   : > { %v4982_v25 = vpop.f32.mrf.mxu1  ;;  %v5127_v41 = vpop.f32.mrf.mxu0 }
 0x413   : > { %v4983_v12 = vadd.f32 %v4982_v25, %v4934_v20  ;;  %v5128_v35 = vadd.f32 %v5127_v41, %v5079_v10  ;;  %v4939_v10 = vadd.f32 %v11023_v14, %v11018_v17 }
 0x415   : > { %v5164_v28 = vmax.f32 %v5128_v35, 0.0  ;;  %v5032_v55 = vadd.f32 %v5031_v11, %v4983_v12 }
 0x417   : > { %5180 = vst [vmem:[#allocation4 + $0x10] sm:$0xff] %v5164_v28 }
 0x418   : > { %v5034_v32 = vpop.f32.mrf.mxu2  ;;  %v5080_v50 = vpop.f32.mrf.mxu3 }
 0x419   : > { %v5081_v8 = vadd.f32 %v5080_v50, %v5032_v55 }
 0x41a   : > { %v4985_v33 = vpop.f32.mrf.mxu1  ;;  %v5129_v59 = vpop.f32.mrf.mxu0 }
 0x41b   : > { %v4986_v3 = vadd.f32 %v4985_v33, %v4937_v42  ;;  %v5130_v38 = vadd.f32 %v5129_v59, %v5081_v8  ;;  %v8431_v8 = vld [vmem:[#allocation10 + $0x40] sm:$0xf]  ;;  %v9438_v42 = vld [vmem:[#allocation10 + $0x44] sm:$0xf0]  ;;  %v9459_v33 = vld [vmem:[#allocation10 + $0xf4] sm:$0xf] }
 0x41c   : > { %v8432_v6 = vor.u32 %v9438_v42, %v8431_v8  ;;  %v8521_v59 = vld [vmem:[#allocation10 + $0xf8] sm:$0xf0] }
 0x41d   : > { %v5165_v2 = vmax.f32 %v5130_v38, 0.0  ;;  %v5035_v21 = vadd.f32 %v5034_v32, %v4986_v3  ;;  %v8503_v3 = vld [vmem:[#allocation10 + $0xd0] sm:$0xf] }
 0x41e   : > { %6580 = vmatpush.bf16.msrb.mxu1 %v8432_v6 }
 0x41f   : > { %5181 = vst [vmem:[#allocation4 + $0x18] sm:$0xff] %v5165_v2  ;;  %v8524_v2 = vor.u32 %v9459_v33, %v8521_v59  ;;  %v9453_v33 = vld [vmem:[#allocation10 + $0xc4] sm:$0xf]  ;;  %v8497_v59 = vld [vmem:[#allocation10 + $0xc8] sm:$0xf0] }
 0x420   : > { %v5036_v11 = vpop.f32.mrf.mxu2  ;;  %v5083_v39 = vpop.f32.mrf.mxu3 }
 0x421   : > { %v5084_v0 = vadd.f32 %v5083_v39, %v5035_v21  ;;  %v9456_v21 = vld [vmem:[#allocation10 + $0xd4] sm:$0xf0]  ;;  %6805 = vmatpush.bf16.msra.mxu0 %v8524_v2 }
 0x422   : > { %v4987_v20 = vpop.f32.mrf.mxu1  ;;  %v5132_v36 = vpop.f32.mrf.mxu0  ;;  %v9452_v2 = vld [vmem:[#allocation10 + $0xb4] sm:$0xf0] }
 0x423   : > { %v4988_v56 = vadd.f32 %v4987_v20, %v4939_v10  ;;  %v5133_v47 = vadd.f32 %v5132_v36, %v5084_v0  ;;  %v8504_v10 = vor.u32 %v9456_v21, %v8503_v3  ;;  %v8567_v20 = vld [vmem:[#allocation10 + $0x150] sm:$0xf]  ;;  %v9472_v36 = vld [vmem:[#allocation10 + $0x154] sm:$0xf0] }
 0x425   : > { %v5166_v23 = vmax.f32 %v5133_v47, 0.0  ;;  %v5037_v12 = vadd.f32 %v5036_v11, %v4988_v56  ;;  %v9457_v11 = vld [vmem:[#allocation10 + $0xe4] sm:$0xf]  ;;  %6598 = vmatpush.bf16.msra.mxu2 %v8504_v10  ;;  %v8551_v10 = vld [vmem:[#allocation10 + $0x130] sm:$0xf] }
 0x426   : > { %v5194_v25 = vld [vmem:[#allocation4] ss:$4 sm:$0xff]  ;;  %v5202_v41 = vld [vmem:[#allocation4 + $0x1] ss:$4 sm:$0xff]  ;;  %v5214_v35 = vld [vmem:[#allocation4 + $0x2] ss:$4 sm:$0xff] }
 0x427   : > { %v5209_v34 = vmax.f32 %v5194_v25, %v5202_v41  ;;  %5182 = vst [vmem:[#allocation4 + $0x20] sm:$0xff] %v5166_v23  ;;  %v5226_v32 = vld [vmem:[#allocation4 + $0x3] ss:$4 sm:$0xff]  ;;  %v8568_v23 = vor.u32 %v9472_v36, %v8567_v20  ;;  %v8500_v20 = vor.u32 %v9453_v33, %v8497_v59 }
 0x428   : > { %v5039_v28 = vpop.f32.mrf.mxu2  ;;  %v5085_v55 = vpop.f32.mrf.mxu3  ;;  %v9455_v25 = vld [vmem:[#allocation10 + $0xd4] sm:$0xf]  ;;  %v8505_v41 = vld [vmem:[#allocation10 + $0xd8] sm:$0xf0] }
 0x429   : > { %v5221_v27 = vmax.f32 %v5209_v34, %v5214_v35  ;;  %v5086_v54 = vadd.f32 %v5085_v55, %v5037_v12  ;;  %v8495_v34 = vld [vmem:[#allocation10 + $0xc0] sm:$0xf]  ;;  %6617 = vmatpush.bf16.msra.mxu3 %v8568_v23  ;;  %v8508_v42 = vor.u32 %v9455_v25, %v8505_v41  ;;  %v9434_v23 = vld [vmem:[#allocation10 + $0x24] sm:$0xf0] }
 0x42a   : > { %v4990_v50 = vpop.f32.mrf.mxu1  ;;  %v5134_v40 = vpop.f32.mrf.mxu0  ;;  %v8559_v55 = vld [vmem:[#allocation10 + $0x140] sm:$0xf] }
 0x42b   : > { %v11119_v7 = vmax.f32 %v5221_v27, %v5226_v32  ;;  %v4991_v17 = vadd.f32 %v4990_v50, %v11031_v31  ;;  %v5135_v14 = vadd.f32 %v5134_v40, %v5086_v54  ;;  %v8513_v31 = vld [vmem:[#allocation10 + $0xe8] sm:$0xf0]  ;;  %v9470_v27 = vld [vmem:[#allocation10 + $0x144] sm:$0xf0]  ;;  %v8479_v41 = vld [vmem:[#allocation10 + $0xa0] sm:$0xf] }
 0x42c   : > { %v8516_v47 = vor.u32 %v9457_v11, %v8513_v31  ;;  %v8560_v40 = vor.u32 %v9470_v27, %v8559_v55 }
 0x42d   : > { %5238 = vst [vmem:[#allocation5 + $0x5] sm:$0xff] %v11119_v7  ;;  %v5167_v1 = vmax.f32 %v5135_v14, 0.0  ;;  %v5040_v38 = vadd.f32 %v5039_v28, %v4991_v17  ;;  %v9454_v28 = vld [vmem:[#allocation10 + $0xc4] sm:$0xf0]  ;;  %v8423_v17 = vld [vmem:[#allocation10 + $0x30] sm:$0xf] }
 0x42e   : > { %v8496_v50 = vor.u32 %v9454_v28, %v8495_v34  ;;  %v9436_v14 = vld [vmem:[#allocation10 + $0x34] sm:$0xf0]  ;;  %6806 = vmatpush.bf16.msra.mxu0 %v8516_v47  ;;  %6618 = vmatpush.bf16.msra.mxu3 %v8560_v40  ;;  %v8415_v47 = vld [vmem:[#allocation10 + $0x20] sm:$0xf]  ;;  %v9450_v34 = vld [vmem:[#allocation10 + $0xa4] sm:$0xf0] }
 0x42f   : > { %5183 = vst [vmem:[#allocation4 + $0x28] sm:$0xff] %v5167_v1  ;;  %v4753_v1 = vadd.f32 %v10872_v4, %v10880_v18  ;;  %v8424_v6 = vor.u32 %v9436_v14, %v8423_v17  ;;  %v9468_v4 = vld [vmem:[#allocation10 + $0x134] sm:$0xf0]  ;;  %v9451_v18 = vld [vmem:[#allocation10 + $0xb4] sm:$0xf]  ;;  %v8480_v27 = vor.u32 %v9450_v34, %v8479_v41 }
 0x430   : > { %v5041_v39 = vpop.f32.mrf.mxu2  ;;  %v5088_v0 = vpop.f32.mrf.mxu3  ;;  %6599 = vmatpush.bf16.msra.mxu2 %v8496_v50  ;;  %v8552_v36 = vor.u32 %v9468_v4, %v8551_v10  ;;  %v9449_v14 = vld [vmem:[#allocation10 + $0xa4] sm:$0xf]  ;;  %v8407_v41 = vld [vmem:[#allocation10 + $0x10] sm:$0xf]  ;;  %v9432_v34 = vld [vmem:[#allocation10 + $0x14] sm:$0xf0] }
 0x431   : > { %v5089_v56 = vadd.f32 %v5088_v0, %v5040_v38  ;;  %v4802_v3 = vadd.f32 %v11046_v16, %v4753_v1  ;;  %6581 = vmatpush.bf16.msrb.mxu1 %v8424_v6  ;;  %v8487_v38 = vld [vmem:[#allocation10 + $0xb0] sm:$0xf]  ;;  %v8481_v1 = vld [vmem:[#allocation10 + $0xa8] sm:$0xf0] }
 0x432   : > { %v4992_v12 = vpop.f32.mrf.mxu1  ;;  %v5137_v35 = vpop.f32.mrf.mxu0  ;;  %v8488_v0 = vor.u32 %v9452_v2, %v8487_v38  ;;  %6807 = vmatpush.bf16.msra.mxu0 %v8508_v42  ;;  %6619 = vmatpush.bf16.msra.mxu3 %v8552_v36  ;;  %v8484_v33 = vor.u32 %v9449_v14, %v8481_v1  ;;  %v4758_v38 = vadd.f32 %v10898_v51, %v10905_v53  ;;  %v8399_v14 = vld [vmem:[#allocation10] sm:$0xf]  ;;  %v9430_v1 = vld [vmem:[#allocation10 + $0x4] sm:$0xf0] }
 0x433   : > { %v4993_v54 = vadd.f32 %v4992_v12, %v11039_v15  ;;  %v5138_v32 = vadd.f32 %v5137_v35, %v5089_v56  ;;  %v8489_v56 = vld [vmem:[#allocation10 + $0xb8] sm:$0xf0]  ;;  %v8543_v12 = vld [vmem:[#allocation10 + $0x120] sm:$0xf]  ;;  %v4851_v35 = vadd.f32 %v11043_v46, %v4802_v3 }
 0x434   : > { %6600 = vmatpush.bf16.msra.mxu2 %v8488_v0  ;;  %v8492_v17 = vor.u32 %v9451_v18, %v8489_v56 }
 0x435   : > { %v5168_v8 = vmax.f32 %v5138_v32, 0.0  ;;  %v5042_v15 = vadd.f32 %v5041_v39, %v4993_v54  ;;  %v8416_v39 = vor.u32 %v9434_v23, %v8415_v47  ;;  %v9466_v54 = vld [vmem:[#allocation10 + $0x124] sm:$0xf0]  ;;  %v4900_v50 = vadd.f32 %v11054_v44, %v4851_v35  ;;  %v8471_v35 = vld [vmem:[#allocation10 + $0x90] sm:$0xf] }
 0x436   : > { %v8544_v32 = vor.u32 %v9466_v54, %v8543_v12  ;;  %6808 = vmatpush.bf16.msra.mxu0 %v8500_v20  ;;  %v8408_v12 = vor.u32 %v9432_v34, %v8407_v41 }
 0x437   : > { %5184 = vst [vmem:[#allocation4 + $0x30] sm:$0xff] %v5168_v8  ;;  %6582 = vmatpush.bf16.msrb.mxu1 %v8416_v39 }
 0x438   : > { %v5044_v21 = vpop.f32.mrf.mxu2  ;;  %v5090_v11 = vpop.f32.mrf.mxu3  ;;  %6601 = vmatpush.bf16.msra.mxu2 %v8480_v27  ;;  %6620 = vmatpush.bf16.msra.mxu3 %v8544_v32  ;;  %v9447_v32 = vld [vmem:[#allocation10 + $0x94] sm:$0xf] }
 0x439   : > { %v5091_v31 = vadd.f32 %v5090_v11, %v5042_v15 }
 0x43a   : > { %v4995_v16 = vpop.f32.mrf.mxu1  ;;  %v5139_v25 = vpop.f32.mrf.mxu0  ;;  %6809 = vmatpush.bf16.msra.mxu0 %v8492_v17 }
 0x43b   : > { %v4996_v28 = vadd.f32 %v4995_v16, %v11049_v45  ;;  %v5140_v55 = vadd.f32 %v5139_v25, %v5091_v31  ;;  %v4949_v45 = vadd.f32 %v11060_v61, %v4900_v50  ;;  %v5247_v50 = vld [vmem:[#allocation5] sm:$0xff]  ;;  %6583 = vmatpush.bf16.msrb.mxu1 %v8408_v12 }
 0x43d   : > { %v5169_v40 = vmax.f32 %v5140_v55, 0.0  ;;  %v5045_v8 = vadd.f32 %v5044_v21, %v4996_v28  ;;  %v4807_v21 = vadd.f32 %v11066_v57, %v4758_v38  ;;  %v9448_v28 = vld [vmem:[#allocation10 + $0x94] sm:$0xf0]  ;;  %v8535_v55 = vld [vmem:[#allocation10 + $0x110] sm:$0xf] }
 0x43e   : > { %6810 = vmatpush.bf16.msra.mxu0 %v8484_v33  ;;  %v8472_v54 = vor.u32 %v9448_v28, %v8471_v35  ;;  %v8463_v33 = vld [vmem:[#allocation10 + $0x80] sm:$0xf] }
 0x43f   : > { %5185 = vst [vmem:[#allocation4 + $0x38] sm:$0xff] %v5169_v40  ;;  %v4856_v16 = vadd.f32 %v11063_v30, %v4807_v21  ;;  %v9464_v30 = vld [vmem:[#allocation10 + $0x114] sm:$0xf0] }
 0x440   : > { %v5046_v46 = vpop.f32.mrf.mxu2  ;;  %v5093_v42 = vpop.f32.mrf.mxu3  ;;  %v8536_v17 = vor.u32 %v9464_v30, %v8535_v55  ;;  %6602 = vmatpush.bf16.msra.mxu2 %v8472_v54 }
 0x441   : > { %v5094_v6 = vadd.f32 %v5093_v42, %v5045_v8  ;;  %v4905_v57 = vadd.f32 %v11073_v60, %v4856_v16  ;;  %v8473_v60 = vld [vmem:[#allocation10 + $0x98] sm:$0xf0]  ;;  %v5249_v8 = vpack.c.bf16 %v5247_v50, %v5247_v50 }
 0x442   : > { %v4997_v59 = vpop.f32.mrf.mxu1  ;;  %v5142_v3 = vpop.f32.mrf.mxu0  ;;  %6621 = vmatpush.bf16.msra.mxu3 %v8536_v17 }
 0x443   : > { %v4998_v15 = vadd.f32 %v4997_v59, %v4949_v45  ;;  %v5143_v44 = vadd.f32 %v5142_v3, %v5094_v6  ;;  %v8476_v45 = vor.u32 %v9447_v32, %v8473_v60  ;;  %v8400_v6 = vor.u32 %v9430_v1, %v8399_v14  ;;  %v9446_v59 = vld [vmem:[#allocation10 + $0x84] sm:$0xf0]  ;;  %v8527_v3 = vld [vmem:[#allocation10 + $0x100] sm:$0xf]  ;;  %5251 = vst [vmem:[#allocation6] sm:$0xf] %v5249_v8 }
 0x444   : > { %v8464_v38 = vor.u32 %v9446_v59, %v8463_v33  ;;  %v4768_v59 = vadd.f32 %v10952_v52, %v10959_v48 }
 0x445   : > { %v5170_v2 = vmax.f32 %v5143_v44, 0.0  ;;  %v5047_v4 = vadd.f32 %v5046_v46, %v4998_v15  ;;  %v4954_v46 = vadd.f32 %v11078_v9, %v4905_v57  ;;  %6811 = vmatpush.bf16.msra.mxu0 %v8476_v45  ;;  %v5253_v9 = vld [vmem:[#allocation5 + $0x1] sm:$0xff]  ;;  %6584 = vmatpush.bf16.msrb.mxu1 %v8400_v6 }
 0x446   : > { %v5196_v11 = vld [vmem:[#allocation4 + $0x20] ss:$4 sm:$0xff]  ;;  %v5204_v0 = vld [vmem:[#allocation4 + $0x21] ss:$4 sm:$0xff]  ;;  %v5216_v61 = vld [vmem:[#allocation4 + $0x22] ss:$4 sm:$0xff]  ;;  %6603 = vmatpush.bf16.msra.mxu2 %v8464_v38 }
 0x447   : > { %v5210_v10 = vmax.f32 %v5196_v11, %v5204_v0  ;;  %5186 = vst [vmem:[#allocation4 + $0x40] sm:$0xff] %v5170_v2  ;;  %v5228_v56 = vld [vmem:[#allocation4 + $0x23] ss:$4 sm:$0xff] }
 0x448   : > { %v5049_v18 = vpop.f32.mrf.mxu2  ;;  %v5095_v31 = vpop.f32.mrf.mxu3  ;;  %v9462_v2 = vld [vmem:[#allocation10 + $0x104] sm:$0xf0]  ;;  %v9445_v11 = vld [vmem:[#allocation10 + $0x84] sm:$0xf]  ;;  %v8465_v0 = vld [vmem:[#allocation10 + $0x88] sm:$0xf0] }
 0x449   : > { %v5222_v20 = vmax.f32 %v5210_v10, %v5216_v61  ;;  %v5096_v36 = vadd.f32 %v5095_v31, %v5047_v4  ;;  %v8528_v4 = vor.u32 %v9462_v2, %v8527_v3  ;;  %v8468_v61 = vor.u32 %v9445_v11, %v8465_v0 }
 0x44a   : > { %v5000_v47 = vpop.f32.mrf.mxu1  ;;  %v5144_v23 = vpop.f32.mrf.mxu0  ;;  %v8311_v32 = vld [vmem:[#allocation6] sm:$0xf] }
 0x44b   : > { %v11135_v51 = vmax.f32 %v5222_v20, %v5228_v56  ;;  %v5001_v53 = vadd.f32 %v5000_v47, %v11069_v5  ;;  %v5145_v25 = vadd.f32 %v5144_v23, %v5096_v36  ;;  %v5255_v36 = vpack.c.bf16 %v5253_v9, %v5253_v9  ;;  %6622 = vmatpush.bf16.msra.mxu3 %v8528_v4 }
 0x44c   : > { %v4763_v47 = vadd.f32 %v10920_v49, %v10933_v22  ;;  %6812 = vmatpush.bf16.msra.mxu0 %v8468_v61 }
 0x44d   : > { %5239 = vst [vmem:[#allocation5 + $0xd] sm:$0xff] %v11135_v51  ;;  %v5171_v39 = vmax.f32 %v5145_v25, 0.0  ;;  %v5050_v27 = vadd.f32 %v5049_v18, %v5001_v53  ;;  %v5259_v18 = vld [vmem:[#allocation5 + $0x2] sm:$0xff] }
 0x44e   : > { %5257 = vst [vmem:[#allocation6 + $0x4] sm:$0xf] %v5255_v36  ;;  %v5261_v25 = vpack.c.bf16 %v5259_v18, %v5259_v18  ;;  %v4812_v57 = vadd.f32 %v11084_v62, %v4763_v47  ;;  %v9492_v47 = vld [vmem:[#allocation10 + $0x1f4] sm:$0xf0] }
 0x44f   : > { %5187 = vst [vmem:[#allocation4 + $0x48] sm:$0xff] %v5171_v39 }
 0x450   : > { %v5051_v40 = vpop.f32.mrf.mxu2  ;;  %v5098_v5 = vpop.f32.mrf.mxu3  ;;  %5263 = vst [vmem:[#allocation6 + $0x8] sm:$0xf] %v5261_v25  ;;  %v4861_v22 = vadd.f32 %v11081_v37, %v4812_v57  ;;  %v8775_v25 = vld [vmem:[#allocation10 + $0x2f0] sm:$0xf] }
 0x451   : > { %v5099_v42 = vadd.f32 %v5098_v5, %v5050_v27 }
 0x452   : > { %v5002_v15 = vpop.f32.mrf.mxu1  ;;  %v5147_v44 = vpop.f32.mrf.mxu0  ;;  %v4910_v62 = vadd.f32 %v11090_v19, %v4861_v22 }
 0x453   : > { %v5003_v21 = vadd.f32 %v5002_v15, %v4954_v46  ;;  %v5148_v10 = vadd.f32 %v5147_v44, %v5099_v42  ;;  %v4817_v44 = vadd.f32 %v11098_v24, %v4768_v59 }
 0x454   : > { %v5248_v31 = vld [vmem:[#allocation5 + $0x8] sm:$0xff]  ;;  %v4959_v37 = vadd.f32 %v11094_v13, %v4910_v62  ;;  %v9506_v62 = vld [vmem:[#allocation10 + $0x264] sm:$0xf0] }
 0x455   : > { %v5254_v20 = vld [vmem:[#allocation5 + $0x9] sm:$0xff]  ;;  %v5172_v23 = vmax.f32 %v5148_v10, 0.0  ;;  %v5250_v16 = vpack.c.bf16 %v5248_v31, %v5248_v31  ;;  %v5052_v39 = vadd.f32 %v5051_v40, %v5003_v21  ;;  %v9407_v17 = vld [vmem:[#allocation6 + $0x4] sm:$0xf]  ;;  %v4866_v18 = vadd.f32 %v11096_v26, %v4817_v44 }
 0x456   : > { %v5260_v56 = vld [vmem:[#allocation5 + $0xa] sm:$0xff]  ;;  %v5256_v53 = vpack.c.bf16 %v5254_v20, %v5254_v20 }
 0x457   : > { %5188 = vst [vmem:[#allocation4 + $0x50] sm:$0xff] %v5172_v23  ;;  %v5262_v41 = vpack.c.bf16 %v5260_v56, %v5260_v56  ;;  %v8319_v8 = vld [vmem:[#allocation6 + $0x8] sm:$0xf]  ;;  %v4915_v24 = vadd.f32 %v11103_v29, %v4866_v18  ;;  %v8647_v56 = vld [vmem:[#allocation10 + $0x1f0] sm:$0xf] }
 0x458   : > { %v5054_v34 = vpop.f32.mrf.mxu2  ;;  %v5100_v12 = vpop.f32.mrf.mxu3  ;;  %5252 = vst [vmem:[#allocation6 + $0x2c] sm:$0xf] %v5250_v16  ;;  %v8648_v23 = vor.u32 %v9492_v47, %v8647_v56  ;;  %v9490_v29 = vld [vmem:[#allocation10 + $0x1e4] sm:$0xf0]  ;;  %v8751_v18 = vld [vmem:[#allocation10 + $0x2c0] sm:$0xf] }
 0x459   : > { %v5101_v35 = vadd.f32 %v5100_v12, %v5052_v39  ;;  %5258 = vst [vmem:[#allocation6 + $0x30] sm:$0xf] %v5256_v53  ;;  %v9524_v39 = vld [vmem:[#allocation10 + $0x2f4] sm:$0xf0]  ;;  %v8777_v12 = vld [vmem:[#allocation10 + $0x2f8] sm:$0xf0] }
 0x45a   : > { %v5005_v28 = vpop.f32.mrf.mxu1  ;;  %v5149_v49 = vpop.f32.mrf.mxu0  ;;  %5264 = vst [vmem:[#allocation6 + $0x34] sm:$0xf] %v5262_v41  ;;  %v9523_v41 = vld [vmem:[#allocation10 + $0x2f4] sm:$0xf]  ;;  %6634 = vmatpush.bf16.msra.mxu1 %v8648_v23 }
 0x45b   : > { %v5006_v55 = vadd.f32 %v5005_v28, %v11086_v58  ;;  %v5150_v27 = vadd.f32 %v5149_v49, %v5101_v35  ;;  %5299 = vst [vmem:[#allocation6 + $0x20] sm:$0xf] %v5250_v16  ;;  %v8711_v16 = vld [vmem:[#allocation10 + $0x270] sm:$0xf]  ;;  %v8639_v35 = vld [vmem:[#allocation10 + $0x1e0] sm:$0xf]  ;;  %v4964_v28 = vadd.f32 %v11107_v63, %v4915_v24  ;;  %v8780_v22 = vor.u32 %v9523_v41, %v8777_v12 }
 0x45c   : > { %5305 = vst [vmem:[#allocation6 + $0x24] sm:$0xf] %v5256_v53  ;;  %v9508_v53 = vld [vmem:[#allocation10 + $0x274] sm:$0xf0]  ;;  %v8631_v63 = vld [vmem:[#allocation10 + $0x1d0] sm:$0xf] }
 0x45d   : > { %v5173_v54 = vmax.f32 %v5150_v27, 0.0  ;;  %v5055_v30 = vadd.f32 %v5054_v34, %v5006_v55  ;;  %v8712_v26 = vor.u32 %v9508_v53, %v8711_v16  ;;  %v8640_v55 = vor.u32 %v9490_v29, %v8639_v35  ;;  %v8703_v27 = vld [vmem:[#allocation10 + $0x260] sm:$0xf]  ;;  %6881 = vmatpush.bf16.msrb.mxu0 %v8780_v22  ;;  %v9517_v24 = vld [vmem:[#allocation10 + $0x2c4] sm:$0xf] }
 0x45e   : > { %v9484_v12 = vld [vmem:[#allocation10 + $0x1b4] sm:$0xf0]  ;;  %v8679_v35 = vld [vmem:[#allocation10 + $0x230] sm:$0xf] }
 0x45f   : > { %5189 = vst [vmem:[#allocation4 + $0x58] sm:$0xff] %v5173_v54  ;;  %v9412_v50 = vld [vmem:[#allocation6 + $0x28] sm:$0xf0]  ;;  %6653 = vmatpush.bf16.msrb.mxu2 %v8712_v26  ;;  %v8767_v54 = vld [vmem:[#allocation10 + $0x2e0] sm:$0xf]  ;;  %6635 = vmatpush.bf16.msra.mxu1 %v8640_v55 }
 0x460   : > { %v5103_v40 = vpop.f32.mrf.mxu3  ;;  %v11147_v5 = vor.u32 %v9412_v50, %v8311_v32  ;;  %v8313_v60 = vld [vmem:[#allocation6 + $0x2c] sm:$0xf0]  ;;  %v5056_v14 = vpop.f32.mrf.mxu2  ;;  %v8704_v50 = vor.u32 %v9506_v62, %v8703_v27  ;;  %v9516_v55 = vld [vmem:[#allocation10 + $0x2b4] sm:$0xf0]  ;;  %v9515_v27 = vld [vmem:[#allocation10 + $0x2b4] sm:$0xf] }
 0x461   : > { %v5104_v58 = vadd.f32 %v5103_v40, %v5055_v30  ;;  %v8316_v1 = vor.u32 %v9407_v17, %v8313_v60  ;;  %v9413_v19 = vld [vmem:[#allocation6 + $0x30] sm:$0xf0]  ;;  %v9522_v40 = vld [vmem:[#allocation10 + $0x2e4] sm:$0xf0]  ;;  %v8769_v60 = vld [vmem:[#allocation10 + $0x2e8] sm:$0xf0] }
 0x462   : > { %6585 = vmatmul.bf16.vlgmr.msrb.gmra.mxu1 %v11147_v5  ;;  %v5007_v46 = vpop.f32.mrf.mxu1  ;;  %v5152_v42 = vpop.f32.mrf.mxu0  ;;  %v11151_v45 = vor.u32 %v9413_v19, %v8319_v8  ;;  %v9521_v17 = vld [vmem:[#allocation10 + $0x2e4] sm:$0xf]  ;;  %v9488_v8 = vld [vmem:[#allocation10 + $0x1d4] sm:$0xf0]  ;;  %v8695_v19 = vld [vmem:[#allocation10 + $0x250] sm:$0xf] }
 0x463   : > { %6604 = vmatmul.bf16.vlgmr.msra.gmra.mxu2 %v8316_v1  ;;  %6813 = vmatmul.bf16.vlgmr.msra.gmra.mxu0 %v8316_v1  ;;  %v5008_v6 = vadd.f32 %v5007_v46, %v4959_v37  ;;  %v5153_v33 = vadd.f32 %v5152_v42, %v5104_v58  ;;  %v8768_v58 = vor.u32 %v9522_v40, %v8767_v54  ;;  %v9504_v42 = vld [vmem:[#allocation10 + $0x254] sm:$0xf0]  ;;  %v8745_v40 = vld [vmem:[#allocation10 + $0x2b8] sm:$0xf0] }
 0x464   : > { %6623 = vmatmul.bf16.vlgmr.msra.gmra.mxu3 %v11151_v45  ;;  %v8772_v1 = vor.u32 %v9521_v17, %v8769_v60  ;;  %v8632_v46 = vor.u32 %v9488_v8, %v8631_v63  ;;  %6654 = vmatpush.bf16.msrb.mxu2 %v8704_v50  ;;  %v8607_v17 = vld [vmem:[#allocation10 + $0x1a0] sm:$0xf] }
 0x465   : > { %v5174_v13 = vmax.f32 %v5153_v33, 0.0  ;;  %v5057_v2 = vadd.f32 %v5056_v14, %v5008_v6  ;;  %v8759_v6 = vld [vmem:[#allocation10 + $0x2d0] sm:$0xf]  ;;  %v9520_v33 = vld [vmem:[#allocation10 + $0x2d4] sm:$0xf0] }
 0x466   : > { %v5198_v3 = vld [vmem:[#allocation4 + $0x40] ss:$4 sm:$0xff]  ;;  %v5206_v15 = vld [vmem:[#allocation4 + $0x41] ss:$4 sm:$0xff]  ;;  %v5218_v11 = vld [vmem:[#allocation4 + $0x42] ss:$4 sm:$0xff]  ;;  %6882 = vmatpush.bf16.msrb.mxu0 %v8772_v1  ;;  %6636 = vmatpush.bf16.msra.mxu1 %v8632_v46 }
 0x467   : > { %v5211_v38 = vmax.f32 %v5198_v3, %v5206_v15  ;;  %5190 = vst [vmem:[#allocation4 + $0x60] sm:$0xff] %v5174_v13  ;;  %v5230_v4 = vld [vmem:[#allocation4 + $0x43] ss:$4 sm:$0xff]  ;;  %v8696_v13 = vor.u32 %v9504_v42, %v8695_v19 }
 0x468   : > { %v5105_v0 = vpop.f32.mrf.mxu3  ;;  %v5059_v20 = vpop.f32.mrf.mxu2  ;;  %v9519_v3 = vld [vmem:[#allocation10 + $0x2d4] sm:$0xf]  ;;  %v8761_v15 = vld [vmem:[#allocation10 + $0x2d8] sm:$0xf0]  ;;  %v9498_v1 = vld [vmem:[#allocation10 + $0x224] sm:$0xf0] }
 0x469   : > { %v5223_v21 = vmax.f32 %v5211_v38, %v5218_v11  ;;  %v5106_v10 = vadd.f32 %v5105_v0, %v5057_v2  ;;  %v8760_v2 = vor.u32 %v9520_v33, %v8759_v6  ;;  %v8623_v11 = vld [vmem:[#allocation10 + $0x1c0] sm:$0xf]  ;;  %v9486_v0 = vld [vmem:[#allocation10 + $0x1c4] sm:$0xf0]  ;;  %6655 = vmatpush.bf16.msrb.mxu2 %v8696_v13  ;;  %v9513_v6 = vld [vmem:[#allocation10 + $0x2a4] sm:$0xf] }
 0x46a   : > { %v5010_v61 = vpop.f32.mrf.mxu1  ;;  %v5154_v9 = vpop.f32.mrf.mxu0  ;;  %v8735_v46 = vld [vmem:[#allocation10 + $0x2a0] sm:$0xf]  ;;  %v9514_v42 = vld [vmem:[#allocation10 + $0x2a4] sm:$0xf0]  ;;  %v8599_v13 = vld [vmem:[#allocation10 + $0x190] sm:$0xf] }
 0x46b   : > { %v11158_v52 = vmax.f32 %v5223_v21, %v5230_v4  ;;  %v5011_v48 = vadd.f32 %v5010_v61, %v11100_v43  ;;  %v5155_v31 = vadd.f32 %v5154_v9, %v5106_v10  ;;  %v8776_v43 = vor.u32 %v9524_v39, %v8775_v25  ;;  %v8687_v21 = vld [vmem:[#allocation10 + $0x240] sm:$0xf]  ;;  %v9502_v9 = vld [vmem:[#allocation10 + $0x244] sm:$0xf0] }
 0x46c   : > { %v8764_v61 = vor.u32 %v9519_v3, %v8761_v15  ;;  %v8688_v47 = vor.u32 %v9502_v9, %v8687_v21  ;;  %v8736_v33 = vor.u32 %v9514_v42, %v8735_v46  ;;  %v9480_v3 = vld [vmem:[#allocation10 + $0x194] sm:$0xf0]  ;;  %v8727_v21 = vld [vmem:[#allocation10 + $0x290] sm:$0xf]  ;;  %v8729_v9 = vld [vmem:[#allocation10 + $0x298] sm:$0xf0] }
 0x46d   : > { %5243 = vst [vmem:[#allocation5 + $0x25] sm:$0xff] %v11158_v52  ;;  %v5175_v36 = vmax.f32 %v5155_v31, 0.0  ;;  %v5060_v57 = vadd.f32 %v5059_v20, %v5011_v48  ;;  %6672 = vmatpush.bf16.msrb.mxu3 %v8776_v43  ;;  %v8624_v31 = vor.u32 %v9486_v0, %v8623_v11  ;;  %v9518_v20 = vld [vmem:[#allocation10 + $0x2c4] sm:$0xf0]  ;;  %v8615_v43 = vld [vmem:[#allocation10 + $0x1b0] sm:$0xf] }
 0x46e   : > { %v8752_v16 = vor.u32 %v9518_v20, %v8751_v18  ;;  %6883 = vmatpush.bf16.msrb.mxu0 %v8764_v61  ;;  %6656 = vmatpush.bf16.msrb.mxu2 %v8688_v47  ;;  %v8616_v29 = vor.u32 %v9484_v12, %v8615_v43  ;;  %v9496_v11 = vld [vmem:[#allocation10 + $0x214] sm:$0xf0]  ;;  %v9511_v61 = vld [vmem:[#allocation10 + $0x294] sm:$0xf]  ;;  %v9478_v20 = vld [vmem:[#allocation10 + $0x184] sm:$0xf0] }
 0x46f   : > { %5191 = vst [vmem:[#allocation4 + $0x68] sm:$0xff] %v5175_v36  ;;  %v8753_v36 = vld [vmem:[#allocation10 + $0x2c8] sm:$0xf0]  ;;  %6637 = vmatpush.bf16.msra.mxu1 %v8624_v31  ;;  %v5265_v18 = vld [vmem:[#allocation5 + $0x3] sm:$0xff]  ;;  %v8591_v31 = vld [vmem:[#allocation10 + $0x180] sm:$0xf] }
 0x470   : > { %v5108_v34 = vpop.f32.mrf.mxu3  ;;  %v5061_v38 = vpop.f32.mrf.mxu2  ;;  %v8756_v25 = vor.u32 %v9517_v24, %v8753_v36  ;;  %v8655_v24 = vld [vmem:[#allocation10 + $0x200] sm:$0xf]  ;;  %v5267_v36 = vpack.c.bf16 %v5265_v18, %v5265_v18  ;;  %v9494_v47 = vld [vmem:[#allocation10 + $0x204] sm:$0xf0]  ;;  %v8887_v18 = vld [vmem:[#allocation10 + $0x3d0] sm:$0xf] }
 0x471   : > { %v5109_v49 = vadd.f32 %v5108_v34, %v5060_v57  ;;  %6673 = vmatpush.bf16.msrb.mxu3 %v8768_v58  ;;  %v8671_v58 = vld [vmem:[#allocation10 + $0x220] sm:$0xf]  ;;  %v9538_v46 = vld [vmem:[#allocation10 + $0x364] sm:$0xf0] }
 0x472   : > { %v5012_v30 = vpop.f32.mrf.mxu1  ;;  %v5157_v32 = vpop.f32.mrf.mxu0  ;;  %6884 = vmatpush.bf16.msrb.mxu0 %v8756_v25  ;;  %v8672_v19 = vor.u32 %v9498_v1, %v8671_v58  ;;  %5269 = vst [vmem:[#allocation6 + $0xc] sm:$0xf] %v5267_v36  ;;  %v5272_v43 = vld [vmem:[#allocation5 + $0xc] sm:$0xff]  ;;  %v9587_v1 = vld [vmem:[#allocation10 + $0x4f4] sm:$0xf] }
 0x473   : > { %v5013_v37 = vadd.f32 %v5012_v30, %v4964_v28  ;;  %v5158_v14 = vadd.f32 %v5157_v32, %v5109_v49  ;;  %v9500_v28 = vld [vmem:[#allocation10 + $0x234] sm:$0xf0]  ;;  %v8743_v49 = vld [vmem:[#allocation10 + $0x2b0] sm:$0xf]  ;;  %6638 = vmatpush.bf16.msra.mxu1 %v8616_v29  ;;  %v5274_v29 = vpack.c.bf16 %v5272_v43, %v5272_v43  ;;  %v8895_v42 = vld [vmem:[#allocation10 + $0x3e0] sm:$0xf] }
 0x474   : > { %v5313_v44 = vld [vmem:[#allocation5 + $0x20] sm:$0xff]  ;;  %v8680_v22 = vor.u32 %v9500_v28, %v8679_v35  ;;  %v8744_v30 = vor.u32 %v9516_v55, %v8743_v49  ;;  %v5279_v28 = vpack.c.bf16 %v11119_v7, %v11119_v7  ;;  %v5280_v7 = vpack.c.bf16 %v11135_v51, %v11135_v51  ;;  %v8879_v43 = vld [vmem:[#allocation10 + $0x3c0] sm:$0xf] }
 0x475   : > { %v5176_v59 = vmax.f32 %v5158_v14, 0.0  ;;  %v5315_v10 = vpack.c.bf16 %v5313_v44, %v5313_v44  ;;  %v5062_v4 = vadd.f32 %v5061_v38, %v5013_v37  ;;  %6674 = vmatpush.bf16.msrb.mxu3 %v8760_v2  ;;  %v5319_v26 = vld [vmem:[#allocation5 + $0x21] sm:$0xff]  ;;  %v8748_v37 = vor.u32 %v9515_v27, %v8745_v40  ;;  %v9482_v14 = vld [vmem:[#allocation10 + $0x1a4] sm:$0xf0]  ;;  %5276 = vst [vmem:[#allocation6 + $0x3c] sm:$0xf] %v5274_v29 }
 0x476   : > { %v5321_v39 = vpack.c.bf16 %v5319_v26, %v5319_v26  ;;  %v5325_v41 = vld [vmem:[#allocation5 + $0x22] sm:$0xff]  ;;  %6657 = vmatpush.bf16.msrb.mxu2 %v8680_v22  ;;  %v8608_v8 = vor.u32 %v9482_v14, %v8607_v17  ;;  %v8600_v38 = vor.u32 %v9480_v3, %v8599_v13  ;;  %v8721_v26 = vld [vmem:[#allocation10 + $0x288] sm:$0xf0]  ;;  %5281 = vst [vmem:[#allocation6 + $0x14] sm:$0xf] %v5279_v28 }
 0x477   : > { %5192 = vst [vmem:[#allocation4 + $0x70] sm:$0xff] %v5176_v59  ;;  %v5327_v34 = vpack.c.bf16 %v5325_v41, %v5325_v41  ;;  %6885 = vmatpush.bf16.msrb.mxu0 %v8748_v37  ;;  %v8737_v59 = vld [vmem:[#allocation10 + $0x2a8] sm:$0xf0]  ;;  %v8663_v2 = vld [vmem:[#allocation10 + $0x210] sm:$0xf]  ;;  %v5345_v29 = vpack.c.bf16 %v11158_v52, %v11158_v52 }
 0x478   : > { %v5110_v48 = vpop.f32.mrf.mxu3  ;;  %5317 = vst [vmem:[#allocation6 + $0x58] sm:$0xf] %v5315_v10  ;;  %6639 = vmatpush.bf16.msra.mxu1 %v8608_v8  ;;  %v8740_v44 = vor.u32 %v9513_v6, %v8737_v59  ;;  %v8664_v0 = vor.u32 %v9496_v11, %v8663_v2  ;;  %v9512_v10 = vld [vmem:[#allocation10 + $0x294] sm:$0xf0]  ;;  %v8839_v49 = vld [vmem:[#allocation10 + $0x370] sm:$0xf] }
 0x479   : > { %v5111_v56 = vadd.f32 %v5110_v48, %v5062_v4  ;;  %6675 = vmatpush.bf16.msrb.mxu3 %v8752_v16  ;;  %5323 = vst [vmem:[#allocation6 + $0x5c] sm:$0xf] %v5321_v39  ;;  %v8728_v4 = vor.u32 %v9512_v10, %v8727_v21  ;;  %v8732_v48 = vor.u32 %v9511_v61, %v8729_v9  ;;  %v9510_v16 = vld [vmem:[#allocation10 + $0x284] sm:$0xf0]  ;;  %v5266_v39 = vld [vmem:[#allocation5 + $0xb] sm:$0xff] }
 0x47a   : > { %v5159_v23 = vpop.f32.mrf.mxu0  ;;  %5329 = vst [vmem:[#allocation6 + $0x60] sm:$0xf] %v5327_v34  ;;  %6658 = vmatpush.bf16.msrb.mxu2 %v8672_v19  ;;  %v5268_v41 = vpack.c.bf16 %v5266_v39, %v5266_v39  ;;  %v5271_v34 = vld [vmem:[#allocation5 + $0x4] sm:$0xff]  ;;  %v8831_v19 = vld [vmem:[#allocation10 + $0x360] sm:$0xf] }
 0x47b   : > { %v5160_v53 = vadd.f32 %v5159_v23, %v5111_v56  ;;  %6886 = vmatpush.bf16.msrb.mxu0 %v8740_v44  ;;  %v8592_v56 = vor.u32 %v9478_v20, %v8591_v31  ;;  %v8719_v23 = vld [vmem:[#allocation10 + $0x280] sm:$0xf]  ;;  %v5273_v35 = vpack.c.bf16 %v5271_v34, %v5271_v34  ;;  %v9540_v22 = vld [vmem:[#allocation10 + $0x374] sm:$0xf0]  ;;  %v8903_v40 = vld [vmem:[#allocation10 + $0x3f0] sm:$0xf]  ;;  %v8832_v51 = vor.u32 %v9538_v46, %v8831_v19 }
 0x47c   : > { %6640 = vmatpush.bf16.msra.mxu1 %v8600_v38  ;;  %v8720_v25 = vor.u32 %v9510_v16, %v8719_v23  ;;  %5270 = vst [vmem:[#allocation6 + $0x38] sm:$0xf] %v5268_v41  ;;  %v9556_v17 = vld [vmem:[#allocation10 + $0x3f4] sm:$0xf0]  ;;  %v8967_v37 = vld [vmem:[#allocation10 + $0x470] sm:$0xf] }
 0x47d   : > { %v5177_v57 = vmax.f32 %v5160_v53, 0.0  ;;  %6676 = vmatpush.bf16.msrb.mxu3 %v8744_v30  ;;  %v8656_v53 = vor.u32 %v9494_v47, %v8655_v24  ;;  %5275 = vst [vmem:[#allocation6 + $0x10] sm:$0xf] %v5273_v35  ;;  %v9572_v14 = vld [vmem:[#allocation10 + $0x474] sm:$0xf0] }
 0x47e   : > { %6659 = vmatpush.bf16.msrb.mxu2 %v8664_v0  ;;  %v8968_v58 = vor.u32 %v9572_v14, %v8967_v37  ;;  %5282 = vst [vmem:[#allocation6 + $0x40] sm:$0xf] %v5280_v7  ;;  %v9554_v6 = vld [vmem:[#allocation10 + $0x3e4] sm:$0xf0]  ;;  %v8959_v59 = vld [vmem:[#allocation10 + $0x460] sm:$0xf] }
 0x47f   : > { %5193 = vst [vmem:[#allocation4 + $0x78] sm:$0xff] %v5177_v57  ;;  %v9509_v57 = vld [vmem:[#allocation10 + $0x284] sm:$0xf]  ;;  %6887 = vmatpush.bf16.msrb.mxu0 %v8732_v48  ;;  %v9570_v13 = vld [vmem:[#allocation10 + $0x464] sm:$0xf0] }
 0x480   : > { %v8724_v12 = vor.u32 %v9509_v57, %v8721_v26  ;;  %6641 = vmatpush.bf16.msra.mxu1 %v8592_v56  ;;  %v8355_v3 = vld [vmem:[#allocation6 + $0x58] sm:$0xf]  ;;  %v8960_v44 = vor.u32 %v9570_v13, %v8959_v59  ;;  %v9025_v2 = vld [vmem:[#allocation10 + $0x4e8] sm:$0xf0]  ;;  %v8823_v21 = vld [vmem:[#allocation10 + $0x350] sm:$0xf] }
 0x481   : > { %6677 = vmatpush.bf16.msrb.mxu3 %v8736_v33  ;;  %v8896_v33 = vor.u32 %v9554_v6, %v8895_v42  ;;  %v9585_v38 = vld [vmem:[#allocation10 + $0x4e4] sm:$0xf]  ;;  %v9418_v11 = vld [vmem:[#allocation6 + $0x5c] sm:$0xf]  ;;  %v9536_v10 = vld [vmem:[#allocation10 + $0x354] sm:$0xf0] }
 0x482   : > { %6660 = vmatpush.bf16.msrb.mxu2 %v8656_v53  ;;  %v9028_v0 = vor.u32 %v9585_v38, %v9025_v2  ;;  %v8363_v61 = vld [vmem:[#allocation6 + $0x60] sm:$0xf]  ;;  %v8824_v9 = vor.u32 %v9536_v10, %v8823_v21  ;;  %v9552_v48 = vld [vmem:[#allocation10 + $0x3d4] sm:$0xf0]  ;;  %v9583_v53 = vld [vmem:[#allocation10 + $0x4d4] sm:$0xf] }
 0x483   : > { %6888 = vmatpush.bf16.msrb.mxu0 %v8724_v12  ;;  %v8888_v24 = vor.u32 %v9552_v48, %v8887_v18  ;;  %v8951_v36 = vld [vmem:[#allocation10 + $0x450] sm:$0xf]  ;;  %v9568_v56 = vld [vmem:[#allocation10 + $0x454] sm:$0xf0]  ;;  %v8815_v39 = vld [vmem:[#allocation10 + $0x340] sm:$0xf] }
 0x484   : > { %v8952_v16 = vor.u32 %v9568_v56, %v8951_v36  ;;  %v9534_v41 = vld [vmem:[#allocation10 + $0x344] sm:$0xf0]  ;;  %v8943_v35 = vld [vmem:[#allocation10 + $0x440] sm:$0xf]  ;;  %5347 = vst [vmem:[#allocation6 + $0x6c] sm:$0xf] %v5345_v29 }
 0x485   : > { %6678 = vmatpush.bf16.msrb.mxu3 %v8728_v4  ;;  %v8816_v34 = vor.u32 %v9534_v41, %v8815_v39  ;;  %v9550_v12 = vld [vmem:[#allocation10 + $0x3c4] sm:$0xf0]  ;;  %v8807_v14 = vld [vmem:[#allocation10 + $0x330] sm:$0xf]  ;;  %v9564_v42 = vld [vmem:[#allocation10 + $0x434] sm:$0xf0] }
 0x486   : > { %v5200_v62 = vld [vmem:[#allocation4 + $0x60] ss:$4 sm:$0xff]  ;;  %v5208_v54 = vld [vmem:[#allocation4 + $0x61] ss:$4 sm:$0xff]  ;;  %v5220_v50 = vld [vmem:[#allocation4 + $0x62] ss:$4 sm:$0xff]  ;;  %v8880_v28 = vor.u32 %v9550_v12, %v8879_v43 }
 0x487   : > { %v5212_v32 = vmax.f32 %v5200_v62, %v5208_v54  ;;  %v5232_v60 = vld [vmem:[#allocation4 + $0x63] ss:$4 sm:$0xff]  ;;  %v8840_v54 = vor.u32 %v9540_v22, %v8839_v49 }
 0x488   : > { %v9566_v49 = vld [vmem:[#allocation10 + $0x444] sm:$0xf0]  ;;  %v9581_v22 = vld [vmem:[#allocation10 + $0x4c4] sm:$0xf]  ;;  %v8935_v46 = vld [vmem:[#allocation10 + $0x430] sm:$0xf] }
 0x489   : > { %v5224_v63 = vmax.f32 %v5212_v32, %v5220_v50  ;;  %6679 = vmatpush.bf16.msrb.mxu3 %v8720_v25  ;;  %6691 = vmatpush.bf16.msrb.mxu1 %v8840_v54  ;;  %v9017_v25 = vld [vmem:[#allocation10 + $0x4d8] sm:$0xf0]  ;;  %v9579_v6 = vld [vmem:[#allocation10 + $0x4b4] sm:$0xf]  ;;  %v8799_v13 = vld [vmem:[#allocation10 + $0x320] sm:$0xf] }
 0x48a   : > { %v9020_v26 = vor.u32 %v9583_v53, %v9017_v25  ;;  %v8863_v2 = vld [vmem:[#allocation10 + $0x3a0] sm:$0xf]  ;;  %v8329_v21 = vld [vmem:[#allocation6 + $0x3c] sm:$0xf0]  ;;  %v9577_v48 = vld [vmem:[#allocation10 + $0x4a4] sm:$0xf] }
 0x48b   : > { %v11164_v15 = vmax.f32 %v5224_v63, %v5232_v60  ;;  %v8904_v60 = vor.u32 %v9556_v17, %v8903_v40  ;;  %v9033_v63 = vld [vmem:[#allocation10 + $0x4f8] sm:$0xf0]  ;;  %v5337_v17 = vld [vmem:[#allocation5 + $0x24] sm:$0xff]  ;;  %v9409_v39 = vld [vmem:[#allocation6 + $0x14] sm:$0xf] }
 0x48c   : > { %v9036_v8 = vor.u32 %v9587_v1, %v9033_v63  ;;  %v5339_v37 = vpack.c.bf16 %v5337_v17, %v5337_v17  ;;  %v9532_v1 = vld [vmem:[#allocation10 + $0x334] sm:$0xf0]  ;;  %v8871_v63 = vld [vmem:[#allocation10 + $0x3b0] sm:$0xf]  ;;  %v9575_v12 = vld [vmem:[#allocation10 + $0x494] sm:$0xf]  ;;  %v8332_v29 = vor.u32 %v9409_v39, %v8329_v21 }
 0x48d   : > { %5244 = vst [vmem:[#allocation5 + $0x2d] sm:$0xff] %v11164_v15  ;;  %6710 = vmatpush.bf16.msra.mxu2 %v8904_v60  ;;  %6729 = vmatpush.bf16.msra.mxu3 %v8968_v58  ;;  %v8791_v56 = vld [vmem:[#allocation10 + $0x310] sm:$0xf]  ;;  %v9544_v53 = vld [vmem:[#allocation10 + $0x394] sm:$0xf0] }
 0x48e   : > { %6957 = vmatpush.bf16.msra.mxu0 %v9036_v8  ;;  %6692 = vmatpush.bf16.msrb.mxu1 %v8832_v51  ;;  %v9548_v8 = vld [vmem:[#allocation10 + $0x3b4] sm:$0xf0]  ;;  %v8936_v51 = vor.u32 %v9564_v42, %v8935_v46  ;;  %5341 = vst [vmem:[#allocation6 + $0x68] sm:$0xf] %v5339_v37  ;;  %v8919_v25 = vld [vmem:[#allocation10 + $0x410] sm:$0xf] }
 0x48f   : > { %v8872_v19 = vor.u32 %v9548_v8, %v8871_v63  ;;  %v9560_v43 = vld [vmem:[#allocation10 + $0x414] sm:$0xf0]  ;;  %v9558_v17 = vld [vmem:[#allocation10 + $0x404] sm:$0xf0]  ;;  %v8977_v37 = vld [vmem:[#allocation10 + $0x488] sm:$0xf0] }
 0x490   : > { %v5289_v8 = vld [vmem:[#allocation5 + $0x7] sm:$0xff] }
 0x491   : > { %6711 = vmatpush.bf16.msra.mxu2 %v8896_v33  ;;  %6730 = vmatpush.bf16.msra.mxu3 %v8960_v44  ;;  %v9001_v33 = vld [vmem:[#allocation10 + $0x4b8] sm:$0xf0]  ;;  %v8321_v44 = vld [vmem:[#allocation6 + $0x34] sm:$0xf0]  ;;  %v5291_v46 = vpack.c.bf16 %v5289_v8, %v5289_v8  ;;  %v9600_v39 = vld [vmem:[#allocation10 + $0x554] sm:$0xf0] }
 0x492   : > { %6958 = vmatpush.bf16.msra.mxu0 %v9028_v0  ;;  %6693 = vmatpush.bf16.msrb.mxu1 %v8824_v9  ;;  %v9004_v59 = vor.u32 %v9579_v6, %v9001_v33  ;;  %v9414_v0 = vld [vmem:[#allocation6 + $0x38] sm:$0xf0]  ;;  %v9408_v9 = vld [vmem:[#allocation6 + $0xc] sm:$0xf]  ;;  %v9031_v6 = vld [vmem:[#allocation10 + $0x4f0] sm:$0xf] }
 0x493   : > { %v9588_v33 = vld [vmem:[#allocation10 + $0x4f4] sm:$0xf0]  ;;  %5293 = vst [vmem:[#allocation6 + $0x1c] sm:$0xf] %v5291_v46 }
 0x494   : > { %v5314_v55 = vld [vmem:[#allocation5 + $0x28] sm:$0xff]  ;;  %v5362_v46 = vld [vmem:[#allocation5 + $0x30] sm:$0xff] }
 0x495   : > { %v5320_v27 = vld [vmem:[#allocation5 + $0x29] sm:$0xff]  ;;  %v11169_v30 = vpack.c.bf16 %v5314_v55, %v5314_v55  ;;  %6712 = vmatpush.bf16.msra.mxu2 %v8888_v24  ;;  %v9009_v55 = vld [vmem:[#allocation10 + $0x4c8] sm:$0xf0]  ;;  %6731 = vmatpush.bf16.msra.mxu3 %v8952_v16 }
 0x496   : > { %v5326_v62 = vld [vmem:[#allocation5 + $0x2a] sm:$0xff]  ;;  %v11171_v32 = vpack.c.bf16 %v5320_v27, %v5320_v27  ;;  %6959 = vmatpush.bf16.msra.mxu0 %v9020_v26  ;;  %v5346_v27 = vpack.c.bf16 %v11164_v15, %v11164_v15  ;;  %6694 = vmatpush.bf16.msrb.mxu1 %v8816_v34  ;;  %v9012_v54 = vor.u32 %v9581_v22, %v9009_v55 }
 0x497   : > { %v5328_v50 = vpack.c.bf16 %v5326_v62, %v5326_v62  ;;  %5318 = vst [vmem:[#allocation6 + $0x84] sm:$0xf] %v11169_v30  ;;  %v8944_v62 = vor.u32 %v9566_v49, %v8943_v35  ;;  %v5332_v40 = vld [vmem:[#allocation5 + $0x2b] sm:$0xff]  ;;  %v8808_v15 = vor.u32 %v9532_v1, %v8807_v14  ;;  %v11187_v26 = vor.u32 %v9408_v9, %v8321_v44  ;;  %v9095_v44 = vld [vmem:[#allocation10 + $0x570] sm:$0xf] }
 0x498   : > { %5324 = vst [vmem:[#allocation6 + $0x88] sm:$0xf] %v11171_v32  ;;  %v5334_v7 = vpack.c.bf16 %v5332_v40, %v5332_v40  ;;  %v5338_v60 = vld [vmem:[#allocation5 + $0x2c] sm:$0xff] }
 0x499   : > { %5330 = vst [vmem:[#allocation6 + $0x8c] sm:$0xf] %v5328_v50  ;;  %v5331_v50 = vld [vmem:[#allocation5 + $0x23] sm:$0xff]  ;;  %6713 = vmatpush.bf16.msra.mxu2 %v8880_v28  ;;  %v5340_v58 = vpack.c.bf16 %v5338_v60, %v5338_v60  ;;  %6732 = vmatpush.bf16.msra.mxu3 %v8944_v62  ;;  %v8327_v16 = vld [vmem:[#allocation6 + $0x10] sm:$0xf]  ;;  %v8920_v28 = vor.u32 %v9560_v43, %v8919_v25 }
 0x49a   : > { %v5333_v52 = vpack.c.bf16 %v5331_v50, %v5331_v50  ;;  %5348 = vst [vmem:[#allocation6 + $0x98] sm:$0xf] %v5346_v27  ;;  %6960 = vmatpush.bf16.msra.mxu0 %v9012_v54  ;;  %6695 = vmatpush.bf16.msrb.mxu1 %v8808_v15  ;;  %v5283_v24 = vld [vmem:[#allocation5 + $0x6] sm:$0xff]  ;;  %v11189_v35 = vor.u32 %v9414_v0, %v8327_v16  ;;  %v8783_v22 = vld [vmem:[#allocation10 + $0x300] sm:$0xf] }
 0x49b   : > { %5336 = vst [vmem:[#allocation6 + $0x90] sm:$0xf] %v5334_v7  ;;  %v8985_v49 = vld [vmem:[#allocation10 + $0x498] sm:$0xf0]  ;;  %v5285_v55 = vpack.c.bf16 %v5283_v24, %v5283_v24  ;;  %v9526_v62 = vld [vmem:[#allocation10 + $0x304] sm:$0xf0] }
 0x49c   : > { %5335 = vst [vmem:[#allocation6 + $0x64] sm:$0xf] %v5333_v52  ;;  %v8988_v27 = vor.u32 %v9575_v12, %v8985_v49  ;;  %v8847_v54 = vld [vmem:[#allocation10 + $0x380] sm:$0xf]  ;;  %v9542_v50 = vld [vmem:[#allocation10 + $0x384] sm:$0xf0]  ;;  %v8784_v52 = vor.u32 %v9526_v62, %v8783_v22 }
 0x49d   : > { %6714 = vmatpush.bf16.msra.mxu2 %v8872_v19  ;;  %5342 = vst [vmem:[#allocation6 + $0x94] sm:$0xf] %v5340_v58  ;;  %6733 = vmatpush.bf16.msra.mxu3 %v8936_v51  ;;  %v8911_v40 = vld [vmem:[#allocation10 + $0x400] sm:$0xf]  ;;  %v8848_v7 = vor.u32 %v9542_v50, %v8847_v54  ;;  %v9573_v60 = vld [vmem:[#allocation10 + $0x484] sm:$0xf] }
 0x49e   : > { %v9423_v4 = vld [vmem:[#allocation6 + $0x80] sm:$0xf0]  ;;  %6961 = vmatpush.bf16.msra.mxu0 %v9004_v59  ;;  %v5284_v14 = vld [vmem:[#allocation5 + $0xe] sm:$0xff]  ;;  %v8912_v58 = vor.u32 %v9558_v17, %v8911_v40  ;;  %v8980_v1 = vor.u32 %v9573_v60, %v8977_v37  ;;  %5287 = vst [vmem:[#allocation6 + $0x18] sm:$0xf] %v5285_v55  ;;  %v9032_v59 = vor.u32 %v9588_v33, %v9031_v6 }
 0x49f   : > { %v11177_v31 = vor.u32 %v9423_v4, %v8355_v3  ;;  %v8357_v20 = vld [vmem:[#allocation6 + $0x84] sm:$0xf0]  ;;  %v9530_v3 = vld [vmem:[#allocation10 + $0x324] sm:$0xf0]  ;;  %v8927_v4 = vld [vmem:[#allocation10 + $0x420] sm:$0xf]  ;;  %v5286_v63 = vpack.c.bf16 %v5284_v14, %v5284_v14  ;;  %v5364_v33 = vpack.c.bf16 %v5362_v46, %v5362_v46 }
 0x4a0   : > { %v8360_v47 = vor.u32 %v9418_v11, %v8357_v20  ;;  %v9424_v23 = vld [vmem:[#allocation6 + $0x88] sm:$0xf0]  ;;  %v8800_v38 = vor.u32 %v9530_v3, %v8799_v13  ;;  %v9546_v11 = vld [vmem:[#allocation10 + $0x3a4] sm:$0xf0]  ;;  %v8993_v20 = vld [vmem:[#allocation10 + $0x4a8] sm:$0xf0] }
 0x4a1   : > { %6590 = vmatmul.bf16.gmra.mxu1 %v11177_v31  ;;  %v11180_v57 = vor.u32 %v9424_v23, %v8363_v61  ;;  %v8864_v10 = vor.u32 %v9546_v11, %v8863_v2  ;;  %v9562_v61 = vld [vmem:[#allocation10 + $0x424] sm:$0xf0]  ;;  %v8996_v36 = vor.u32 %v9577_v48, %v8993_v20  ;;  %v8855_v23 = vld [vmem:[#allocation10 + $0x390] sm:$0xf]  ;;  %v5290_v15 = vld [vmem:[#allocation5 + $0xf] sm:$0xff] }
 0x4a2   : > { %6609 = vmatmul.bf16.gmra.mxu2 %v8360_v47  ;;  %6818 = vmatmul.bf16.gmra.mxu0 %v8360_v47  ;;  %v8928_v18 = vor.u32 %v9562_v61, %v8927_v4  ;;  %v9528_v47 = vld [vmem:[#allocation10 + $0x314] sm:$0xf0]  ;;  %v8856_v34 = vor.u32 %v9544_v53, %v8855_v23  ;;  %v5296_v19 = vld [vmem:[#allocation5 + $0x10] sm:$0xff]  ;;  %v5292_v42 = vpack.c.bf16 %v5290_v15, %v5290_v15  ;;  %v9443_v11 = vld [vmem:[#allocation10 + $0x74] sm:$0xf] }
 0x4a3   : > { %6628 = vmatmul.bf16.gmra.mxu3 %v11180_v57  ;;  %6696 = vmatpush.bf16.msrb.mxu1 %v8800_v38  ;;  %v8792_v41 = vor.u32 %v9528_v47, %v8791_v56  ;;  %v5298_v51 = vpack.c.bf16 %v5296_v19, %v5296_v19  ;;  %5288 = vst [vmem:[#allocation6 + $0x44] sm:$0xf] %v5286_v63  ;;  %v5302_v13 = vld [vmem:[#allocation5 + $0x11] sm:$0xff]  ;;  %v9604_v38 = vld [vmem:[#allocation10 + $0x574] sm:$0xf0] }
 0x4a4   : > { %6715 = vmatpush.bf16.msra.mxu2 %v8864_v10  ;;  %6962 = vmatpush.bf16.msra.mxu0 %v8996_v36  ;;  %v5304_v3 = vpack.c.bf16 %v5302_v13, %v5302_v13  ;;  %5294 = vst [vmem:[#allocation6 + $0x48] sm:$0xf] %v5292_v42  ;;  %v9096_v2 = vor.u32 %v9604_v38, %v9095_v44  ;;  %v8457_v0 = vld [vmem:[#allocation10 + $0x78] sm:$0xf0]  ;;  %v9023_v10 = vld [vmem:[#allocation10 + $0x4e0] sm:$0xf] }
 0x4a5   : > { %6734 = vmatpush.bf16.msra.mxu3 %v8928_v18  ;;  %5300 = vst [vmem:[#allocation6 + $0x4c] sm:$0xf] %v5298_v51  ;;  %v8460_v21 = vor.u32 %v9443_v11, %v8457_v0  ;;  %v9586_v4 = vld [vmem:[#allocation10 + $0x4e4] sm:$0xf0]  ;;  %v9087_v9 = vld [vmem:[#allocation10 + $0x560] sm:$0xf] }
 0x4a6   : > { %5306 = vst [vmem:[#allocation6 + $0x50] sm:$0xf] %v5304_v3  ;;  %v9024_v61 = vor.u32 %v9586_v4, %v9023_v10  ;;  %v9602_v18 = vld [vmem:[#allocation10 + $0x564] sm:$0xf0]  ;;  %v8365_v48 = vld [vmem:[#allocation6 + $0x8c] sm:$0xf0] }
 0x4a7   : > { %6697 = vmatpush.bf16.msrb.mxu1 %v8792_v41  ;;  %v8373_v20 = vld [vmem:[#allocation6 + $0x94] sm:$0xf0]  ;;  %v9088_v24 = vor.u32 %v9602_v18, %v9087_v9  ;;  %v8449_v56 = vld [vmem:[#allocation10 + $0x68] sm:$0xf0]  ;;  %v9425_v47 = vld [vmem:[#allocation6 + $0x90] sm:$0xf0] }
 0x4a8   : > { %6716 = vmatpush.bf16.msra.mxu2 %v8856_v34  ;;  %6963 = vmatpush.bf16.msra.mxu0 %v8988_v27  ;;  %v9441_v36 = vld [vmem:[#allocation10 + $0x64] sm:$0xf]  ;;  %v9015_v16 = vld [vmem:[#allocation10 + $0x4d0] sm:$0xf]  ;;  %v9584_v53 = vld [vmem:[#allocation10 + $0x4d4] sm:$0xf0] }
 0x4a9   : > { %6735 = vmatpush.bf16.msra.mxu3 %v8920_v28  ;;  %v8452_v23 = vor.u32 %v9441_v36, %v8449_v56  ;;  %v9079_v25 = vld [vmem:[#allocation10 + $0x550] sm:$0xf]  ;;  %v9439_v41 = vld [vmem:[#allocation10 + $0x54] sm:$0xf]  ;;  %v9420_v43 = vld [vmem:[#allocation6 + $0x6c] sm:$0xf]  ;;  %v9016_v49 = vor.u32 %v9584_v53, %v9015_v16 }
 0x4aa   : > { %v9419_v34 = vld [vmem:[#allocation6 + $0x64] sm:$0xf]  ;;  %v8441_v12 = vld [vmem:[#allocation10 + $0x58] sm:$0xf0]  ;;  %v8371_v28 = vld [vmem:[#allocation6 + $0x68] sm:$0xf]  ;;  %v8376_v62 = vor.u32 %v9420_v43, %v8373_v20  ;;  %v9080_v54 = vor.u32 %v9600_v39, %v9079_v25 }
 0x4ab   : > { %6698 = vmatpush.bf16.msrb.mxu1 %v8784_v52  ;;  %v9007_v22 = vld [vmem:[#allocation10 + $0x4c0] sm:$0xf]  ;;  %v9582_v55 = vld [vmem:[#allocation10 + $0x4c4] sm:$0xf0]  ;;  %v11195_v27 = vor.u32 %v9425_v47, %v8371_v28  ;;  %v8444_v50 = vor.u32 %v9439_v41, %v8441_v12  ;;  %v5349_v17 = vld [vmem:[#allocation5 + $0x26] sm:$0xff] }
 0x4ac   : > { %6717 = vmatpush.bf16.msra.mxu2 %v8848_v7  ;;  %6964 = vmatpush.bf16.msra.mxu0 %v8980_v1  ;;  %v9071_v40 = vld [vmem:[#allocation10 + $0x540] sm:$0xf]  ;;  %v9598_v52 = vld [vmem:[#allocation10 + $0x544] sm:$0xf0]  ;;  %v9437_v7 = vld [vmem:[#allocation10 + $0x44] sm:$0xf]  ;;  %v5351_v60 = vpack.c.bf16 %v5349_v17, %v5349_v17  ;;  %v9008_v37 = vor.u32 %v9582_v55, %v9007_v22 }
 0x4ad   : > { %6736 = vmatpush.bf16.msra.mxu3 %v8912_v58  ;;  %v8433_v14 = vld [vmem:[#allocation10 + $0x48] sm:$0xf0]  ;;  %v5350_v58 = vld [vmem:[#allocation5 + $0x2e] sm:$0xff]  ;;  %5365 = vst [vmem:[#allocation6 + $0x78] sm:$0xf] %v11169_v30  ;;  %v9072_v63 = vor.u32 %v9598_v52, %v9071_v40 }
 0x4ae   : > { %v5355_v1 = vld [vmem:[#allocation5 + $0x27] sm:$0xff]  ;;  %v5352_v8 = vpack.c.bf16 %v5350_v58, %v5350_v58  ;;  %5353 = vst [vmem:[#allocation6 + $0x70] sm:$0xf] %v5351_v60  ;;  %v5356_v15 = vld [vmem:[#allocation5 + $0x2f] sm:$0xff]  ;;  %v8999_v42 = vld [vmem:[#allocation10 + $0x4b0] sm:$0xf]  ;;  %v8436_v51 = vor.u32 %v9437_v7, %v8433_v14 }
 0x4af   : > { %v5357_v19 = vpack.c.bf16 %v5355_v1, %v5355_v1  ;;  %v5358_v6 = vpack.c.bf16 %v5356_v15, %v5356_v15  ;;  %v5368_v13 = vld [vmem:[#allocation5 + $0x31] sm:$0xff]  ;;  %5371 = vst [vmem:[#allocation6 + $0x7c] sm:$0xf] %v11171_v32  ;;  %v9063_v3 = vld [vmem:[#allocation10 + $0x530] sm:$0xf] }
 0x4b0   : > { %5354 = vst [vmem:[#allocation6 + $0x9c] sm:$0xf] %v5352_v8  ;;  %v5370_v30 = vpack.c.bf16 %v5368_v13, %v5368_v13  ;;  %v9596_v44 = vld [vmem:[#allocation10 + $0x534] sm:$0xf0]  ;;  %v9435_v38 = vld [vmem:[#allocation10 + $0x34] sm:$0xf] }
 0x4b1   : > { %6642 = vmatmul.bf16.vlgmr.msra.gmra.mxu1 %v11187_v26  ;;  %5359 = vst [vmem:[#allocation6 + $0x74] sm:$0xf] %v5357_v19  ;;  %v9064_v0 = vor.u32 %v9596_v44, %v9063_v3  ;;  %v8991_v10 = vld [vmem:[#allocation10 + $0x4a0] sm:$0xf]  ;;  %v8335_v4 = vld [vmem:[#allocation6 + $0x18] sm:$0xf] }
 0x4b2   : > { %6661 = vmatmul.bf16.vlgmr.msrb.gmra.mxu2 %v11189_v35  ;;  %6889 = vmatmul.bf16.vlgmr.msrb.gmra.mxu0 %v8332_v29  ;;  %5360 = vst [vmem:[#allocation6 + $0xa0] sm:$0xf] %v5358_v6  ;;  %v9578_v32 = vld [vmem:[#allocation10 + $0x4a4] sm:$0xf0]  ;;  %v9055_v9 = vld [vmem:[#allocation10 + $0x520] sm:$0xf] }
 0x4b3   : > { %6680 = vmatmul.bf16.vlgmr.msrb.gmra.mxu3 %v8332_v29  ;;  %6748 = vmatpush.bf16.msra.mxu1 %v9032_v59  ;;  %v11193_v29 = vor.u32 %v9419_v34, %v8365_v48  ;;  %v9580_v59 = vld [vmem:[#allocation10 + $0x4b4] sm:$0xf0]  ;;  %5366 = vst [vmem:[#allocation6 + $0xa4] sm:$0xf] %v5364_v33  ;;  %v9410_v18 = vld [vmem:[#allocation6 + $0x1c] sm:$0xf]  ;;  %v8992_v20 = vor.u32 %v9578_v32, %v8991_v10 }
 0x4b4   : > { %6767 = vmatpush.bf16.msrb.mxu2 %v9096_v2  ;;  %6786 = vmatpush.bf16.msrb.mxu3 %v8460_v21  ;;  %v8425_v2 = vld [vmem:[#allocation10 + $0x38] sm:$0xf0]  ;;  %v9000_v11 = vor.u32 %v9580_v59, %v8999_v42  ;;  %5372 = vst [vmem:[#allocation6 + $0xa8] sm:$0xf] %v5370_v30  ;;  %v9411_v48 = vld [vmem:[#allocation6 + $0x24] sm:$0xf] }
 0x4b5   : > { %v8428_v21 = vor.u32 %v9435_v38, %v8425_v2  ;;  %v9433_v36 = vld [vmem:[#allocation10 + $0x24] sm:$0xf]  ;;  %v8337_v56 = vld [vmem:[#allocation6 + $0x44] sm:$0xf0]  ;;  %v8343_v47 = vld [vmem:[#allocation6 + $0x20] sm:$0xf] }
 0x4b6   : > { %v8417_v16 = vld [vmem:[#allocation10 + $0x28] sm:$0xf0]  ;;  %v8983_v53 = vld [vmem:[#allocation10 + $0x490] sm:$0xf]  ;;  %v8345_v25 = vld [vmem:[#allocation6 + $0x4c] sm:$0xf0]  ;;  %v11203_v22 = vor.u32 %v9410_v18, %v8337_v56 }
 0x4b7   : > { %6749 = vmatpush.bf16.msra.mxu1 %v9024_v61  ;;  %v9415_v61 = vld [vmem:[#allocation6 + $0x40] sm:$0xf0]  ;;  %v8420_v39 = vor.u32 %v9433_v36, %v8417_v16  ;;  %v9576_v41 = vld [vmem:[#allocation10 + $0x494] sm:$0xf0]  ;;  %v8975_v52 = vld [vmem:[#allocation10 + $0x480] sm:$0xf] }
 0x4b8   : > { %6768 = vmatpush.bf16.msrb.mxu2 %v9088_v24  ;;  %6787 = vmatpush.bf16.msrb.mxu3 %v8452_v23  ;;  %v9594_v24 = vld [vmem:[#allocation10 + $0x524] sm:$0xf0]  ;;  %v9047_v34 = vld [vmem:[#allocation10 + $0x510] sm:$0xf]  ;;  %v9416_v43 = vld [vmem:[#allocation6 + $0x48] sm:$0xf0]  ;;  %v8984_v55 = vor.u32 %v9576_v41, %v8983_v53 }
 0x4b9   : > { %v9056_v23 = vor.u32 %v9594_v24, %v9055_v9  ;;  %v9592_v12 = vld [vmem:[#allocation10 + $0x514] sm:$0xf0]  ;;  %v9431_v28 = vld [vmem:[#allocation10 + $0x14] sm:$0xf]  ;;  %v11208_v17 = vor.u32 %v9416_v43, %v8343_v47  ;;  %v9574_v7 = vld [vmem:[#allocation10 + $0x484] sm:$0xf0] }
 0x4ba   : > { %v9039_v60 = vld [vmem:[#allocation10 + $0x500] sm:$0xf]  ;;  %v9429_v14 = vld [vmem:[#allocation10 + $0x4] sm:$0xf]  ;;  %v8401_v58 = vld [vmem:[#allocation10 + $0x8] sm:$0xf0]  ;;  %v8976_v1 = vor.u32 %v9574_v7, %v8975_v52 }
 0x4bb   : > { %6750 = vmatpush.bf16.msra.mxu1 %v9016_v49  ;;  %v11201_v49 = vor.u32 %v9415_v61, %v8335_v4  ;;  %v5307_v8 = vld [vmem:[#allocation5 + $0xa] sm:$0xff]  ;;  %v5308_v15 = vld [vmem:[#allocation5 + $0x12] sm:$0xff]  ;;  %v9475_v19 = vld [vmem:[#allocation10 + $0x174] sm:$0xf]  ;;  %v8404_v46 = vor.u32 %v9429_v14, %v8401_v58 }
 0x4bc   : > { %6769 = vmatpush.bf16.msrb.mxu2 %v9080_v54  ;;  %6788 = vmatpush.bf16.msrb.mxu3 %v8444_v50  ;;  %v11205_v54 = vor.u32 %v9411_v48, %v8345_v25  ;;  %v9048_v50 = vor.u32 %v9592_v12, %v9047_v34  ;;  %v5309_v42 = vpack.c.bf16 %v5307_v8, %v5307_v8  ;;  %v8585_v6 = vld [vmem:[#allocation10 + $0x178] sm:$0xf0]  ;;  %v9491_v33 = vld [vmem:[#allocation10 + $0x1f4] sm:$0xf]  ;;  %v9473_v38 = vld [vmem:[#allocation10 + $0x164] sm:$0xf] }
 0x4bd   : > { %v8649_v59 = vld [vmem:[#allocation10 + $0x1f8] sm:$0xf0]  ;;  %v8588_v13 = vor.u32 %v9475_v19, %v8585_v6  ;;  %v9507_v3 = vld [vmem:[#allocation10 + $0x274] sm:$0xf]  ;;  %v9505_v10 = vld [vmem:[#allocation10 + $0x264] sm:$0xf] }
 0x4be   : > { %v8652_v30 = vor.u32 %v9491_v33, %v8649_v59  ;;  %v8713_v44 = vld [vmem:[#allocation10 + $0x278] sm:$0xf0]  ;;  %5311 = vst [vmem:[#allocation6 + $0x28] sm:$0xf] %v5309_v42  ;;  %v8705_v4 = vld [vmem:[#allocation10 + $0x268] sm:$0xf0] }
 0x4bf   : > { %6751 = vmatpush.bf16.msra.mxu1 %v9008_v37  ;;  %v9590_v37 = vld [vmem:[#allocation10 + $0x504] sm:$0xf0]  ;;  %v8716_v2 = vor.u32 %v9507_v3, %v8713_v44  ;;  %v8379_v9 = vld [vmem:[#allocation6 + $0x70] sm:$0xf]  ;;  %v8708_v18 = vor.u32 %v9505_v10, %v8705_v4  ;;  %v9487_v48 = vld [vmem:[#allocation10 + $0x1d4] sm:$0xf] }
 0x4c0   : > { %6770 = vmatpush.bf16.msrb.mxu2 %v9072_v63  ;;  %6789 = vmatpush.bf16.msrb.mxu3 %v8436_v51  ;;  %v9040_v63 = vor.u32 %v9590_v37, %v9039_v60  ;;  %v5310_v51 = vpack.c.bf16 %v5308_v15, %v5308_v15  ;;  %v9426_v24 = vld [vmem:[#allocation6 + $0x98] sm:$0xf0]  ;;  %v9421_v36 = vld [vmem:[#allocation6 + $0x74] sm:$0xf]  ;;  %v11216_v47 = vld [vmem:[%s11356_s6] sm:$0x3] }
 0x4c1   : > { %6647 = vmatmul.bf16.gmra.mxu1 %v11193_v29  ;;  %v9422_v56 = vld [vmem:[#allocation6 + $0x7c] sm:$0xf]  ;;  %v8387_v16 = vld [vmem:[#allocation6 + $0x78] sm:$0xf]  ;;  %v9471_v53 = vld [vmem:[#allocation10 + $0x154] sm:$0xf] }
 0x4c2   : > { %6666 = vmatmul.bf16.gmra.mxu2 %v11195_v27  ;;  %6894 = vmatmul.bf16.gmra.mxu0 %v8376_v62  ;;  %5312 = vst [vmem:[#allocation6 + $0x54] sm:$0xf] %v5310_v51  ;;  %v8569_v25 = vld [vmem:[#allocation10 + $0x158] sm:$0xf0]  ;;  %v9503_v34 = vld [vmem:[#allocation10 + $0x254] sm:$0xf] }
 0x4c3   : > { %6685 = vmatmul.bf16.gmra.mxu3 %v8376_v62  ;;  %6752 = vmatpush.bf16.msra.mxu1 %v9000_v11  ;;  %v8409_v62 = vld [vmem:[#allocation10 + $0x18] sm:$0xf0]  ;;  %v8577_v11 = vld [vmem:[#allocation10 + $0x168] sm:$0xf0]  ;;  %v9427_v12 = vld [vmem:[#allocation6 + $0xa0] sm:$0xf0] }
 0x4c4   : > { %6771 = vmatpush.bf16.msrb.mxu2 %v9064_v0  ;;  %6790 = vmatpush.bf16.msrb.mxu3 %v8428_v21  ;;  %v8412_v40 = vor.u32 %v9431_v28, %v8409_v62  ;;  %v9489_v0 = vld [vmem:[#allocation10 + $0x1e4] sm:$0xf]  ;;  %v8641_v21 = vld [vmem:[#allocation10 + $0x1e8] sm:$0xf0]  ;;  %v8580_v61 = vor.u32 %v9473_v38, %v8577_v11  ;;  %v8697_v43 = vld [vmem:[#allocation10 + $0x258] sm:$0xf0]  ;;  %v11218_v62 = vor.u32 %v9426_v24, %v8379_v9 }
 0x4c5   : > { %v8644_v32 = vor.u32 %v9489_v0, %v8641_v21  ;;  %v9485_v28 = vld [vmem:[#allocation10 + $0x1c4] sm:$0xf]  ;;  %v8700_v7 = vor.u32 %v9503_v34, %v8697_v43  ;;  %v8561_v37 = vld [vmem:[#allocation10 + $0x148] sm:$0xf0]  ;;  %v11225_v58 = vperm.slane %v11216_v47, 0  ;;  %v5373_v15 = vld [vmem:[#allocation5 + $0x2a] sm:$0xff] }
 0x4c6   : > { %v9469_v60 = vld [vmem:[#allocation10 + $0x144] sm:$0xf]  ;;  %v8689_v8 = vld [vmem:[#allocation10 + $0x248] sm:$0xf0]  ;;  %v5375_v42 = vpack.c.bf16 %v5373_v15, %v5373_v15  ;;  %v9467_v33 = vld [vmem:[#allocation10 + $0x134] sm:$0xf] }
 0x4c7   : > { %6753 = vmatpush.bf16.msra.mxu1 %v8992_v20  ;;  %v8633_v20 = vld [vmem:[#allocation10 + $0x1d8] sm:$0xf0]  ;;  %v9501_v14 = vld [vmem:[#allocation10 + $0x244] sm:$0xf]  ;;  %v8564_v6 = vor.u32 %v9469_v60, %v8561_v37  ;;  %v9483_v59 = vld [vmem:[#allocation10 + $0x1b4] sm:$0xf] }
 0x4c8   : > { %6772 = vmatpush.bf16.msrb.mxu2 %v9056_v23  ;;  %6791 = vmatpush.bf16.msrb.mxu3 %v8420_v39  ;;  %v8381_v23 = vld [vmem:[#allocation6 + $0x9c] sm:$0xf0]  ;;  %v8389_v39 = vld [vmem:[#allocation6 + $0xa4] sm:$0xf0]  ;;  %v8636_v41 = vor.u32 %v9487_v48, %v8633_v20  ;;  %v5374_v19 = vld [vmem:[#allocation5 + $0x32] sm:$0xff] }
 0x4c9   : > { %v11222_v52 = vor.u32 %v9422_v56, %v8389_v39  ;;  %v5376_v51 = vpack.c.bf16 %v5374_v19, %v5374_v19  ;;  %5377 = vst [vmem:[#allocation6 + $0x80] sm:$0xf] %v5375_v42  ;;  %v8617_v3 = vld [vmem:[#allocation10 + $0x1b8] sm:$0xf0]  ;;  %v9481_v21 = vld [vmem:[#allocation10 + $0x1a4] sm:$0xf] }
 0x4ca   : > { %v8620_v38 = vor.u32 %v9483_v59, %v8617_v3  ;;  %v8681_v11 = vld [vmem:[#allocation10 + $0x238] sm:$0xf0]  ;;  %v8609_v10 = vld [vmem:[#allocation10 + $0x1a8] sm:$0xf0]  ;;  %v9417_v43 = vld [vmem:[#allocation6 + $0x50] sm:$0xf0] }
 0x4cb   : > { %6754 = vmatpush.bf16.msra.mxu1 %v8984_v55  ;;  %v8625_v55 = vld [vmem:[#allocation10 + $0x1c8] sm:$0xf0]  ;;  %5378 = vst [vmem:[#allocation6 + $0xac] sm:$0xf] %v5376_v51  ;;  %v8612_v24 = vor.u32 %v9481_v21, %v8609_v10  ;;  %v8537_v34 = vld [vmem:[#allocation10 + $0x118] sm:$0xf0] }
 0x4cc   : > { %6773 = vmatpush.bf16.msrb.mxu2 %v9048_v50  ;;  %6792 = vmatpush.bf16.msrb.mxu3 %v8412_v40  ;;  %v8572_v50 = vor.u32 %v9471_v53, %v8569_v25  ;;  %v11220_v40 = vor.u32 %v9421_v36, %v8381_v23  ;;  %v8545_v48 = vld [vmem:[#allocation10 + $0x128] sm:$0xf0]  ;;  %v9497_v36 = vld [vmem:[#allocation10 + $0x224] sm:$0xf]  ;;  %v9479_v23 = vld [vmem:[#allocation10 + $0x194] sm:$0xf] }
 0x4cd   : > { %v8673_v56 = vld [vmem:[#allocation10 + $0x228] sm:$0xf0]  ;;  %v8351_v25 = vld [vmem:[#allocation6 + $0x28] sm:$0xf]  ;;  %v9493_v19 = vld [vmem:[#allocation10 + $0x204] sm:$0xf] }
 0x4ce   : > { %v8676_v39 = vor.u32 %v9497_v36, %v8673_v56  ;;  %v11236_v37 = vor.u32 %v9417_v43, %v8351_v25  ;;  %v9539_v51 = vld [vmem:[#allocation10 + $0x374] sm:$0xf]  ;;  %v8897_v21 = vld [vmem:[#allocation10 + $0x3e8] sm:$0xf0]  ;;  %v9569_v10 = vld [vmem:[#allocation10 + $0x464] sm:$0xf] }
 0x4cf   : > { %6755 = vmatpush.bf16.msra.mxu1 %v8976_v1  ;;  %v11228_v1 = vor.u32 %v9427_v12, %v8387_v16  ;;  %v8601_v16 = vld [vmem:[#allocation10 + $0x198] sm:$0xf0]  ;;  %v9571_v3 = vld [vmem:[#allocation10 + $0x474] sm:$0xf]  ;;  %v9549_v43 = vld [vmem:[#allocation10 + $0x3c4] sm:$0xf] }
 0x4d0   : > { %6774 = vmatpush.bf16.msrb.mxu2 %v9040_v63  ;;  %6793 = vmatpush.bf16.msrb.mxu3 %v8404_v46  ;;  %v8628_v63 = vor.u32 %v9485_v28, %v8625_v55  ;;  %v8604_v12 = vor.u32 %v9479_v23, %v8601_v16  ;;  %v9495_v28 = vld [vmem:[#allocation10 + $0x214] sm:$0xf]  ;;  %v8665_v55 = vld [vmem:[#allocation10 + $0x218] sm:$0xf0]  ;;  %v8395_v16 = vld [vmem:[#allocation6 + $0x80] sm:$0xf] }
 0x4d1   : > { %6699 = vmatmul.bf16.vlgmr.msrb.gmra.mxu1 %v11201_v49  ;;  %v9567_v36 = vld [vmem:[#allocation10 + $0x454] sm:$0xf]  ;;  %v8953_v56 = vld [vmem:[#allocation10 + $0x458] sm:$0xf0] }
 0x4d2   : > { %6718 = vmatmul.bf16.vlgmr.msra.gmra.mxu2 %v11203_v22  ;;  %6965 = vmatmul.bf16.vlgmr.msra.gmra.mxu0 %v11205_v54  ;;  %v9428_v25 = vld [vmem:[#allocation6 + $0xa8] sm:$0xf0] }
 0x4d3   : > { %6737 = vmatmul.bf16.vlgmr.msra.gmra.mxu3 %v11208_v17  ;;  %6824 = vmatpush.bf16.msrb.mxu1 %v8588_v13  ;;  %v8692_v13 = vor.u32 %v9501_v14, %v8689_v8  ;;  %v8668_v14 = vor.u32 %v9495_v28, %v8665_v55  ;;  %v8529_v8 = vld [vmem:[#allocation10 + $0x108] sm:$0xf0]  ;;  %v9565_v28 = vld [vmem:[#allocation10 + $0x444] sm:$0xf]  ;;  %v11241_v55 = vor.u32 %v9428_v25, %v8395_v16  ;;  %v9603_v25 = vld [vmem:[#allocation10 + $0x574] sm:$0xf] }
 0x4d4   : > { %6843 = vmatpush.bf16.msra.mxu2 %v8652_v30  ;;  %6862 = vmatpush.bf16.msra.mxu3 %v8716_v2  ;;  %v8553_v30 = vld [vmem:[#allocation10 + $0x138] sm:$0xf0]  ;;  %v9499_v2 = vld [vmem:[#allocation10 + $0x234] sm:$0xf] }
 0x4d5   : > { %v8684_v9 = vor.u32 %v9499_v2, %v8681_v11  ;;  %v9537_v2 = vld [vmem:[#allocation10 + $0x364] sm:$0xf]  ;;  %v8833_v11 = vld [vmem:[#allocation10 + $0x368] sm:$0xf0] }
 0x4d7   : > { %6825 = vmatpush.bf16.msrb.mxu1 %v8580_v61  ;;  %v8556_v61 = vor.u32 %v9467_v33, %v8553_v30  ;;  %v9555_v33 = vld [vmem:[#allocation10 + $0x3f4] sm:$0xf]  ;;  %v8905_v30 = vld [vmem:[#allocation10 + $0x3f8] sm:$0xf0] }
 0x4d8   : > { %6844 = vmatpush.bf16.msra.mxu2 %v8644_v32  ;;  %6863 = vmatpush.bf16.msra.mxu3 %v8708_v18  ;;  %v9465_v18 = vld [vmem:[#allocation10 + $0x124] sm:$0xf] }
 0x4d9   : > { %v8548_v53 = vor.u32 %v9465_v18, %v8545_v48  ;;  %v9535_v48 = vld [vmem:[#allocation10 + $0x354] sm:$0xf] }
 0x4db   : > { %6826 = vmatpush.bf16.msrb.mxu1 %v8572_v50  ;;  %v9477_v50 = vld [vmem:[#allocation10 + $0x184] sm:$0xf] }
 0x4dc   : > { %6845 = vmatpush.bf16.msra.mxu2 %v8636_v41  ;;  %6864 = vmatpush.bf16.msra.mxu3 %v8700_v7  ;;  %v9463_v41 = vld [vmem:[#allocation10 + $0x114] sm:$0xf]  ;;  %v8593_v7 = vld [vmem:[#allocation10 + $0x188] sm:$0xf0] }
 0x4dd   : > { %v8540_v60 = vor.u32 %v9463_v41, %v8537_v34  ;;  %v8596_v15 = vor.u32 %v9477_v50, %v8593_v7  ;;  %v9533_v41 = vld [vmem:[#allocation10 + $0x344] sm:$0xf]  ;;  %v8817_v34 = vld [vmem:[#allocation10 + $0x348] sm:$0xf0] }
 0x4de   : > { %v8820_v50 = vor.u32 %v9533_v41, %v8817_v34 }
 0x4df   : > { %v6586_v46 = vpop.f32.mrf.mxu1  ;;  %6827 = vmatpush.bf16.msrb.mxu1 %v8564_v6  ;;  %v8841_v6 = vld [vmem:[#allocation10 + $0x378] sm:$0xf0] }
 0x4e0   : > { %v6587_v44 = vadd.f32 %v6586_v46, %v11225_v58  ;;  %6846 = vmatpush.bf16.msra.mxu2 %v8628_v63  ;;  %6865 = vmatpush.bf16.msra.mxu3 %v8692_v13  ;;  %v9461_v63 = vld [vmem:[#allocation10 + $0x104] sm:$0xf]  ;;  %v8657_v46 = vld [vmem:[#allocation10 + $0x208] sm:$0xf0]  ;;  %v8844_v13 = vor.u32 %v9539_v51, %v8841_v6  ;;  %v8937_v51 = vld [vmem:[#allocation10 + $0x438] sm:$0xf0] }
 0x4e1   : > { %6704 = vmatmul.bf16.gmra.mxu1 %v11218_v62  ;;  %v8532_v42 = vor.u32 %v9461_v63, %v8529_v8  ;;  %v8660_v59 = vor.u32 %v9493_v19, %v8657_v46  ;;  %v9531_v63 = vld [vmem:[#allocation10 + $0x334] sm:$0xf]  ;;  %v8809_v8 = vld [vmem:[#allocation10 + $0x338] sm:$0xf0] }
 0x4e2   : > { %6723 = vmatmul.bf16.gmra.mxu2 %v11220_v40  ;;  %6970 = vmatmul.bf16.gmra.mxu0 %v11222_v52  ;;  %v8812_v19 = vor.u32 %v9531_v63, %v8809_v8  ;;  %v8873_v46 = vld [vmem:[#allocation10 + $0x3b8] sm:$0xf0]  ;;  %v9073_v63 = vld [vmem:[#allocation10 + $0x548] sm:$0xf0] }
 0x4e3   : > { %6742 = vmatmul.bf16.gmra.mxu3 %v11228_v1  ;;  %6828 = vmatpush.bf16.msrb.mxu1 %v8556_v61  ;;  %v8836_v61 = vor.u32 %v9537_v2, %v8833_v11  ;;  %v9527_v2 = vld [vmem:[#allocation10 + $0x314] sm:$0xf]  ;;  %v8793_v11 = vld [vmem:[#allocation10 + $0x318] sm:$0xf0] }
 0x4e4   : > { %6847 = vmatpush.bf16.msra.mxu2 %v8620_v38  ;;  %6866 = vmatpush.bf16.msra.mxu3 %v8684_v9  ;;  %v8889_v9 = vld [vmem:[#allocation10 + $0x3d8] sm:$0xf0] }
 0x4e6   : > { %v6605_v0 = vpop.f32.mrf.mxu2 }
 0x4e7   : > { %v6606_v4 = vadd.f32 %v6605_v0, %v6587_v44  ;;  %v6624_v32 = vpop.f32.mrf.mxu3  ;;  %6829 = vmatpush.bf16.msrb.mxu1 %v8548_v53  ;;  %v8969_v44 = vld [vmem:[#allocation10 + $0x478] sm:$0xf0]  ;;  %v9553_v0 = vld [vmem:[#allocation10 + $0x3e4] sm:$0xf]  ;;  %v6588_v34 = vpop.f32.mrf.mxu1 }
 0x4e8   : > { %6848 = vmatpush.bf16.msra.mxu2 %v8612_v24  ;;  %6867 = vmatpush.bf16.msra.mxu3 %v8676_v39  ;;  %v8972_v38 = vor.u32 %v9571_v3, %v8969_v44  ;;  %v8825_v24 = vld [vmem:[#allocation10 + $0x358] sm:$0xf0]  ;;  %v8956_v39 = vor.u32 %v9567_v36, %v8953_v56  ;;  %v9561_v3 = vld [vmem:[#allocation10 + $0x424] sm:$0xf]  ;;  %v8929_v44 = vld [vmem:[#allocation10 + $0x428] sm:$0xf0] }
 0x4e9   : > { %v11234_v20 = vadd.f32 %v6624_v32, %v6606_v4  ;;  %v8900_v4 = vor.u32 %v9553_v0, %v8897_v21  ;;  %v9551_v32 = vld [vmem:[#allocation10 + $0x3d4] sm:$0xf]  ;;  %v8828_v53 = vor.u32 %v9535_v48, %v8825_v24  ;;  %v8857_v21 = vld [vmem:[#allocation10 + $0x398] sm:$0xf0]  ;;  %v9541_v48 = vld [vmem:[#allocation10 + $0x384] sm:$0xf] }
 0x4ea   : > { %v8892_v23 = vor.u32 %v9551_v32, %v8889_v9  ;;  %v9543_v0 = vld [vmem:[#allocation10 + $0x394] sm:$0xf]  ;;  %v9525_v9 = vld [vmem:[#allocation10 + $0x304] sm:$0xf]  ;;  %v8849_v36 = vld [vmem:[#allocation10 + $0x388] sm:$0xf0] }
 0x4eb   : > { %6830 = vmatpush.bf16.msrb.mxu1 %v8540_v60  ;;  %v8945_v60 = vld [vmem:[#allocation10 + $0x448] sm:$0xf0]  ;;  %v9557_v56 = vld [vmem:[#allocation10 + $0x404] sm:$0xf]  ;;  %v8852_v16 = vor.u32 %v9541_v48, %v8849_v36 }
 0x4ec   : > { %6849 = vmatpush.bf16.msra.mxu2 %v8604_v12  ;;  %6868 = vmatpush.bf16.msra.mxu3 %v8668_v14  ;;  %v8881_v12 = vld [vmem:[#allocation10 + $0x3c8] sm:$0xf0]  ;;  %v8948_v14 = vor.u32 %v9565_v28, %v8945_v60 }
 0x4ed   : > { %v8884_v7 = vor.u32 %v9549_v43, %v8881_v12  ;;  %v9089_v43 = vld [vmem:[#allocation10 + $0x568] sm:$0xf0]  ;;  %v9599_v12 = vld [vmem:[#allocation10 + $0x554] sm:$0xf] }
 0x4ef   : > { %6831 = vmatpush.bf16.msrb.mxu1 %v8532_v42  ;;  %v9563_v42 = vld [vmem:[#allocation10 + $0x434] sm:$0xf]  ;;  %v6626_v60 = vpop.f32.mrf.mxu3 }
 0x4f0   : > { %6850 = vmatpush.bf16.msra.mxu2 %v8596_v15  ;;  %6869 = vmatpush.bf16.msra.mxu3 %v8660_v59  ;;  %v9547_v15 = vld [vmem:[#allocation10 + $0x3b4] sm:$0xf]  ;;  %v8801_v59 = vld [vmem:[#allocation10 + $0x328] sm:$0xf0] }
 0x4f1   : > { %6756 = vmatmul.bf16.vlgmr.msra.gmra.mxu1 %v11205_v54  ;;  %v8908_v54 = vor.u32 %v9555_v33, %v8905_v30  ;;  %v8876_v6 = vor.u32 %v9547_v15, %v8873_v46  ;;  %v8940_v33 = vor.u32 %v9563_v42, %v8937_v51  ;;  %v9595_v15 = vld [vmem:[#allocation10 + $0x534] sm:$0xf] }
 0x4f2   : > { %6775 = vmatmul.bf16.vlgmr.msrb.gmra.mxu2 %v11236_v37 }
 0x4f3   : > { %6794 = vmatmul.bf16.vlgmr.msrb.gmra.mxu3 %v11147_v5  ;;  %v8961_v5 = vld [vmem:[#allocation10 + $0x468] sm:$0xf0]  ;;  %6900 = vmatpush.bf16.msra.mxu1 %v8844_v13  ;;  %v9545_v13 = vld [vmem:[#allocation10 + $0x3a4] sm:$0xf] }
 0x4f4   : > { %6919 = vmatpush.bf16.msrb.mxu2 %v8908_v54  ;;  %6938 = vmatpush.bf16.msrb.mxu3 %v8972_v38  ;;  %v8964_v18 = vor.u32 %v9569_v10, %v8961_v5  ;;  %v8932_v38 = vor.u32 %v9561_v3, %v8929_v44  ;;  %v9559_v10 = vld [vmem:[#allocation10 + $0x414] sm:$0xf]  ;;  %v8921_v5 = vld [vmem:[#allocation10 + $0x418] sm:$0xf0] }
 0x4f5   : > { %v8924_v32 = vor.u32 %v9559_v10, %v8921_v5  ;;  %v9049_v3 = vld [vmem:[#allocation10 + $0x518] sm:$0xf0]  ;;  %v6589_v5 = vadd.f32 %v6588_v34, %v11225_v58 }
 0x4f7   : > { %6901 = vmatpush.bf16.msra.mxu1 %v8836_v61  ;;  %v8860_v61 = vor.u32 %v9543_v0, %v8857_v21  ;;  %v9589_v0 = vld [vmem:[#allocation10 + $0x504] sm:$0xf]  ;;  %v9041_v21 = vld [vmem:[#allocation10 + $0x508] sm:$0xf0] }
 0x4f8   : > { %6920 = vmatpush.bf16.msrb.mxu2 %v8900_v4  ;;  %6939 = vmatpush.bf16.msrb.mxu3 %v8964_v18  ;;  %v8796_v4 = vor.u32 %v9527_v2, %v8793_v11  ;;  %v8785_v18 = vld [vmem:[#allocation10 + $0x308] sm:$0xf0]  ;;  %v9044_v10 = vor.u32 %v9589_v0, %v9041_v21 }
 0x4f9   : > { %v8788_v24 = vor.u32 %v9525_v9, %v8785_v18 }
 0x4fb   : > { %6902 = vmatpush.bf16.msra.mxu1 %v8828_v53 }
 0x4fc   : > { %6921 = vmatpush.bf16.msrb.mxu2 %v8892_v23  ;;  %6940 = vmatpush.bf16.msrb.mxu3 %v8956_v39  ;;  %v8913_v23 = vld [vmem:[#allocation10 + $0x408] sm:$0xf0]  ;;  %v9097_v39 = vld [vmem:[#allocation10 + $0x578] sm:$0xf0] }
 0x4fd   : > { %v8916_v53 = vor.u32 %v9557_v56, %v8913_v23  ;;  %v9100_v41 = vor.u32 %v9603_v25, %v9097_v39 }
 0x4ff   : > { %6903 = vmatpush.bf16.msra.mxu1 %v8820_v50  ;;  %v9081_v50 = vld [vmem:[#allocation10 + $0x558] sm:$0xf0] }
 0x500   : > { %6922 = vmatpush.bf16.msrb.mxu2 %v8884_v7  ;;  %6941 = vmatpush.bf16.msrb.mxu3 %v8948_v14  ;;  %v9084_v7 = vor.u32 %v9599_v12, %v9081_v50 }
 0x501   : > { %6761 = vmatmul.bf16.gmra.mxu1 %v11222_v52  ;;  %v9529_v52 = vld [vmem:[#allocation10 + $0x324] sm:$0xf] }
 0x502   : > { %6780 = vmatmul.bf16.gmra.mxu2 %v11241_v55  ;;  %v8804_v30 = vor.u32 %v9529_v52, %v8801_v59 }
 0x503   : > { %6799 = vmatmul.bf16.gmra.mxu3 %v11177_v31  ;;  %6904 = vmatpush.bf16.msra.mxu1 %v8812_v19  ;;  %v8865_v31 = vld [vmem:[#allocation10 + $0x3a8] sm:$0xf0]  ;;  %v9065_v19 = vld [vmem:[#allocation10 + $0x538] sm:$0xf0] }
 0x504   : > { %6923 = vmatpush.bf16.msrb.mxu2 %v8876_v6  ;;  %6942 = vmatpush.bf16.msrb.mxu3 %v8940_v33  ;;  %v8868_v54 = vor.u32 %v9545_v13, %v8865_v31  ;;  %v9068_v42 = vor.u32 %v9595_v15, %v9065_v19  ;;  %v9593_v13 = vld [vmem:[#allocation10 + $0x524] sm:$0xf] }
 0x507   : > { %6905 = vmatpush.bf16.msra.mxu1 %v8804_v30  ;;  %v9057_v30 = vld [vmem:[#allocation10 + $0x528] sm:$0xf0] }
 0x508   : > { %6924 = vmatpush.bf16.msrb.mxu2 %v8868_v54  ;;  %6943 = vmatpush.bf16.msrb.mxu3 %v8932_v38  ;;  %v9060_v31 = vor.u32 %v9593_v13, %v9057_v30 }
 0x50b   : > { %6906 = vmatpush.bf16.msra.mxu1 %v8796_v4 }
 0x50c   : > { %6925 = vmatpush.bf16.msrb.mxu2 %v8860_v61  ;;  %6944 = vmatpush.bf16.msrb.mxu3 %v8924_v32 }
 0x50f   : > { %6907 = vmatpush.bf16.msra.mxu1 %v8788_v24 }
 0x510   : > { %6926 = vmatpush.bf16.msrb.mxu2 %v8852_v16  ;;  %6945 = vmatpush.bf16.msrb.mxu3 %v8916_v53 }
 0x511   : > { %6832 = vmatmul.bf16.vlgmr.msrb.gmra.mxu1 %v11151_v45  ;;  %v9601_v45 = vld [vmem:[#allocation10 + $0x564] sm:$0xf] }
 0x512   : > { %6851 = vmatmul.bf16.vlgmr.msra.gmra.mxu2 %v11187_v26  ;;  %v9092_v28 = vor.u32 %v9601_v45, %v9089_v43  ;;  %v6607_v26 = vpop.f32.mrf.mxu2 }
 0x513   : > { %6870 = vmatmul.bf16.vlgmr.msra.gmra.mxu3 %v11189_v35  ;;  %6976 = vmatpush.bf16.msrb.mxu1 %v9100_v41  ;;  %v9597_v35 = vld [vmem:[#allocation10 + $0x544] sm:$0xf]  ;;  %v6608_v61 = vadd.f32 %v6607_v26, %v6589_v5 }
 0x514   : > { %v9076_v8 = vor.u32 %v9597_v35, %v9073_v63  ;;  %v9611_v35 = vld [vmem:[%s11357_s7 + $0x30] sm:$0xff] }
 0x515   : > { %v6627_v48 = vadd.f32 %v6626_v60, %v6608_v61  ;;  %v9612_v60 = vld [vmem:[%s11357_s7 + $0x38] sm:$0xff] }
 0x516   : > { %7179 = vmatpush.bf16.msra.mxu2 %v9612_v60 }
 0x517   : > { %6977 = vmatpush.bf16.msrb.mxu1 %v9092_v28 }
 0x51a   : > { %7180 = vmatpush.bf16.msra.mxu2 %v9611_v35 }
 0x51b   : > { %6978 = vmatpush.bf16.msrb.mxu1 %v9084_v7 }
 0x51e   : > { %v6591_v14 = vpop.f32.mrf.mxu1 }
 0x51f   : > { %6979 = vmatpush.bf16.msrb.mxu1 %v9076_v8  ;;  %v6592_v46 = vadd.f32 %v6591_v14, %v11225_v58  ;;  %v6814_v8 = vpop.f32.mrf.mxu0 }
 0x521   : > { %6837 = vmatmul.bf16.gmra.mxu1 %v11180_v57  ;;  %v9591_v57 = vld [vmem:[#allocation10 + $0x514] sm:$0xf] }
 0x522   : > { %6856 = vmatmul.bf16.gmra.mxu2 %v11193_v29  ;;  %v9052_v29 = vor.u32 %v9591_v57, %v9049_v3 }
 0x523   : > { %6875 = vmatmul.bf16.gmra.mxu3 %v11195_v27  ;;  %6980 = vmatpush.bf16.msrb.mxu1 %v9068_v42 }
 0x525   : > { %v6610_v51 = vpop.f32.mrf.mxu2 }
 0x526   : > { %v6611_v6 = vadd.f32 %v6610_v51, %v6592_v46  ;;  %v6629_v33 = vpop.f32.mrf.mxu3  ;;  %v6593_v52 = vpop.f32.mrf.mxu1 }
 0x527   : > { %6981 = vmatpush.bf16.msrb.mxu1 %v9060_v31  ;;  %v6594_v27 = vadd.f32 %v6593_v52, %v11225_v58  ;;  %v11274_v31 = vperm.slane %v11216_v47, 1  ;;  %v6816_v0 = vpop.f32.mrf.mxu0 }
 0x528   : > { %v6630_v59 = vadd.f32 %v6629_v33, %v6611_v6 }
 0x52b   : > { %6982 = vmatpush.bf16.msrb.mxu1 %v9052_v29 }
 0x52d   : > { %v6612_v44 = vpop.f32.mrf.mxu2 }
 0x52e   : > { %v11254_v54 = vadd.f32 %v6612_v44, %v6594_v27  ;;  %v6631_v38 = vpop.f32.mrf.mxu3  ;;  %v6643_v2 = vpop.f32.mrf.mxu1 }
 0x52f   : > { %v6644_v11 = vadd.f32 %v6643_v2, %v11234_v20  ;;  %6983 = vmatpush.bf16.msrb.mxu1 %v9044_v10 }
 0x530   : > { %v6632_v6 = vadd.f32 %v6631_v38, %v11254_v54  ;;  %v9610_v38 = vld [vmem:[%s11357_s7 + $0x28] sm:$0xff] }
 0x531   : > { %6908 = vmatmul.bf16.vlgmr.msra.gmra.mxu1 %v11201_v49  ;;  %7181 = vmatpush.bf16.msra.mxu2 %v9610_v38 }
 0x532   : > { %6927 = vmatmul.bf16.vlgmr.msrb.gmra.mxu2 %v11203_v22 }
 0x533   : > { %6946 = vmatmul.bf16.vlgmr.msrb.gmra.mxu3 %v11208_v17 }
 0x535   : > { %v6662_v4 = vpop.f32.mrf.mxu2 }
 0x536   : > { %v6663_v32 = vadd.f32 %v6662_v4, %v6644_v11  ;;  %v6681_v9 = vpop.f32.mrf.mxu3  ;;  %v6645_v18 = vpop.f32.mrf.mxu1 }
 0x537   : > { %v6646_v20 = vadd.f32 %v6645_v18, %v6627_v48  ;;  %v9748_v48 = vmov 16.0  }
 0x538   : > { %v6682_v26 = vadd.f32 %v6681_v9, %v6663_v32  ;;  %v9609_v32 = vld [vmem:[%s11357_s7 + $0x20] sm:$0xff]  ;;  %9662 = vrcp.f32 %v9748_v48 }
 0x539   : > { %7182 = vmatpush.bf16.msra.mxu2 %v9609_v32 }
 0x53d   : > { %v6664_v24 = vpop.f32.mrf.mxu2 }
 0x53e   : > { %v6665_v36 = vadd.f32 %v6664_v24, %v6646_v20  ;;  %v6683_v56 = vpop.f32.mrf.mxu3  ;;  %v6648_v23 = vpop.f32.mrf.mxu1 }
 0x53f   : > { %v6649_v49 = vadd.f32 %v6648_v23, %v6630_v59  ;;  %v9608_v23 = vld [vmem:[%s11357_s7 + $0x18] sm:$0xff] }
 0x540   : > { %7183 = vmatpush.bf16.msra.mxu2 %v9608_v23 }
 0x541   : > { %6913 = vmatmul.bf16.gmra.mxu1 %v11218_v62 }
 0x542   : > { %6932 = vmatmul.bf16.gmra.mxu2 %v11220_v40 }
 0x543   : > { %6951 = vmatmul.bf16.gmra.mxu3 %v11228_v1 }
 0x545   : > { %v6667_v22 = vpop.f32.mrf.mxu2 }
 0x546   : > { %v6686_v17 = vpop.f32.mrf.mxu3  ;;  %v6650_v58 = vpop.f32.mrf.mxu1  ;;  %v6668_v59 = vadd.f32 %v6667_v22, %v6649_v49 }
 0x547   : > { %v6651_v13 = vadd.f32 %v6650_v58, %v6632_v6 }
 0x548   : > { %v6687_v21 = vadd.f32 %v6686_v17, %v6668_v59  ;;  %v11288_v17 = vpop.f32.mrf.mxu0 }
 0x54d   : > { %v6669_v16 = vpop.f32.mrf.mxu2 }
 0x54e   : > { %v6688_v53 = vpop.f32.mrf.mxu3  ;;  %v6700_v25 = vpop.f32.mrf.mxu1  ;;  %v6670_v29 = vadd.f32 %v6669_v16, %v6651_v13 }
 0x54f   : > { %v6701_v14 = vadd.f32 %v6700_v25, %v6682_v26  ;;  %v9663_v16 = vpop.eup %9662 }
 0x550   : > { %v6689_v4 = vadd.f32 %v6688_v53, %v6670_v29  ;;  %vm7022_vm3 = vweird.f32 %v9663_v16 }
 0x551   : > { %6984 = vmatmul.bf16.vlgmr.msrb.gmra.mxu1 %v11236_v37  ;;  %v6684_v37 = vadd.f32 %v6683_v56, %v6665_v36 }
 0x555   : > { %v6719_v39 = vpop.f32.mrf.mxu2 }
 0x556   : > { %v6738_v41 = vpop.f32.mrf.mxu3  ;;  %v6702_v34 = vpop.f32.mrf.mxu1  ;;  %v6720_v63 = vadd.f32 %v6719_v39, %v6701_v14  ;;  %v9607_v39 = vld [vmem:[%s11357_s7 + $0x10] sm:$0xff] }
 0x557   : > { %7184 = vmatpush.bf16.msra.mxu2 %v9607_v39 }
 0x558   : > { %v6739_v51 = vadd.f32 %v6738_v41, %v6720_v63  ;;  %v9605_v63 = vld [vmem:[%s11357_s7] sm:$0xff] }
 0x55d   : > { %v6721_v45 = vpop.f32.mrf.mxu2 }
 0x55e   : > { %v6740_v43 = vpop.f32.mrf.mxu3  ;;  %v6705_v12 = vpop.f32.mrf.mxu1 }
 0x55f   : > { %v6706_v61 = vadd.f32 %v6705_v12, %v6687_v21 }
 0x561   : > { %6989 = vmatmul.bf16.gmra.mxu1 %v11241_v55  ;;  %v6703_v55 = vadd.f32 %v6702_v34, %v6684_v37 }
 0x563   : > { %v6722_v19 = vadd.f32 %v6721_v45, %v6703_v55  ;;  %v6821_v55 = vpop.f32.mrf.mxu0 }
 0x565   : > { %v6724_v62 = vpop.f32.mrf.mxu2  ;;  %v6741_v33 = vadd.f32 %v6740_v43, %v6722_v19  ;;  %v7018_v43 = vmul.f32 16.0, %v9663_v16 }
 0x566   : > { %v6743_v40 = vpop.f32.mrf.mxu3  ;;  %v6707_v28 = vpop.f32.mrf.mxu1  ;;  %v6725_v9 = vadd.f32 %v6724_v62, %v6706_v61 }
 0x567   : > { %v6708_v18 = vadd.f32 %v6707_v28, %v6689_v4  ;;  %v7019_v14 = vsub.f32 1.0, %v7018_v43 }
 0x568   : > { %v6744_v49 = vadd.f32 %v6743_v40, %v6725_v9 }
 0x569   : > { %v7020_v19 = vmul.f32 %v9663_v16, %v7019_v14 }
 0x56b   : > { %v7021_v59 = vadd.f32 %v9663_v16, %v7020_v19  ;;  %v6890_v29 = vpop.f32.mrf.mxu0 }
 0x56d   : > { %v6726_v1 = vpop.f32.mrf.mxu2 }
 0x56e   : > { %v6745_v50 = vpop.f32.mrf.mxu3  ;;  %v6757_v7 = vpop.f32.mrf.mxu1  ;;  %v6727_v24 = vadd.f32 %v6726_v1, %v6708_v18  ;;  %v9606_v1 = vld [vmem:[%s11357_s7 + $0x8] sm:$0xff] }
 0x56f   : > { %v6758_v52 = vadd.f32 %v6757_v7, %v6739_v51  ;;  %7185 = vmatpush.bf16.msra.mxu2 %v9606_v1 }
 0x570   : > { %v6746_v53 = vadd.f32 %v6745_v50, %v6727_v24 }
 0x573   : > { %7186 = vmatpush.bf16.msra.mxu2 %v9605_v63  ;;  %v6892_v4 = vpop.f32.mrf.mxu0 }
 0x575   : > { %v6776_v15 = vpop.f32.mrf.mxu2 }
 0x576   : > { %v6795_v46 = vpop.f32.mrf.mxu3  ;;  %v6759_v42 = vpop.f32.mrf.mxu1  ;;  %v6777_v30 = vadd.f32 %v6776_v15, %v6758_v52 }
 0x577   : > { %v6760_v57 = vadd.f32 %v6759_v42, %v6741_v33  ;;  %v6796_v58 = vadd.f32 %v6795_v46, %v11274_v31 }
 0x578   : > { %v6995_v10 = vmax.f32 %v6777_v30, 0.0 }
 0x579   : > { %v6815_v62 = vadd.f32 %v6814_v8, %v6796_v58 }
 0x57b   : > { %v6895_v9 = vpop.f32.mrf.mxu0 }
 0x57d   : > { %v6778_v3 = vpop.f32.mrf.mxu2 }
 0x57e   : > { %v6779_v27 = vadd.f32 %v6778_v3, %v6760_v57  ;;  %v6797_v44 = vpop.f32.mrf.mxu3  ;;  %v6762_v2 = vpop.f32.mrf.mxu1 }
 0x57f   : > { %v6798_v11 = vadd.f32 %v6797_v44, %v11274_v31  ;;  %v6763_v25 = vadd.f32 %v6762_v2, %v6744_v49 }
 0x580   : > { %v6997_v54 = vmax.f32 %v6779_v27, 0.0  ;;  %v11300_v27 = vsel %vm7022_vm3, %v9663_v16, %v7021_v59 }
 0x581   : > { %v6817_v5 = vadd.f32 %v6816_v0, %v6798_v11 }
 0x582   : > { %v7003_v47 = vadd.f32 %v6997_v54, %v6995_v10 }
 0x583   : > { %v6897_v24 = vpop.f32.mrf.mxu0 }
 0x584   : > { %v7004_v22 = vrot.slane %v7003_v47, 4 }
 0x585   : > { %v6781_v20 = vpop.f32.mrf.mxu2 }
 0x586   : > { %v11283_v36 = vpop.f32.mrf.mxu3  ;;  %v6764_v56 = vpop.f32.mrf.mxu1  ;;  %v7005_v41 = vadd.f32 %v7004_v22, %v7003_v47  ;;  %v6782_v34 = vadd.f32 %v6781_v20, %v6763_v25 }
 0x587   : > { %v6765_v45 = vadd.f32 %v6764_v56, %v6746_v53 }
 0x588   : > { %v7006_v7 = vrot.slane %v7005_v41, 2  ;;  %v6999_v26 = vmax.f32 %v6782_v34, 0.0  ;;  %v6801_v34 = vadd.f32 %v11283_v36, %v11274_v31 }
 0x58a   : > { %v7007_v8 = vadd.f32 %v7006_v7, %v7005_v41  ;;  %v9619_v7 = vld [vmem:[%s11357_s7 + $0x70] sm:$0xff] }
 0x58b   : > { %v6966_v53 = vpop.f32.mrf.mxu0 }
 0x58c   : > { %v7008_v33 = vrot.slane %v7007_v8, 1 }
 0x58d   : > { %v6783_v12 = vpop.f32.mrf.mxu2 }
 0x58e   : > { %v6784_v40 = vadd.f32 %v6783_v12, %v6765_v45  ;;  %v6833_v28 = vpop.f32.mrf.mxu1  ;;  %v6802_v37 = vpop.f32.mrf.mxu3  ;;  %v7009_v57 = vadd.f32 %v7008_v33, %v7007_v8 }
 0x58f   : > { %v6834_v50 = vadd.f32 %v6833_v28, %v6815_v62  ;;  %v6803_v43 = vadd.f32 %v6802_v37, %v11274_v31  ;;  %v6820_v28 = vadd.f32 %v11288_v17, %v6801_v34 }
 0x590   : > { %v7001_v60 = vmax.f32 %v6784_v40, 0.0  ;;  %v7024_v0 = vmul.f32 %v11300_v27, %v7009_v57  ;;  %v9620_v40 = vld [vmem:[%s11357_s7 + $0x78] sm:$0xff] }
 0x591   : > { %7192 = vmatpush.bf16.msra.mxu3 %v9620_v40 }
 0x592   : > { %v7026_v35 = vadd.f32 %v7001_v60, %v6999_v26  ;;  %v6822_v60 = vadd.f32 %v6821_v55, %v6803_v43 }
 0x593   : > { %v6968_v8 = vpop.f32.mrf.mxu0 }
 0x594   : > { %v7027_v15 = vrot.slane %v7026_v35, 4 }
 0x595   : > { %v6852_v46 = vpop.f32.mrf.mxu2  ;;  %7193 = vmatpush.bf16.msra.mxu3 %v9619_v7 }
 0x596   : > { %v7028_v42 = vadd.f32 %v7027_v15, %v7026_v35  ;;  %v6835_v51 = vpop.f32.mrf.mxu1  ;;  %v6871_v30 = vpop.f32.mrf.mxu3  ;;  %v6853_v49 = vadd.f32 %v6852_v46, %v6834_v50 }
 0x597   : > { %v6836_v6 = vadd.f32 %v6835_v51, %v6817_v5 }
 0x598   : > { %v7029_v52 = vrot.slane %v7028_v42, 2  ;;  %v6872_v16 = vadd.f32 %v6871_v30, %v6853_v49 }
 0x59a   : > { %v7030_v13 = vadd.f32 %v7029_v52, %v7028_v42  ;;  %v6891_v45 = vadd.f32 %v6890_v29, %v6872_v16 }
 0x59c   : > { %v7031_v3 = vrot.slane %v7030_v13, 1 }
 0x59d   : > { %v6854_v2 = vpop.f32.mrf.mxu2 }
 0x59e   : > { %v7032_v44 = vadd.f32 %v7031_v3, %v7030_v13  ;;  %v6838_v11 = vpop.f32.mrf.mxu1  ;;  %v6873_v38 = vpop.f32.mrf.mxu3  ;;  %v6855_v22 = vadd.f32 %v6854_v2, %v6836_v6 }
 0x59f   : > { %v6839_v36 = vadd.f32 %v6838_v11, %v6820_v28  ;;  %v6971_v2 = vpop.f32.mrf.mxu0 }
 0x5a0   : > { %v7040_v21 = vmul.f32 %v7032_v44, %v11300_v27  ;;  %v6874_v25 = vadd.f32 %v6873_v38, %v6855_v22  ;;  %v9618_v44 = vld [vmem:[%s11357_s7 + $0x68] sm:$0xff] }
 0x5a1   : > { %7194 = vmatpush.bf16.msra.mxu3 %v9618_v44 }
 0x5a2   : > { %v7043_v10 = vsel %vm7042_vm4, %v7024_v0, %v7040_v21  ;;  %v6893_v62 = vadd.f32 %v6892_v4, %v6874_v25 }
 0x5a3   : > { %v7045_v54 = vpack.c.bf16 %v7043_v10, %v7043_v10 }
 0x5a5   : > { %7187 = vmatmul.bf16.vlgmr.msra.gmra.mxu2 %v7045_v54  ;;  %v6857_v61 = vpop.f32.mrf.mxu2  ;;  %v9617_v54 = vld [vmem:[%s11357_s7 + $0x60] sm:$0xff] }
 0x5a6   : > { %v6840_v5 = vpop.f32.mrf.mxu1  ;;  %v6876_v47 = vpop.f32.mrf.mxu3  ;;  %v6858_v37 = vadd.f32 %v6857_v61, %v6839_v36  ;;  %7195 = vmatpush.bf16.msra.mxu3 %v9617_v54  ;;  %v9616_v61 = vld [vmem:[%s11357_s7 + $0x58] sm:$0xff] }
 0x5a7   : > { %v6841_v35 = vadd.f32 %v6840_v5, %v6822_v60 }
 0x5a8   : > { %v6877_v46 = vadd.f32 %v6876_v47, %v6858_v37  ;;  %v9659_v37 = vld [vmem:[%s11358_s8] ss:$0 sm:$0xff] }
 0x5aa   : > { %v6896_v13 = vadd.f32 %v6895_v9, %v6877_v46  ;;  %7196 = vmatpush.bf16.msra.mxu3 %v9616_v61 }
 0x5ad   : > { %v6859_v18 = vpop.f32.mrf.mxu2 }
 0x5ae   : > { %v6909_v32 = vpop.f32.mrf.mxu1  ;;  %v6878_v20 = vpop.f32.mrf.mxu3  ;;  %v6860_v19 = vadd.f32 %v6859_v18, %v6841_v35 }
 0x5af   : > { %v6910_v12 = vadd.f32 %v6909_v32, %v6891_v45 }
 0x5b0   : > { %v6879_v51 = vadd.f32 %v6878_v20, %v6860_v19  ;;  %v6973_v20 = vpop.f32.mrf.mxu0 }
 0x5b2   : > { %v6898_v57 = vadd.f32 %v6897_v24, %v6879_v51 }
 0x5b5   : > { %v6928_v56 = vpop.f32.mrf.mxu2 }
 0x5b6   : > { %v6911_v48 = vpop.f32.mrf.mxu1  ;;  %v6947_v58 = vpop.f32.mrf.mxu3  ;;  %v6929_v1 = vadd.f32 %v6928_v56, %v6910_v12 }
 0x5b7   : > { %v6912_v50 = vadd.f32 %v6911_v48, %v6893_v62  ;;  %v9615_v48 = vld [vmem:[%s11357_s7 + $0x50] sm:$0xff] }
 0x5b8   : > { %v6948_v63 = vadd.f32 %v6947_v58, %v6929_v1  ;;  %7197 = vmatpush.bf16.msra.mxu3 %v9615_v48  ;;  %v9614_v58 = vld [vmem:[%s11357_s7 + $0x48] sm:$0xff] }
 0x5ba   : > { %v6967_v42 = vadd.f32 %v6966_v53, %v6948_v63 }
 0x5bc   : > { %7198 = vmatpush.bf16.msra.mxu3 %v9614_v58 }
 0x5bd   : > { %v6930_v39 = vpop.f32.mrf.mxu2 }
 0x5be   : > { %v6914_v23 = vpop.f32.mrf.mxu1  ;;  %v6949_v26 = vpop.f32.mrf.mxu3  ;;  %v6931_v14 = vadd.f32 %v6930_v39, %v6912_v50 }
 0x5bf   : > { %v6915_v55 = vadd.f32 %v6914_v23, %v6896_v13 }
 0x5c0   : > { %v6950_v17 = vadd.f32 %v6949_v26, %v6931_v14 }
 0x5c2   : > { %v6969_v33 = vadd.f32 %v6968_v8, %v6950_v17 }
 0x5c5   : > { %v6933_v15 = vpop.f32.mrf.mxu2 }
 0x5c6   : > { %v6916_v41 = vpop.f32.mrf.mxu1  ;;  %v6952_v52 = vpop.f32.mrf.mxu3  ;;  %v6934_v0 = vadd.f32 %v6933_v15, %v6915_v55  ;;  %v9660_v15 = vld [vmem:[%s11359_s9] ss:$0 sm:$0xff] }
 0x5c7   : > { %v6917_v21 = vadd.f32 %v6916_v41, %v6898_v57  ;;  %v9613_v41 = vld [vmem:[%s11357_s7 + $0x40] sm:$0xff] }
 0x5c8   : > { %v6953_v4 = vadd.f32 %v6952_v52, %v6934_v0  ;;  %7199 = vmatpush.bf16.msra.mxu3 %v9613_v41 }
 0x5ca   : > { %v6972_v18 = vadd.f32 %v6971_v2, %v6953_v4 }
 0x5cd   : > { %v6935_v11 = vpop.f32.mrf.mxu2 }
 0x5ce   : > { %v6985_v31 = vpop.f32.mrf.mxu1  ;;  %v6936_v38 = vadd.f32 %v6935_v11, %v6917_v21  ;;  %v6954_v47 = vpop.f32.mrf.mxu3 }
 0x5cf   : > { %v6986_v6 = vadd.f32 %v6985_v31, %v6967_v42  ;;  %v9661_v42 = vld [vmem:[#allocation7] ss:$0 sm:$0xff] }
 0x5d0   : > { %v6955_v32 = vadd.f32 %v6954_v47, %v6936_v38 }
 0x5d1   : > { %v6996_v3 = vmax.f32 %v6986_v6, 0.0 }
 0x5d2   : > { %v6974_v23 = vadd.f32 %v6973_v20, %v6955_v32 }
 0x5d6   : > { %v6987_v59 = vpop.f32.mrf.mxu1 }
 0x5d7   : > { %v6988_v30 = vadd.f32 %v6987_v59, %v6969_v33 }
 0x5d9   : > { %v6998_v29 = vmax.f32 %v6988_v30, 0.0 }
 0x5db   : > { %v7010_v10 = vadd.f32 %v6998_v29, %v6996_v3 }
 0x5dd   : > { %v7011_v9 = vrot.slane %v7010_v10, 4 }
 0x5de   : > { %v6990_v5 = vpop.f32.mrf.mxu1 }
 0x5df   : > { %v7012_v24 = vadd.f32 %v7011_v9, %v7010_v10  ;;  %v6991_v56 = vadd.f32 %v6990_v5, %v6972_v18 }
 0x5e1   : > { %v7013_v16 = vrot.slane %v7012_v24, 2  ;;  %v7000_v53 = vmax.f32 %v6991_v56, 0.0 }
 0x5e3   : > { %v7014_v34 = vadd.f32 %v7013_v16, %v7012_v24 }
 0x5e5   : > { %v7015_v12 = vrot.slane %v7014_v34, 1 }
 0x5e6   : > { %v6992_v49 = vpop.f32.mrf.mxu1 }
 0x5e7   : > { %v6993_v22 = vadd.f32 %v6992_v49, %v6974_v23  ;;  %v7016_v28 = vadd.f32 %v7015_v12, %v7014_v34 }
 0x5e9   : > { %v7002_v25 = vmax.f32 %v6993_v22, 0.0  ;;  %v7025_v7 = vmul.f32 %v11300_v27, %v7016_v28 }
 0x5eb   : > { %v7033_v39 = vadd.f32 %v7002_v25, %v7000_v53 }
 0x5ed   : > { %v7034_v45 = vrot.slane %v7033_v39, 4 }
 0x5ef   : > { %v7035_v43 = vadd.f32 %v7034_v45, %v7033_v39 }
 0x5f1   : > { %v7036_v62 = vrot.slane %v7035_v43, 2 }
 0x5f3   : > { %v7037_v40 = vadd.f32 %v7036_v62, %v7035_v43 }
 0x5f5   : > { %v7038_v1 = vrot.slane %v7037_v40, 1 }
 0x5f7   : > { %v7039_v50 = vadd.f32 %v7038_v1, %v7037_v40 }
 0x5f9   : > { %v7041_v26 = vmul.f32 %v7039_v50, %v11300_v27 }
 0x5fb   : > { %v7044_v36 = vsel %vm7042_vm4, %v7025_v7, %v7041_v26 }
 0x5fc   : > { %v7046_v60 = vpack.c.bf16 %v7044_v36, %v7044_v36 }
 0x5fe   : > { %7200 = vmatmul.bf16.vlgmr.msra.gmra.mxu3 %v7046_v60 }
 0x628   : > { %v7188_v14 = vpop.f32.mrf.mxu2 }
 0x629   : > { %v7189_v35 = vadd.f32 %v9659_v37, %v7188_v14 }
 0x630   : > { %v7190_v31 = vpop.f32.mrf.mxu2 }
 0x681   : > { %v7201_v63 = vpop.f32.mrf.mxu3 }
 0x682   : > { %v7202_v8 = vadd.f32 %v7201_v63, %v7189_v35 }
 0x684   : > { %v7205_v27 = vmax.f32 %v7202_v8, 0.0 }
 0x686   : > { %v7210_v19 = vmul.f32 %v9660_v15, %v7205_v27 }
 0x688   : > { %v7212_v17 = vsel %vm7211_vm5, %v7210_v19, 0.0 }
 0x689   : > { %v7203_v46 = vpop.f32.mrf.mxu3  ;;  %7213 = vadd.xlane.f32.xlu0 %v7212_v17 }
 0x6fc   : > { %v7214_v51 = vpop.xlane.xlu0 %7213 }
 0x6fd   : > { %v7219_v6 = vadd.f32 %v9661_v42, %v7214_v51 }
 0x6ff   : > { %7221 = vst.msk [vmem:[%s422_s22] sm:$0x3] %vm7220_vm6, %v7219_v6 }
 0x700 PF: > { %s25_s19 = sadd.s32 1, %s9738_s19  }
 0x701   : > { %p22_p8 = scmp.ge.s32.totalorder %s25_s19, 4  }
 0x703   :  { %24 = sbr.rel (!%p22_p8) target bundleno = 5 (0x5), region = 118 }
 0x708   :  { %7241 = vsyncpa [#allocation9], 1 }
 0x709   :  { %7243 = vsyncpa [#allocation9 + $0x1], 1 }
 0x70a   :  { %7244 = vsyncpa [#allocation11], 1 }

</bundles_post_ra>
